<compile_context>
chip_gen: v7x
topology: tpu7x:2x2x1
jax: 0.10.0
libtpu: 0.0.40
codegen_flags: <defaults>
</compile_context>

<pallas_src>
import functools

import jax
import jax.numpy as jnp
from jax.experimental import pallas as pl
from jax.experimental.pallas import tpu as pltpu

EMBEDDING_DIM = 64
NUM_IMAGE_EMBEDDINGS = 128
KSIZE = 5  # all convs use 5x5 kernels


def _round_up(x, m):
    return ((x + m - 1) // m) * m


# ----------------------------- Pallas kernels -----------------------------

def _mm_bias_kernel(x_ref, w_ref, b_ref, o_ref, *, relu):
    """Fused (tile of X) @ W + b, optional ReLU. X tile: (TM, K) bf16, W: (K, N) bf16, b: (1, N) f32."""
    acc = jnp.dot(x_ref[...], w_ref[...], preferred_element_type=jnp.float32)
    acc = acc + b_ref[...]
    if relu:
        acc = jnp.maximum(acc, 0.0)
    o_ref[...] = acc


def matmul_bias(x, w, b, *, relu):
    """y = relu?(x @ w + b). x: (M, K), w: (K, N), b: (N,).

    - bf16 MXU inputs, f32 accumulate + epilogue.
    - N is zero-padded to a multiple of 128 so output stores are lane dense (sliced back after).
    - M tile right-sized: one exact block for small M; a 2-way "parallel" split for large M
      (lets v7x's two TensorCores share the work; negligible overhead on v5e/v6e).
    """
    M, K = x.shape
    N = w.shape[1]
    Np = _round_up(N, 128)
    if Np != N:
        w = jnp.pad(w, ((0, 0), (0, Np - N)))
        b = jnp.pad(b, (0, Np - N))

    grid_m = 2 if M >= 512 else 1
    tm = _round_up(pl.cdiv(M, grid_m), 8) if grid_m > 1 else M
    Mp = grid_m * tm
    if Mp != M:
        x = jnp.pad(x, ((0, Mp - M), (0, 0)))

    x16 = x.astype(jnp.bfloat16)
    w16 = w.astype(jnp.bfloat16)
    b2 = b.reshape(1, Np).astype(jnp.float32)

    out = pl.pallas_call(
        functools.partial(_mm_bias_kernel, relu=relu),
        out_shape=jax.ShapeDtypeStruct((Mp, Np), jnp.float32),
        grid=(grid_m,),
        in_specs=[
            pl.BlockSpec((tm, K), lambda i: (i, 0)),
            pl.BlockSpec((K, Np), lambda i: (0, 0)),
            pl.BlockSpec((1, Np), lambda i: (0, 0)),
        ],
        out_specs=pl.BlockSpec((tm, Np), lambda i: (i, 0)),
        compiler_params=pltpu.CompilerParams(dimension_semantics=("parallel",)),
    )(x16, w16, b2)

    if Mp != M:
        out = out[:M]
    if Np != N:
        out = out[:, :N]
    return out


def _mm_vq_kernel(x_ref, w_ref, b_ref, e_ref, z_ref, idx_ref, zq_ref):
    """Last encoder conv matmul fused with the VQ bottleneck.

    z = relu(x @ w + b): (Nv, D) bottleneck features (f32).
    e: (D, Kc) codebook, kept in f32 (argmin must not move on near-ties).
    Squared distance ||z - e_k||^2 = ||z||^2 - 2 z.e_k + ||e_k||^2 (argmin unaffected by expansion).
    idx: (Nv, 1) first-minimum index (torch.argmin semantics); zq: (Nv, D) gathered codebook vectors.
    """
    z = jnp.dot(x_ref[...], w_ref[...], preferred_element_type=jnp.float32) + b_ref[...]
    z = jnp.maximum(z, 0.0)                                    # (Nv, D)
    e = e_ref[...]                                             # (D, Kc)
    z_sq = jnp.sum(z * z, axis=-1, keepdims=True)              # (Nv, 1)
    e_sq = jnp.sum(e * e, axis=0, keepdims=True)               # (1, Kc)
    ze = jnp.dot(z, e, preferred_element_type=jnp.float32)     # (Nv, Kc)
    d = z_sq - 2.0 * ze + e_sq
    dmin = jnp.min(d, axis=-1, keepdims=True)
    iota = jax.lax.broadcasted_iota(jnp.int32, d.shape, 1)
    idx = jnp.min(jnp.where(d <= dmin, iota, jnp.int32(d.shape[-1])), axis=-1, keepdims=True)
    onehot = (iota == idx).astype(jnp.float32)
    zq = jax.lax.dot_general(onehot, e, (((1,), (1,)), ((), ())),
                             preferred_element_type=jnp.float32)
    z_ref[...] = z
    idx_ref[...] = idx
    zq_ref[...] = zq


# ----------------------------- conv glue (im2col in XLA, matmul in Pallas) -----------------------------

def _extract_patches(x, k, stride, pad):
    """x: (B, H, W, C) NHWC -> (B*Ho*Wo, k*k*C) patches ordered (kh, kw, cin)."""
    if pad > 0:
        x = jnp.pad(x, ((0, 0), (pad, pad), (pad, pad), (0, 0)))
    B, Hp, Wp, C = x.shape
    Ho = (Hp - k) // stride + 1
    Wo = (Wp - k) // stride + 1
    cols = []
    for kh in range(k):
        for kw in range(k):
            cols.append(x[:, kh:kh + stride * (Ho - 1) + 1:stride,
                          kw:kw + stride * (Wo - 1) + 1:stride, :])
    patches = jnp.concatenate(cols, axis=-1)
    return patches.reshape(B * Ho * Wo, k * k * C), (B, Ho, Wo)


def conv2d(x, w_hwio, b, *, stride, pad, relu):
    """NHWC conv via im2col (bf16 patch matrix) + Pallas fused matmul/bias/ReLU."""
    kh, kw, cin, cout = w_hwio.shape
    patches, (B, Ho, Wo) = _extract_patches(x.astype(jnp.bfloat16), kh, stride, pad)
    w2 = w_hwio.reshape(kh * kw * cin, cout)
    y = matmul_bias(patches, w2, b, relu=relu)
    return y.reshape(B, Ho, Wo, cout)


def conv_s2_vq(x, w_hwio, b, e):
    """Last encoder conv (k5, stride2, pad0) fused with the VQ bottleneck in one pallas_call."""
    kh, kw, cin, cout = w_hwio.shape
    patches, (B, Ho, Wo) = _extract_patches(x.astype(jnp.bfloat16), kh, 2, 0)
    Nv, K = patches.shape
    D = cout
    Kc = e.shape[1]
    w2 = w_hwio.reshape(K, D).astype(jnp.bfloat16)
    b2 = b.reshape(1, D).astype(jnp.float32)
    z, idx, zq = pl.pallas_call(
        _mm_vq_kernel,
        out_shape=(jax.ShapeDtypeStruct((Nv, D), jnp.float32),
                   jax.ShapeDtypeStruct((Nv, 1), jnp.int32),
                   jax.ShapeDtypeStruct((Nv, D), jnp.float32)),
        grid=(1,),
        in_specs=[pl.BlockSpec((Nv, K), lambda i: (0, 0)),
                  pl.BlockSpec((K, D), lambda i: (0, 0)),
                  pl.BlockSpec((1, D), lambda i: (0, 0)),
                  pl.BlockSpec((D, Kc), lambda i: (0, 0))],
        out_specs=(pl.BlockSpec((Nv, D), lambda i: (0, 0)),
                   pl.BlockSpec((Nv, 1), lambda i: (0, 0)),
                   pl.BlockSpec((Nv, D), lambda i: (0, 0))),
        compiler_params=pltpu.CompilerParams(dimension_semantics=("arbitrary",)),
    )(patches, w2, b2, e.astype(jnp.float32))
    return (z.reshape(B, Ho, Wo, D),
            idx[:, 0].reshape(B, Ho, Wo),
            zq.reshape(B, Ho, Wo, D))


# ----------------------------- transposed convs -----------------------------

def _subpixel_weights(w_t):
    """Rearrange a torch-layout (cin, cout, 5, 5) stride-2 ConvT weight into a single
    3x3 stride-1 conv weight (3, 3, cin, 4*cout) producing 4 phase-packed output planes."""
    w_pad = jnp.pad(w_t, ((0, 0), (0, 0), (0, 1), (0, 1)))      # (cin, cout, 6, 6)
    phases = []
    for ri in range(2):
        for rj in range(2):
            sub = w_pad[:, :, ri::2, rj::2][:, :, ::-1, ::-1]   # (cin, cout, 3, 3)
            phases.append(jnp.transpose(sub, (2, 3, 0, 1)))     # (3, 3, cin, cout)
    return jnp.concatenate(phases, axis=-1)                     # (3, 3, cin, 4*cout)


def conv_transpose2d_s2(x, w_t, b, *, relu):
    """PyTorch ConvTranspose2d(k=5, stride=2, padding=0), sub-pixel decomposition.

    One stride-1 3x3 conv over the (un-dilated) input produces all 4 output phases packed
    along channels; an interleaving scatter reassembles the (2H+3, 2W+3) output.
    """
    cout = w_t.shape[1]
    B, H, W, _ = x.shape
    w3 = _subpixel_weights(w_t)                                 # (3, 3, cin, 4*cout)
    b4 = jnp.tile(b, 4)
    y = conv2d(x, w3, b4, stride=1, pad=2, relu=relu)           # (B, H+2, W+2, 4*cout)
    Hout, Wout = 2 * H + 3, 2 * W + 3
    out = jnp.zeros((B, Hout, Wout, cout), jnp.float32)
    for ri in range(2):
        for rj in range(2):
            ph = (ri * 2 + rj) * cout
            out = out.at[:, ri::2, rj::2, :].set(
                y[:, :H + 2 - ri, :W + 2 - rj, ph:ph + cout])
    return out


def conv_transpose2d_s1p2(x, w_t, b, *, relu):
    """PyTorch ConvTranspose2d(k=5, stride=1, padding=2) == conv with flipped kernel, pad 2."""
    w_hwio = jnp.transpose(w_t[:, :, ::-1, ::-1], (2, 3, 0, 1))
    return conv2d(x, w_hwio, b, stride=1, pad=2, relu=relu)


def double_conv_apply(x, p):
    x = conv2d(x, p["w1"], p["b1"], stride=1, pad=2, relu=True)
    x = conv2d(x, p["w2"], p["b2"], stride=2, pad=0, relu=True)
    return x


def double_convT_apply(x, p):
    x = conv_transpose2d_s2(x, p["w1"], p["b1"], relu=True)
    x = conv_transpose2d_s1p2(x, p["w2"], p["b2"], relu=True)
    return x


# ----------------------------- parameters -----------------------------

def _uniform(key, shape, bound):
    return jax.random.uniform(key, shape, jnp.float32, -bound, bound)


def init_params(key):
    keys = jax.random.split(key, 26)
    it = iter(keys)

    def conv_pair(cin, cmid):
        # double_conv(cin, cmid): Conv2d(cin,cmid,5,s1,p2) ; Conv2d(cmid,cmid,5,s2,p0)
        b1 = 1.0 / (cin * KSIZE * KSIZE) ** 0.5
        b2 = 1.0 / (cmid * KSIZE * KSIZE) ** 0.5
        return {
            "w1": _uniform(next(it), (KSIZE, KSIZE, cin, cmid), b1),
            "b1": _uniform(next(it), (cmid,), b1),
            "w2": _uniform(next(it), (KSIZE, KSIZE, cmid, cmid), b2),
            "b2": _uniform(next(it), (cmid,), b2),
        }

    def convT_pair(cin, cout):
        # double_convT(cin, cout): ConvT(cin,cout,5,s2,p0) ; ConvT(cout,cout,5,s1,p2)
        b1 = 1.0 / (cout * KSIZE * KSIZE) ** 0.5
        b2 = 1.0 / (cout * KSIZE * KSIZE) ** 0.5
        return {
            "w1": _uniform(next(it), (cin, cout, KSIZE, KSIZE), b1),   # torch ConvT layout
            "b1": _uniform(next(it), (cout,), b1),
            "w2": _uniform(next(it), (cout, cout, KSIZE, KSIZE), b2),
            "b2": _uniform(next(it), (cout,), b2),
        }

    params = {
        "conv1": conv_pair(1, 64),
        "conv2": conv_pair(64, 128),
        "conv3": conv_pair(128, EMBEDDING_DIM),
        "convT3": convT_pair(EMBEDDING_DIM, 128),
        "convT2": convT_pair(128, 64),
        "convT1": convT_pair(64, 1),
        # codebook e: (EMBEDDING_DIM, NUM_IMAGE_EMBEDDINGS), kaiming_uniform-style bound
        "e": _uniform(next(it), (EMBEDDING_DIM, NUM_IMAGE_EMBEDDINGS),
                      (6.0 / NUM_IMAGE_EMBEDDINGS) ** 0.5),
    }
    return params


# ----------------------------- VQVAE forward -----------------------------

def vqvae_forward(params, x_nchw):
    """Returns (reconstructions, idxs, beforeBottleneck, afterBottleneck), all NCHW like PyTorch."""
    x = jnp.transpose(x_nchw, (0, 2, 3, 1)).astype(jnp.float32)   # NCHW -> NHWC

    # encoder (conv3's second conv is fused with the VQ bottleneck kernel)
    h = double_conv_apply(x, params["conv1"])
    h = double_conv_apply(h, params["conv2"])
    h = conv2d(h, params["conv3"]["w1"], params["conv3"]["b1"], stride=1, pad=2, relu=True)
    z, idxs, zq = conv_s2_vq(h, params["conv3"]["w2"], params["conv3"]["b2"], params["e"])
    # z  = beforeBottleneck (B, H3, W3, 64); zq = afterBottleneck (B, H3, W3, 64)

    # decoder (forward path uses afterBottleneck, matching decode(idxs) with beforeBottleneck=None)
    d = double_convT_apply(zq, params["convT3"])
    d = double_convT_apply(d, params["convT2"])
    recon = double_convT_apply(d, params["convT1"])

    to_nchw = lambda a: jnp.transpose(a, (0, 3, 1, 2))
    return to_nchw(recon), idxs, to_nchw(z), to_nchw(zq)


if __name__ == "__main__":
    key = jax.random.PRNGKey(0)
    pkey, xkey = jax.random.split(key)
    params = init_params(pkey)

    # 37x37 input: encoder 37 -> 17 -> 7 -> 2, decoder 2 -> 7 -> 17 -> 37 (exactly symmetric).
    x = jax.random.uniform(xkey, (2, 1, 37, 37), jnp.float32)

    fwd = jax.jit(vqvae_forward)
    recon, idxs, before, after = fwd(params, x)
    jax.block_until_ready((recon, idxs, before, after))

    assert recon.shape == (2, 1, 37, 37), recon.shape
    assert idxs.shape == (2, 2, 2), idxs.shape
    assert idxs.dtype == jnp.int32
    assert before.shape == (2, EMBEDDING_DIM, 2, 2), before.shape
    assert after.shape == (2, EMBEDDING_DIM, 2, 2), after.shape

    print("KERNEL_OK")
</pallas_src>

<mosaic_0001>
module attributes {stable_mosaic.version = 11 : i64} {
  func.func @_mm_bias_kernel(%arg0: i32, %arg1: memref<1376x25xbf16, #tpu.memory_space<vmem>>, %arg2: memref<25x128xbf16, #tpu.memory_space<vmem>>, %arg3: memref<1x128xf32, #tpu.memory_space<vmem>>, %arg4: memref<1376x128xf32, #tpu.memory_space<vmem>>) attributes {dimension_semantics = [#tpu.dimension_semantics<parallel>], iteration_bounds = array<i64: 2>, scalar_prefetch = 0 : i64, scratch_operands = 0 : i64, tpu.core_type = #tpu.core_type<tc>, window_params = [{transform_indices = @transform_0, window_bounds = array<i64: 1376, 25>}, {pipeline_mode = #tpu.pipeline_mode<synchronous>, transform_indices = @transform_1, window_bounds = array<i64: 25, 128>}, {pipeline_mode = #tpu.pipeline_mode<synchronous>, transform_indices = @transform_2, window_bounds = array<i64: 1, 128>}, {transform_indices = @transform_3, window_bounds = array<i64: 1376, 128>}]} {
    %c0 = arith.constant 0 : index
    %c0_0 = arith.constant 0 : index
    %0 = vector.load %arg1[%c0, %c0_0] : memref<1376x25xbf16, #tpu.memory_space<vmem>>, vector<1376x25xbf16>
    %c0_1 = arith.constant 0 : index
    %c0_2 = arith.constant 0 : index
    %1 = vector.load %arg2[%c0_1, %c0_2] : memref<25x128xbf16, #tpu.memory_space<vmem>>, vector<25x128xbf16>
    %cst = arith.constant dense<0.000000e+00> : vector<1376x128xf32>
    %2 = tpu.matmul %0, %1, %cst {dimension_numbers = #tpu.dot_dimension_numbers<[1], [0], [0], [1], [0, 0, 1, 1], [], []>} : vector<1376x25xbf16>, vector<25x128xbf16>, vector<1376x128xf32> -> vector<1376x128xf32>
    %c0_3 = arith.constant 0 : index
    %c0_4 = arith.constant 0 : index
    %3 = vector.load %arg3[%c0_3, %c0_4] : memref<1x128xf32, #tpu.memory_space<vmem>>, vector<1x128xf32>
    %4 = vector.broadcast %3 : vector<1x128xf32> to vector<1376x128xf32>
    %5 = arith.addf %2, %4 : vector<1376x128xf32>
    %cst_5 = arith.constant 0.000000e+00 : f32
    %6 = vector.broadcast %cst_5 : f32 to vector<1376x128xf32>
    %7 = arith.maximumf %5, %6 : vector<1376x128xf32>
    %c0_6 = arith.constant 0 : index
    %c0_7 = arith.constant 0 : index
    %8 = vector.load %arg4[%c0_6, %c0_7] : memref<1376x128xf32, #tpu.memory_space<vmem>>, vector<1376x128xf32>
    tpu.vector_store %arg4[%c0_6, %c0_7], %7 {strides = array<i32>} : memref<1376x128xf32, #tpu.memory_space<vmem>>, vector<1376x128xf32>,
    return
  }
  func.func @transform_0(%arg0: i32) -> (i32, i32) {
    %c0_i32 = arith.constant 0 : i32
    %c0_i32_0 = arith.constant 0 : i32
    return %arg0, %c0_i32 : i32, i32
  }
  func.func @transform_1(%arg0: i32) -> (i32, i32) {
    %c0_i32 = arith.constant 0 : i32
    %c0_i32_0 = arith.constant 0 : i32
    %c0_i32_1 = arith.constant 0 : i32
    return %c0_i32, %c0_i32_0 : i32, i32
  }
  func.func @transform_2(%arg0: i32) -> (i32, i32) {
    %c0_i32 = arith.constant 0 : i32
    %c0_i32_0 = arith.constant 0 : i32
    %c0_i32_1 = arith.constant 0 : i32
    return %c0_i32, %c0_i32_0 : i32, i32
  }
  func.func @transform_3(%arg0: i32) -> (i32, i32) {
    %c0_i32 = arith.constant 0 : i32
    %c0_i32_0 = arith.constant 0 : i32
    return %arg0, %c0_i32 : i32, i32
  }
}

module attributes {stable_mosaic.version = 11 : i64} {
  func.func @_mm_bias_kernel(%arg0: i32, %arg1: memref<296x1600xbf16, #tpu.memory_space<vmem>>, %arg2: memref<1600x128xbf16, #tpu.memory_space<vmem>>, %arg3: memref<1x128xf32, #tpu.memory_space<vmem>>, %arg4: memref<296x128xf32, #tpu.memory_space<vmem>>) attributes {dimension_semantics = [#tpu.dimension_semantics<parallel>], iteration_bounds = array<i64: 2>, scalar_prefetch = 0 : i64, scratch_operands = 0 : i64, tpu.core_type = #tpu.core_type<tc>, window_params = [{transform_indices = @transform_0, window_bounds = array<i64: 296, 1600>}, {pipeline_mode = #tpu.pipeline_mode<synchronous>, transform_indices = @transform_1, window_bounds = array<i64: 1600, 128>}, {pipeline_mode = #tpu.pipeline_mode<synchronous>, transform_indices = @transform_2, window_bounds = array<i64: 1, 128>}, {transform_indices = @transform_3, window_bounds = array<i64: 296, 128>}]} {
    %c0 = arith.constant 0 : index
    %c0_0 = arith.constant 0 : index
    %0 = vector.load %arg1[%c0, %c0_0] : memref<296x1600xbf16, #tpu.memory_space<vmem>>, vector<296x1600xbf16>
    %c0_1 = arith.constant 0 : index
    %c0_2 = arith.constant 0 : index
    %1 = vector.load %arg2[%c0_1, %c0_2] : memref<1600x128xbf16, #tpu.memory_space<vmem>>, vector<1600x128xbf16>
    %cst = arith.constant dense<0.000000e+00> : vector<296x128xf32>
    %2 = tpu.matmul %0, %1, %cst {dimension_numbers = #tpu.dot_dimension_numbers<[1], [0], [0], [1], [0, 0, 1, 1], [], []>} : vector<296x1600xbf16>, vector<1600x128xbf16>, vector<296x128xf32> -> vector<296x128xf32>
    %c0_3 = arith.constant 0 : index
    %c0_4 = arith.constant 0 : index
    %3 = vector.load %arg3[%c0_3, %c0_4] : memref<1x128xf32, #tpu.memory_space<vmem>>, vector<1x128xf32>
    %4 = vector.broadcast %3 : vector<1x128xf32> to vector<296x128xf32>
    %5 = arith.addf %2, %4 : vector<296x128xf32>
    %cst_5 = arith.constant 0.000000e+00 : f32
    %6 = vector.broadcast %cst_5 : f32 to vector<296x128xf32>
    %7 = arith.maximumf %5, %6 : vector<296x128xf32>
    %c0_6 = arith.constant 0 : index
    %c0_7 = arith.constant 0 : index
    %8 = vector.load %arg4[%c0_6, %c0_7] : memref<296x128xf32, #tpu.memory_space<vmem>>, vector<296x128xf32>
    tpu.vector_store %arg4[%c0_6, %c0_7], %7 {strides = array<i32>} : memref<296x128xf32, #tpu.memory_space<vmem>>, vector<296x128xf32>,
    return
  }
  func.func @transform_0(%arg0: i32) -> (i32, i32) {
    %c0_i32 = arith.constant 0 : i32
    %c0_i32_0 = arith.constant 0 : i32
    return %arg0, %c0_i32 : i32, i32
  }
  func.func @transform_1(%arg0: i32) -> (i32, i32) {
    %c0_i32 = arith.constant 0 : i32
    %c0_i32_0 = arith.constant 0 : i32
    %c0_i32_1 = arith.constant 0 : i32
    return %c0_i32, %c0_i32_0 : i32, i32
  }
  func.func @transform_2(%arg0: i32) -> (i32, i32) {
    %c0_i32 = arith.constant 0 : i32
    %c0_i32_0 = arith.constant 0 : i32
    %c0_i32_1 = arith.constant 0 : i32
    return %c0_i32, %c0_i32_0 : i32, i32
  }
  func.func @transform_3(%arg0: i32) -> (i32, i32) {
    %c0_i32 = arith.constant 0 : i32
    %c0_i32_0 = arith.constant 0 : i32
    return %arg0, %c0_i32 : i32, i32
  }
}

module attributes {stable_mosaic.version = 11 : i64} {
  func.func @_mm_bias_kernel(%arg0: i32, %arg1: memref<98x3200xbf16, #tpu.memory_space<vmem>>, %arg2: memref<3200x128xbf16, #tpu.memory_space<vmem>>, %arg3: memref<1x128xf32, #tpu.memory_space<vmem>>, %arg4: memref<98x128xf32, #tpu.memory_space<vmem>>) attributes {dimension_semantics = [#tpu.dimension_semantics<parallel>], iteration_bounds = array<i64: 1>, scalar_prefetch = 0 : i64, scratch_operands = 0 : i64, tpu.core_type = #tpu.core_type<tc>, window_params = [{transform_indices = @transform_0, window_bounds = array<i64: 98, 3200>}, {pipeline_mode = #tpu.pipeline_mode<synchronous>, transform_indices = @transform_1, window_bounds = array<i64: 3200, 128>}, {pipeline_mode = #tpu.pipeline_mode<synchronous>, transform_indices = @transform_2, window_bounds = array<i64: 1, 128>}, {transform_indices = @transform_3, window_bounds = array<i64: 98, 128>}]} {
    %c0 = arith.constant 0 : index
    %c0_0 = arith.constant 0 : index
    %0 = vector.load %arg1[%c0, %c0_0] : memref<98x3200xbf16, #tpu.memory_space<vmem>>, vector<98x3200xbf16>
    %c0_1 = arith.constant 0 : index
    %c0_2 = arith.constant 0 : index
    %1 = vector.load %arg2[%c0_1, %c0_2] : memref<3200x128xbf16, #tpu.memory_space<vmem>>, vector<3200x128xbf16>
    %cst = arith.constant dense<0.000000e+00> : vector<98x128xf32>
    %2 = tpu.matmul %0, %1, %cst {dimension_numbers = #tpu.dot_dimension_numbers<[1], [0], [0], [1], [0, 0, 1, 1], [], []>} : vector<98x3200xbf16>, vector<3200x128xbf16>, vector<98x128xf32> -> vector<98x128xf32>
    %c0_3 = arith.constant 0 : index
    %c0_4 = arith.constant 0 : index
    %3 = vector.load %arg3[%c0_3, %c0_4] : memref<1x128xf32, #tpu.memory_space<vmem>>, vector<1x128xf32>
    %4 = vector.broadcast %3 : vector<1x128xf32> to vector<98x128xf32>
    %5 = arith.addf %2, %4 : vector<98x128xf32>
    %cst_5 = arith.constant 0.000000e+00 : f32
    %6 = vector.broadcast %cst_5 : f32 to vector<98x128xf32>
    %7 = arith.maximumf %5, %6 : vector<98x128xf32>
    %c0_6 = arith.constant 0 : index
    %c0_7 = arith.constant 0 : index
    %8 = vector.load %arg4[%c0_6, %c0_7] : memref<98x128xf32, #tpu.memory_space<vmem>>, vector<98x128xf32>
    tpu.vector_store %arg4[%c0_6, %c0_7], %7 {strides = array<i32>} : memref<98x128xf32, #tpu.memory_space<vmem>>, vector<98x128xf32>,
    return
  }
  func.func @transform_0(%arg0: i32) -> (i32, i32) {
    %c0_i32 = arith.constant 0 : i32
    %c0_i32_0 = arith.constant 0 : i32
    return %arg0, %c0_i32 : i32, i32
  }
  func.func @transform_1(%arg0: i32) -> (i32, i32) {
    %c0_i32 = arith.constant 0 : i32
    %c0_i32_0 = arith.constant 0 : i32
    %c0_i32_1 = arith.constant 0 : i32
    return %c0_i32, %c0_i32_0 : i32, i32
  }
  func.func @transform_2(%arg0: i32) -> (i32, i32) {
    %c0_i32 = arith.constant 0 : i32
    %c0_i32_0 = arith.constant 0 : i32
    %c0_i32_1 = arith.constant 0 : i32
    return %c0_i32, %c0_i32_0 : i32, i32
  }
  func.func @transform_3(%arg0: i32) -> (i32, i32) {
    %c0_i32 = arith.constant 0 : i32
    %c0_i32_0 = arith.constant 0 : i32
    return %arg0, %c0_i32 : i32, i32
  }
}

module attributes {stable_mosaic.version = 11 : i64} {
  func.func @_mm_vq_kernel(%arg0: i32, %arg1: memref<8x1600xbf16, #tpu.memory_space<vmem>>, %arg2: memref<1600x64xbf16, #tpu.memory_space<vmem>>, %arg3: memref<1x64xf32, #tpu.memory_space<vmem>>, %arg4: memref<64x128xf32, #tpu.memory_space<vmem>>, %arg5: memref<8x64xf32, #tpu.memory_space<vmem>>, %arg6: memref<8x1xi32, #tpu.memory_space<vmem>>, %arg7: memref<8x64xf32, #tpu.memory_space<vmem>>) attributes {dimension_semantics = [#tpu.dimension_semantics<arbitrary>], iteration_bounds = array<i64: 1>, scalar_prefetch = 0 : i64, scratch_operands = 0 : i64, tpu.core_type = #tpu.core_type<tc>, window_params = [{pipeline_mode = #tpu.pipeline_mode<synchronous>, transform_indices = @transform_0, window_bounds = array<i64: 8, 1600>}, {pipeline_mode = #tpu.pipeline_mode<synchronous>, transform_indices = @transform_1, window_bounds = array<i64: 1600, 64>}, {pipeline_mode = #tpu.pipeline_mode<synchronous>, transform_indices = @transform_2, window_bounds = array<i64: 1, 64>}, {pipeline_mode = #tpu.pipeline_mode<synchronous>, transform_indices = @transform_3, window_bounds = array<i64: 64, 128>}, {pipeline_mode = #tpu.pipeline_mode<synchronous>, transform_indices = @transform_4, window_bounds = array<i64: 8, 64>}, {pipeline_mode = #tpu.pipeline_mode<synchronous>, transform_indices = @transform_5, window_bounds = array<i64: 8, 1>}, {pipeline_mode = #tpu.pipeline_mode<synchronous>, transform_indices = @transform_6, window_bounds = array<i64: 8, 64>}]} {
    %c0 = arith.constant 0 : index
    %c0_0 = arith.constant 0 : index
    %0 = vector.load %arg1[%c0, %c0_0] : memref<8x1600xbf16, #tpu.memory_space<vmem>>, vector<8x1600xbf16>
    %c0_1 = arith.constant 0 : index
    %c0_2 = arith.constant 0 : index
    %1 = vector.load %arg2[%c0_1, %c0_2] : memref<1600x64xbf16, #tpu.memory_space<vmem>>, vector<1600x64xbf16>
    %cst = arith.constant dense<0.000000e+00> : vector<8x64xf32>
    %2 = tpu.matmul %0, %1, %cst {dimension_numbers = #tpu.dot_dimension_numbers<[1], [0], [0], [1], [0, 0, 1, 1], [], []>} : vector<8x1600xbf16>, vector<1600x64xbf16>, vector<8x64xf32> -> vector<8x64xf32>
    %c0_3 = arith.constant 0 : index
    %c0_4 = arith.constant 0 : index
    %3 = vector.load %arg3[%c0_3, %c0_4] : memref<1x64xf32, #tpu.memory_space<vmem>>, vector<1x64xf32>
    %4 = vector.broadcast %3 : vector<1x64xf32> to vector<8x64xf32>
    %5 = arith.addf %2, %4 : vector<8x64xf32>
    %cst_5 = arith.constant 0.000000e+00 : f32
    %6 = vector.broadcast %cst_5 : f32 to vector<8x64xf32>
    %7 = arith.maximumf %5, %6 : vector<8x64xf32>
    %c0_6 = arith.constant 0 : index
    %c0_7 = arith.constant 0 : index
    %8 = vector.load %arg4[%c0_6, %c0_7] : memref<64x128xf32, #tpu.memory_space<vmem>>, vector<64x128xf32>
    %9 = arith.mulf %7, %7 : vector<8x64xf32>
    %cst_8 = arith.constant dense<0.000000e+00> : vector<8xf32>
    %10 = vector.multi_reduction <add>, %9, %cst_8 [1] : vector<8x64xf32> to vector<8xf32>
    %11 = vector.shape_cast %10 : vector<8xf32> to vector<8x1xf32>
    %12 = arith.mulf %8, %8 : vector<64x128xf32>
    %cst_9 = arith.constant dense<0.000000e+00> : vector<128xf32>
    %13 = vector.multi_reduction <add>, %12, %cst_9 [0] : vector<64x128xf32> to vector<128xf32>
    %14 = vector.shape_cast %13 : vector<128xf32> to vector<1x128xf32>
    %cst_10 = arith.constant dense<0.000000e+00> : vector<8x128xf32>
    %15 = tpu.matmul %7, %8, %cst_10 {dimension_numbers = #tpu.dot_dimension_numbers<[1], [0], [0], [1], [0, 0, 1, 1], [], []>} : vector<8x64xf32>, vector<64x128xf32>, vector<8x128xf32> -> vector<8x128xf32>
    %cst_11 = arith.constant 2.000000e+00 : f32
    %16 = vector.broadcast %cst_11 : f32 to vector<8x128xf32>
    %17 = arith.mulf %16, %15 : vector<8x128xf32>
    %18 = vector.broadcast %11 : vector<8x1xf32> to vector<8x128xf32>
    %19 = arith.subf %18, %17 : vector<8x128xf32>
    %20 = vector.broadcast %14 : vector<1x128xf32> to vector<8x128xf32>
    %21 = arith.addf %19, %20 : vector<8x128xf32>
    %cst_12 = arith.constant dense<0x7F800000> : vector<8xf32>
    %22 = vector.multi_reduction <minimumf>, %21, %cst_12 [1] : vector<8x128xf32> to vector<8xf32>
    %23 = vector.shape_cast %22 : vector<8xf32> to vector<8x1xf32>
    %24 = tpu.iota {dimensions = array<i32: 1>} : vector<8x128xi32>
    %25 = vector.broadcast %23 : vector<8x1xf32> to vector<8x128xf32>
    %26 = arith.cmpf ole, %21, %25 : vector<8x128xf32>
    %c128_i32 = arith.constant 128 : i32
    %27 = vector.broadcast %c128_i32 : i32 to vector<8x128xi32>
    %28 = arith.select %26, %24, %27 : vector<8x128xi1>, vector<8x128xi32>
    %cst_13 = arith.constant dense<2147483647> : vector<8xi32>
    %29 = vector.multi_reduction <minsi>, %28, %cst_13 [1] : vector<8x128xi32> to vector<8xi32>
    %30 = vector.shape_cast %29 : vector<8xi32> to vector<8x1xi32>
    %31 = vector.broadcast %30 : vector<8x1xi32> to vector<8x128xi32>
    %32 = arith.cmpi eq, %24, %31 : vector<8x128xi32>
    %33 = arith.extui %32 : vector<8x128xi1> to vector<8x128xi32>
    %34 = arith.sitofp %33 : vector<8x128xi32> to vector<8x128xf32>
    %cst_14 = arith.constant dense<0.000000e+00> : vector<8x64xf32>
    %35 = tpu.matmul %34, %8, %cst_14 {dimension_numbers = #tpu.dot_dimension_numbers<[1], [1], [0], [0], [0, 0, 1, 0], [], []>} : vector<8x128xf32>, vector<64x128xf32>, vector<8x64xf32> -> vector<8x64xf32>
    %c0_15 = arith.constant 0 : index
    %c0_16 = arith.constant 0 : index
    %36 = vector.load %arg5[%c0_15, %c0_16] : memref<8x64xf32, #tpu.memory_space<vmem>>, vector<8x64xf32>
    tpu.vector_store %arg5[%c0_15, %c0_16], %7 {strides = array<i32>} : memref<8x64xf32, #tpu.memory_space<vmem>>, vector<8x64xf32>,
    %c0_17 = arith.constant 0 : index
    %c0_18 = arith.constant 0 : index
    %37 = vector.load %arg6[%c0_17, %c0_18] : memref<8x1xi32, #tpu.memory_space<vmem>>, vector<8x1xi32>
    tpu.vector_store %arg6[%c0_17, %c0_18], %30 {strides = array<i32>} : memref<8x1xi32, #tpu.memory_space<vmem>>, vector<8x1xi32>,
    %c0_19 = arith.constant 0 : index
    %c0_20 = arith.constant 0 : index
    %38 = vector.load %arg7[%c0_19, %c0_20] : memref<8x64xf32, #tpu.memory_space<vmem>>, vector<8x64xf32>
    tpu.vector_store %arg7[%c0_19, %c0_20], %35 {strides = array<i32>} : memref<8x64xf32, #tpu.memory_space<vmem>>, vector<8x64xf32>,
    return
  }
  func.func @transform_0(%arg0: i32) -> (i32, i32) {
    %c0_i32 = arith.constant 0 : i32
    %c0_i32_0 = arith.constant 0 : i32
    %c0_i32_1 = arith.constant 0 : i32
    return %c0_i32, %c0_i32_0 : i32, i32
  }
  func.func @transform_1(%arg0: i32) -> (i32, i32) {
    %c0_i32 = arith.constant 0 : i32
    %c0_i32_0 = arith.constant 0 : i32
    %c0_i32_1 = arith.constant 0 : i32
    return %c0_i32, %c0_i32_0 : i32, i32
  }
  func.func @transform_2(%arg0: i32) -> (i32, i32) {
    %c0_i32 = arith.constant 0 : i32
    %c0_i32_0 = arith.constant 0 : i32
    %c0_i32_1 = arith.constant 0 : i32
    return %c0_i32, %c0_i32_0 : i32, i32
  }
  func.func @transform_3(%arg0: i32) -> (i32, i32) {
    %c0_i32 = arith.constant 0 : i32
    %c0_i32_0 = arith.constant 0 : i32
    %c0_i32_1 = arith.constant 0 : i32
    return %c0_i32, %c0_i32_0 : i32, i32
  }
  func.func @transform_4(%arg0: i32) -> (i32, i32) {
    %c0_i32 = arith.constant 0 : i32
    %c0_i32_0 = arith.constant 0 : i32
    %c0_i32_1 = arith.constant 0 : i32
    return %c0_i32, %c0_i32_0 : i32, i32
  }
  func.func @transform_5(%arg0: i32) -> (i32, i32) {
    %c0_i32 = arith.constant 0 : i32
    %c0_i32_0 = arith.constant 0 : i32
    %c0_i32_1 = arith.constant 0 : i32
    return %c0_i32, %c0_i32_0 : i32, i32
  }
  func.func @transform_6(%arg0: i32) -> (i32, i32) {
    %c0_i32 = arith.constant 0 : i32
    %c0_i32_0 = arith.constant 0 : i32
    %c0_i32_1 = arith.constant 0 : i32
    return %c0_i32, %c0_i32_0 : i32, i32
  }
}

module attributes {stable_mosaic.version = 11 : i64} {
  func.func @_mm_bias_kernel(%arg0: i32, %arg1: memref<32x576xbf16, #tpu.memory_space<vmem>>, %arg2: memref<576x512xbf16, #tpu.memory_space<vmem>>, %arg3: memref<1x512xf32, #tpu.memory_space<vmem>>, %arg4: memref<32x512xf32, #tpu.memory_space<vmem>>) attributes {dimension_semantics = [#tpu.dimension_semantics<parallel>], iteration_bounds = array<i64: 1>, scalar_prefetch = 0 : i64, scratch_operands = 0 : i64, tpu.core_type = #tpu.core_type<tc>, window_params = [{transform_indices = @transform_0, window_bounds = array<i64: 32, 576>}, {pipeline_mode = #tpu.pipeline_mode<synchronous>, transform_indices = @transform_1, window_bounds = array<i64: 576, 512>}, {pipeline_mode = #tpu.pipeline_mode<synchronous>, transform_indices = @transform_2, window_bounds = array<i64: 1, 512>}, {transform_indices = @transform_3, window_bounds = array<i64: 32, 512>}]} {
    %c0 = arith.constant 0 : index
    %c0_0 = arith.constant 0 : index
    %0 = vector.load %arg1[%c0, %c0_0] : memref<32x576xbf16, #tpu.memory_space<vmem>>, vector<32x576xbf16>
    %c0_1 = arith.constant 0 : index
    %c0_2 = arith.constant 0 : index
    %1 = vector.load %arg2[%c0_1, %c0_2] : memref<576x512xbf16, #tpu.memory_space<vmem>>, vector<576x512xbf16>
    %cst = arith.constant dense<0.000000e+00> : vector<32x512xf32>
    %2 = tpu.matmul %0, %1, %cst {dimension_numbers = #tpu.dot_dimension_numbers<[1], [0], [0], [1], [0, 0, 1, 1], [], []>} : vector<32x576xbf16>, vector<576x512xbf16>, vector<32x512xf32> -> vector<32x512xf32>
    %c0_3 = arith.constant 0 : index
    %c0_4 = arith.constant 0 : index
    %3 = vector.load %arg3[%c0_3, %c0_4] : memref<1x512xf32, #tpu.memory_space<vmem>>, vector<1x512xf32>
    %4 = vector.broadcast %3 : vector<1x512xf32> to vector<32x512xf32>
    %5 = arith.addf %2, %4 : vector<32x512xf32>
    %cst_5 = arith.constant 0.000000e+00 : f32
    %6 = vector.broadcast %cst_5 : f32 to vector<32x512xf32>
    %7 = arith.maximumf %5, %6 : vector<32x512xf32>
    %c0_6 = arith.constant 0 : index
    %c0_7 = arith.constant 0 : index
    %8 = vector.load %arg4[%c0_6, %c0_7] : memref<32x512xf32, #tpu.memory_space<vmem>>, vector<32x512xf32>
    tpu.vector_store %arg4[%c0_6, %c0_7], %7 {strides = array<i32>} : memref<32x512xf32, #tpu.memory_space<vmem>>, vector<32x512xf32>,
    return
  }
  func.func @transform_0(%arg0: i32) -> (i32, i32) {
    %c0_i32 = arith.constant 0 : i32
    %c0_i32_0 = arith.constant 0 : i32
    return %arg0, %c0_i32 : i32, i32
  }
  func.func @transform_1(%arg0: i32) -> (i32, i32) {
    %c0_i32 = arith.constant 0 : i32
    %c0_i32_0 = arith.constant 0 : i32
    %c0_i32_1 = arith.constant 0 : i32
    return %c0_i32, %c0_i32_0 : i32, i32
  }
  func.func @transform_2(%arg0: i32) -> (i32, i32) {
    %c0_i32 = arith.constant 0 : i32
    %c0_i32_0 = arith.constant 0 : i32
    %c0_i32_1 = arith.constant 0 : i32
    return %c0_i32, %c0_i32_0 : i32, i32
  }
  func.func @transform_3(%arg0: i32) -> (i32, i32) {
    %c0_i32 = arith.constant 0 : i32
    %c0_i32_0 = arith.constant 0 : i32
    return %arg0, %c0_i32 : i32, i32
  }
}

module attributes {stable_mosaic.version = 11 : i64} {
  func.func @_mm_bias_kernel(%arg0: i32, %arg1: memref<162x1152xbf16, #tpu.memory_space<vmem>>, %arg2: memref<1152x256xbf16, #tpu.memory_space<vmem>>, %arg3: memref<1x256xf32, #tpu.memory_space<vmem>>, %arg4: memref<162x256xf32, #tpu.memory_space<vmem>>) attributes {dimension_semantics = [#tpu.dimension_semantics<parallel>], iteration_bounds = array<i64: 1>, scalar_prefetch = 0 : i64, scratch_operands = 0 : i64, tpu.core_type = #tpu.core_type<tc>, window_params = [{transform_indices = @transform_0, window_bounds = array<i64: 162, 1152>}, {pipeline_mode = #tpu.pipeline_mode<synchronous>, transform_indices = @transform_1, window_bounds = array<i64: 1152, 256>}, {pipeline_mode = #tpu.pipeline_mode<synchronous>, transform_indices = @transform_2, window_bounds = array<i64: 1, 256>}, {transform_indices = @transform_3, window_bounds = array<i64: 162, 256>}]} {
    %c0 = arith.constant 0 : index
    %c0_0 = arith.constant 0 : index
    %0 = vector.load %arg1[%c0, %c0_0] : memref<162x1152xbf16, #tpu.memory_space<vmem>>, vector<162x1152xbf16>
    %c0_1 = arith.constant 0 : index
    %c0_2 = arith.constant 0 : index
    %1 = vector.load %arg2[%c0_1, %c0_2] : memref<1152x256xbf16, #tpu.memory_space<vmem>>, vector<1152x256xbf16>
    %cst = arith.constant dense<0.000000e+00> : vector<162x256xf32>
    %2 = tpu.matmul %0, %1, %cst {dimension_numbers = #tpu.dot_dimension_numbers<[1], [0], [0], [1], [0, 0, 1, 1], [], []>} : vector<162x1152xbf16>, vector<1152x256xbf16>, vector<162x256xf32> -> vector<162x256xf32>
    %c0_3 = arith.constant 0 : index
    %c0_4 = arith.constant 0 : index
    %3 = vector.load %arg3[%c0_3, %c0_4] : memref<1x256xf32, #tpu.memory_space<vmem>>, vector<1x256xf32>
    %4 = vector.broadcast %3 : vector<1x256xf32> to vector<162x256xf32>
    %5 = arith.addf %2, %4 : vector<162x256xf32>
    %cst_5 = arith.constant 0.000000e+00 : f32
    %6 = vector.broadcast %cst_5 : f32 to vector<162x256xf32>
    %7 = arith.maximumf %5, %6 : vector<162x256xf32>
    %c0_6 = arith.constant 0 : index
    %c0_7 = arith.constant 0 : index
    %8 = vector.load %arg4[%c0_6, %c0_7] : memref<162x256xf32, #tpu.memory_space<vmem>>, vector<162x256xf32>
    tpu.vector_store %arg4[%c0_6, %c0_7], %7 {strides = array<i32>} : memref<162x256xf32, #tpu.memory_space<vmem>>, vector<162x256xf32>,
    return
  }
  func.func @transform_0(%arg0: i32) -> (i32, i32) {
    %c0_i32 = arith.constant 0 : i32
    %c0_i32_0 = arith.constant 0 : i32
    return %arg0, %c0_i32 : i32, i32
  }
  func.func @transform_1(%arg0: i32) -> (i32, i32) {
    %c0_i32 = arith.constant 0 : i32
    %c0_i32_0 = arith.constant 0 : i32
    %c0_i32_1 = arith.constant 0 : i32
    return %c0_i32, %c0_i32_0 : i32, i32
  }
  func.func @transform_2(%arg0: i32) -> (i32, i32) {
    %c0_i32 = arith.constant 0 : i32
    %c0_i32_0 = arith.constant 0 : i32
    %c0_i32_1 = arith.constant 0 : i32
    return %c0_i32, %c0_i32_0 : i32, i32
  }
  func.func @transform_3(%arg0: i32) -> (i32, i32) {
    %c0_i32 = arith.constant 0 : i32
    %c0_i32_0 = arith.constant 0 : i32
    return %arg0, %c0_i32 : i32, i32
  }
}

module attributes {stable_mosaic.version = 11 : i64} {
  func.func @_mm_bias_kernel(%arg0: i32, %arg1: memref<368x576xbf16, #tpu.memory_space<vmem>>, %arg2: memref<576x128xbf16, #tpu.memory_space<vmem>>, %arg3: memref<1x128xf32, #tpu.memory_space<vmem>>, %arg4: memref<368x128xf32, #tpu.memory_space<vmem>>) attributes {dimension_semantics = [#tpu.dimension_semantics<parallel>], iteration_bounds = array<i64: 2>, scalar_prefetch = 0 : i64, scratch_operands = 0 : i64, tpu.core_type = #tpu.core_type<tc>, window_params = [{transform_indices = @transform_0, window_bounds = array<i64: 368, 576>}, {pipeline_mode = #tpu.pipeline_mode<synchronous>, transform_indices = @transform_1, window_bounds = array<i64: 576, 128>}, {pipeline_mode = #tpu.pipeline_mode<synchronous>, transform_indices = @transform_2, window_bounds = array<i64: 1, 128>}, {transform_indices = @transform_3, window_bounds = array<i64: 368, 128>}]} {
    %c0 = arith.constant 0 : index
    %c0_0 = arith.constant 0 : index
    %0 = vector.load %arg1[%c0, %c0_0] : memref<368x576xbf16, #tpu.memory_space<vmem>>, vector<368x576xbf16>
    %c0_1 = arith.constant 0 : index
    %c0_2 = arith.constant 0 : index
    %1 = vector.load %arg2[%c0_1, %c0_2] : memref<576x128xbf16, #tpu.memory_space<vmem>>, vector<576x128xbf16>
    %cst = arith.constant dense<0.000000e+00> : vector<368x128xf32>
    %2 = tpu.matmul %0, %1, %cst {dimension_numbers = #tpu.dot_dimension_numbers<[1], [0], [0], [1], [0, 0, 1, 1], [], []>} : vector<368x576xbf16>, vector<576x128xbf16>, vector<368x128xf32> -> vector<368x128xf32>
    %c0_3 = arith.constant 0 : index
    %c0_4 = arith.constant 0 : index
    %3 = vector.load %arg3[%c0_3, %c0_4] : memref<1x128xf32, #tpu.memory_space<vmem>>, vector<1x128xf32>
    %4 = vector.broadcast %3 : vector<1x128xf32> to vector<368x128xf32>
    %5 = arith.addf %2, %4 : vector<368x128xf32>
    %cst_5 = arith.constant 0.000000e+00 : f32
    %6 = vector.broadcast %cst_5 : f32 to vector<368x128xf32>
    %7 = arith.maximumf %5, %6 : vector<368x128xf32>
    %c0_6 = arith.constant 0 : index
    %c0_7 = arith.constant 0 : index
    %8 = vector.load %arg4[%c0_6, %c0_7] : memref<368x128xf32, #tpu.memory_space<vmem>>, vector<368x128xf32>
    tpu.vector_store %arg4[%c0_6, %c0_7], %7 {strides = array<i32>} : memref<368x128xf32, #tpu.memory_space<vmem>>, vector<368x128xf32>,
    return
  }
  func.func @transform_0(%arg0: i32) -> (i32, i32) {
    %c0_i32 = arith.constant 0 : i32
    %c0_i32_0 = arith.constant 0 : i32
    return %arg0, %c0_i32 : i32, i32
  }
  func.func @transform_1(%arg0: i32) -> (i32, i32) {
    %c0_i32 = arith.constant 0 : i32
    %c0_i32_0 = arith.constant 0 : i32
    %c0_i32_1 = arith.constant 0 : i32
    return %c0_i32, %c0_i32_0 : i32, i32
  }
  func.func @transform_2(%arg0: i32) -> (i32, i32) {
    %c0_i32 = arith.constant 0 : i32
    %c0_i32_0 = arith.constant 0 : i32
    %c0_i32_1 = arith.constant 0 : i32
    return %c0_i32, %c0_i32_0 : i32, i32
  }
  func.func @transform_3(%arg0: i32) -> (i32, i32) {
    %c0_i32 = arith.constant 0 : i32
    %c0_i32_0 = arith.constant 0 : i32
    return %arg0, %c0_i32 : i32, i32
  }
}

</mosaic_0001>

<bundles_post_ra>
// kernel: vqvae_forward.12
= control target key start
LH: loop header
LB: loop body
LE: loop exit
PB: predicated region body
PF: predicated region fallthrough
CT: control target
= control target key end

     0   :  { %s2765_s12 = smov 0   ;;  %s3322_s0 = inlined_call_operand.vmem [shape: bf16[2752,25], index: 0, kind: input, shape index: {}]   ;;  %s3323_s1 = inlined_call_operand.vmem [shape: bf16[25,128], index: 1, kind: input, shape index: {}]   ;;  %s3324_s2 = inlined_call_operand.vmem [shape: f32[1,128], index: 2, kind: input, shape index: {}]   ;;  %s3325_s3 = inlined_call_operand.vmem [shape: f32[2752,128], index: 3, kind: output, shape index: {}]  }
   0x1 LB: > { %s2186_s13 = sadd.s32 4294967295, %s2742_s12   ;;  %p2190_p0 = scmp.ge.s32.totalorder %s2742_s12, 1  ;;  %s2742_s12 = sphi %s2765_s12, %s13_s12  }
   0x2   : > { %p138_p1 = scmp.lt.s32.totalorder %s2742_s12, 3 }
   0x4   : > { %p139_p2 = pnand %p2190_p0, %p138_p1 }
   0x5   : > { %v2647_v0 = vld [vmem:[%s3323_s1] sm:$0xff] (!%p139_p2)   ;;  %vm1058_vm0 = vcmask (!%p139_p2), 1043456   ;;  %v2648_v1 = vld [vmem:[%s3323_s1 + $0x8] sm:$0x1f] (!%p139_p2)   ;;  %vm1059_vm1 = vcmask (!%p139_p2), 1044480   ;;  %s162_s18 = smul.u32 (!%p139_p2), 172, %s2186_s13 }
   0x6   : > { %142 = sbr.rel (%p139_p2) target bundleno = 406 (0x196), region = 32  ;;  %2458 = vmatprep.subr.bf16.mxu0 (!%p139_p2), %v2647_v0  ;;  %2634 = vmatprep.subr.bf16.mxu1 (!%p139_p2), %v2647_v0  ;;  %v2744_v2 = vmov (!%p139_p2), 65535   ;;  %vm799_vm2 = vcmask (!%p139_p2), 203776  }
   0x7   : > { %2459 = vmatpush3.bf16.msra.mxu0 (!%p139_p2), %v2647_v0  ;;  %v1060_v3 = vsel (!%p139_p2), %vm1058_vm0, 4294967295, %v2744_v2  ;;  %2636 = vmatpush3.bf16.msra.mxu1 (!%p139_p2), %v2647_v0  ;;  %p163_p3 = scmp.lt.s32.totalorder (!%p139_p2), %s162_s18, 343 }
   0x8   : > { %v1061_v4 = vsel (!%p139_p2), %vm1059_vm1, %v1060_v3, 0 }
   0x9   : > { %v1063_v5 = vand.u32 (!%p139_p2), %v2648_v1, %v1061_v4 }
   0xb   : > { %2460 = vmatprep.subr.bf16.mxu0 (!%p139_p2), %v1063_v5  ;;  %2635 = vmatprep.subr.bf16.mxu1 (!%p139_p2), %v1063_v5 }
   0xc   : > { %2461 = vmatpush3.bf16.msra.mxu0 (!%p139_p2), %v1063_v5  ;;  %2637 = vmatpush3.bf16.msra.mxu1 (!%p139_p2), %v1063_v5 }
   0xd   : > { %s3327_s18 = smov (!%p163_p3, %s162_s18), 343 }
   0xe   : > { %s2191_s19 = sshll.u32 %s3327_s18, 2  ;;  %s2192_s25 = sshll.u32 %s3327_s18, 3 }
   0xf   : > { %s2785_s22 = scalar_lea.vmem %s3322_s0, %s2191_s19  ;;  %s2969_s28 = scalar_lea.vmem %s3325_s3, %s2192_s25 }
  0x10   : > { %v2649_v6 = vld [vmem:[%s2785_s22] sm:$0xff]   ;;  %v2650_v7 = vld [vmem:[%s2785_s22 + $0x8] sm:$0xff]   ;;  %v2653_v10 = vld [vmem:[%s2785_s22 + $0x10] sm:$0xff]  }
  0x11   : > { %2462 = vmatprep.mubr.msk.bf16.mxu0 %vm799_vm2, %v2649_v6  ;;  %v2651_v8 = vld [vmem:[%s2785_s22 + $0x160] sm:$0xff]   ;;  %v2652_v9 = vld [vmem:[%s2785_s22 + $0x168] sm:$0xff]   ;;  %v2655_v11 = vld [vmem:[%s2785_s22 + $0x170] sm:$0xff]  }
  0x12   : > { %2463 = vmatmul.mubr.msk.bf16.vlgmr.msra.gmra.mrb[0].mxu0 %vm799_vm2, %v2650_v7  ;;  %2550 = vmatprep.mubr.msk.bf16.mxu1 %vm799_vm2, %v2651_v8  ;;  %v2654_v12 = vld [vmem:[%s2785_s22 + $0x18] sm:$0xff]   ;;  %v2657_v13 = vld [vmem:[%s2785_s22 + $0x20] sm:$0xff]   ;;  %v2658_v16 = vld [vmem:[%s2785_s22 + $0x28] sm:$0xff]  }
  0x13   : > { %2551 = vmatmul.mubr.msk.bf16.vlgmr.msra.gmra.mrb[0].mxu1 %vm799_vm2, %v2652_v9  ;;  %2466 = vmatprep.mubr.msk.bf16.mxu0 %vm799_vm2, %v2653_v10  ;;  %v2656_v14 = vld [vmem:[%s2785_s22 + $0x178] sm:$0xff]   ;;  %v2659_v15 = vld [vmem:[%s2785_s22 + $0x180] sm:$0xff]   ;;  %v2661_v17 = vld [vmem:[%s2785_s22 + $0x30] sm:$0xff]  }
  0x14   : > { %2554 = vmatprep.mubr.msk.bf16.mxu1 %vm799_vm2, %v2655_v11  ;;  %v2660_v18 = vld [vmem:[%s2785_s22 + $0x188] sm:$0xff]   ;;  %v2663_v19 = vld [vmem:[%s2785_s22 + $0x190] sm:$0xff]   ;;  %v2662_v20 = vld [vmem:[%s2785_s22 + $0x38] sm:$0xff]  }
  0x15   : > { %v2665_v21 = vld [vmem:[%s2785_s22 + $0x40] sm:$0xff]   ;;  %v2664_v22 = vld [vmem:[%s2785_s22 + $0x198] sm:$0xff]   ;;  %v2666_v24 = vld [vmem:[%s2785_s22 + $0x48] sm:$0xff]  }
  0x16   : > { %v2667_v23 = vld [vmem:[%s2785_s22 + $0x1a0] sm:$0xff]   ;;  %v2669_v25 = vld [vmem:[%s2785_s22 + $0x50] sm:$0xff]   ;;  %v2668_v26 = vld [vmem:[%s2785_s22 + $0x1a8] sm:$0xff]  }
  0x17   : > { %v2671_v27 = vld [vmem:[%s2785_s22 + $0x1b0] sm:$0xff]   ;;  %v2670_v28 = vld [vmem:[%s2785_s22 + $0x58] sm:$0xff]   ;;  %v2673_v29 = vld [vmem:[%s2785_s22 + $0x60] sm:$0xff]  }
  0x18   : > { %v2672_v30 = vld [vmem:[%s2785_s22 + $0x1b8] sm:$0xff]   ;;  %v2675_v31 = vld [vmem:[%s2785_s22 + $0x1c0] sm:$0xff]   ;;  %v2674_v32 = vld [vmem:[%s2785_s22 + $0x68] sm:$0xff]  }
  0x19   : > { %v2677_v33 = vld [vmem:[%s2785_s22 + $0x70] sm:$0xff]   ;;  %v2676_v34 = vld [vmem:[%s2785_s22 + $0x1c8] sm:$0xff]   ;;  %v2678_v36 = vld [vmem:[%s2785_s22 + $0x78] sm:$0xff]  }
  0x1a   : > { %2467 = vmatmul.mubr.msk.bf16.gmra.mrb[4].mxu0 %vm799_vm2, %v2654_v12  ;;  %v2679_v35 = vld [vmem:[%s2785_s22 + $0x1d0] sm:$0xff]   ;;  %v2681_v37 = vld [vmem:[%s2785_s22 + $0x80] sm:$0xff]   ;;  %v2680_v38 = vld [vmem:[%s2785_s22 + $0x1d8] sm:$0xff]  }
  0x1b   : > { %2470 = vmatprep.mubr.msk.bf16.mxu0 %vm799_vm2, %v2657_v13  ;;  %2555 = vmatmul.mubr.msk.bf16.gmra.mrb[4].mxu1 %vm799_vm2, %v2656_v14  ;;  %v2683_v39 = vld [vmem:[%s2785_s22 + $0x1e0] sm:$0xff]   ;;  %v2682_v40 = vld [vmem:[%s2785_s22 + $0x88] sm:$0xff]   ;;  %v2685_v41 = vld [vmem:[%s2785_s22 + $0x90] sm:$0xff]  }
  0x1c   : > { %2558 = vmatprep.mubr.msk.bf16.mxu1 %vm799_vm2, %v2659_v15  ;;  %v2684_v42 = vld [vmem:[%s2785_s22 + $0x1e8] sm:$0xff]   ;;  %v2687_v43 = vld [vmem:[%s2785_s22 + $0x1f0] sm:$0xff]   ;;  %v2686_v44 = vld [vmem:[%s2785_s22 + $0x98] sm:$0xff]  }
  0x1d   : > { %v2689_v45 = vld [vmem:[%s2785_s22 + $0xa0] sm:$0xff]   ;;  %v2688_v46 = vld [vmem:[%s2785_s22 + $0x1f8] sm:$0xff]   ;;  %v2690_v48 = vld [vmem:[%s2785_s22 + $0xa8] sm:$0xff]  }
  0x1e   : > { %v2691_v47 = vld [vmem:[%s2785_s22 + $0x200] sm:$0xff]   ;;  %v2693_v49 = vld [vmem:[%s2785_s22 + $0xb0] sm:$0xff]   ;;  %v2692_v50 = vld [vmem:[%s2785_s22 + $0x208] sm:$0xff]  }
  0x1f   : > { %v2695_v51 = vld [vmem:[%s2785_s22 + $0x210] sm:$0xff]   ;;  %v2694_v52 = vld [vmem:[%s2785_s22 + $0xb8] sm:$0xff]   ;;  %v2697_v53 = vld [vmem:[%s2785_s22 + $0xc0] sm:$0xff]  }
  0x20   : > { %v2696_v54 = vld [vmem:[%s2785_s22 + $0x218] sm:$0xff]   ;;  %v2699_v55 = vld [vmem:[%s2785_s22 + $0x220] sm:$0xff]   ;;  %v2698_v56 = vld [vmem:[%s2785_s22 + $0xc8] sm:$0xff]  }
  0x21   : > { %v2701_v57 = vld [vmem:[%s2785_s22 + $0xd0] sm:$0xff]   ;;  %v2700_v58 = vld [vmem:[%s2785_s22 + $0x228] sm:$0xff]   ;;  %v2702_v60 = vld [vmem:[%s2785_s22 + $0xd8] sm:$0xff]  }
  0x22   : > { %2471 = vmatmul.mubr.msk.bf16.gmra.mrb[8].mxu0 %vm799_vm2, %v2658_v16  ;;  %v2703_v59 = vld [vmem:[%s2785_s22 + $0x230] sm:$0xff]   ;;  %v2705_v61 = vld [vmem:[%s2785_s22 + $0xe0] sm:$0xff]   ;;  %v2704_v62 = vld [vmem:[%s2785_s22 + $0x238] sm:$0xff]  }
  0x23   : > { %2474 = vmatprep.mubr.msk.bf16.mxu0 %vm799_vm2, %v2661_v17  ;;  %2559 = vmatmul.mubr.msk.bf16.gmra.mrb[8].mxu1 %vm799_vm2, %v2660_v18  ;;  %v2707_v63 = vld [vmem:[%s2785_s22 + $0x240] sm:$0xff]   ;;  %v2706_v0 = vld [vmem:[%s2785_s22 + $0xe8] sm:$0xff]   ;;  %v2709_v1 = vld [vmem:[%s2785_s22 + $0xf0] sm:$0xff]  }
  0x24   : > { %2562 = vmatprep.mubr.msk.bf16.mxu1 %vm799_vm2, %v2663_v19  ;;  %v2708_v2 = vld [vmem:[%s2785_s22 + $0x248] sm:$0xff]   ;;  %v2711_v3 = vld [vmem:[%s2785_s22 + $0x250] sm:$0xff]   ;;  %v2710_v4 = vld [vmem:[%s2785_s22 + $0xf8] sm:$0xff]  }
  0x25   : > { %v2713_v5 = vld [vmem:[%s2785_s22 + $0x100] sm:$0xff]   ;;  %v2712_v6 = vld [vmem:[%s2785_s22 + $0x258] sm:$0xff]   ;;  %v2714_v8 = vld [vmem:[%s2785_s22 + $0x108] sm:$0xff]  }
  0x26   : > { %v2715_v7 = vld [vmem:[%s2785_s22 + $0x260] sm:$0xff]   ;;  %v2717_v9 = vld [vmem:[%s2785_s22 + $0x110] sm:$0xff]   ;;  %v2716_v10 = vld [vmem:[%s2785_s22 + $0x268] sm:$0xff]  }
  0x27   : > { %v2719_v11 = vld [vmem:[%s2785_s22 + $0x270] sm:$0xff]   ;;  %v2718_v12 = vld [vmem:[%s2785_s22 + $0x118] sm:$0xff]   ;;  %v2721_v13 = vld [vmem:[%s2785_s22 + $0x120] sm:$0xff]  }
  0x28   : > { %v2720_v14 = vld [vmem:[%s2785_s22 + $0x278] sm:$0xff]   ;;  %v2723_v15 = vld [vmem:[%s2785_s22 + $0x280] sm:$0xff]   ;;  %v2722_v16 = vld [vmem:[%s2785_s22 + $0x128] sm:$0xff]  }
  0x29   : > { %v2725_v17 = vld [vmem:[%s2785_s22 + $0x130] sm:$0xff]   ;;  %v2724_v18 = vld [vmem:[%s2785_s22 + $0x288] sm:$0xff]  }
  0x2a   : > { %2475 = vmatmul.mubr.msk.bf16.gmra.mrb[12].mxu0 %vm799_vm2, %v2662_v20  ;;  %v2727_v19 = vld [vmem:[%s2785_s22 + $0x290] sm:$0xff]   ;;  %v2726_v20 = vld [vmem:[%s2785_s22 + $0x138] sm:$0xff]  }
  0x2b   : > { %2478 = vmatprep.mubr.msk.bf16.mxu0 %vm799_vm2, %v2665_v21  ;;  %2563 = vmatmul.mubr.msk.bf16.gmra.mrb[12].mxu1 %vm799_vm2, %v2664_v22  ;;  %v2729_v21 = vld [vmem:[%s2785_s22 + $0x140] sm:$0xff]   ;;  %v2728_v22 = vld [vmem:[%s2785_s22 + $0x298] sm:$0xff]  }
  0x2c   : > { %2566 = vmatprep.mubr.msk.bf16.mxu1 %vm799_vm2, %v2667_v23  ;;  %v2731_v23 = vld [vmem:[%s2785_s22 + $0x2a0] sm:$0xff]  }
  0x32   : > { %2479 = vmatmul.mubr.msk.bf16.gmra.mrb[16].mxu0 %vm799_vm2, %v2666_v24  ;;  %v2730_v24 = vld [vmem:[%s2785_s22 + $0x148] sm:$0xff]  }
  0x33   : > { %2482 = vmatprep.mubr.msk.bf16.mxu0 %vm799_vm2, %v2669_v25  ;;  %2567 = vmatmul.mubr.msk.bf16.gmra.mrb[16].mxu1 %vm799_vm2, %v2668_v26  ;;  %v2733_v25 = vld [vmem:[%s2785_s22 + $0x150] sm:$0xff]   ;;  %v2732_v26 = vld [vmem:[%s2785_s22 + $0x2a8] sm:$0xff]  }
  0x34   : > { %2570 = vmatprep.mubr.msk.bf16.mxu1 %vm799_vm2, %v2671_v27  ;;  %v2734_v27 = vld [vmem:[%s2785_s22 + $0x158] sm:$0xff]  }
  0x3a   : > { %2483 = vmatmul.mubr.msk.bf16.gmra.mrb[20].mxu0 %vm799_vm2, %v2670_v28  ;;  %v2962_v28 = vld [vmem:[%s3324_s2] ss:$0 sm:$0xff] }
  0x3b   : > { %2486 = vmatprep.mubr.msk.bf16.mxu0 %vm799_vm2, %v2673_v29  ;;  %2571 = vmatmul.mubr.msk.bf16.gmra.mrb[20].mxu1 %vm799_vm2, %v2672_v30 }
  0x3c   : > { %2574 = vmatprep.mubr.msk.bf16.mxu1 %vm799_vm2, %v2675_v31 }
  0x42   : > { %2487 = vmatmul.mubr.msk.bf16.gmra.mrb[24].mxu0 %vm799_vm2, %v2674_v32 }
  0x43   : > { %2490 = vmatprep.mubr.msk.bf16.mxu0 %vm799_vm2, %v2677_v33  ;;  %2575 = vmatmul.mubr.msk.bf16.gmra.mrb[24].mxu1 %vm799_vm2, %v2676_v34 }
  0x44   : > { %2578 = vmatprep.mubr.msk.bf16.mxu1 %vm799_vm2, %v2679_v35 }
  0x4a   : > { %2491 = vmatmul.mubr.msk.bf16.gmra.mrb[28].mxu0 %vm799_vm2, %v2678_v36 }
  0x4b   : > { %2494 = vmatprep.mubr.msk.bf16.mxu0 %vm799_vm2, %v2681_v37  ;;  %2579 = vmatmul.mubr.msk.bf16.gmra.mrb[28].mxu1 %vm799_vm2, %v2680_v38 }
  0x4c   : > { %2582 = vmatprep.mubr.msk.bf16.mxu1 %vm799_vm2, %v2683_v39 }
  0x52   : > { %2495 = vmatmul.mubr.msk.bf16.gmra.mrb[32].mxu0 %vm799_vm2, %v2682_v40 }
  0x53   : > { %2498 = vmatprep.mubr.msk.bf16.mxu0 %vm799_vm2, %v2685_v41  ;;  %2583 = vmatmul.mubr.msk.bf16.gmra.mrb[32].mxu1 %vm799_vm2, %v2684_v42 }
  0x54   : > { %2586 = vmatprep.mubr.msk.bf16.mxu1 %vm799_vm2, %v2687_v43 }
  0x5a   : > { %2499 = vmatmul.mubr.msk.bf16.gmra.mrb[36].mxu0 %vm799_vm2, %v2686_v44 }
  0x5b   : > { %2502 = vmatprep.mubr.msk.bf16.mxu0 %vm799_vm2, %v2689_v45  ;;  %2587 = vmatmul.mubr.msk.bf16.gmra.mrb[36].mxu1 %vm799_vm2, %v2688_v46 }
  0x5c   : > { %2590 = vmatprep.mubr.msk.bf16.mxu1 %vm799_vm2, %v2691_v47 }
  0x62   : > { %2503 = vmatmul.mubr.msk.bf16.gmra.mrb[40].mxu0 %vm799_vm2, %v2690_v48 }
  0x63   : > { %2506 = vmatprep.mubr.msk.bf16.mxu0 %vm799_vm2, %v2693_v49  ;;  %2591 = vmatmul.mubr.msk.bf16.gmra.mrb[40].mxu1 %vm799_vm2, %v2692_v50 }
  0x64   : > { %2594 = vmatprep.mubr.msk.bf16.mxu1 %vm799_vm2, %v2695_v51 }
  0x6a   : > { %2507 = vmatmul.mubr.msk.bf16.gmra.mrb[44].mxu0 %vm799_vm2, %v2694_v52 }
  0x6b   : > { %2510 = vmatprep.mubr.msk.bf16.mxu0 %vm799_vm2, %v2697_v53  ;;  %2595 = vmatmul.mubr.msk.bf16.gmra.mrb[44].mxu1 %vm799_vm2, %v2696_v54 }
  0x6c   : > { %2598 = vmatprep.mubr.msk.bf16.mxu1 %vm799_vm2, %v2699_v55 }
  0x72   : > { %2511 = vmatmul.mubr.msk.bf16.gmra.mrb[48].mxu0 %vm799_vm2, %v2698_v56 }
  0x73   : > { %2514 = vmatprep.mubr.msk.bf16.mxu0 %vm799_vm2, %v2701_v57  ;;  %2599 = vmatmul.mubr.msk.bf16.gmra.mrb[48].mxu1 %vm799_vm2, %v2700_v58 }
  0x74   : > { %2602 = vmatprep.mubr.msk.bf16.mxu1 %vm799_vm2, %v2703_v59 }
  0x7a   : > { %2515 = vmatmul.mubr.msk.bf16.gmra.mrb[52].mxu0 %vm799_vm2, %v2702_v60 }
  0x7b   : > { %2518 = vmatprep.mubr.msk.bf16.mxu0 %vm799_vm2, %v2705_v61  ;;  %2603 = vmatmul.mubr.msk.bf16.gmra.mrb[52].mxu1 %vm799_vm2, %v2704_v62 }
  0x7c   : > { %2606 = vmatprep.mubr.msk.bf16.mxu1 %vm799_vm2, %v2707_v63 }
  0x82   : > { %2519 = vmatmul.mubr.msk.bf16.gmra.mrb[56].mxu0 %vm799_vm2, %v2706_v0 }
  0x83   : > { %2522 = vmatprep.mubr.msk.bf16.mxu0 %vm799_vm2, %v2709_v1  ;;  %2607 = vmatmul.mubr.msk.bf16.gmra.mrb[56].mxu1 %vm799_vm2, %v2708_v2 }
  0x84   : > { %2610 = vmatprep.mubr.msk.bf16.mxu1 %vm799_vm2, %v2711_v3 }
  0x8a   : > { %2523 = vmatmul.mubr.msk.bf16.gmra.mrb[60].mxu0 %vm799_vm2, %v2710_v4 }
  0x8b   : > { %2526 = vmatprep.mubr.msk.bf16.mxu0 %vm799_vm2, %v2713_v5  ;;  %2611 = vmatmul.mubr.msk.bf16.gmra.mrb[60].mxu1 %vm799_vm2, %v2712_v6 }
  0x8c   : > { %2614 = vmatprep.mubr.msk.bf16.mxu1 %vm799_vm2, %v2715_v7 }
  0x92   : > { %2527 = vmatmul.mubr.msk.bf16.gmra.mrb[64].mxu0 %vm799_vm2, %v2714_v8 }
  0x93   : > { %2530 = vmatprep.mubr.msk.bf16.mxu0 %vm799_vm2, %v2717_v9  ;;  %2615 = vmatmul.mubr.msk.bf16.gmra.mrb[64].mxu1 %vm799_vm2, %v2716_v10 }
  0x94   : > { %2618 = vmatprep.mubr.msk.bf16.mxu1 %vm799_vm2, %v2719_v11 }
  0x9a   : > { %2531 = vmatmul.mubr.msk.bf16.gmra.mrb[68].mxu0 %vm799_vm2, %v2718_v12 }
  0x9b   : > { %2534 = vmatprep.mubr.msk.bf16.mxu0 %vm799_vm2, %v2721_v13  ;;  %2619 = vmatmul.mubr.msk.bf16.gmra.mrb[68].mxu1 %vm799_vm2, %v2720_v14 }
  0x9c   : > { %2622 = vmatprep.mubr.msk.bf16.mxu1 %vm799_vm2, %v2723_v15 }
  0xa2   : > { %2535 = vmatmul.mubr.msk.bf16.gmra.mrb[72].mxu0 %vm799_vm2, %v2722_v16 }
  0xa3   : > { %2538 = vmatprep.mubr.msk.bf16.mxu0 %vm799_vm2, %v2725_v17  ;;  %2623 = vmatmul.mubr.msk.bf16.gmra.mrb[72].mxu1 %vm799_vm2, %v2724_v18 }
  0xa4   : > { %2626 = vmatprep.mubr.msk.bf16.mxu1 %vm799_vm2, %v2727_v19 }
  0xaa   : > { %2539 = vmatmul.mubr.msk.bf16.gmra.mrb[76].mxu0 %vm799_vm2, %v2726_v20 }
  0xab   : > { %2542 = vmatprep.mubr.msk.bf16.mxu0 %vm799_vm2, %v2729_v21  ;;  %2627 = vmatmul.mubr.msk.bf16.gmra.mrb[76].mxu1 %vm799_vm2, %v2728_v22 }
  0xac   : > { %2630 = vmatprep.mubr.msk.bf16.mxu1 %vm799_vm2, %v2731_v23 }
  0xb2   : > { %2543 = vmatmul.mubr.msk.bf16.gmra.mrb[80].mxu0 %vm799_vm2, %v2730_v24 }
  0xb3   : > { %2546 = vmatprep.mubr.msk.bf16.mxu0 %vm799_vm2, %v2733_v25  ;;  %2631 = vmatmul.mubr.msk.bf16.gmra.mrb[80].mxu1 %vm799_vm2, %v2732_v26 }
  0xba   : > { %2547 = vmatmul.mubr.msk.bf16.gmra.mrb[84].mxu0 %vm799_vm2, %v2734_v27 }
  0xe5   : > { %v2464_v29 = vpop.f32.mrb[0].mxu0 }
  0xe6   : > { %v1108_v30 = vadd.f32 %v2464_v29, %v2962_v28  ;;  %v1099_v31 = vpop.f32.mrb[1].mxu0  ;;  %v2552_v34 = vpop.f32.mrb[0].mxu1 }
  0xe7   : > { %v1100_v32 = vadd.f32 %v2962_v28, %v1099_v31  ;;  %v2465_v33 = vpop.f32.mrb[2].mxu0  ;;  %v1460_v38 = vadd.f32 %v2552_v34, %v2962_v28  ;;  %v1451_v39 = vpop.f32.mrb[1].mxu1 }
  0xe8   : > { %v1788_v35 = vmax.f32 %v1108_v30, 0.0  ;;  %v1111_v36 = vadd.f32 %v2465_v33, %v2962_v28  ;;  %v1102_v37 = vpop.f32.mrb[3].mxu0  ;;  %v1452_v42 = vadd.f32 %v2962_v28, %v1451_v39  ;;  %v2553_v43 = vpop.f32.mrb[2].mxu1 }
  0xe9   : > { %v1786_v40 = vmax.f32 %v1100_v32, 0.0  ;;  %v1103_v41 = vadd.f32 %v2962_v28, %v1102_v37  ;;  %v1876_v45 = vmax.f32 %v1460_v38, 0.0  ;;  %v1463_v46 = vadd.f32 %v2553_v43, %v2962_v28  ;;  %v1454_v47 = vpop.f32.mrb[3].mxu1 }
  0xea   : > { %1960 = vst [vmem:[%s2969_s28 + $0x10] sm:$0xff] %v1788_v35  ;;  %v1789_v44 = vmax.f32 %v1111_v36, 0.0  ;;  %v1874_v49 = vmax.f32 %v1452_v42, 0.0  ;;  %v1455_v50 = vadd.f32 %v2962_v28, %v1454_v47 }
  0xeb   : > { %1958 = vst [vmem:[%s2969_s28] sm:$0xff] %v1786_v40  ;;  %v1787_v48 = vmax.f32 %v1103_v41, 0.0  ;;  %2048 = vst [vmem:[%s2969_s28 + $0x2d0] sm:$0xff] %v1876_v45  ;;  %v1877_v51 = vmax.f32 %v1463_v46, 0.0 }
  0xec   : > { %1961 = vst [vmem:[%s2969_s28 + $0x18] sm:$0xff] %v1789_v44  ;;  %2046 = vst [vmem:[%s2969_s28 + $0x2c0] sm:$0xff] %v1874_v49  ;;  %v1875_v53 = vmax.f32 %v1455_v50, 0.0 }
  0xed   : > { %1959 = vst [vmem:[%s2969_s28 + $0x8] sm:$0xff] %v1787_v48  ;;  %v2468_v52 = vpop.f32.mrb[4].mxu0  ;;  %2049 = vst [vmem:[%s2969_s28 + $0x2d8] sm:$0xff] %v1877_v51 }
  0xee   : > { %v1124_v54 = vadd.f32 %v2468_v52, %v2962_v28  ;;  %v1115_v55 = vpop.f32.mrb[5].mxu0  ;;  %2047 = vst [vmem:[%s2969_s28 + $0x2c8] sm:$0xff] %v1875_v53  ;;  %v2556_v58 = vpop.f32.mrb[4].mxu1 }
  0xef   : > { %v1116_v56 = vadd.f32 %v2962_v28, %v1115_v55  ;;  %v2469_v57 = vpop.f32.mrb[6].mxu0  ;;  %v1476_v62 = vadd.f32 %v2556_v58, %v2962_v28  ;;  %v1467_v63 = vpop.f32.mrb[5].mxu1 }
  0xf0   : > { %v1792_v59 = vmax.f32 %v1124_v54, 0.0  ;;  %v1127_v60 = vadd.f32 %v2469_v57, %v2962_v28  ;;  %v1118_v61 = vpop.f32.mrb[7].mxu0  ;;  %v1468_v2 = vadd.f32 %v2962_v28, %v1467_v63  ;;  %v2557_v3 = vpop.f32.mrb[6].mxu1 }
  0xf1   : > { %v1790_v0 = vmax.f32 %v1116_v56, 0.0  ;;  %v1119_v1 = vadd.f32 %v2962_v28, %v1118_v61  ;;  %v1880_v5 = vmax.f32 %v1476_v62, 0.0  ;;  %v1479_v6 = vadd.f32 %v2557_v3, %v2962_v28  ;;  %v1470_v7 = vpop.f32.mrb[7].mxu1 }
  0xf2   : > { %1964 = vst [vmem:[%s2969_s28 + $0x30] sm:$0xff] %v1792_v59  ;;  %v1793_v4 = vmax.f32 %v1127_v60, 0.0  ;;  %v1878_v9 = vmax.f32 %v1468_v2, 0.0  ;;  %v1471_v10 = vadd.f32 %v2962_v28, %v1470_v7 }
  0xf3   : > { %1962 = vst [vmem:[%s2969_s28 + $0x20] sm:$0xff] %v1790_v0  ;;  %v1791_v8 = vmax.f32 %v1119_v1, 0.0  ;;  %2052 = vst [vmem:[%s2969_s28 + $0x2f0] sm:$0xff] %v1880_v5  ;;  %v1881_v11 = vmax.f32 %v1479_v6, 0.0 }
  0xf4   : > { %1965 = vst [vmem:[%s2969_s28 + $0x38] sm:$0xff] %v1793_v4  ;;  %2050 = vst [vmem:[%s2969_s28 + $0x2e0] sm:$0xff] %v1878_v9  ;;  %v1879_v13 = vmax.f32 %v1471_v10, 0.0 }
  0xf5   : > { %1963 = vst [vmem:[%s2969_s28 + $0x28] sm:$0xff] %v1791_v8  ;;  %v2472_v12 = vpop.f32.mrb[8].mxu0  ;;  %2053 = vst [vmem:[%s2969_s28 + $0x2f8] sm:$0xff] %v1881_v11 }
  0xf6   : > { %v1140_v14 = vadd.f32 %v2472_v12, %v2962_v28  ;;  %v1131_v15 = vpop.f32.mrb[9].mxu0  ;;  %2051 = vst [vmem:[%s2969_s28 + $0x2e8] sm:$0xff] %v1879_v13  ;;  %v2560_v18 = vpop.f32.mrb[8].mxu1 }
  0xf7   : > { %v1132_v16 = vadd.f32 %v2962_v28, %v1131_v15  ;;  %v2473_v17 = vpop.f32.mrb[10].mxu0  ;;  %v1492_v22 = vadd.f32 %v2560_v18, %v2962_v28  ;;  %v1483_v23 = vpop.f32.mrb[9].mxu1 }
  0xf8   : > { %v1796_v19 = vmax.f32 %v1140_v14, 0.0  ;;  %v1143_v20 = vadd.f32 %v2473_v17, %v2962_v28  ;;  %v1134_v21 = vpop.f32.mrb[11].mxu0  ;;  %v1484_v26 = vadd.f32 %v2962_v28, %v1483_v23  ;;  %v2561_v27 = vpop.f32.mrb[10].mxu1 }
  0xf9   : > { %v1794_v24 = vmax.f32 %v1132_v16, 0.0  ;;  %v1135_v25 = vadd.f32 %v2962_v28, %v1134_v21  ;;  %v1884_v30 = vmax.f32 %v1492_v22, 0.0  ;;  %v1495_v31 = vadd.f32 %v2561_v27, %v2962_v28  ;;  %v1486_v32 = vpop.f32.mrb[11].mxu1 }
  0xfa   : > { %1968 = vst [vmem:[%s2969_s28 + $0x50] sm:$0xff] %v1796_v19  ;;  %v1797_v29 = vmax.f32 %v1143_v20, 0.0  ;;  %v1882_v34 = vmax.f32 %v1484_v26, 0.0  ;;  %v1487_v35 = vadd.f32 %v2962_v28, %v1486_v32 }
  0xfb   : > { %1966 = vst [vmem:[%s2969_s28 + $0x40] sm:$0xff] %v1794_v24  ;;  %v1795_v33 = vmax.f32 %v1135_v25, 0.0  ;;  %2056 = vst [vmem:[%s2969_s28 + $0x310] sm:$0xff] %v1884_v30  ;;  %v1885_v36 = vmax.f32 %v1495_v31, 0.0 }
  0xfc   : > { %1969 = vst [vmem:[%s2969_s28 + $0x58] sm:$0xff] %v1797_v29  ;;  %2054 = vst [vmem:[%s2969_s28 + $0x300] sm:$0xff] %v1882_v34  ;;  %v1883_v38 = vmax.f32 %v1487_v35, 0.0 }
  0xfd   : > { %1967 = vst [vmem:[%s2969_s28 + $0x48] sm:$0xff] %v1795_v33  ;;  %v2476_v37 = vpop.f32.mrb[12].mxu0  ;;  %2057 = vst [vmem:[%s2969_s28 + $0x318] sm:$0xff] %v1885_v36 }
  0xfe   : > { %v1156_v39 = vadd.f32 %v2476_v37, %v2962_v28  ;;  %v1147_v40 = vpop.f32.mrb[13].mxu0  ;;  %2055 = vst [vmem:[%s2969_s28 + $0x308] sm:$0xff] %v1883_v38  ;;  %v2564_v43 = vpop.f32.mrb[12].mxu1 }
  0xff   : > { %v1148_v41 = vadd.f32 %v2962_v28, %v1147_v40  ;;  %v2477_v42 = vpop.f32.mrb[14].mxu0  ;;  %v1508_v47 = vadd.f32 %v2564_v43, %v2962_v28  ;;  %v1499_v48 = vpop.f32.mrb[13].mxu1 }
 0x100   : > { %v1800_v44 = vmax.f32 %v1156_v39, 0.0  ;;  %v1159_v45 = vadd.f32 %v2477_v42, %v2962_v28  ;;  %v1150_v46 = vpop.f32.mrb[15].mxu0  ;;  %v1500_v51 = vadd.f32 %v2962_v28, %v1499_v48  ;;  %v2565_v52 = vpop.f32.mrb[14].mxu1 }
 0x101   : > { %v1798_v49 = vmax.f32 %v1148_v41, 0.0  ;;  %v1151_v50 = vadd.f32 %v2962_v28, %v1150_v46  ;;  %v1888_v54 = vmax.f32 %v1508_v47, 0.0  ;;  %v1511_v55 = vadd.f32 %v2565_v52, %v2962_v28  ;;  %v1502_v56 = vpop.f32.mrb[15].mxu1 }
 0x102   : > { %1972 = vst [vmem:[%s2969_s28 + $0x70] sm:$0xff] %v1800_v44  ;;  %v1801_v53 = vmax.f32 %v1159_v45, 0.0  ;;  %v1886_v58 = vmax.f32 %v1500_v51, 0.0  ;;  %v1503_v59 = vadd.f32 %v2962_v28, %v1502_v56 }
 0x103   : > { %1970 = vst [vmem:[%s2969_s28 + $0x60] sm:$0xff] %v1798_v49  ;;  %v1799_v57 = vmax.f32 %v1151_v50, 0.0  ;;  %2060 = vst [vmem:[%s2969_s28 + $0x330] sm:$0xff] %v1888_v54  ;;  %v1889_v60 = vmax.f32 %v1511_v55, 0.0 }
 0x104   : > { %1973 = vst [vmem:[%s2969_s28 + $0x78] sm:$0xff] %v1801_v53  ;;  %2058 = vst [vmem:[%s2969_s28 + $0x320] sm:$0xff] %v1886_v58  ;;  %v1887_v62 = vmax.f32 %v1503_v59, 0.0 }
 0x105   : > { %1971 = vst [vmem:[%s2969_s28 + $0x68] sm:$0xff] %v1799_v57  ;;  %v2480_v61 = vpop.f32.mrb[16].mxu0  ;;  %2061 = vst [vmem:[%s2969_s28 + $0x338] sm:$0xff] %v1889_v60 }
 0x106   : > { %v1172_v63 = vadd.f32 %v2480_v61, %v2962_v28  ;;  %v1163_v0 = vpop.f32.mrb[17].mxu0  ;;  %2059 = vst [vmem:[%s2969_s28 + $0x328] sm:$0xff] %v1887_v62  ;;  %v2568_v3 = vpop.f32.mrb[16].mxu1 }
 0x107   : > { %v1164_v1 = vadd.f32 %v2962_v28, %v1163_v0  ;;  %v2481_v2 = vpop.f32.mrb[18].mxu0  ;;  %v1524_v7 = vadd.f32 %v2568_v3, %v2962_v28  ;;  %v1515_v8 = vpop.f32.mrb[17].mxu1 }
 0x108   : > { %v1804_v4 = vmax.f32 %v1172_v63, 0.0  ;;  %v1175_v5 = vadd.f32 %v2481_v2, %v2962_v28  ;;  %v1166_v6 = vpop.f32.mrb[19].mxu0  ;;  %v1516_v11 = vadd.f32 %v2962_v28, %v1515_v8  ;;  %v2569_v12 = vpop.f32.mrb[18].mxu1 }
 0x109   : > { %v1802_v9 = vmax.f32 %v1164_v1, 0.0  ;;  %v1167_v10 = vadd.f32 %v2962_v28, %v1166_v6  ;;  %v1892_v14 = vmax.f32 %v1524_v7, 0.0  ;;  %v1527_v15 = vadd.f32 %v2569_v12, %v2962_v28  ;;  %v1518_v16 = vpop.f32.mrb[19].mxu1 }
 0x10a   : > { %1976 = vst [vmem:[%s2969_s28 + $0x90] sm:$0xff] %v1804_v4  ;;  %v1805_v13 = vmax.f32 %v1175_v5, 0.0  ;;  %v1890_v18 = vmax.f32 %v1516_v11, 0.0  ;;  %v1519_v19 = vadd.f32 %v2962_v28, %v1518_v16 }
 0x10b   : > { %1974 = vst [vmem:[%s2969_s28 + $0x80] sm:$0xff] %v1802_v9  ;;  %v1803_v17 = vmax.f32 %v1167_v10, 0.0  ;;  %2064 = vst [vmem:[%s2969_s28 + $0x350] sm:$0xff] %v1892_v14  ;;  %v1893_v20 = vmax.f32 %v1527_v15, 0.0 }
 0x10c   : > { %1977 = vst [vmem:[%s2969_s28 + $0x98] sm:$0xff] %v1805_v13  ;;  %2062 = vst [vmem:[%s2969_s28 + $0x340] sm:$0xff] %v1890_v18  ;;  %v1891_v22 = vmax.f32 %v1519_v19, 0.0 }
 0x10d   : > { %1975 = vst [vmem:[%s2969_s28 + $0x88] sm:$0xff] %v1803_v17  ;;  %v2484_v21 = vpop.f32.mrb[20].mxu0  ;;  %2065 = vst [vmem:[%s2969_s28 + $0x358] sm:$0xff] %v1893_v20 }
 0x10e   : > { %v1188_v23 = vadd.f32 %v2484_v21, %v2962_v28  ;;  %v1179_v24 = vpop.f32.mrb[21].mxu0  ;;  %2063 = vst [vmem:[%s2969_s28 + $0x348] sm:$0xff] %v1891_v22  ;;  %v2572_v27 = vpop.f32.mrb[20].mxu1 }
 0x10f   : > { %v1180_v25 = vadd.f32 %v2962_v28, %v1179_v24  ;;  %v2485_v26 = vpop.f32.mrb[22].mxu0  ;;  %v1540_v32 = vadd.f32 %v2572_v27, %v2962_v28  ;;  %v1531_v33 = vpop.f32.mrb[21].mxu1 }
 0x110   : > { %v1808_v29 = vmax.f32 %v1188_v23, 0.0  ;;  %v1191_v30 = vadd.f32 %v2485_v26, %v2962_v28  ;;  %v1182_v31 = vpop.f32.mrb[23].mxu0  ;;  %v1532_v36 = vadd.f32 %v2962_v28, %v1531_v33  ;;  %v2573_v37 = vpop.f32.mrb[22].mxu1 }
 0x111   : > { %v1806_v34 = vmax.f32 %v1180_v25, 0.0  ;;  %v1183_v35 = vadd.f32 %v2962_v28, %v1182_v31  ;;  %v1896_v39 = vmax.f32 %v1540_v32, 0.0  ;;  %v1543_v40 = vadd.f32 %v2573_v37, %v2962_v28  ;;  %v1534_v41 = vpop.f32.mrb[23].mxu1 }
 0x112   : > { %1980 = vst [vmem:[%s2969_s28 + $0xb0] sm:$0xff] %v1808_v29  ;;  %v1809_v38 = vmax.f32 %v1191_v30, 0.0  ;;  %v1894_v43 = vmax.f32 %v1532_v36, 0.0  ;;  %v1535_v44 = vadd.f32 %v2962_v28, %v1534_v41 }
 0x113   : > { %1978 = vst [vmem:[%s2969_s28 + $0xa0] sm:$0xff] %v1806_v34  ;;  %v1807_v42 = vmax.f32 %v1183_v35, 0.0  ;;  %2068 = vst [vmem:[%s2969_s28 + $0x370] sm:$0xff] %v1896_v39  ;;  %v1897_v45 = vmax.f32 %v1543_v40, 0.0 }
 0x114   : > { %1981 = vst [vmem:[%s2969_s28 + $0xb8] sm:$0xff] %v1809_v38  ;;  %2066 = vst [vmem:[%s2969_s28 + $0x360] sm:$0xff] %v1894_v43  ;;  %v1895_v47 = vmax.f32 %v1535_v44, 0.0 }
 0x115   : > { %1979 = vst [vmem:[%s2969_s28 + $0xa8] sm:$0xff] %v1807_v42  ;;  %v2488_v46 = vpop.f32.mrb[24].mxu0  ;;  %2069 = vst [vmem:[%s2969_s28 + $0x378] sm:$0xff] %v1897_v45 }
 0x116   : > { %v1204_v48 = vadd.f32 %v2488_v46, %v2962_v28  ;;  %v1195_v49 = vpop.f32.mrb[25].mxu0  ;;  %2067 = vst [vmem:[%s2969_s28 + $0x368] sm:$0xff] %v1895_v47  ;;  %v2576_v52 = vpop.f32.mrb[24].mxu1 }
 0x117   : > { %v1196_v50 = vadd.f32 %v2962_v28, %v1195_v49  ;;  %v2489_v51 = vpop.f32.mrb[26].mxu0  ;;  %v1556_v56 = vadd.f32 %v2576_v52, %v2962_v28  ;;  %v1547_v57 = vpop.f32.mrb[25].mxu1 }
 0x118   : > { %v1812_v53 = vmax.f32 %v1204_v48, 0.0  ;;  %v1207_v54 = vadd.f32 %v2489_v51, %v2962_v28  ;;  %v1198_v55 = vpop.f32.mrb[27].mxu0  ;;  %v1548_v60 = vadd.f32 %v2962_v28, %v1547_v57  ;;  %v2577_v61 = vpop.f32.mrb[26].mxu1 }
 0x119   : > { %v1810_v58 = vmax.f32 %v1196_v50, 0.0  ;;  %v1199_v59 = vadd.f32 %v2962_v28, %v1198_v55  ;;  %v1900_v63 = vmax.f32 %v1556_v56, 0.0  ;;  %v1559_v0 = vadd.f32 %v2577_v61, %v2962_v28  ;;  %v1550_v1 = vpop.f32.mrb[27].mxu1 }
 0x11a   : > { %1984 = vst [vmem:[%s2969_s28 + $0xd0] sm:$0xff] %v1812_v53  ;;  %v1813_v62 = vmax.f32 %v1207_v54, 0.0  ;;  %v1898_v3 = vmax.f32 %v1548_v60, 0.0  ;;  %v1551_v4 = vadd.f32 %v2962_v28, %v1550_v1 }
 0x11b   : > { %1982 = vst [vmem:[%s2969_s28 + $0xc0] sm:$0xff] %v1810_v58  ;;  %v1811_v2 = vmax.f32 %v1199_v59, 0.0  ;;  %2072 = vst [vmem:[%s2969_s28 + $0x390] sm:$0xff] %v1900_v63  ;;  %v1901_v5 = vmax.f32 %v1559_v0, 0.0 }
 0x11c   : > { %1985 = vst [vmem:[%s2969_s28 + $0xd8] sm:$0xff] %v1813_v62  ;;  %2070 = vst [vmem:[%s2969_s28 + $0x380] sm:$0xff] %v1898_v3  ;;  %v1899_v7 = vmax.f32 %v1551_v4, 0.0 }
 0x11d   : > { %1983 = vst [vmem:[%s2969_s28 + $0xc8] sm:$0xff] %v1811_v2  ;;  %v2492_v6 = vpop.f32.mrb[28].mxu0  ;;  %2073 = vst [vmem:[%s2969_s28 + $0x398] sm:$0xff] %v1901_v5 }
 0x11e   : > { %v1220_v8 = vadd.f32 %v2492_v6, %v2962_v28  ;;  %v1211_v9 = vpop.f32.mrb[29].mxu0  ;;  %2071 = vst [vmem:[%s2969_s28 + $0x388] sm:$0xff] %v1899_v7  ;;  %v2580_v12 = vpop.f32.mrb[28].mxu1 }
 0x11f   : > { %v1212_v10 = vadd.f32 %v2962_v28, %v1211_v9  ;;  %v2493_v11 = vpop.f32.mrb[30].mxu0  ;;  %v1572_v16 = vadd.f32 %v2580_v12, %v2962_v28  ;;  %v1563_v17 = vpop.f32.mrb[29].mxu1 }
 0x120   : > { %v1816_v13 = vmax.f32 %v1220_v8, 0.0  ;;  %v1223_v14 = vadd.f32 %v2493_v11, %v2962_v28  ;;  %v1214_v15 = vpop.f32.mrb[31].mxu0  ;;  %v1564_v20 = vadd.f32 %v2962_v28, %v1563_v17  ;;  %v2581_v21 = vpop.f32.mrb[30].mxu1 }
 0x121   : > { %v1814_v18 = vmax.f32 %v1212_v10, 0.0  ;;  %v1215_v19 = vadd.f32 %v2962_v28, %v1214_v15  ;;  %v1904_v23 = vmax.f32 %v1572_v16, 0.0  ;;  %v1575_v24 = vadd.f32 %v2581_v21, %v2962_v28  ;;  %v1566_v25 = vpop.f32.mrb[31].mxu1 }
 0x122   : > { %1988 = vst [vmem:[%s2969_s28 + $0xf0] sm:$0xff] %v1816_v13  ;;  %v1817_v22 = vmax.f32 %v1223_v14, 0.0  ;;  %v1902_v27 = vmax.f32 %v1564_v20, 0.0  ;;  %v1567_v29 = vadd.f32 %v2962_v28, %v1566_v25 }
 0x123   : > { %1986 = vst [vmem:[%s2969_s28 + $0xe0] sm:$0xff] %v1814_v18  ;;  %v1815_v26 = vmax.f32 %v1215_v19, 0.0  ;;  %2076 = vst [vmem:[%s2969_s28 + $0x3b0] sm:$0xff] %v1904_v23  ;;  %v1905_v30 = vmax.f32 %v1575_v24, 0.0 }
 0x124   : > { %1989 = vst [vmem:[%s2969_s28 + $0xf8] sm:$0xff] %v1817_v22  ;;  %2074 = vst [vmem:[%s2969_s28 + $0x3a0] sm:$0xff] %v1902_v27  ;;  %v1903_v32 = vmax.f32 %v1567_v29, 0.0 }
 0x125   : > { %1987 = vst [vmem:[%s2969_s28 + $0xe8] sm:$0xff] %v1815_v26  ;;  %v2496_v31 = vpop.f32.mrb[32].mxu0  ;;  %2077 = vst [vmem:[%s2969_s28 + $0x3b8] sm:$0xff] %v1905_v30 }
 0x126   : > { %v1236_v33 = vadd.f32 %v2496_v31, %v2962_v28  ;;  %v1227_v34 = vpop.f32.mrb[33].mxu0  ;;  %2075 = vst [vmem:[%s2969_s28 + $0x3a8] sm:$0xff] %v1903_v32  ;;  %v2584_v37 = vpop.f32.mrb[32].mxu1 }
 0x127   : > { %v1228_v35 = vadd.f32 %v2962_v28, %v1227_v34  ;;  %v2497_v36 = vpop.f32.mrb[34].mxu0  ;;  %v1588_v41 = vadd.f32 %v2584_v37, %v2962_v28  ;;  %v1579_v42 = vpop.f32.mrb[33].mxu1 }
 0x128   : > { %v1820_v38 = vmax.f32 %v1236_v33, 0.0  ;;  %v1239_v39 = vadd.f32 %v2497_v36, %v2962_v28  ;;  %v1230_v40 = vpop.f32.mrb[35].mxu0  ;;  %v1580_v45 = vadd.f32 %v2962_v28, %v1579_v42  ;;  %v2585_v46 = vpop.f32.mrb[34].mxu1 }
 0x129   : > { %v1818_v43 = vmax.f32 %v1228_v35, 0.0  ;;  %v1231_v44 = vadd.f32 %v2962_v28, %v1230_v40  ;;  %v1908_v48 = vmax.f32 %v1588_v41, 0.0  ;;  %v1591_v49 = vadd.f32 %v2585_v46, %v2962_v28  ;;  %v1582_v50 = vpop.f32.mrb[35].mxu1 }
 0x12a   : > { %1992 = vst [vmem:[%s2969_s28 + $0x110] sm:$0xff] %v1820_v38  ;;  %v1821_v47 = vmax.f32 %v1239_v39, 0.0  ;;  %v1906_v52 = vmax.f32 %v1580_v45, 0.0  ;;  %v1583_v53 = vadd.f32 %v2962_v28, %v1582_v50 }
 0x12b   : > { %1990 = vst [vmem:[%s2969_s28 + $0x100] sm:$0xff] %v1818_v43  ;;  %v1819_v51 = vmax.f32 %v1231_v44, 0.0  ;;  %2080 = vst [vmem:[%s2969_s28 + $0x3d0] sm:$0xff] %v1908_v48  ;;  %v1909_v54 = vmax.f32 %v1591_v49, 0.0 }
 0x12c   : > { %1993 = vst [vmem:[%s2969_s28 + $0x118] sm:$0xff] %v1821_v47  ;;  %2078 = vst [vmem:[%s2969_s28 + $0x3c0] sm:$0xff] %v1906_v52  ;;  %v1907_v56 = vmax.f32 %v1583_v53, 0.0 }
 0x12d   : > { %1991 = vst [vmem:[%s2969_s28 + $0x108] sm:$0xff] %v1819_v51  ;;  %v2500_v55 = vpop.f32.mrb[36].mxu0  ;;  %2081 = vst [vmem:[%s2969_s28 + $0x3d8] sm:$0xff] %v1909_v54 }
 0x12e   : > { %v1252_v57 = vadd.f32 %v2500_v55, %v2962_v28  ;;  %v1243_v58 = vpop.f32.mrb[37].mxu0  ;;  %2079 = vst [vmem:[%s2969_s28 + $0x3c8] sm:$0xff] %v1907_v56  ;;  %v2588_v61 = vpop.f32.mrb[36].mxu1 }
 0x12f   : > { %v1244_v59 = vadd.f32 %v2962_v28, %v1243_v58  ;;  %v2501_v60 = vpop.f32.mrb[38].mxu0  ;;  %v1604_v1 = vadd.f32 %v2588_v61, %v2962_v28  ;;  %v1595_v2 = vpop.f32.mrb[37].mxu1 }
 0x130   : > { %v1824_v62 = vmax.f32 %v1252_v57, 0.0  ;;  %v1255_v63 = vadd.f32 %v2501_v60, %v2962_v28  ;;  %v1246_v0 = vpop.f32.mrb[39].mxu0  ;;  %v1596_v5 = vadd.f32 %v2962_v28, %v1595_v2  ;;  %v2589_v6 = vpop.f32.mrb[38].mxu1 }
 0x131   : > { %v1822_v3 = vmax.f32 %v1244_v59, 0.0  ;;  %v1247_v4 = vadd.f32 %v2962_v28, %v1246_v0  ;;  %v1912_v8 = vmax.f32 %v1604_v1, 0.0  ;;  %v1607_v9 = vadd.f32 %v2589_v6, %v2962_v28  ;;  %v1598_v10 = vpop.f32.mrb[39].mxu1 }
 0x132   : > { %1996 = vst [vmem:[%s2969_s28 + $0x130] sm:$0xff] %v1824_v62  ;;  %v1825_v7 = vmax.f32 %v1255_v63, 0.0  ;;  %v1910_v12 = vmax.f32 %v1596_v5, 0.0  ;;  %v1599_v13 = vadd.f32 %v2962_v28, %v1598_v10 }
 0x133   : > { %1994 = vst [vmem:[%s2969_s28 + $0x120] sm:$0xff] %v1822_v3  ;;  %v1823_v11 = vmax.f32 %v1247_v4, 0.0  ;;  %2084 = vst [vmem:[%s2969_s28 + $0x3f0] sm:$0xff] %v1912_v8  ;;  %v1913_v14 = vmax.f32 %v1607_v9, 0.0 }
 0x134   : > { %1997 = vst [vmem:[%s2969_s28 + $0x138] sm:$0xff] %v1825_v7  ;;  %2082 = vst [vmem:[%s2969_s28 + $0x3e0] sm:$0xff] %v1910_v12  ;;  %v1911_v16 = vmax.f32 %v1599_v13, 0.0 }
 0x135   : > { %1995 = vst [vmem:[%s2969_s28 + $0x128] sm:$0xff] %v1823_v11  ;;  %v2504_v15 = vpop.f32.mrb[40].mxu0  ;;  %2085 = vst [vmem:[%s2969_s28 + $0x3f8] sm:$0xff] %v1913_v14 }
 0x136   : > { %v1268_v17 = vadd.f32 %v2504_v15, %v2962_v28  ;;  %v1259_v18 = vpop.f32.mrb[41].mxu0  ;;  %2083 = vst [vmem:[%s2969_s28 + $0x3e8] sm:$0xff] %v1911_v16  ;;  %v2592_v21 = vpop.f32.mrb[40].mxu1 }
 0x137   : > { %v1260_v19 = vadd.f32 %v2962_v28, %v1259_v18  ;;  %v2505_v20 = vpop.f32.mrb[42].mxu0  ;;  %v1620_v25 = vadd.f32 %v2592_v21, %v2962_v28  ;;  %v1611_v26 = vpop.f32.mrb[41].mxu1 }
 0x138   : > { %v1828_v22 = vmax.f32 %v1268_v17, 0.0  ;;  %v1271_v23 = vadd.f32 %v2505_v20, %v2962_v28  ;;  %v1262_v24 = vpop.f32.mrb[43].mxu0  ;;  %v1612_v30 = vadd.f32 %v2962_v28, %v1611_v26  ;;  %v2593_v31 = vpop.f32.mrb[42].mxu1 }
 0x139   : > { %v1826_v27 = vmax.f32 %v1260_v19, 0.0  ;;  %v1263_v29 = vadd.f32 %v2962_v28, %v1262_v24  ;;  %v1916_v33 = vmax.f32 %v1620_v25, 0.0  ;;  %v1623_v34 = vadd.f32 %v2593_v31, %v2962_v28  ;;  %v1614_v35 = vpop.f32.mrb[43].mxu1 }
 0x13a   : > { %2000 = vst [vmem:[%s2969_s28 + $0x150] sm:$0xff] %v1828_v22  ;;  %v1829_v32 = vmax.f32 %v1271_v23, 0.0  ;;  %v1914_v37 = vmax.f32 %v1612_v30, 0.0  ;;  %v1615_v38 = vadd.f32 %v2962_v28, %v1614_v35 }
 0x13b   : > { %1998 = vst [vmem:[%s2969_s28 + $0x140] sm:$0xff] %v1826_v27  ;;  %v1827_v36 = vmax.f32 %v1263_v29, 0.0  ;;  %2088 = vst [vmem:[%s2969_s28 + $0x410] sm:$0xff] %v1916_v33  ;;  %v1917_v39 = vmax.f32 %v1623_v34, 0.0 }
 0x13c   : > { %2001 = vst [vmem:[%s2969_s28 + $0x158] sm:$0xff] %v1829_v32  ;;  %2086 = vst [vmem:[%s2969_s28 + $0x400] sm:$0xff] %v1914_v37  ;;  %v1915_v41 = vmax.f32 %v1615_v38, 0.0 }
 0x13d   : > { %1999 = vst [vmem:[%s2969_s28 + $0x148] sm:$0xff] %v1827_v36  ;;  %v2508_v40 = vpop.f32.mrb[44].mxu0  ;;  %2089 = vst [vmem:[%s2969_s28 + $0x418] sm:$0xff] %v1917_v39 }
 0x13e   : > { %v1284_v42 = vadd.f32 %v2508_v40, %v2962_v28  ;;  %v1275_v43 = vpop.f32.mrb[45].mxu0  ;;  %2087 = vst [vmem:[%s2969_s28 + $0x408] sm:$0xff] %v1915_v41  ;;  %v2596_v46 = vpop.f32.mrb[44].mxu1 }
 0x13f   : > { %v1276_v44 = vadd.f32 %v2962_v28, %v1275_v43  ;;  %v2509_v45 = vpop.f32.mrb[46].mxu0  ;;  %v1636_v50 = vadd.f32 %v2596_v46, %v2962_v28  ;;  %v1627_v51 = vpop.f32.mrb[45].mxu1 }
 0x140   : > { %v1832_v47 = vmax.f32 %v1284_v42, 0.0  ;;  %v1287_v48 = vadd.f32 %v2509_v45, %v2962_v28  ;;  %v1278_v49 = vpop.f32.mrb[47].mxu0  ;;  %v1628_v54 = vadd.f32 %v2962_v28, %v1627_v51  ;;  %v2597_v55 = vpop.f32.mrb[46].mxu1 }
 0x141   : > { %v1830_v52 = vmax.f32 %v1276_v44, 0.0  ;;  %v1279_v53 = vadd.f32 %v2962_v28, %v1278_v49  ;;  %v1920_v57 = vmax.f32 %v1636_v50, 0.0  ;;  %v1639_v58 = vadd.f32 %v2597_v55, %v2962_v28  ;;  %v1630_v59 = vpop.f32.mrb[47].mxu1 }
 0x142   : > { %2004 = vst [vmem:[%s2969_s28 + $0x170] sm:$0xff] %v1832_v47  ;;  %v1833_v56 = vmax.f32 %v1287_v48, 0.0  ;;  %v1918_v61 = vmax.f32 %v1628_v54, 0.0  ;;  %v1631_v62 = vadd.f32 %v2962_v28, %v1630_v59 }
 0x143   : > { %2002 = vst [vmem:[%s2969_s28 + $0x160] sm:$0xff] %v1830_v52  ;;  %v1831_v60 = vmax.f32 %v1279_v53, 0.0  ;;  %2092 = vst [vmem:[%s2969_s28 + $0x430] sm:$0xff] %v1920_v57  ;;  %v1921_v63 = vmax.f32 %v1639_v58, 0.0 }
 0x144   : > { %2005 = vst [vmem:[%s2969_s28 + $0x178] sm:$0xff] %v1833_v56  ;;  %2090 = vst [vmem:[%s2969_s28 + $0x420] sm:$0xff] %v1918_v61  ;;  %v1919_v1 = vmax.f32 %v1631_v62, 0.0 }
 0x145   : > { %2003 = vst [vmem:[%s2969_s28 + $0x168] sm:$0xff] %v1831_v60  ;;  %v2512_v0 = vpop.f32.mrb[48].mxu0  ;;  %2093 = vst [vmem:[%s2969_s28 + $0x438] sm:$0xff] %v1921_v63 }
 0x146   : > { %v1300_v2 = vadd.f32 %v2512_v0, %v2962_v28  ;;  %v1291_v3 = vpop.f32.mrb[49].mxu0  ;;  %2091 = vst [vmem:[%s2969_s28 + $0x428] sm:$0xff] %v1919_v1  ;;  %v2600_v6 = vpop.f32.mrb[48].mxu1 }
 0x147   : > { %v1292_v4 = vadd.f32 %v2962_v28, %v1291_v3  ;;  %v2513_v5 = vpop.f32.mrb[50].mxu0  ;;  %v1652_v10 = vadd.f32 %v2600_v6, %v2962_v28  ;;  %v1643_v11 = vpop.f32.mrb[49].mxu1 }
 0x148   : > { %v1836_v7 = vmax.f32 %v1300_v2, 0.0  ;;  %v1303_v8 = vadd.f32 %v2513_v5, %v2962_v28  ;;  %v1294_v9 = vpop.f32.mrb[51].mxu0  ;;  %v1644_v14 = vadd.f32 %v2962_v28, %v1643_v11  ;;  %v2601_v15 = vpop.f32.mrb[50].mxu1 }
 0x149   : > { %v1834_v12 = vmax.f32 %v1292_v4, 0.0  ;;  %v1295_v13 = vadd.f32 %v2962_v28, %v1294_v9  ;;  %v1924_v17 = vmax.f32 %v1652_v10, 0.0  ;;  %v1655_v18 = vadd.f32 %v2601_v15, %v2962_v28  ;;  %v1646_v19 = vpop.f32.mrb[51].mxu1 }
 0x14a   : > { %2008 = vst [vmem:[%s2969_s28 + $0x190] sm:$0xff] %v1836_v7  ;;  %v1837_v16 = vmax.f32 %v1303_v8, 0.0  ;;  %v1922_v21 = vmax.f32 %v1644_v14, 0.0  ;;  %v1647_v22 = vadd.f32 %v2962_v28, %v1646_v19 }
 0x14b   : > { %2006 = vst [vmem:[%s2969_s28 + $0x180] sm:$0xff] %v1834_v12  ;;  %v1835_v20 = vmax.f32 %v1295_v13, 0.0  ;;  %2096 = vst [vmem:[%s2969_s28 + $0x450] sm:$0xff] %v1924_v17  ;;  %v1925_v23 = vmax.f32 %v1655_v18, 0.0 }
 0x14c   : > { %2009 = vst [vmem:[%s2969_s28 + $0x198] sm:$0xff] %v1837_v16  ;;  %2094 = vst [vmem:[%s2969_s28 + $0x440] sm:$0xff] %v1922_v21  ;;  %v1923_v25 = vmax.f32 %v1647_v22, 0.0 }
 0x14d   : > { %2007 = vst [vmem:[%s2969_s28 + $0x188] sm:$0xff] %v1835_v20  ;;  %v2516_v24 = vpop.f32.mrb[52].mxu0  ;;  %2097 = vst [vmem:[%s2969_s28 + $0x458] sm:$0xff] %v1925_v23 }
 0x14e   : > { %v1316_v26 = vadd.f32 %v2516_v24, %v2962_v28  ;;  %v1307_v27 = vpop.f32.mrb[53].mxu0  ;;  %2095 = vst [vmem:[%s2969_s28 + $0x448] sm:$0xff] %v1923_v25  ;;  %v2604_v31 = vpop.f32.mrb[52].mxu1 }
 0x14f   : > { %v1308_v29 = vadd.f32 %v2962_v28, %v1307_v27  ;;  %v2517_v30 = vpop.f32.mrb[54].mxu0  ;;  %v1668_v35 = vadd.f32 %v2604_v31, %v2962_v28  ;;  %v1659_v36 = vpop.f32.mrb[53].mxu1 }
 0x150   : > { %v1840_v32 = vmax.f32 %v1316_v26, 0.0  ;;  %v1319_v33 = vadd.f32 %v2517_v30, %v2962_v28  ;;  %v1310_v34 = vpop.f32.mrb[55].mxu0  ;;  %v1660_v39 = vadd.f32 %v2962_v28, %v1659_v36  ;;  %v2605_v40 = vpop.f32.mrb[54].mxu1  ;;  %v3228_v36 = vld [vmem:[%s3324_s2] ss:$0 sm:$0xff] }
 0x151   : > { %v1838_v37 = vmax.f32 %v1308_v29, 0.0  ;;  %v1311_v38 = vadd.f32 %v2962_v28, %v1310_v34  ;;  %v1928_v42 = vmax.f32 %v1668_v35, 0.0  ;;  %v1671_v43 = vadd.f32 %v2605_v40, %v2962_v28  ;;  %v1662_v44 = vpop.f32.mrb[55].mxu1 }
 0x152   : > { %2012 = vst [vmem:[%s2969_s28 + $0x1b0] sm:$0xff] %v1840_v32  ;;  %v1841_v41 = vmax.f32 %v1319_v33, 0.0  ;;  %v1926_v46 = vmax.f32 %v1660_v39, 0.0  ;;  %v1663_v47 = vadd.f32 %v2962_v28, %v1662_v44 }
 0x153   : > { %2010 = vst [vmem:[%s2969_s28 + $0x1a0] sm:$0xff] %v1838_v37  ;;  %v1839_v45 = vmax.f32 %v1311_v38, 0.0  ;;  %2100 = vst [vmem:[%s2969_s28 + $0x470] sm:$0xff] %v1928_v42  ;;  %v1929_v48 = vmax.f32 %v1671_v43, 0.0 }
 0x154   : > { %2013 = vst [vmem:[%s2969_s28 + $0x1b8] sm:$0xff] %v1841_v41  ;;  %2098 = vst [vmem:[%s2969_s28 + $0x460] sm:$0xff] %v1926_v46  ;;  %v1927_v50 = vmax.f32 %v1663_v47, 0.0 }
 0x155   : > { %2011 = vst [vmem:[%s2969_s28 + $0x1a8] sm:$0xff] %v1839_v45  ;;  %v2520_v49 = vpop.f32.mrb[56].mxu0  ;;  %2101 = vst [vmem:[%s2969_s28 + $0x478] sm:$0xff] %v1929_v48 }
 0x156   : > { %v1332_v51 = vadd.f32 %v2520_v49, %v2962_v28  ;;  %v1323_v52 = vpop.f32.mrb[57].mxu0  ;;  %2099 = vst [vmem:[%s2969_s28 + $0x468] sm:$0xff] %v1927_v50  ;;  %v2608_v55 = vpop.f32.mrb[56].mxu1 }
 0x157   : > { %v1324_v53 = vadd.f32 %v2962_v28, %v1323_v52  ;;  %v2521_v54 = vpop.f32.mrb[58].mxu0  ;;  %v1684_v59 = vadd.f32 %v2608_v55, %v2962_v28  ;;  %v1675_v60 = vpop.f32.mrb[57].mxu1 }
 0x158   : > { %v1844_v56 = vmax.f32 %v1332_v51, 0.0  ;;  %v1335_v57 = vadd.f32 %v2521_v54, %v2962_v28  ;;  %v1326_v58 = vpop.f32.mrb[59].mxu0  ;;  %v1676_v63 = vadd.f32 %v2962_v28, %v1675_v60  ;;  %v2609_v0 = vpop.f32.mrb[58].mxu1 }
 0x159   : > { %v1842_v61 = vmax.f32 %v1324_v53, 0.0  ;;  %v1327_v62 = vadd.f32 %v2962_v28, %v1326_v58  ;;  %v1932_v2 = vmax.f32 %v1684_v59, 0.0  ;;  %v1687_v3 = vadd.f32 %v2609_v0, %v2962_v28  ;;  %v1678_v4 = vpop.f32.mrb[59].mxu1 }
 0x15a   : > { %2016 = vst [vmem:[%s2969_s28 + $0x1d0] sm:$0xff] %v1844_v56  ;;  %v1845_v1 = vmax.f32 %v1335_v57, 0.0  ;;  %v1930_v6 = vmax.f32 %v1676_v63, 0.0  ;;  %v1679_v7 = vadd.f32 %v2962_v28, %v1678_v4 }
 0x15b   : > { %2014 = vst [vmem:[%s2969_s28 + $0x1c0] sm:$0xff] %v1842_v61  ;;  %v1843_v5 = vmax.f32 %v1327_v62, 0.0  ;;  %2104 = vst [vmem:[%s2969_s28 + $0x490] sm:$0xff] %v1932_v2  ;;  %v1933_v8 = vmax.f32 %v1687_v3, 0.0 }
 0x15c   : > { %2017 = vst [vmem:[%s2969_s28 + $0x1d8] sm:$0xff] %v1845_v1  ;;  %2102 = vst [vmem:[%s2969_s28 + $0x480] sm:$0xff] %v1930_v6  ;;  %v1931_v10 = vmax.f32 %v1679_v7, 0.0 }
 0x15d   : > { %2015 = vst [vmem:[%s2969_s28 + $0x1c8] sm:$0xff] %v1843_v5  ;;  %v2524_v9 = vpop.f32.mrb[60].mxu0  ;;  %2105 = vst [vmem:[%s2969_s28 + $0x498] sm:$0xff] %v1933_v8 }
 0x15e   : > { %v1348_v11 = vadd.f32 %v2524_v9, %v2962_v28  ;;  %v1339_v12 = vpop.f32.mrb[61].mxu0  ;;  %2103 = vst [vmem:[%s2969_s28 + $0x488] sm:$0xff] %v1931_v10  ;;  %v2612_v15 = vpop.f32.mrb[60].mxu1 }
 0x15f   : > { %v1340_v13 = vadd.f32 %v2962_v28, %v1339_v12  ;;  %v2525_v14 = vpop.f32.mrb[62].mxu0  ;;  %v1700_v19 = vadd.f32 %v2612_v15, %v2962_v28  ;;  %v1691_v20 = vpop.f32.mrb[61].mxu1 }
 0x160   : > { %v1848_v16 = vmax.f32 %v1348_v11, 0.0  ;;  %v1351_v17 = vadd.f32 %v2525_v14, %v2962_v28  ;;  %v1342_v18 = vpop.f32.mrb[63].mxu0  ;;  %v1692_v23 = vadd.f32 %v2962_v28, %v1691_v20  ;;  %v2613_v24 = vpop.f32.mrb[62].mxu1 }
 0x161   : > { %v1846_v21 = vmax.f32 %v1340_v13, 0.0  ;;  %v1343_v22 = vadd.f32 %v2962_v28, %v1342_v18  ;;  %v1936_v26 = vmax.f32 %v1700_v19, 0.0  ;;  %v1703_v27 = vadd.f32 %v2613_v24, %v2962_v28  ;;  %v1694_v29 = vpop.f32.mrb[63].mxu1 }
 0x162   : > { %2020 = vst [vmem:[%s2969_s28 + $0x1f0] sm:$0xff] %v1848_v16  ;;  %v1849_v25 = vmax.f32 %v1351_v17, 0.0  ;;  %v1934_v31 = vmax.f32 %v1692_v23, 0.0  ;;  %v1695_v32 = vadd.f32 %v2962_v28, %v1694_v29 }
 0x163   : > { %2018 = vst [vmem:[%s2969_s28 + $0x1e0] sm:$0xff] %v1846_v21  ;;  %v1847_v30 = vmax.f32 %v1343_v22, 0.0  ;;  %2108 = vst [vmem:[%s2969_s28 + $0x4b0] sm:$0xff] %v1936_v26  ;;  %v1937_v33 = vmax.f32 %v1703_v27, 0.0 }
 0x164   : > { %2021 = vst [vmem:[%s2969_s28 + $0x1f8] sm:$0xff] %v1849_v25  ;;  %2106 = vst [vmem:[%s2969_s28 + $0x4a0] sm:$0xff] %v1934_v31  ;;  %v1935_v35 = vmax.f32 %v1695_v32, 0.0 }
 0x165   : > { %2019 = vst [vmem:[%s2969_s28 + $0x1e8] sm:$0xff] %v1847_v30  ;;  %v2528_v34 = vpop.f32.mrb[64].mxu0  ;;  %2109 = vst [vmem:[%s2969_s28 + $0x4b8] sm:$0xff] %v1937_v33 }
 0x166   : > { %v1364_v37 = vadd.f32 %v3228_v36, %v2528_v34  ;;  %v1355_v38 = vpop.f32.mrb[65].mxu0  ;;  %2107 = vst [vmem:[%s2969_s28 + $0x4a8] sm:$0xff] %v1935_v35  ;;  %v2616_v40 = vpop.f32.mrb[64].mxu1 }
 0x167   : > { %v1356_v28 = vadd.f32 %v3228_v36, %v1355_v38  ;;  %v2529_v39 = vpop.f32.mrb[66].mxu0  ;;  %v1716_v44 = vadd.f32 %v3228_v36, %v2616_v40  ;;  %v1707_v45 = vpop.f32.mrb[65].mxu1 }
 0x168   : > { %v1852_v41 = vmax.f32 %v1364_v37, 0.0  ;;  %v1367_v42 = vadd.f32 %v3228_v36, %v2529_v39  ;;  %v1358_v43 = vpop.f32.mrb[67].mxu0  ;;  %v1708_v48 = vadd.f32 %v3228_v36, %v1707_v45  ;;  %v2617_v49 = vpop.f32.mrb[66].mxu1 }
 0x169   : > { %v1850_v46 = vmax.f32 %v1356_v28, 0.0  ;;  %v1359_v47 = vadd.f32 %v3228_v36, %v1358_v43  ;;  %v1940_v51 = vmax.f32 %v1716_v44, 0.0  ;;  %v1719_v52 = vadd.f32 %v3228_v36, %v2617_v49  ;;  %v1710_v53 = vpop.f32.mrb[67].mxu1 }
 0x16a   : > { %2024 = vst [vmem:[%s2969_s28 + $0x210] sm:$0xff] %v1852_v41  ;;  %v1853_v50 = vmax.f32 %v1367_v42, 0.0  ;;  %v1938_v55 = vmax.f32 %v1708_v48, 0.0  ;;  %v1711_v56 = vadd.f32 %v3228_v36, %v1710_v53 }
 0x16b   : > { %2022 = vst [vmem:[%s2969_s28 + $0x200] sm:$0xff] %v1850_v46  ;;  %v1851_v54 = vmax.f32 %v1359_v47, 0.0  ;;  %2112 = vst [vmem:[%s2969_s28 + $0x4d0] sm:$0xff] %v1940_v51  ;;  %v1941_v57 = vmax.f32 %v1719_v52, 0.0 }
 0x16c   : > { %2025 = vst [vmem:[%s2969_s28 + $0x218] sm:$0xff] %v1853_v50  ;;  %2110 = vst [vmem:[%s2969_s28 + $0x4c0] sm:$0xff] %v1938_v55  ;;  %v1939_v59 = vmax.f32 %v1711_v56, 0.0 }
 0x16d   : > { %2023 = vst [vmem:[%s2969_s28 + $0x208] sm:$0xff] %v1851_v54  ;;  %v2532_v58 = vpop.f32.mrb[68].mxu0  ;;  %2113 = vst [vmem:[%s2969_s28 + $0x4d8] sm:$0xff] %v1941_v57 }
 0x16e   : > { %v1380_v60 = vadd.f32 %v3228_v36, %v2532_v58  ;;  %v1371_v61 = vpop.f32.mrb[69].mxu0  ;;  %2111 = vst [vmem:[%s2969_s28 + $0x4c8] sm:$0xff] %v1939_v59  ;;  %v2620_v0 = vpop.f32.mrb[68].mxu1 }
 0x16f   : > { %v1372_v62 = vadd.f32 %v3228_v36, %v1371_v61  ;;  %v2533_v63 = vpop.f32.mrb[70].mxu0  ;;  %v1732_v4 = vadd.f32 %v3228_v36, %v2620_v0  ;;  %v1723_v5 = vpop.f32.mrb[69].mxu1 }
 0x170   : > { %v1856_v1 = vmax.f32 %v1380_v60, 0.0  ;;  %v1383_v2 = vadd.f32 %v3228_v36, %v2533_v63  ;;  %v1374_v3 = vpop.f32.mrb[71].mxu0  ;;  %v1724_v8 = vadd.f32 %v3228_v36, %v1723_v5  ;;  %v2621_v9 = vpop.f32.mrb[70].mxu1 }
 0x171   : > { %v1854_v6 = vmax.f32 %v1372_v62, 0.0  ;;  %v1375_v7 = vadd.f32 %v3228_v36, %v1374_v3  ;;  %v1944_v11 = vmax.f32 %v1732_v4, 0.0  ;;  %v1735_v12 = vadd.f32 %v3228_v36, %v2621_v9  ;;  %v1726_v13 = vpop.f32.mrb[71].mxu1 }
 0x172   : > { %2028 = vst [vmem:[%s2969_s28 + $0x230] sm:$0xff] %v1856_v1  ;;  %v1857_v10 = vmax.f32 %v1383_v2, 0.0  ;;  %v1942_v15 = vmax.f32 %v1724_v8, 0.0  ;;  %v1727_v16 = vadd.f32 %v3228_v36, %v1726_v13 }
 0x173   : > { %2026 = vst [vmem:[%s2969_s28 + $0x220] sm:$0xff] %v1854_v6  ;;  %v1855_v14 = vmax.f32 %v1375_v7, 0.0  ;;  %2116 = vst [vmem:[%s2969_s28 + $0x4f0] sm:$0xff] %v1944_v11  ;;  %v1945_v17 = vmax.f32 %v1735_v12, 0.0 }
 0x174   : > { %2029 = vst [vmem:[%s2969_s28 + $0x238] sm:$0xff] %v1857_v10  ;;  %2114 = vst [vmem:[%s2969_s28 + $0x4e0] sm:$0xff] %v1942_v15  ;;  %v1943_v19 = vmax.f32 %v1727_v16, 0.0 }
 0x175   : > { %2027 = vst [vmem:[%s2969_s28 + $0x228] sm:$0xff] %v1855_v14  ;;  %v2536_v18 = vpop.f32.mrb[72].mxu0  ;;  %2117 = vst [vmem:[%s2969_s28 + $0x4f8] sm:$0xff] %v1945_v17 }
 0x176   : > { %v1396_v20 = vadd.f32 %v3228_v36, %v2536_v18  ;;  %v1387_v21 = vpop.f32.mrb[73].mxu0  ;;  %2115 = vst [vmem:[%s2969_s28 + $0x4e8] sm:$0xff] %v1943_v19  ;;  %v2624_v24 = vpop.f32.mrb[72].mxu1 }
 0x177   : > { %v1388_v22 = vadd.f32 %v3228_v36, %v1387_v21  ;;  %v2537_v23 = vpop.f32.mrb[74].mxu0  ;;  %v1748_v29 = vadd.f32 %v3228_v36, %v2624_v24  ;;  %v1739_v30 = vpop.f32.mrb[73].mxu1 }
 0x178   : > { %v1860_v25 = vmax.f32 %v1396_v20, 0.0  ;;  %v1399_v26 = vadd.f32 %v3228_v36, %v2537_v23  ;;  %v1390_v27 = vpop.f32.mrb[75].mxu0  ;;  %v1740_v33 = vadd.f32 %v3228_v36, %v1739_v30  ;;  %v2625_v34 = vpop.f32.mrb[74].mxu1 }
 0x179   : > { %v1858_v31 = vmax.f32 %v1388_v22, 0.0  ;;  %v1391_v32 = vadd.f32 %v3228_v36, %v1390_v27  ;;  %v1948_v37 = vmax.f32 %v1748_v29, 0.0  ;;  %v1751_v38 = vadd.f32 %v3228_v36, %v2625_v34  ;;  %v1742_v28 = vpop.f32.mrb[75].mxu1 }
 0x17a   : > { %2032 = vst [vmem:[%s2969_s28 + $0x250] sm:$0xff] %v1860_v25  ;;  %v1861_v35 = vmax.f32 %v1399_v26, 0.0  ;;  %v1946_v40 = vmax.f32 %v1740_v33, 0.0  ;;  %v1743_v41 = vadd.f32 %v3228_v36, %v1742_v28 }
 0x17b   : > { %2030 = vst [vmem:[%s2969_s28 + $0x240] sm:$0xff] %v1858_v31  ;;  %v1859_v39 = vmax.f32 %v1391_v32, 0.0  ;;  %2120 = vst [vmem:[%s2969_s28 + $0x510] sm:$0xff] %v1948_v37  ;;  %v1949_v42 = vmax.f32 %v1751_v38, 0.0 }
 0x17c   : > { %2033 = vst [vmem:[%s2969_s28 + $0x258] sm:$0xff] %v1861_v35  ;;  %2118 = vst [vmem:[%s2969_s28 + $0x500] sm:$0xff] %v1946_v40  ;;  %v1947_v44 = vmax.f32 %v1743_v41, 0.0 }
 0x17d   : > { %2031 = vst [vmem:[%s2969_s28 + $0x248] sm:$0xff] %v1859_v39  ;;  %v2540_v43 = vpop.f32.mrb[76].mxu0  ;;  %2121 = vst [vmem:[%s2969_s28 + $0x518] sm:$0xff] %v1949_v42 }
 0x17e   : > { %v1412_v45 = vadd.f32 %v3228_v36, %v2540_v43  ;;  %v1403_v46 = vpop.f32.mrb[77].mxu0  ;;  %2119 = vst [vmem:[%s2969_s28 + $0x508] sm:$0xff] %v1947_v44  ;;  %v2628_v49 = vpop.f32.mrb[76].mxu1 }
 0x17f   : > { %v1404_v47 = vadd.f32 %v3228_v36, %v1403_v46  ;;  %v2541_v48 = vpop.f32.mrb[78].mxu0  ;;  %v1764_v53 = vadd.f32 %v3228_v36, %v2628_v49  ;;  %v1755_v54 = vpop.f32.mrb[77].mxu1 }
 0x180   : > { %v1864_v50 = vmax.f32 %v1412_v45, 0.0  ;;  %v1415_v51 = vadd.f32 %v3228_v36, %v2541_v48  ;;  %v1406_v52 = vpop.f32.mrb[79].mxu0  ;;  %v1756_v57 = vadd.f32 %v3228_v36, %v1755_v54  ;;  %v2629_v58 = vpop.f32.mrb[78].mxu1 }
 0x181   : > { %v1862_v55 = vmax.f32 %v1404_v47, 0.0  ;;  %v1407_v56 = vadd.f32 %v3228_v36, %v1406_v52  ;;  %v1952_v60 = vmax.f32 %v1764_v53, 0.0  ;;  %v1767_v61 = vadd.f32 %v3228_v36, %v2629_v58  ;;  %v1758_v62 = vpop.f32.mrb[79].mxu1 }
 0x182   : > { %2036 = vst [vmem:[%s2969_s28 + $0x270] sm:$0xff] %v1864_v50  ;;  %v1865_v59 = vmax.f32 %v1415_v51, 0.0  ;;  %v1950_v0 = vmax.f32 %v1756_v57, 0.0  ;;  %v1759_v1 = vadd.f32 %v3228_v36, %v1758_v62 }
 0x183   : > { %2034 = vst [vmem:[%s2969_s28 + $0x260] sm:$0xff] %v1862_v55  ;;  %v1863_v63 = vmax.f32 %v1407_v56, 0.0  ;;  %2124 = vst [vmem:[%s2969_s28 + $0x530] sm:$0xff] %v1952_v60  ;;  %v1953_v2 = vmax.f32 %v1767_v61, 0.0 }
 0x184   : > { %2037 = vst [vmem:[%s2969_s28 + $0x278] sm:$0xff] %v1865_v59  ;;  %2122 = vst [vmem:[%s2969_s28 + $0x520] sm:$0xff] %v1950_v0  ;;  %v1951_v4 = vmax.f32 %v1759_v1, 0.0 }
 0x185   : > { %2035 = vst [vmem:[%s2969_s28 + $0x268] sm:$0xff] %v1863_v63  ;;  %v2544_v3 = vpop.f32.mrb[80].mxu0  ;;  %2125 = vst [vmem:[%s2969_s28 + $0x538] sm:$0xff] %v1953_v2 }
 0x186   : > { %v1428_v5 = vadd.f32 %v3228_v36, %v2544_v3  ;;  %v1419_v6 = vpop.f32.mrb[81].mxu0  ;;  %2123 = vst [vmem:[%s2969_s28 + $0x528] sm:$0xff] %v1951_v4  ;;  %v2632_v9 = vpop.f32.mrb[80].mxu1 }
 0x187   : > { %v1420_v7 = vadd.f32 %v3228_v36, %v1419_v6  ;;  %v2545_v8 = vpop.f32.mrb[82].mxu0  ;;  %v1780_v13 = vadd.f32 %v3228_v36, %v2632_v9  ;;  %v1771_v14 = vpop.f32.mrb[81].mxu1 }
 0x188   : > { %v1868_v10 = vmax.f32 %v1428_v5, 0.0  ;;  %v1431_v11 = vadd.f32 %v3228_v36, %v2545_v8  ;;  %v1422_v12 = vpop.f32.mrb[83].mxu0  ;;  %v1772_v17 = vadd.f32 %v3228_v36, %v1771_v14  ;;  %v2633_v18 = vpop.f32.mrb[82].mxu1 }
 0x189   : > { %v1866_v15 = vmax.f32 %v1420_v7, 0.0  ;;  %v1423_v16 = vadd.f32 %v3228_v36, %v1422_v12  ;;  %v1956_v20 = vmax.f32 %v1780_v13, 0.0  ;;  %v1783_v21 = vadd.f32 %v3228_v36, %v2633_v18  ;;  %v1774_v22 = vpop.f32.mrb[83].mxu1 }
 0x18a   : > { %2040 = vst [vmem:[%s2969_s28 + $0x290] sm:$0xff] %v1868_v10  ;;  %v1869_v19 = vmax.f32 %v1431_v11, 0.0  ;;  %v1954_v24 = vmax.f32 %v1772_v17, 0.0  ;;  %v1775_v25 = vadd.f32 %v3228_v36, %v1774_v22 }
 0x18b   : > { %2038 = vst [vmem:[%s2969_s28 + $0x280] sm:$0xff] %v1866_v15  ;;  %v1867_v23 = vmax.f32 %v1423_v16, 0.0  ;;  %2128 = vst [vmem:[%s2969_s28 + $0x550] sm:$0xff] %v1956_v20  ;;  %v1957_v26 = vmax.f32 %v1783_v21, 0.0 }
 0x18c   : > { %2041 = vst [vmem:[%s2969_s28 + $0x298] sm:$0xff] %v1869_v19  ;;  %2126 = vst [vmem:[%s2969_s28 + $0x540] sm:$0xff] %v1954_v24  ;;  %v1955_v29 = vmax.f32 %v1775_v25, 0.0 }
 0x18d   : > { %2039 = vst [vmem:[%s2969_s28 + $0x288] sm:$0xff] %v1867_v23  ;;  %v2548_v27 = vpop.f32.mrb[84].mxu0  ;;  %2129 = vst [vmem:[%s2969_s28 + $0x558] sm:$0xff] %v1957_v26 }
 0x18e   : > { %v1444_v30 = vadd.f32 %v3228_v36, %v2548_v27  ;;  %v1435_v31 = vpop.f32.mrb[85].mxu0  ;;  %2127 = vst [vmem:[%s2969_s28 + $0x548] sm:$0xff] %v1955_v29 }
 0x18f   : > { %v1436_v32 = vadd.f32 %v3228_v36, %v1435_v31  ;;  %v2549_v33 = vpop.f32.mrb[86].mxu0 }
 0x190   : > { %v1872_v34 = vmax.f32 %v1444_v30, 0.0  ;;  %v1447_v35 = vadd.f32 %v3228_v36, %v2549_v33  ;;  %v1438_v37 = vpop.f32.mrb[87].mxu0 }
 0x191   : > { %v1870_v38 = vmax.f32 %v1436_v32, 0.0  ;;  %v1439_v28 = vadd.f32 %v3228_v36, %v1438_v37 }
 0x192   : > { %2044 = vst [vmem:[%s2969_s28 + $0x2b0] sm:$0xff] %v1872_v34  ;;  %v1873_v39 = vmax.f32 %v1447_v35, 0.0 }
 0x193   : > { %2042 = vst [vmem:[%s2969_s28 + $0x2a0] sm:$0xff] %v1870_v38  ;;  %v1871_v40 = vmax.f32 %v1439_v28, 0.0 }
 0x194   : > { %2045 = vst [vmem:[%s2969_s28 + $0x2b8] sm:$0xff] %v1873_v39 }
 0x195   : > { %2043 = vst [vmem:[%s2969_s28 + $0x2a8] sm:$0xff] %v1871_v40 }
 0x196 PF: > { %s13_s12 = sadd.s32 1, %s2742_s12  }
 0x197   : > { %p10_p4 = scmp.ge.s32.totalorder %s13_s12, 4  }
 0x199   :  { %12 = sbr.rel (!%p10_p4) target bundleno = 1 (0x1), region = 62 }

// kernel: vqvae_forward.13
= control target key start
LH: loop header
LB: loop body
LE: loop exit
PB: predicated region body
PF: predicated region fallthrough
CT: control target
= control target key end

     0   :  { %s5418_s12 = smov 0   ;;  %s6328_s0 = inlined_call_operand.vmem [shape: bf16[592,1600], index: 0, kind: input, shape index: {}]   ;;  %s6329_s1 = inlined_call_operand.vmem [shape: bf16[1600,128], index: 1, kind: input, shape index: {}]   ;;  %s6330_s2 = inlined_call_operand.vmem [shape: f32[1,128], index: 2, kind: input, shape index: {}]   ;;  %s6331_s3 = inlined_call_operand.vmem [shape: f32[592,128], index: 3, kind: output, shape index: {}]  }
   0x1 LB: > { %s3935_s13 = sadd.s32 4294967295, %s5393_s12   ;;  %p3939_p0 = scmp.ge.s32.totalorder %s5393_s12, 1  ;;  %s5393_s12 = sphi %s5418_s12, %s13_s12  }
   0x2   : > { %p139_p1 = scmp.lt.s32.totalorder %s5393_s12, 3 }
   0x4   : > { %p140_p2 = pnand %p3939_p0, %p139_p1 }
   0x5   : > { %v4916_v0 = vld [vmem:[%s6329_s1] sm:$0xff] (!%p140_p2)   ;;  %v5395_v1 = vmov (!%p140_p2), 0   ;;  %v4918_v3 = vld [vmem:[%s6329_s1 + $0x8] sm:$0xff] (!%p140_p2)   ;;  %v4920_v5 = vld [vmem:[%s6329_s1 + $0x10] sm:$0xff] (!%p140_p2)   ;;  %s164_s5 = smul.u32 (!%p140_p2), 37, %s3935_s13  ;;  %vm5397_vm0 = vmmov (!%p140_p2), 0  }
   0x6   : > { %143 = sbr.rel (%p140_p2) target bundleno = 816 (0x330), region = 32  ;;  %2517 = vmatprep.subr.bf16.mxu1 (!%p140_p2), %v5395_v1  ;;  %3069 = vmatprep.subr.bf16.mxu0 (!%p140_p2), %v5395_v1  ;;  %v4917_v2 = vld [vmem:[%s6329_s1 + $0x180] sm:$0xff] (!%p140_p2)   ;;  %v4919_v4 = vld [vmem:[%s6329_s1 + $0x188] sm:$0xff] (!%p140_p2)   ;;  %v4921_v6 = vld [vmem:[%s6329_s1 + $0x190] sm:$0xff] (!%p140_p2)   ;;  %vm2459_vm1 = vcmask (!%p140_p2), 523264  }
   0x7   : > { %2518 = vmatpush1.bf16.msra.mxu1 (!%p140_p2), %v4916_v0  ;;  %3070 = vmatpush1.bf16.msra.mxu0 (!%p140_p2), %v4917_v2  ;;  %v4922_v7 = vld [vmem:[%s6329_s1 + $0x18] sm:$0xff] (!%p140_p2)   ;;  %v4924_v9 = vld [vmem:[%s6329_s1 + $0x20] sm:$0xff] (!%p140_p2)   ;;  %v4926_v11 = vld [vmem:[%s6329_s1 + $0x28] sm:$0xff] (!%p140_p2)   ;;  %p165_p3 = scmp.lt.s32.totalorder (!%p140_p2), %s164_s5, 73 }
   0x8   : > { %2519 = vmatprep.subr.bf16.mxu1 (!%p140_p2), %v5395_v1  ;;  %3071 = vmatprep.subr.bf16.mxu0 (!%p140_p2), %v5395_v1  ;;  %v4923_v8 = vld [vmem:[%s6329_s1 + $0x198] sm:$0xff] (!%p140_p2)   ;;  %v4925_v10 = vld [vmem:[%s6329_s1 + $0x1a0] sm:$0xff] (!%p140_p2)   ;;  %v4927_v12 = vld [vmem:[%s6329_s1 + $0x1a8] sm:$0xff] (!%p140_p2)  }
   0x9   : > { %v4928_v13 = vld [vmem:[%s6329_s1 + $0x30] sm:$0xff] (!%p140_p2)   ;;  %v4930_v15 = vld [vmem:[%s6329_s1 + $0x38] sm:$0xff] (!%p140_p2)   ;;  %v4932_v17 = vld [vmem:[%s6329_s1 + $0x40] sm:$0xff] (!%p140_p2)  }
   0xa   : > { %v4929_v14 = vld [vmem:[%s6329_s1 + $0x1b0] sm:$0xff] (!%p140_p2)   ;;  %v4931_v16 = vld [vmem:[%s6329_s1 + $0x1b8] sm:$0xff] (!%p140_p2)   ;;  %v4933_v18 = vld [vmem:[%s6329_s1 + $0x1c0] sm:$0xff] (!%p140_p2)  }
   0xb   : > { %2520 = vmatpush1.bf16.msra.mxu1 (!%p140_p2), %v4918_v3  ;;  %3072 = vmatpush1.bf16.msra.mxu0 (!%p140_p2), %v4919_v4  ;;  %v4934_v20 = vld [vmem:[%s6329_s1 + $0x48] sm:$0xff] (!%p140_p2)   ;;  %v4936_v23 = vld [vmem:[%s6329_s1 + $0x50] sm:$0xff] (!%p140_p2)   ;;  %v4938_v25 = vld [vmem:[%s6329_s1 + $0x58] sm:$0xff] (!%p140_p2)  }
   0xc   : > { %2521 = vmatprep.subr.bf16.mxu1 (!%p140_p2), %v5395_v1  ;;  %3073 = vmatprep.subr.bf16.mxu0 (!%p140_p2), %v5395_v1  ;;  %v4935_v22 = vld [vmem:[%s6329_s1 + $0x1c8] sm:$0xff] (!%p140_p2)   ;;  %v4937_v24 = vld [vmem:[%s6329_s1 + $0x1d0] sm:$0xff] (!%p140_p2)   ;;  %v4939_v26 = vld [vmem:[%s6329_s1 + $0x1d8] sm:$0xff] (!%p140_p2)  }
   0xd   : > { %s6333_s5 = smov (!%p165_p3, %s164_s5), 73  ;;  %v4940_v27 = vld [vmem:[%s6329_s1 + $0x60] sm:$0xff]   ;;  %v4942_v29 = vld [vmem:[%s6329_s1 + $0x68] sm:$0xff]   ;;  %v4944_v31 = vld [vmem:[%s6329_s1 + $0x70] sm:$0xff]  }
   0xe   : > { %s4904_s19 = smul.u32 52, %s6333_s5  ;;  %v4941_v28 = vld [vmem:[%s6329_s1 + $0x1e0] sm:$0xff]   ;;  %v4943_v30 = vld [vmem:[%s6329_s1 + $0x1e8] sm:$0xff]   ;;  %v4945_v32 = vld [vmem:[%s6329_s1 + $0x1f0] sm:$0xff]   ;;  %s3941_s8 = sshll.u32 %s6333_s5, 3 }
   0xf   : > { %2522 = vmatpush1.bf16.msra.mxu1 %v4920_v5  ;;  %3074 = vmatpush1.bf16.msra.mxu0 %v4921_v6  ;;  %v4946_v33 = vld [vmem:[%s6329_s1 + $0x78] sm:$0xff]   ;;  %v4954_v37 = vld [vmem:[%s6329_s1 + $0x200] sm:$0xff]   ;;  %v4955_v41 = vld [vmem:[%s6329_s1 + $0x208] sm:$0xff]   ;;  %s6237_s11 = scalar_lea.vmem %s6331_s3, %s3941_s8 }
  0x10   : > { %2523 = vmatprep.subr.bf16.mxu1 %v5395_v1  ;;  %3075 = vmatprep.subr.bf16.mxu0 %v5395_v1  ;;  %s5501_s26 = scalar_lea.vmem %s6328_s0, %s4904_s19  ;;  %v4947_v34 = vld [vmem:[%s6329_s1 + $0x1f8] sm:$0xff]   ;;  %v4958_v39 = vld [vmem:[%s6329_s1 + $0x80] sm:$0xff]   ;;  %v4971_v42 = vld [vmem:[%s6329_s1 + $0x88] sm:$0xff]  }
  0x11   : > { %v4950_v19 = vld [vmem:[%s5501_s26 + $0x4] ss:$52 sps:$4 sm:$0xff]   ;;  %v4953_v21 = vld [vmem:[%s5501_s26 + $0x1c] ss:$52 sps:$4 sm:$0xff]   ;;  %v4948_v35 = vld [vmem:[%s5501_s26] ss:$52 sps:$4 sm:$0xff]  }
  0x12   : > { %2549 = vmatprep.mubr.bf16.mxu1 %v4950_v19  ;;  %3101 = vmatprep.mubr.bf16.mxu0 %v4953_v21  ;;  %v4951_v36 = vld [vmem:[%s5501_s26 + $0x18] ss:$52 sps:$4 sm:$0xff]   ;;  %v4961_v43 = vld [vmem:[%s5501_s26 + $0x68] ss:$52 sps:$4 sm:$0xff]   ;;  %v4962_v44 = vld [vmem:[%s5501_s26 + $0x80] ss:$52 sps:$4 sm:$0xff]  }
  0x13   : > { %2524 = vmatpush1.bf16.msra.mxu1 %v4922_v7  ;;  %3076 = vmatpush1.bf16.msra.mxu0 %v4923_v8  ;;  %v4956_v38 = vld [vmem:[%s5501_s26 + $0x6c] ss:$52 sps:$4 sm:$0xff]   ;;  %v4959_v40 = vld [vmem:[%s5501_s26 + $0x84] ss:$52 sps:$4 sm:$0xff]   ;;  %v4963_v45 = vld [vmem:[%s6329_s1 + $0x210] sm:$0xff]  }
  0x14   : > { %2525 = vmatprep.subr.bf16.mxu1 %v5395_v1  ;;  %3077 = vmatprep.subr.bf16.mxu0 %v5395_v1  ;;  %v4964_v46 = vld [vmem:[%s5501_s26 + $0xd4] ss:$52 sps:$4 sm:$0xff]   ;;  %v4966_v47 = vld [vmem:[%s5501_s26 + $0xec] ss:$52 sps:$4 sm:$0xff]   ;;  %v4968_v49 = vld [vmem:[%s5501_s26 + $0xd0] ss:$52 sps:$4 sm:$0xff]  }
  0x15   : > { %v4979_v48 = vld [vmem:[%s6329_s1 + $0x90] sm:$0xff]   ;;  %v4970_v50 = vld [vmem:[%s6329_s1 + $0x218] sm:$0xff]   ;;  %v4972_v53 = vld [vmem:[%s6329_s1 + $0x220] sm:$0xff]  }
  0x16   : > { %v4969_v51 = vld [vmem:[%s5501_s26 + $0xe8] ss:$52 sps:$4 sm:$0xff]   ;;  %v4997_v56 = vld [vmem:[%s6329_s1 + $0xa0] sm:$0xff]   ;;  %v4977_v57 = vld [vmem:[%s5501_s26 + $0x138] ss:$52 sps:$4 sm:$0xff]  }
  0x17   : > { %2526 = vmatpush1.bf16.msra.mxu1 %v4924_v9  ;;  %3078 = vmatpush1.bf16.msra.mxu0 %v4925_v10  ;;  %v4988_v52 = vld [vmem:[%s6329_s1 + $0x98] sm:$0xff]   ;;  %v4975_v55 = vld [vmem:[%s5501_s26 + $0x154] ss:$52 sps:$4 sm:$0xff]   ;;  %v4978_v59 = vld [vmem:[%s5501_s26 + $0x150] ss:$52 sps:$4 sm:$0xff]  }
  0x18   : > { %2527 = vmatprep.subr.bf16.mxu1 %v5395_v1  ;;  %3079 = vmatprep.subr.bf16.mxu0 %v5395_v1  ;;  %v4973_v54 = vld [vmem:[%s5501_s26 + $0x13c] ss:$52 sps:$4 sm:$0xff]   ;;  %v4980_v58 = vld [vmem:[%s6329_s1 + $0x228] sm:$0xff]   ;;  %v4981_v61 = vld [vmem:[%s5501_s26 + $0x1a4] ss:$52 sps:$4 sm:$0xff]  }
  0x19   : > { %v5008_v60 = vld [vmem:[%s6329_s1 + $0xa8] sm:$0xff]   ;;  %v4983_v62 = vld [vmem:[%s5501_s26 + $0x1bc] ss:$52 sps:$4 sm:$0xff]   ;;  %v4986_v2 = vld [vmem:[%s5501_s26 + $0x1a0] ss:$52 sps:$4 sm:$0xff]  }
  0x1a   : > { %v4985_v63 = vld [vmem:[%s6329_s1 + $0x230] sm:$0xff]   ;;  %v4989_v3 = vld [vmem:[%s6329_s1 + $0x238] sm:$0xff]   ;;  %v4990_v6 = vld [vmem:[%s5501_s26 + $0x20c] ss:$52 sps:$4 sm:$0xff]  }
  0x1b   : > { %2528 = vmatpush1.bf16.msra.mxu1 %v4926_v11  ;;  %3080 = vmatpush1.bf16.msra.mxu0 %v4927_v12  ;;  %v5020_v0 = vld [vmem:[%s6329_s1 + $0xb0] sm:$0xff]   ;;  %v5030_v4 = vld [vmem:[%s6329_s1 + $0xb8] sm:$0xff]   ;;  %v4996_v8 = vld [vmem:[%s6329_s1 + $0x240] sm:$0xff]  }
  0x1c   : > { %2529 = vmatprep.subr.bf16.mxu1 %v5395_v1  ;;  %3081 = vmatprep.subr.bf16.mxu0 %v5395_v1  ;;  %v4987_v5 = vld [vmem:[%s5501_s26 + $0x1b8] ss:$52 sps:$4 sm:$0xff]   ;;  %v5039_v9 = vld [vmem:[%s6329_s1 + $0xc0] sm:$0xff]   ;;  %v4994_v12 = vld [vmem:[%s5501_s26 + $0x208] ss:$52 sps:$4 sm:$0xff]  }
  0x1d   : > { %v4992_v7 = vld [vmem:[%s5501_s26 + $0x224] ss:$52 sps:$4 sm:$0xff]   ;;  %v4998_v10 = vld [vmem:[%s6329_s1 + $0x248] sm:$0xff]  }
  0x1e   : > { %v5047_v11 = vld [vmem:[%s6329_s1 + $0xc8] sm:$0xff]   ;;  %v5013_v19 = vld [vmem:[%s6329_s1 + $0x258] sm:$0xff]  }
  0x1f   : > { %2530 = vmatpush1.bf16.msra.mxu1 %v4928_v13  ;;  %3082 = vmatpush1.bf16.msra.mxu0 %v4929_v14  ;;  %v4995_v13 = vld [vmem:[%s5501_s26 + $0x220] ss:$52 sps:$4 sm:$0xff]   ;;  %v5004_v21 = vld [vmem:[%s5501_s26 + $0x288] ss:$52 sps:$4 sm:$0xff]  }
  0x20   : > { %2531 = vmatprep.subr.bf16.mxu1 %v5395_v1  ;;  %3083 = vmatprep.subr.bf16.mxu0 %v5395_v1  ;;  %v4999_v14 = vld [vmem:[%s5501_s26 + $0x274] ss:$52 sps:$4 sm:$0xff]  }
  0x23   : > { %2532 = vmatpush1.bf16.msra.mxu1 %v4930_v15  ;;  %3084 = vmatpush1.bf16.msra.mxu0 %v4931_v16  ;;  %v5001_v15 = vld [vmem:[%s5501_s26 + $0x28c] ss:$52 sps:$4 sm:$0xff]   ;;  %v5005_v16 = vld [vmem:[%s6329_s1 + $0x250] sm:$0xff]  }
  0x24   : > { %2533 = vmatprep.subr.bf16.mxu1 %v5395_v1  ;;  %3085 = vmatprep.subr.bf16.mxu0 %v5395_v1 }
  0x27   : > { %2534 = vmatpush1.bf16.msra.mxu1 %v4932_v17  ;;  %3086 = vmatpush1.bf16.msra.mxu0 %v4933_v18  ;;  %v5055_v17 = vld [vmem:[%s6329_s1 + $0xd0] sm:$0xff]  }
  0x28   : > { %2535 = vmatprep.subr.bf16.mxu1 %v5395_v1  ;;  %3087 = vmatprep.subr.bf16.mxu0 %v5395_v1  ;;  %v5003_v18 = vld [vmem:[%s5501_s26 + $0x270] ss:$52 sps:$4 sm:$0xff]  }
  0x2b   : > { %2536 = vmatpush1.bf16.msra.mxu1 %v4934_v20  ;;  %3088 = vmatpush1.bf16.msra.mxu0 %v4935_v22  ;;  %v5068_v20 = vld [vmem:[%s6329_s1 + $0xd8] sm:$0xff]  }
  0x2c   : > { %2537 = vmatprep.subr.bf16.mxu1 %v5395_v1  ;;  %3089 = vmatprep.subr.bf16.mxu0 %v5395_v1  ;;  %v5006_v22 = vld [vmem:[%s5501_s26 + $0x2dc] ss:$52 sps:$4 sm:$0xff]  }
  0x2f   : > { %2538 = vmatpush1.bf16.msra.mxu1 %v4936_v23  ;;  %3090 = vmatpush1.bf16.msra.mxu0 %v4937_v24  ;;  %v5009_v23 = vld [vmem:[%s5501_s26 + $0x2f4] ss:$52 sps:$4 sm:$0xff]   ;;  %v5014_v24 = vld [vmem:[%s6329_s1 + $0x260] sm:$0xff]  }
  0x30   : > { %2539 = vmatprep.subr.bf16.mxu1 %v5395_v1  ;;  %3091 = vmatprep.subr.bf16.mxu0 %v5395_v1 }
  0x33   : > { %2540 = vmatpush1.bf16.msra.mxu1 %v4938_v25  ;;  %3092 = vmatpush1.bf16.msra.mxu0 %v4939_v26  ;;  %v5077_v25 = vld [vmem:[%s6329_s1 + $0xe0] sm:$0xff]   ;;  %v5011_v26 = vld [vmem:[%s5501_s26 + $0x2d8] ss:$52 sps:$4 sm:$0xff]  }
  0x34   : > { %2541 = vmatprep.subr.bf16.mxu1 %v5395_v1  ;;  %3093 = vmatprep.subr.bf16.mxu0 %v5395_v1 }
  0x37   : > { %2542 = vmatpush1.bf16.msra.mxu1 %v4940_v27  ;;  %3094 = vmatpush1.bf16.msra.mxu0 %v4941_v28  ;;  %v5022_v27 = vld [vmem:[%s6329_s1 + $0x268] sm:$0xff]  }
  0x38   : > { %2543 = vmatprep.subr.bf16.mxu1 %v5395_v1  ;;  %3095 = vmatprep.subr.bf16.mxu0 %v5395_v1  ;;  %v5085_v28 = vld [vmem:[%s6329_s1 + $0xe8] sm:$0xff]  }
  0x3b   : > { %2544 = vmatpush1.bf16.msra.mxu1 %v4942_v29  ;;  %3096 = vmatpush1.bf16.msra.mxu0 %v4943_v30  ;;  %v5012_v29 = vld [vmem:[%s5501_s26 + $0x2f0] ss:$52 sps:$4 sm:$0xff]  }
  0x3c   : > { %2545 = vmatprep.subr.bf16.mxu1 %v5395_v1  ;;  %3097 = vmatprep.subr.bf16.mxu0 %v5395_v1  ;;  %v5015_v30 = vld [vmem:[%s5501_s26 + $0x344] ss:$52 sps:$4 sm:$0xff]  }
  0x3f   : > { %2546 = vmatpush1.bf16.msra.mxu1 %v4944_v31  ;;  %3098 = vmatpush1.bf16.msra.mxu0 %v4945_v32  ;;  %v5017_v31 = vld [vmem:[%s5501_s26 + $0x35c] ss:$52 sps:$4 sm:$0xff]  }
  0x40   : > { %2547 = vmatprep.subr.bf16.mxu1 %v5395_v1  ;;  %3099 = vmatprep.subr.bf16.mxu0 %v5395_v1  ;;  %v5027_v32 = vld [vmem:[%s6329_s1 + $0x270] sm:$0xff]  }
  0x43   : > { %2548 = vmatpush1.bf16.msra.mxu1 %v4946_v33  ;;  %3100 = vmatpush1.bf16.msra.mxu0 %v4947_v34  ;;  %v5093_v33 = vld [vmem:[%s6329_s1 + $0xf0] sm:$0xff]  }
  0x44   : > { %2701 = vmatprep.subr.bf16.mxu1 %v5395_v1  ;;  %3253 = vmatprep.subr.bf16.mxu0 %v5395_v1  ;;  %v5019_v34 = vld [vmem:[%s5501_s26 + $0x340] ss:$52 sps:$4 sm:$0xff]  }
  0x46   : > { %2550 = vmatmul.mubr.bf16.vlgmr.msra.gmra.mrb[0].mxu1 %v4948_v35  ;;  %3102 = vmatmul.mubr.bf16.vlgmr.msra.gmra.mrb[0].mxu0 %v4951_v36  ;;  %v5031_v35 = vld [vmem:[%s6329_s1 + $0x278] sm:$0xff]  }
  0x47   : > { %2557 = vmatprep.mubr.bf16.mxu1 %v4956_v38  ;;  %3254 = vmatpush1.bf16.msra.mxu0 %v4954_v37  ;;  %v5100_v36 = vld [vmem:[%s6329_s1 + $0xf8] sm:$0xff]   ;;  %v5023_v38 = vld [vmem:[%s5501_s26 + $0x3ac] ss:$52 sps:$4 sm:$0xff]  }
  0x48   : > { %2702 = vmatpush1.bf16.msra.mxu1 %v4958_v39  ;;  %3255 = vmatprep.subr.bf16.mxu0 %v5395_v1  ;;  %v5021_v37 = vld [vmem:[%s5501_s26 + $0x358] ss:$52 sps:$4 sm:$0xff]  }
  0x49   : > { %3109 = vmatprep.mubr.bf16.mxu0 %v4959_v40  ;;  %2703 = vmatprep.subr.bf16.mxu1 %v5395_v1  ;;  %v5025_v39 = vld [vmem:[%s5501_s26 + $0x3c4] ss:$52 sps:$4 sm:$0xff]   ;;  %v5028_v40 = vld [vmem:[%s5501_s26 + $0x3a8] ss:$52 sps:$4 sm:$0xff]  }
  0x4b   : > { %3256 = vmatpush1.bf16.msra.mxu0 %v4955_v41  ;;  %v5029_v41 = vld [vmem:[%s5501_s26 + $0x3c0] ss:$52 sps:$4 sm:$0xff]  }
  0x4c   : > { %2704 = vmatpush1.bf16.msra.mxu1 %v4971_v42  ;;  %3257 = vmatprep.subr.bf16.mxu0 %v5395_v1  ;;  %v5032_v42 = vld [vmem:[%s5501_s26 + $0x414] ss:$52 sps:$4 sm:$0xff]  }
  0x4d   : > { %2705 = vmatprep.subr.bf16.mxu1 %v5395_v1 }
  0x4e   : > { %2558 = vmatmul.mubr.bf16.gmra.mrb[4].mxu1 %v4961_v43  ;;  %3110 = vmatmul.mubr.bf16.gmra.mrb[4].mxu0 %v4962_v44  ;;  %v5036_v43 = vld [vmem:[%s5501_s26 + $0x24] ss:$52 sps:$4 sm:$0xff]   ;;  %v5034_v44 = vld [vmem:[%s5501_s26 + $0x20] ss:$52 sps:$4 sm:$0xff]  }
  0x4f   : > { %2565 = vmatprep.mubr.bf16.mxu1 %v4964_v46  ;;  %3258 = vmatpush1.bf16.msra.mxu0 %v4963_v45  ;;  %v5037_v45 = vld [vmem:[%s5501_s26 + $0x410] ss:$52 sps:$4 sm:$0xff]  }
  0x50   : > { %3117 = vmatprep.mubr.bf16.mxu0 %v4966_v47  ;;  %3259 = vmatprep.subr.bf16.mxu0 %v5395_v1  ;;  %v5038_v46 = vld [vmem:[%s6329_s1 + $0x280] sm:$0xff]   ;;  %v5040_v47 = vld [vmem:[%s5501_s26 + $0x47c] ss:$52 sps:$4 sm:$0xff]  }
  0x51   : > { %2706 = vmatpush1.bf16.msra.mxu1 %v4979_v48  ;;  %v5042_v48 = vld [vmem:[%s5501_s26 + $0x8c] ss:$52 sps:$4 sm:$0xff]  }
  0x52   : > { %2707 = vmatprep.subr.bf16.mxu1 %v5395_v1 }
  0x53   : > { %3260 = vmatpush1.bf16.msra.mxu0 %v4970_v50  ;;  %v5044_v50 = vld [vmem:[%s5501_s26 + $0x478] ss:$52 sps:$4 sm:$0xff]  }
  0x54   : > { %3261 = vmatprep.subr.bf16.mxu0 %v5395_v1 }
  0x55   : > { %2708 = vmatpush1.bf16.msra.mxu1 %v4988_v52  ;;  %v5048_v52 = vld [vmem:[%s5501_s26 + $0x4e4] ss:$52 sps:$4 sm:$0xff]  }
  0x56   : > { %2566 = vmatmul.mubr.bf16.gmra.mrb[8].mxu1 %v4968_v49  ;;  %2709 = vmatprep.subr.bf16.mxu1 %v5395_v1  ;;  %v5046_v49 = vld [vmem:[%s6329_s1 + $0x288] sm:$0xff]  }
  0x57   : > { %3118 = vmatmul.mubr.bf16.gmra.mrb[8].mxu0 %v4969_v51  ;;  %2573 = vmatprep.mubr.bf16.mxu1 %v4973_v54  ;;  %v5045_v51 = vld [vmem:[%s5501_s26 + $0x88] ss:$52 sps:$4 sm:$0xff]   ;;  %v5054_v54 = vld [vmem:[%s6329_s1 + $0x290] sm:$0xff]  }
  0x58   : > { %3262 = vmatpush1.bf16.msra.mxu0 %v4972_v53  ;;  %3125 = vmatprep.mubr.bf16.mxu0 %v4975_v55  ;;  %v5050_v53 = vld [vmem:[%s5501_s26 + $0xf4] ss:$52 sps:$4 sm:$0xff]   ;;  %v5062_v55 = vld [vmem:[%s6329_s1 + $0x298] sm:$0xff]  }
  0x59   : > { %3263 = vmatprep.subr.bf16.mxu0 %v5395_v1  ;;  %2710 = vmatpush1.bf16.msra.mxu1 %v4997_v56  ;;  %v5052_v56 = vld [vmem:[%s5501_s26 + $0x4e0] ss:$52 sps:$4 sm:$0xff]  }
  0x5a   : > { %2711 = vmatprep.subr.bf16.mxu1 %v5395_v1 }
  0x5c   : > { %3264 = vmatpush1.bf16.msra.mxu0 %v4980_v58  ;;  %v5056_v58 = vld [vmem:[%s5501_s26 + $0x54c] ss:$52 sps:$4 sm:$0xff]  }
  0x5d   : > { %3265 = vmatprep.subr.bf16.mxu0 %v5395_v1  ;;  %2712 = vmatpush1.bf16.msra.mxu1 %v5008_v60  ;;  %v5074_v60 = vld [vmem:[%s6329_s1 + $0x2a0] sm:$0xff]  }
  0x5e   : > { %2574 = vmatmul.mubr.bf16.gmra.mrb[12].mxu1 %v4977_v57  ;;  %2713 = vmatprep.subr.bf16.mxu1 %v5395_v1  ;;  %v5053_v57 = vld [vmem:[%s5501_s26 + $0xf0] ss:$52 sps:$4 sm:$0xff]  }
  0x5f   : > { %3126 = vmatmul.mubr.bf16.gmra.mrb[12].mxu0 %v4978_v59  ;;  %2581 = vmatprep.mubr.bf16.mxu1 %v4981_v61  ;;  %v5058_v59 = vld [vmem:[%s5501_s26 + $0x15c] ss:$52 sps:$4 sm:$0xff]  }
  0x60   : > { %3133 = vmatprep.mubr.bf16.mxu0 %v4983_v62  ;;  %3266 = vmatpush1.bf16.msra.mxu0 %v4985_v63  ;;  %v5060_v61 = vld [vmem:[%s5501_s26 + $0x548] ss:$52 sps:$4 sm:$0xff]   ;;  %v5061_v63 = vld [vmem:[%s5501_s26 + $0x158] ss:$52 sps:$4 sm:$0xff]  }
  0x61   : > { %3267 = vmatprep.subr.bf16.mxu0 %v5395_v1  ;;  %2714 = vmatpush1.bf16.msra.mxu1 %v5020_v0  ;;  %v5084_v62 = vld [vmem:[%s6329_s1 + $0x2a8] sm:$0xff]  }
  0x62   : > { %2715 = vmatprep.subr.bf16.mxu1 %v5395_v1  ;;  %v5063_v0 = vld [vmem:[%s5501_s26 + $0x5b4] ss:$52 sps:$4 sm:$0xff]  }
  0x64   : > { %3268 = vmatpush1.bf16.msra.mxu0 %v4989_v3  ;;  %v5092_v3 = vld [vmem:[%s6329_s1 + $0x2b0] sm:$0xff]  }
  0x65   : > { %3269 = vmatprep.subr.bf16.mxu0 %v5395_v1  ;;  %2716 = vmatpush1.bf16.msra.mxu1 %v5030_v4  ;;  %v5067_v4 = vld [vmem:[%s5501_s26 + $0x5b0] ss:$52 sps:$4 sm:$0xff]  }
  0x66   : > { %2582 = vmatmul.mubr.bf16.gmra.mrb[16].mxu1 %v4986_v2  ;;  %2717 = vmatprep.subr.bf16.mxu1 %v5395_v1  ;;  %v5065_v2 = vld [vmem:[%s5501_s26 + $0x1c4] ss:$52 sps:$4 sm:$0xff]  }
  0x67   : > { %3134 = vmatmul.mubr.bf16.gmra.mrb[16].mxu0 %v4987_v5  ;;  %2589 = vmatprep.mubr.bf16.mxu1 %v4990_v6  ;;  %v5099_v5 = vld [vmem:[%s6329_s1 + $0x2b8] sm:$0xff]   ;;  %v5069_v6 = vld [vmem:[%s5501_s26 + $0x1c0] ss:$52 sps:$4 sm:$0xff]  }
  0x68   : > { %3141 = vmatprep.mubr.bf16.mxu0 %v4992_v7  ;;  %3270 = vmatpush1.bf16.msra.mxu0 %v4996_v8  ;;  %v5070_v7 = vld [vmem:[%s5501_s26 + $0x61c] ss:$52 sps:$4 sm:$0xff]   ;;  %v5072_v8 = vld [vmem:[%s5501_s26 + $0x22c] ss:$52 sps:$4 sm:$0xff]  }
  0x69   : > { %3271 = vmatprep.subr.bf16.mxu0 %v5395_v1  ;;  %2718 = vmatpush1.bf16.msra.mxu1 %v5039_v9  ;;  %v5107_v9 = vld [vmem:[%s6329_s1 + $0x2c0] sm:$0xff]  }
  0x6a   : > { %2719 = vmatprep.subr.bf16.mxu1 %v5395_v1 }
  0x6c   : > { %3272 = vmatpush1.bf16.msra.mxu0 %v4998_v10  ;;  %v5075_v10 = vld [vmem:[%s5501_s26 + $0x618] ss:$52 sps:$4 sm:$0xff]  }
  0x6d   : > { %3273 = vmatprep.subr.bf16.mxu0 %v5395_v1  ;;  %2720 = vmatpush1.bf16.msra.mxu1 %v5047_v11  ;;  %v5119_v11 = vld [vmem:[%s6329_s1 + $0x2c8] sm:$0xff]  }
  0x6e   : > { %2590 = vmatmul.mubr.bf16.gmra.mrb[20].mxu1 %v4994_v12  ;;  %2721 = vmatprep.subr.bf16.mxu1 %v5395_v1  ;;  %v5076_v12 = vld [vmem:[%s5501_s26 + $0x228] ss:$52 sps:$4 sm:$0xff]  }
  0x6f   : > { %3142 = vmatmul.mubr.bf16.gmra.mrb[20].mxu0 %v4995_v13  ;;  %2597 = vmatprep.mubr.bf16.mxu1 %v4999_v14  ;;  %v5078_v13 = vld [vmem:[%s5501_s26 + $0x684] ss:$52 sps:$4 sm:$0xff]   ;;  %v5080_v14 = vld [vmem:[%s5501_s26 + $0x294] ss:$52 sps:$4 sm:$0xff]  }
  0x70   : > { %3149 = vmatprep.mubr.bf16.mxu0 %v5001_v15  ;;  %3274 = vmatpush1.bf16.msra.mxu0 %v5005_v16  ;;  %v5129_v15 = vld [vmem:[%s6329_s1 + $0x2d0] sm:$0xff]  }
  0x71   : > { %3275 = vmatprep.subr.bf16.mxu0 %v5395_v1  ;;  %2722 = vmatpush1.bf16.msra.mxu1 %v5055_v17  ;;  %v5082_v16 = vld [vmem:[%s5501_s26 + $0x680] ss:$52 sps:$4 sm:$0xff]   ;;  %v5137_v17 = vld [vmem:[%s6329_s1 + $0x2d8] sm:$0xff]  }
  0x72   : > { %2723 = vmatprep.subr.bf16.mxu1 %v5395_v1 }
  0x74   : > { %3276 = vmatpush1.bf16.msra.mxu0 %v5013_v19  ;;  %v5086_v19 = vld [vmem:[%s5501_s26 + $0x6ec] ss:$52 sps:$4 sm:$0xff]  }
  0x75   : > { %3277 = vmatprep.subr.bf16.mxu0 %v5395_v1  ;;  %2724 = vmatpush1.bf16.msra.mxu1 %v5068_v20  ;;  %v5088_v20 = vld [vmem:[%s5501_s26 + $0x2fc] ss:$52 sps:$4 sm:$0xff]  }
  0x76   : > { %2598 = vmatmul.mubr.bf16.gmra.mrb[24].mxu1 %v5003_v18  ;;  %2725 = vmatprep.subr.bf16.mxu1 %v5395_v1  ;;  %v5083_v18 = vld [vmem:[%s5501_s26 + $0x290] ss:$52 sps:$4 sm:$0xff]  }
  0x77   : > { %3150 = vmatmul.mubr.bf16.gmra.mrb[24].mxu0 %v5004_v21  ;;  %2605 = vmatprep.mubr.bf16.mxu1 %v5006_v22  ;;  %v5145_v21 = vld [vmem:[%s6329_s1 + $0x2e0] sm:$0xff]   ;;  %v430_v22 = vld [vmem:[%s5501_s26 + $0x750] sm:$0xff] }
  0x78   : > { %3157 = vmatprep.mubr.bf16.mxu0 %v5009_v23  ;;  %3278 = vmatpush1.bf16.msra.mxu0 %v5014_v24  ;;  %v5090_v23 = vld [vmem:[%s5501_s26 + $0x6e8] ss:$52 sps:$4 sm:$0xff]  }
  0x79   : > { %3279 = vmatprep.subr.bf16.mxu0 %v5395_v1  ;;  %2726 = vmatpush1.bf16.msra.mxu1 %v5077_v25  ;;  %v5153_v24 = vld [vmem:[%s6329_s1 + $0x2e8] sm:$0xff]  }
  0x7a   : > { %2727 = vmatprep.subr.bf16.mxu1 %v5395_v1  ;;  %v5091_v25 = vld [vmem:[%s5501_s26 + $0x2f8] ss:$52 sps:$4 sm:$0xff]  }
  0x7c   : > { %3280 = vmatpush1.bf16.msra.mxu0 %v5022_v27  ;;  %v5161_v27 = vld [vmem:[%s6329_s1 + $0x2f0] sm:$0xff]  }
  0x7d   : > { %3281 = vmatprep.subr.bf16.mxu0 %v5395_v1  ;;  %2728 = vmatpush1.bf16.msra.mxu1 %v5085_v28  ;;  %v4178_v28 = vcombine.high %v430_v22, %v430_v22 }
  0x7e   : > { %2606 = vmatmul.mubr.bf16.gmra.mrb[28].mxu1 %v5011_v26  ;;  %2729 = vmatprep.subr.bf16.mxu1 %v5395_v1  ;;  %v5095_v26 = vld [vmem:[%s5501_s26 + $0x364] ss:$52 sps:$4 sm:$0xff]  }
  0x7f   : > { %3158 = vmatmul.mubr.bf16.gmra.mrb[28].mxu0 %v5012_v29  ;;  %2613 = vmatprep.mubr.bf16.mxu1 %v5015_v30  ;;  %v5174_v29 = vld [vmem:[%s6329_s1 + $0x2f8] sm:$0xff]   ;;  %v5098_v30 = vld [vmem:[%s5501_s26 + $0x360] ss:$52 sps:$4 sm:$0xff]  }
  0x80   : > { %3165 = vmatprep.mubr.bf16.mxu0 %v5017_v31  ;;  %3282 = vmatpush1.bf16.msra.mxu0 %v5027_v32  ;;  %v5103_v31 = vld [vmem:[%s5501_s26 + $0xc] ss:$52 sps:$4 sm:$0xff]   ;;  %v4177_v32 = vcombine.low %v430_v22, %v430_v22  ;;  %v5168_v22 = vld [vmem:[%s5501_s26 + $0x708] ss:$52 sps:$4 sm:$0xff]  }
  0x81   : > { %3283 = vmatprep.subr.bf16.mxu0 %v5395_v1  ;;  %2730 = vmatpush1.bf16.msra.mxu1 %v5093_v33  ;;  %v5104_v33 = vld [vmem:[%s5501_s26 + $0x3cc] ss:$52 sps:$4 sm:$0xff]  }
  0x82   : > { %2731 = vmatprep.subr.bf16.mxu1 %v5395_v1 }
  0x84   : > { %3284 = vmatpush1.bf16.msra.mxu0 %v5031_v35  ;;  %v5101_v35 = vld [vmem:[%s5501_s26 + $0x8] ss:$52 sps:$4 sm:$0xff]  }
  0x85   : > { %3437 = vmatprep.subr.bf16.mxu0 %v5395_v1  ;;  %2732 = vmatpush1.bf16.msra.mxu1 %v5100_v36  ;;  %v5106_v36 = vld [vmem:[%s5501_s26 + $0x3c8] ss:$52 sps:$4 sm:$0xff]  }
  0x86   : > { %2614 = vmatmul.mubr.bf16.gmra.mrb[32].mxu1 %v5019_v34  ;;  %2885 = vmatprep.subr.bf16.mxu1 %v5395_v1  ;;  %v5396_v34 = vmov 0.0  }
  0x87   : > { %3166 = vmatmul.mubr.bf16.gmra.mrb[32].mxu0 %v5021_v37  ;;  %2621 = vmatprep.mubr.bf16.mxu1 %v5023_v38  ;;  %v5108_v37 = vld [vmem:[%s5501_s26 + $0x74] ss:$52 sps:$4 sm:$0xff]   ;;  %v5110_v38 = vld [vmem:[%s6329_s1 + $0x100] sm:$0xff]  }
  0x88   : > { %3173 = vmatprep.mubr.bf16.mxu0 %v5025_v39  ;;  %v5111_v39 = vld [vmem:[%s5501_s26 + $0x434] ss:$52 sps:$4 sm:$0xff]  }
  0x8e   : > { %2622 = vmatmul.mubr.bf16.gmra.mrb[36].mxu1 %v5028_v40  ;;  %v5113_v40 = vld [vmem:[%s5501_s26 + $0x70] ss:$52 sps:$4 sm:$0xff]  }
  0x8f   : > { %3174 = vmatmul.mubr.bf16.gmra.mrb[36].mxu0 %v5029_v41  ;;  %2629 = vmatprep.mubr.bf16.mxu1 %v5032_v42  ;;  %v5122_v41 = vld [vmem:[%s6329_s1 + $0x108] sm:$0xff]   ;;  %v5114_v42 = vld [vmem:[%s5501_s26 + $0x430] ss:$52 sps:$4 sm:$0xff]  }
  0x90   : > { %3285 = vmatprep.mubr.bf16.mxu0 %v5036_v43  ;;  %v5115_v43 = vld [vmem:[%s5501_s26 + $0xdc] ss:$52 sps:$4 sm:$0xff]  }
  0x96   : > { %2630 = vmatmul.mubr.bf16.gmra.mrb[40].mxu1 %v5037_v45  ;;  %v5130_v45 = vld [vmem:[%s6329_s1 + $0x110] sm:$0xff]  }
  0x97   : > { %3286 = vmatmul.mubr.bf16.vlgmr.msra.gmra.mrb[0].mxu0 %v5034_v44  ;;  %2637 = vmatprep.mubr.bf16.mxu1 %v5040_v47  ;;  %v5117_v44 = vld [vmem:[%s5501_s26 + $0x49c] ss:$52 sps:$4 sm:$0xff]   ;;  %v5120_v47 = vld [vmem:[%s5501_s26 + $0xd8] ss:$52 sps:$4 sm:$0xff]  }
  0x98   : > { %3438 = vmatpush1.bf16.msra.mxu0 %v5038_v46  ;;  %3293 = vmatprep.mubr.bf16.mxu0 %v5042_v48  ;;  %v5138_v46 = vld [vmem:[%s6329_s1 + $0x118] sm:$0xff]  }
  0x99   : > { %3439 = vmatprep.subr.bf16.mxu0 %v5395_v1  ;;  %v5121_v48 = vld [vmem:[%s5501_s26 + $0x498] ss:$52 sps:$4 sm:$0xff]  }
  0x9c   : > { %3440 = vmatpush1.bf16.msra.mxu0 %v5046_v49  ;;  %v5123_v49 = vld [vmem:[%s5501_s26 + $0x144] ss:$52 sps:$4 sm:$0xff]  }
  0x9d   : > { %3441 = vmatprep.subr.bf16.mxu0 %v5395_v1 }
  0x9e   : > { %2638 = vmatmul.mubr.bf16.gmra.mrb[44].mxu1 %v5044_v50  ;;  %v5125_v50 = vld [vmem:[%s5501_s26 + $0x504] ss:$52 sps:$4 sm:$0xff]  }
  0x9f   : > { %3294 = vmatmul.mubr.bf16.gmra.mrb[4].mxu0 %v5045_v51  ;;  %2645 = vmatprep.mubr.bf16.mxu1 %v5048_v52  ;;  %v5146_v51 = vld [vmem:[%s6329_s1 + $0x120] sm:$0xff]   ;;  %v5156_v52 = vld [vmem:[%s6329_s1 + $0x128] sm:$0xff]  }
  0xa0   : > { %3301 = vmatprep.mubr.bf16.mxu0 %v5050_v53  ;;  %3442 = vmatpush1.bf16.msra.mxu0 %v5054_v54  ;;  %v5127_v53 = vld [vmem:[%s5501_s26 + $0x140] ss:$52 sps:$4 sm:$0xff]  }
  0xa1   : > { %3443 = vmatprep.subr.bf16.mxu0 %v5395_v1  ;;  %v5128_v54 = vld [vmem:[%s5501_s26 + $0x500] ss:$52 sps:$4 sm:$0xff]  }
  0xa4   : > { %3444 = vmatpush1.bf16.msra.mxu0 %v5062_v55  ;;  %v5131_v55 = vld [vmem:[%s5501_s26 + $0x1ac] ss:$52 sps:$4 sm:$0xff]  }
  0xa5   : > { %3445 = vmatprep.subr.bf16.mxu0 %v5395_v1 }
  0xa6   : > { %2646 = vmatmul.mubr.bf16.gmra.mrb[48].mxu1 %v5052_v56  ;;  %v5133_v56 = vld [vmem:[%s5501_s26 + $0x56c] ss:$52 sps:$4 sm:$0xff]  }
  0xa7   : > { %3302 = vmatmul.mubr.bf16.gmra.mrb[8].mxu0 %v5053_v57  ;;  %2653 = vmatprep.mubr.bf16.mxu1 %v5056_v58  ;;  %v5167_v57 = vld [vmem:[%s6329_s1 + $0x130] sm:$0xff]   ;;  %v5175_v58 = vld [vmem:[%s6329_s1 + $0x138] sm:$0xff]  }
  0xa8   : > { %3309 = vmatprep.mubr.bf16.mxu0 %v5058_v59  ;;  %3446 = vmatpush1.bf16.msra.mxu0 %v5074_v60  ;;  %v5135_v59 = vld [vmem:[%s5501_s26 + $0x1a8] ss:$52 sps:$4 sm:$0xff]  }
  0xa9   : > { %3447 = vmatprep.subr.bf16.mxu0 %v5395_v1  ;;  %v5136_v60 = vld [vmem:[%s5501_s26 + $0x568] ss:$52 sps:$4 sm:$0xff]  }
  0xac   : > { %3448 = vmatpush1.bf16.msra.mxu0 %v5084_v62  ;;  %v5141_v62 = vld [vmem:[%s5501_s26 + $0x5d4] ss:$52 sps:$4 sm:$0xff]  }
  0xad   : > { %3449 = vmatprep.subr.bf16.mxu0 %v5395_v1 }
  0xae   : > { %2654 = vmatmul.mubr.bf16.gmra.mrb[52].mxu1 %v5060_v61  ;;  %v5139_v61 = vld [vmem:[%s5501_s26 + $0x214] ss:$52 sps:$4 sm:$0xff]  }
  0xaf   : > { %3310 = vmatmul.mubr.bf16.gmra.mrb[12].mxu0 %v5061_v63  ;;  %2661 = vmatprep.mubr.bf16.mxu1 %v5063_v0  ;;  %v5183_v63 = vld [vmem:[%s6329_s1 + $0x140] sm:$0xff]   ;;  %v5190_v0 = vld [vmem:[%s6329_s1 + $0x148] sm:$0xff]  }
  0xb0   : > { %3317 = vmatprep.mubr.bf16.mxu0 %v5065_v2  ;;  %3450 = vmatpush1.bf16.msra.mxu0 %v5092_v3  ;;  %v5143_v2 = vld [vmem:[%s5501_s26 + $0x210] ss:$52 sps:$4 sm:$0xff]  }
  0xb1   : > { %3451 = vmatprep.subr.bf16.mxu0 %v5395_v1  ;;  %v5144_v3 = vld [vmem:[%s5501_s26 + $0x5d0] ss:$52 sps:$4 sm:$0xff]  }
  0xb4   : > { %3452 = vmatpush1.bf16.msra.mxu0 %v5099_v5  ;;  %v5149_v5 = vld [vmem:[%s5501_s26 + $0x63c] ss:$52 sps:$4 sm:$0xff]  }
  0xb5   : > { %3453 = vmatprep.subr.bf16.mxu0 %v5395_v1 }
  0xb6   : > { %2662 = vmatmul.mubr.bf16.gmra.mrb[56].mxu1 %v5067_v4  ;;  %v5147_v4 = vld [vmem:[%s5501_s26 + $0x27c] ss:$52 sps:$4 sm:$0xff]  }
  0xb7   : > { %3318 = vmatmul.mubr.bf16.gmra.mrb[16].mxu0 %v5069_v6  ;;  %2669 = vmatprep.mubr.bf16.mxu1 %v5070_v7  ;;  %v5197_v6 = vld [vmem:[%s6329_s1 + $0x150] sm:$0xff]   ;;  %v5209_v7 = vld [vmem:[%s6329_s1 + $0x158] sm:$0xff]  }
  0xb8   : > { %3325 = vmatprep.mubr.bf16.mxu0 %v5072_v8  ;;  %3454 = vmatpush1.bf16.msra.mxu0 %v5107_v9  ;;  %v5151_v8 = vld [vmem:[%s5501_s26 + $0x278] ss:$52 sps:$4 sm:$0xff]  }
  0xb9   : > { %3455 = vmatprep.subr.bf16.mxu0 %v5395_v1  ;;  %v5152_v9 = vld [vmem:[%s5501_s26 + $0x638] ss:$52 sps:$4 sm:$0xff]  }
  0xbc   : > { %3456 = vmatpush1.bf16.msra.mxu0 %v5119_v11  ;;  %v5157_v11 = vld [vmem:[%s5501_s26 + $0x6a4] ss:$52 sps:$4 sm:$0xff]  }
  0xbd   : > { %3457 = vmatprep.subr.bf16.mxu0 %v5395_v1 }
  0xbe   : > { %2670 = vmatmul.mubr.bf16.gmra.mrb[60].mxu1 %v5075_v10  ;;  %v5154_v10 = vld [vmem:[%s5501_s26 + $0x2e4] ss:$52 sps:$4 sm:$0xff]  }
  0xbf   : > { %3326 = vmatmul.mubr.bf16.gmra.mrb[20].mxu0 %v5076_v12  ;;  %2677 = vmatprep.mubr.bf16.mxu1 %v5078_v13  ;;  %v5218_v12 = vld [vmem:[%s6329_s1 + $0x160] sm:$0xff]   ;;  %v5225_v13 = vld [vmem:[%s6329_s1 + $0x168] sm:$0xff]  }
  0xc0   : > { %3333 = vmatprep.mubr.bf16.mxu0 %v5080_v14  ;;  %3458 = vmatpush1.bf16.msra.mxu0 %v5129_v15  ;;  %v5159_v14 = vld [vmem:[%s5501_s26 + $0x2e0] ss:$52 sps:$4 sm:$0xff]  }
  0xc1   : > { %3459 = vmatprep.subr.bf16.mxu0 %v5395_v1  ;;  %v5160_v15 = vld [vmem:[%s5501_s26 + $0x6a0] ss:$52 sps:$4 sm:$0xff]  }
  0xc4   : > { %3460 = vmatpush1.bf16.msra.mxu0 %v5137_v17  ;;  %v5164_v17 = vld [vmem:[%s5501_s26 + $0x70c] ss:$52 sps:$4 sm:$0xff]  }
  0xc5   : > { %3461 = vmatprep.subr.bf16.mxu0 %v5395_v1 }
  0xc6   : > { %2678 = vmatmul.mubr.bf16.gmra.mrb[64].mxu1 %v5082_v16  ;;  %v5162_v16 = vld [vmem:[%s5501_s26 + $0x34c] ss:$52 sps:$4 sm:$0xff]  }
  0xc7   : > { %3334 = vmatmul.mubr.bf16.gmra.mrb[24].mxu0 %v5083_v18  ;;  %2685 = vmatprep.mubr.bf16.mxu1 %v5086_v19  ;;  %v5232_v18 = vld [vmem:[%s6329_s1 + $0x170] sm:$0xff]   ;;  %v5238_v19 = vld [vmem:[%s6329_s1 + $0x178] sm:$0xff]  }
  0xc8   : > { %3341 = vmatprep.mubr.bf16.mxu0 %v5088_v20  ;;  %3462 = vmatpush1.bf16.msra.mxu0 %v5145_v21  ;;  %v434_v20 = vld [vmem:[%s5501_s26 + $0x770] sm:$0xff]  ;;  %v5166_v21 = vld [vmem:[%s5501_s26 + $0x348] ss:$52 sps:$4 sm:$0xff]  }
  0xc9   : > { %3463 = vmatprep.subr.bf16.mxu0 %v5395_v1 }
  0xcc   : > { %3464 = vmatpush1.bf16.msra.mxu0 %v5153_v24  ;;  %v4186_v24 = vcombine.high %v434_v20, %v434_v20 }
  0xcd   : > { %3465 = vmatprep.subr.bf16.mxu0 %v5395_v1 }
  0xce   : > { %2686 = vmatmul.mubr.bf16.gmra.mrb[68].mxu1 %v5090_v23  ;;  %v5169_v23 = vld [vmem:[%s5501_s26 + $0x3b4] ss:$52 sps:$4 sm:$0xff]  }
  0xcf   : > { %3342 = vmatmul.mubr.bf16.gmra.mrb[28].mxu0 %v5091_v25  ;;  %2693 = vmatprep.mubr.bf16.mxu1 %v4178_v28  ;;  %v5172_v25 = vld [vmem:[%s5501_s26 + $0x3b0] ss:$52 sps:$4 sm:$0xff]   ;;  %v5180_v28 = vld [vmem:[%s5501_s26 + $0x2c] ss:$52 sps:$4 sm:$0xff]  }
  0xd0   : > { %3349 = vmatprep.mubr.bf16.mxu0 %v5095_v26  ;;  %3466 = vmatpush1.bf16.msra.mxu0 %v5161_v27  ;;  %v4185_v26 = vcombine.low %v434_v20, %v434_v20  ;;  %v5176_v27 = vld [vmem:[%s5501_s26 + $0x41c] ss:$52 sps:$4 sm:$0xff]   ;;  %v5257_v20 = vld [vmem:[%s5501_s26 + $0x4a0] ss:$52 sps:$4 sm:$0xff]  }
  0xd1   : > { %3467 = vmatprep.subr.bf16.mxu0 %v5395_v1 }
  0xd4   : > { %3468 = vmatpush1.bf16.msra.mxu0 %v5174_v29  ;;  %v5181_v29 = vld [vmem:[%s5501_s26 + $0x418] ss:$52 sps:$4 sm:$0xff]  }
  0xd5   : > { %4334 = vmatprep.subr.bf16.mxu0 %v5396_v34 }
  0xd6   : > { %2694 = vmatmul.mubr.bf16.gmra.mrb[72].mxu1 %v4177_v32  ;;  %v5182_v32 = vld [vmem:[%s6329_s1 + $0x300] sm:$0xff]  }
  0xd7   : > { %3350 = vmatmul.mubr.bf16.gmra.mrb[32].mxu0 %v5098_v30  ;;  %2733 = vmatprep.mubr.bf16.mxu1 %v5103_v31  ;;  %v5178_v30 = vld [vmem:[%s5501_s26 + $0x28] ss:$52 sps:$4 sm:$0xff]   ;;  %v5184_v31 = vld [vmem:[%s5501_s26 + $0x484] ss:$52 sps:$4 sm:$0xff]  }
  0xd8   : > { %3357 = vmatprep.mubr.bf16.mxu0 %v5104_v33  ;;  %v5186_v33 = vld [vmem:[%s5501_s26 + $0x94] ss:$52 sps:$4 sm:$0xff]  }
  0xde   : > { %2734 = vmatmul.mubr.bf16.vlgmr.msra.gmra.mrb[0].mxu1 %v5101_v35  ;;  %v5215_v35 = vld [vmem:[%s6329_s1 + $0x308] sm:$0xff]  }
  0xdf   : > { %3358 = vmatmul.mubr.bf16.gmra.mrb[36].mxu0 %v5106_v36  ;;  %2741 = vmatprep.mubr.bf16.mxu1 %v5108_v37  ;;  %v5188_v36 = vld [vmem:[%s5501_s26 + $0x480] ss:$52 sps:$4 sm:$0xff]   ;;  %v5189_v37 = vld [vmem:[%s5501_s26 + $0x90] ss:$52 sps:$4 sm:$0xff]  }
  0xe0   : > { %2886 = vmatpush1.bf16.msra.mxu1 %v5110_v38  ;;  %3365 = vmatprep.mubr.bf16.mxu0 %v5111_v39  ;;  %v5191_v38 = vld [vmem:[%s5501_s26 + $0x4ec] ss:$52 sps:$4 sm:$0xff]   ;;  %v5193_v39 = vld [vmem:[%s5501_s26 + $0xfc] ss:$52 sps:$4 sm:$0xff]  }
  0xe1   : > { %2887 = vmatprep.subr.bf16.mxu1 %v5395_v1 }
  0xe4   : > { %2888 = vmatpush1.bf16.msra.mxu1 %v5122_v41  ;;  %v5276_v41 = vld [vmem:[%s6329_s1 + $0x318] sm:$0xff]  }
  0xe5   : > { %2889 = vmatprep.subr.bf16.mxu1 %v5395_v1 }
  0xe6   : > { %2742 = vmatmul.mubr.bf16.gmra.mrb[4].mxu1 %v5113_v40  ;;  %v5245_v40 = vld [vmem:[%s6329_s1 + $0x310] sm:$0xff]  }
  0xe7   : > { %3366 = vmatmul.mubr.bf16.gmra.mrb[40].mxu0 %v5114_v42  ;;  %2749 = vmatprep.mubr.bf16.mxu1 %v5115_v43  ;;  %v5195_v42 = vld [vmem:[%s5501_s26 + $0x4e8] ss:$52 sps:$4 sm:$0xff]   ;;  %v5196_v43 = vld [vmem:[%s5501_s26 + $0xf8] ss:$52 sps:$4 sm:$0xff]  }
  0xe8   : > { %3373 = vmatprep.mubr.bf16.mxu0 %v5117_v44  ;;  %2890 = vmatpush1.bf16.msra.mxu1 %v5130_v45  ;;  %v5198_v44 = vld [vmem:[%s5501_s26 + $0x554] ss:$52 sps:$4 sm:$0xff]   ;;  %v5200_v45 = vld [vmem:[%s5501_s26 + $0x164] ss:$52 sps:$4 sm:$0xff]  }
  0xe9   : > { %2891 = vmatprep.subr.bf16.mxu1 %v5395_v1 }
  0xec   : > { %2892 = vmatpush1.bf16.msra.mxu1 %v5138_v46  ;;  %v5202_v46 = vld [vmem:[%s5501_s26 + $0x550] ss:$52 sps:$4 sm:$0xff]  }
  0xed   : > { %2893 = vmatprep.subr.bf16.mxu1 %v5395_v1 }
  0xee   : > { %2750 = vmatmul.mubr.bf16.gmra.mrb[8].mxu1 %v5120_v47  ;;  %v5203_v47 = vld [vmem:[%s5501_s26 + $0x160] ss:$52 sps:$4 sm:$0xff]  }
  0xef   : > { %3374 = vmatmul.mubr.bf16.gmra.mrb[44].mxu0 %v5121_v48  ;;  %2757 = vmatprep.mubr.bf16.mxu1 %v5123_v49  ;;  %v5204_v48 = vld [vmem:[%s5501_s26 + $0x5bc] ss:$52 sps:$4 sm:$0xff]   ;;  %v5206_v49 = vld [vmem:[%s5501_s26 + $0x1cc] ss:$52 sps:$4 sm:$0xff]  }
  0xf0   : > { %3381 = vmatprep.mubr.bf16.mxu0 %v5125_v50  ;;  %2894 = vmatpush1.bf16.msra.mxu1 %v5146_v51  ;;  %v5208_v50 = vld [vmem:[%s5501_s26 + $0x5b8] ss:$52 sps:$4 sm:$0xff]   ;;  %v5210_v51 = vld [vmem:[%s5501_s26 + $0x1c8] ss:$52 sps:$4 sm:$0xff]  }
  0xf1   : > { %2895 = vmatprep.subr.bf16.mxu1 %v5395_v1 }
  0xf4   : > { %2896 = vmatpush1.bf16.msra.mxu1 %v5156_v52  ;;  %v5211_v52 = vld [vmem:[%s5501_s26 + $0x624] ss:$52 sps:$4 sm:$0xff]  }
  0xf5   : > { %2897 = vmatprep.subr.bf16.mxu1 %v5395_v1 }
  0xf6   : > { %2758 = vmatmul.mubr.bf16.gmra.mrb[12].mxu1 %v5127_v53  ;;  %v5213_v53 = vld [vmem:[%s5501_s26 + $0x234] ss:$52 sps:$4 sm:$0xff]  }
  0xf7   : > { %3382 = vmatmul.mubr.bf16.gmra.mrb[48].mxu0 %v5128_v54  ;;  %2765 = vmatprep.mubr.bf16.mxu1 %v5131_v55  ;;  %v5216_v54 = vld [vmem:[%s5501_s26 + $0x620] ss:$52 sps:$4 sm:$0xff]   ;;  %v5217_v55 = vld [vmem:[%s5501_s26 + $0x230] ss:$52 sps:$4 sm:$0xff]  }
  0xf8   : > { %3389 = vmatprep.mubr.bf16.mxu0 %v5133_v56  ;;  %2898 = vmatpush1.bf16.msra.mxu1 %v5167_v57  ;;  %v5219_v56 = vld [vmem:[%s5501_s26 + $0x68c] ss:$52 sps:$4 sm:$0xff]   ;;  %v5221_v57 = vld [vmem:[%s5501_s26 + $0x29c] ss:$52 sps:$4 sm:$0xff]  }
  0xf9   : > { %2899 = vmatprep.subr.bf16.mxu1 %v5395_v1 }
  0xfc   : > { %2900 = vmatpush1.bf16.msra.mxu1 %v5175_v58  ;;  %v5223_v58 = vld [vmem:[%s5501_s26 + $0x688] ss:$52 sps:$4 sm:$0xff]  }
  0xfd   : > { %2901 = vmatprep.subr.bf16.mxu1 %v5395_v1 }
  0xfe   : > { %2766 = vmatmul.mubr.bf16.gmra.mrb[16].mxu1 %v5135_v59  ;;  %v5224_v59 = vld [vmem:[%s5501_s26 + $0x298] ss:$52 sps:$4 sm:$0xff]  }
  0xff   : > { %3390 = vmatmul.mubr.bf16.gmra.mrb[52].mxu0 %v5136_v60  ;;  %2773 = vmatprep.mubr.bf16.mxu1 %v5139_v61  ;;  %v5226_v60 = vld [vmem:[%s5501_s26 + $0x6f4] ss:$52 sps:$4 sm:$0xff]   ;;  %v5228_v61 = vld [vmem:[%s5501_s26 + $0x304] ss:$52 sps:$4 sm:$0xff]  }
 0x100   : > { %3397 = vmatprep.mubr.bf16.mxu0 %v5141_v62  ;;  %2902 = vmatpush1.bf16.msra.mxu1 %v5183_v63  ;;  %v431_v62 = vld [vmem:[%s5501_s26 + $0x758] sm:$0xff]  ;;  %v5230_v63 = vld [vmem:[%s5501_s26 + $0x6f0] ss:$52 sps:$4 sm:$0xff]  }
 0x101   : > { %2903 = vmatprep.subr.bf16.mxu1 %v5395_v1 }
 0x104   : > { %2904 = vmatpush1.bf16.msra.mxu1 %v5190_v0  ;;  %v5231_v0 = vld [vmem:[%s5501_s26 + $0x300] ss:$52 sps:$4 sm:$0xff]  }
 0x105   : > { %2905 = vmatprep.subr.bf16.mxu1 %v5395_v1 }
 0x106   : > { %2774 = vmatmul.mubr.bf16.gmra.mrb[20].mxu1 %v5143_v2  ;;  %v4180_v2 = vcombine.high %v431_v62, %v431_v62 }
 0x107   : > { %3398 = vmatmul.mubr.bf16.gmra.mrb[56].mxu0 %v5144_v3  ;;  %2781 = vmatprep.mubr.bf16.mxu1 %v5147_v4  ;;  %v5234_v3 = vld [vmem:[%s5501_s26 + $0x36c] ss:$52 sps:$4 sm:$0xff]   ;;  %v4179_v4 = vcombine.low %v431_v62, %v431_v62 }
 0x108   : > { %3405 = vmatprep.mubr.bf16.mxu0 %v5149_v5  ;;  %2906 = vmatpush1.bf16.msra.mxu1 %v5197_v6  ;;  %v5237_v5 = vld [vmem:[%s5501_s26 + $0x368] ss:$52 sps:$4 sm:$0xff]   ;;  %v5298_v62 = vld [vmem:[%s5501_s26 + $0x3b8] ss:$52 sps:$4 sm:$0xff]  }
 0x109   : > { %2907 = vmatprep.subr.bf16.mxu1 %v5395_v1  ;;  %v5241_v6 = vld [vmem:[%s5501_s26 + $0x14] ss:$52 sps:$4 sm:$0xff]  }
 0x10c   : > { %2908 = vmatpush1.bf16.msra.mxu1 %v5209_v7  ;;  %v5242_v7 = vld [vmem:[%s5501_s26 + $0x3d4] ss:$52 sps:$4 sm:$0xff]  }
 0x10d   : > { %2909 = vmatprep.subr.bf16.mxu1 %v5395_v1 }
 0x10e   : > { %2782 = vmatmul.mubr.bf16.gmra.mrb[24].mxu1 %v5151_v8  ;;  %v5239_v8 = vld [vmem:[%s5501_s26 + $0x10] ss:$52 sps:$4 sm:$0xff]  }
 0x10f   : > { %3406 = vmatmul.mubr.bf16.gmra.mrb[60].mxu0 %v5152_v9  ;;  %2789 = vmatprep.mubr.bf16.mxu1 %v5154_v10  ;;  %v5244_v9 = vld [vmem:[%s5501_s26 + $0x3d0] ss:$52 sps:$4 sm:$0xff]  }
 0x110   : > { %3413 = vmatprep.mubr.bf16.mxu0 %v5157_v11  ;;  %2910 = vmatpush1.bf16.msra.mxu1 %v5218_v12  ;;  %v5246_v10 = vld [vmem:[%s5501_s26 + $0x7c] ss:$52 sps:$4 sm:$0xff]   ;;  %v5371_v12 = vld [vmem:[%s6329_s1 + $0x180] sm:$0xff]  }
 0x111   : > { %2911 = vmatprep.subr.bf16.mxu1 %v5395_v1  ;;  %v5248_v11 = vld [vmem:[%s5501_s26 + $0x43c] ss:$52 sps:$4 sm:$0xff]  }
 0x114   : > { %2912 = vmatpush1.bf16.msra.mxu1 %v5225_v13  ;;  %v5250_v13 = vld [vmem:[%s5501_s26 + $0x78] ss:$52 sps:$4 sm:$0xff]  }
 0x115   : > { %2913 = vmatprep.subr.bf16.mxu1 %v5395_v1 }
 0x116   : > { %2790 = vmatmul.mubr.bf16.gmra.mrb[28].mxu1 %v5159_v14  ;;  %v5251_v14 = vld [vmem:[%s5501_s26 + $0x438] ss:$52 sps:$4 sm:$0xff]  }
 0x117   : > { %3414 = vmatmul.mubr.bf16.gmra.mrb[64].mxu0 %v5160_v15  ;;  %2797 = vmatprep.mubr.bf16.mxu1 %v5162_v16  ;;  %v5252_v15 = vld [vmem:[%s5501_s26 + $0xe4] ss:$52 sps:$4 sm:$0xff]  }
 0x118   : > { %3421 = vmatprep.mubr.bf16.mxu0 %v5164_v17  ;;  %2914 = vmatpush1.bf16.msra.mxu1 %v5232_v18  ;;  %v5254_v16 = vld [vmem:[%s5501_s26 + $0x4a4] ss:$52 sps:$4 sm:$0xff]   ;;  %v5372_v17 = vld [vmem:[%s6329_s1 + $0x188] sm:$0xff]   ;;  %v5373_v18 = vld [vmem:[%s6329_s1 + $0x190] sm:$0xff]  }
 0x119   : > { %2915 = vmatprep.subr.bf16.mxu1 %v5395_v1 }
 0x11c   : > { %2916 = vmatpush1.bf16.msra.mxu1 %v5238_v19  ;;  %v5256_v19 = vld [vmem:[%s5501_s26 + $0xe0] ss:$52 sps:$4 sm:$0xff]  }
 0x11d   : > { %4418 = vmatprep.subr.bf16.mxu1 %v5395_v1 }
 0x11e   : > { %2798 = vmatmul.mubr.bf16.gmra.mrb[32].mxu1 %v5166_v21  ;;  %v5258_v21 = vld [vmem:[%s5501_s26 + $0x14c] ss:$52 sps:$4 sm:$0xff]  }
 0x11f   : > { %3422 = vmatmul.mubr.bf16.gmra.mrb[68].mxu0 %v5168_v22  ;;  %2805 = vmatprep.mubr.bf16.mxu1 %v5169_v23  ;;  %v5260_v22 = vld [vmem:[%s5501_s26 + $0x50c] ss:$52 sps:$4 sm:$0xff]   ;;  %v5374_v23 = vld [vmem:[%s6329_s1 + $0x198] sm:$0xff]  }
 0x120   : > { %3429 = vmatprep.mubr.bf16.mxu0 %v4186_v24  ;;  %v5375_v24 = vld [vmem:[%s6329_s1 + $0x1a0] sm:$0xff]  }
 0x126   : > { %2806 = vmatmul.mubr.bf16.gmra.mrb[36].mxu1 %v5172_v25  ;;  %v5262_v25 = vld [vmem:[%s5501_s26 + $0x148] ss:$52 sps:$4 sm:$0xff]  }
 0x127   : > { %3430 = vmatmul.mubr.bf16.gmra.mrb[72].mxu0 %v4185_v26  ;;  %2813 = vmatprep.mubr.bf16.mxu1 %v5176_v27  ;;  %v5263_v26 = vld [vmem:[%s5501_s26 + $0x508] ss:$52 sps:$4 sm:$0xff]  }
 0x128   : > { %3469 = vmatprep.mubr.bf16.mxu0 %v5180_v28  ;;  %v5264_v27 = vld [vmem:[%s5501_s26 + $0x1b4] ss:$52 sps:$4 sm:$0xff]  }
 0x129   : > { %v5266_v28 = vld [vmem:[%s5501_s26 + $0x574] ss:$52 sps:$4 sm:$0xff]  }
 0x12e   : > { %2814 = vmatmul.mubr.bf16.gmra.mrb[40].mxu1 %v5181_v29  ;;  %v5376_v29 = vld [vmem:[%s6329_s1 + $0x1a8] sm:$0xff]  }
 0x12f   : > { %3470 = vmatmul.mubr.bf16.vlgmr.msra.gmra.mrb[0].mxu0 %v5178_v30  ;;  %2821 = vmatprep.mubr.bf16.mxu1 %v5184_v31  ;;  %v5377_v30 = vld [vmem:[%s6329_s1 + $0x1b0] sm:$0xff]  }
 0x130   : > { %4335 = vmatpush3.bf16.msra.mxu0 %v5182_v32  ;;  %3477 = vmatprep.mubr.bf16.mxu0 %v5186_v33  ;;  %v5268_v31 = vld [vmem:[%s5501_s26 + $0x1b0] ss:$52 sps:$4 sm:$0xff]  }
 0x131   : > { %4336 = vmatprep.subr.bf16.mxu0 %v5396_v34  ;;  %v5269_v32 = vld [vmem:[%s5501_s26 + $0x570] ss:$52 sps:$4 sm:$0xff]  }
 0x132   : > { %v5270_v33 = vld [vmem:[%s5501_s26 + $0x21c] ss:$52 sps:$4 sm:$0xff]  }
 0x134   : > { %4337 = vmatpush3.bf16.msra.mxu0 %v5215_v35  ;;  %v5272_v35 = vld [vmem:[%s5501_s26 + $0x5dc] ss:$52 sps:$4 sm:$0xff]  }
 0x135   : > { %4338 = vmatprep.subr.bf16.mxu0 %v5396_v34 }
 0x136   : > { %2822 = vmatmul.mubr.bf16.gmra.mrb[44].mxu1 %v5188_v36  ;;  %v5378_v36 = vld [vmem:[%s6329_s1 + $0x1b8] sm:$0xff]  }
 0x137   : > { %3478 = vmatmul.mubr.bf16.gmra.mrb[4].mxu0 %v5189_v37  ;;  %2829 = vmatprep.mubr.bf16.mxu1 %v5191_v38  ;;  %v5379_v37 = vld [vmem:[%s6329_s1 + $0x1c0] sm:$0xff]   ;;  %v5274_v38 = vld [vmem:[%s5501_s26 + $0x218] ss:$52 sps:$4 sm:$0xff]  }
 0x138   : > { %3485 = vmatprep.mubr.bf16.mxu0 %v5193_v39  ;;  %4339 = vmatpush3.bf16.msra.mxu0 %v5245_v40  ;;  %v5275_v39 = vld [vmem:[%s5501_s26 + $0x5d8] ss:$52 sps:$4 sm:$0xff]  }
 0x139   : > { %4340 = vmatprep.subr.bf16.mxu0 %v5396_v34  ;;  %v5277_v40 = vld [vmem:[%s5501_s26 + $0x284] ss:$52 sps:$4 sm:$0xff]  }
 0x13c   : > { %4341 = vmatpush3.bf16.msra.mxu0 %v5276_v41  ;;  %v5279_v41 = vld [vmem:[%s5501_s26 + $0x644] ss:$52 sps:$4 sm:$0xff]  }
 0x13e   : > { %2830 = vmatmul.mubr.bf16.gmra.mrb[48].mxu1 %v5195_v42  ;;  %v5380_v42 = vld [vmem:[%s6329_s1 + $0x1c8] sm:$0xff]  }
 0x13f   : > { %3486 = vmatmul.mubr.bf16.gmra.mrb[8].mxu0 %v5196_v43  ;;  %2837 = vmatprep.mubr.bf16.mxu1 %v5198_v44  ;;  %v5381_v43 = vld [vmem:[%s6329_s1 + $0x1d0] sm:$0xff]  }
 0x140   : > { %3493 = vmatprep.mubr.bf16.mxu0 %v5200_v45  ;;  %v5281_v44 = vld [vmem:[%s5501_s26 + $0x280] ss:$52 sps:$4 sm:$0xff]  }
 0x141   : > { %v5282_v45 = vld [vmem:[%s5501_s26 + $0x640] ss:$52 sps:$4 sm:$0xff]  }
 0x146   : > { %2838 = vmatmul.mubr.bf16.gmra.mrb[52].mxu1 %v5202_v46  ;;  %v5283_v46 = vld [vmem:[%s5501_s26 + $0x2ec] ss:$52 sps:$4 sm:$0xff]  }
 0x147   : > { %3494 = vmatmul.mubr.bf16.gmra.mrb[12].mxu0 %v5203_v47  ;;  %2845 = vmatprep.mubr.bf16.mxu1 %v5204_v48  ;;  %v5285_v47 = vld [vmem:[%s5501_s26 + $0x6ac] ss:$52 sps:$4 sm:$0xff]   ;;  %v5382_v48 = vld [vmem:[%s6329_s1 + $0x1d8] sm:$0xff]  }
 0x148   : > { %3501 = vmatprep.mubr.bf16.mxu0 %v5206_v49  ;;  %v5383_v49 = vld [vmem:[%s6329_s1 + $0x1e0] sm:$0xff]  }
 0x14e   : > { %2846 = vmatmul.mubr.bf16.gmra.mrb[56].mxu1 %v5208_v50  ;;  %v5287_v50 = vld [vmem:[%s5501_s26 + $0x2e8] ss:$52 sps:$4 sm:$0xff]  }
 0x14f   : > { %3502 = vmatmul.mubr.bf16.gmra.mrb[16].mxu0 %v5210_v51  ;;  %2853 = vmatprep.mubr.bf16.mxu1 %v5211_v52  ;;  %v5288_v51 = vld [vmem:[%s5501_s26 + $0x6a8] ss:$52 sps:$4 sm:$0xff]  }
 0x150   : > { %3509 = vmatprep.mubr.bf16.mxu0 %v5213_v53  ;;  %v5289_v52 = vld [vmem:[%s5501_s26 + $0x354] ss:$52 sps:$4 sm:$0xff]  }
 0x151   : > { %v5291_v53 = vld [vmem:[%s5501_s26 + $0x714] ss:$52 sps:$4 sm:$0xff]  }
 0x156   : > { %2854 = vmatmul.mubr.bf16.gmra.mrb[60].mxu1 %v5216_v54  ;;  %v5384_v54 = vld [vmem:[%s6329_s1 + $0x1e8] sm:$0xff]  }
 0x157   : > { %3510 = vmatmul.mubr.bf16.gmra.mrb[20].mxu0 %v5217_v55  ;;  %2861 = vmatprep.mubr.bf16.mxu1 %v5219_v56  ;;  %v5385_v55 = vld [vmem:[%s6329_s1 + $0x1f0] sm:$0xff]   ;;  %v435_v56 = vld [vmem:[%s5501_s26 + $0x778] sm:$0xff] }
 0x158   : > { %3517 = vmatprep.mubr.bf16.mxu0 %v5221_v57  ;;  %v5293_v57 = vld [vmem:[%s5501_s26 + $0x350] ss:$52 sps:$4 sm:$0xff]  }
 0x15e   : > { %2862 = vmatmul.mubr.bf16.gmra.mrb[64].mxu1 %v5223_v58  ;;  %v5294_v58 = vld [vmem:[%s5501_s26 + $0x710] ss:$52 sps:$4 sm:$0xff]  }
 0x15f   : > { %3518 = vmatmul.mubr.bf16.gmra.mrb[24].mxu0 %v5224_v59  ;;  %2869 = vmatprep.mubr.bf16.mxu1 %v5226_v60  ;;  %v5295_v59 = vld [vmem:[%s5501_s26 + $0x3bc] ss:$52 sps:$4 sm:$0xff]   ;;  %v4188_v60 = vcombine.high %v435_v56, %v435_v56 }
 0x160   : > { %3525 = vmatprep.mubr.bf16.mxu0 %v5228_v61  ;;  %v5386_v61 = vld [vmem:[%s6329_s1 + $0x1f8] sm:$0xff]  }
 0x166   : > { %2870 = vmatmul.mubr.bf16.gmra.mrb[68].mxu1 %v5230_v63  ;;  %v4187_v63 = vcombine.low %v435_v56, %v435_v56 }
 0x167   : > { %3526 = vmatmul.mubr.bf16.gmra.mrb[28].mxu0 %v5231_v0  ;;  %2877 = vmatprep.mubr.bf16.mxu1 %v4180_v2  ;;  %v5302_v0 = vld [vmem:[%s5501_s26 + $0x420] ss:$52 sps:$4 sm:$0xff]   ;;  %v5303_v2 = vld [vmem:[%s5501_s26 + $0x30] ss:$52 sps:$4 sm:$0xff]  }
 0x168   : > { %3533 = vmatprep.mubr.bf16.mxu0 %v5234_v3  ;;  %v5304_v3 = vld [vmem:[%s5501_s26 + $0x48c] ss:$52 sps:$4 sm:$0xff]  }
 0x16e   : > { %2878 = vmatmul.mubr.bf16.gmra.mrb[72].mxu1 %v4179_v4  ;;  %v5306_v4 = vld [vmem:[%s5501_s26 + $0x488] ss:$52 sps:$4 sm:$0xff]  }
 0x16f   : > { %3534 = vmatmul.mubr.bf16.gmra.mrb[32].mxu0 %v5237_v5  ;;  %2917 = vmatprep.mubr.bf16.mxu1 %v5241_v6  ;;  %v5307_v5 = vld [vmem:[%s5501_s26 + $0x98] ss:$52 sps:$4 sm:$0xff]   ;;  %v5308_v6 = vld [vmem:[%s5501_s26 + $0x4f4] ss:$52 sps:$4 sm:$0xff]  }
 0x170   : > { %3541 = vmatprep.mubr.bf16.mxu0 %v5242_v7  ;;  %v5310_v7 = vld [vmem:[%s5501_s26 + $0x4f0] ss:$52 sps:$4 sm:$0xff]  }
 0x176   : > { %2918 = vmatmul.mubr.bf16.vlgmr.msra.gmra.mrb[0].mxu1 %v5239_v8  ;;  %v5311_v8 = vld [vmem:[%s5501_s26 + $0x100] ss:$52 sps:$4 sm:$0xff]  }
 0x177   : > { %3542 = vmatmul.mubr.bf16.gmra.mrb[36].mxu0 %v5244_v9  ;;  %2925 = vmatprep.mubr.bf16.mxu1 %v5246_v10  ;;  %v5312_v9 = vld [vmem:[%s5501_s26 + $0x55c] ss:$52 sps:$4 sm:$0xff]   ;;  %v5314_v10 = vld [vmem:[%s5501_s26 + $0x558] ss:$52 sps:$4 sm:$0xff]  }
 0x178   : > { %4434 = vmatpush1.bf16.msra.mxu1 %v5371_v12  ;;  %3549 = vmatprep.mubr.bf16.mxu0 %v5248_v11  ;;  %v5315_v11 = vld [vmem:[%s5501_s26 + $0x168] ss:$52 sps:$4 sm:$0xff]   ;;  %v5316_v12 = vld [vmem:[%s5501_s26 + $0x5c4] ss:$52 sps:$4 sm:$0xff]  }
 0x179   : > { %4419 = vmatprep.subr.bf16.mxu1 %v5395_v1 }
 0x17c   : > { %4435 = vmatpush1.bf16.msra.mxu1 %v5372_v17  ;;  %v5323_v17 = vld [vmem:[%s5501_s26 + $0x238] ss:$52 sps:$4 sm:$0xff]  }
 0x17d   : > { %4420 = vmatprep.subr.bf16.mxu1 %v5395_v1 }
 0x17e   : > { %2926 = vmatmul.mubr.bf16.gmra.mrb[4].mxu1 %v5250_v13  ;;  %v5318_v13 = vld [vmem:[%s5501_s26 + $0x5c0] ss:$52 sps:$4 sm:$0xff]  }
 0x17f   : > { %3550 = vmatmul.mubr.bf16.gmra.mrb[40].mxu0 %v5251_v14  ;;  %2933 = vmatprep.mubr.bf16.mxu1 %v5252_v15  ;;  %v5319_v14 = vld [vmem:[%s5501_s26 + $0x1d0] ss:$52 sps:$4 sm:$0xff]   ;;  %v5320_v15 = vld [vmem:[%s5501_s26 + $0x62c] ss:$52 sps:$4 sm:$0xff]  }
 0x180   : > { %3557 = vmatprep.mubr.bf16.mxu0 %v5254_v16  ;;  %4436 = vmatpush1.bf16.msra.mxu1 %v5373_v18  ;;  %v5322_v16 = vld [vmem:[%s5501_s26 + $0x628] ss:$52 sps:$4 sm:$0xff]  }
 0x181   : > { %4421 = vmatprep.subr.bf16.mxu1 %v5395_v1  ;;  %v5324_v18 = vld [vmem:[%s5501_s26 + $0x694] ss:$52 sps:$4 sm:$0xff]  }
 0x184   : > { %4437 = vmatpush1.bf16.msra.mxu1 %v5374_v23  ;;  %v5330_v23 = vld [vmem:[%s5501_s26 + $0x6f8] ss:$52 sps:$4 sm:$0xff]  }
 0x185   : > { %4422 = vmatprep.subr.bf16.mxu1 %v5395_v1 }
 0x186   : > { %2934 = vmatmul.mubr.bf16.gmra.mrb[8].mxu1 %v5256_v19  ;;  %v5326_v19 = vld [vmem:[%s5501_s26 + $0x690] ss:$52 sps:$4 sm:$0xff]  }
 0x187   : > { %3558 = vmatmul.mubr.bf16.gmra.mrb[44].mxu0 %v5257_v20  ;;  %2941 = vmatprep.mubr.bf16.mxu1 %v5258_v21  ;;  %v5327_v20 = vld [vmem:[%s5501_s26 + $0x2a0] ss:$52 sps:$4 sm:$0xff]   ;;  %v5328_v21 = vld [vmem:[%s5501_s26 + $0x6fc] ss:$52 sps:$4 sm:$0xff]  }
 0x188   : > { %3565 = vmatprep.mubr.bf16.mxu0 %v5260_v22  ;;  %4438 = vmatpush1.bf16.msra.mxu1 %v5375_v24  ;;  %v432_v22 = vld [vmem:[%s5501_s26 + $0x760] sm:$0xff]  ;;  %v5331_v24 = vld [vmem:[%s5501_s26 + $0x308] ss:$52 sps:$4 sm:$0xff]  }
 0x189   : > { %4423 = vmatprep.subr.bf16.mxu1 %v5395_v1 }
 0x18c   : > { %4439 = vmatpush1.bf16.msra.mxu1 %v5376_v29  ;;  %v5335_v29 = vld [vmem:[%s5501_s26 + $0x428] ss:$52 sps:$4 sm:$0xff]  }
 0x18d   : > { %4424 = vmatprep.subr.bf16.mxu1 %v5395_v1 }
 0x18e   : > { %2942 = vmatmul.mubr.bf16.gmra.mrb[12].mxu1 %v5262_v25  ;;  %v4182_v25 = vcombine.high %v432_v22, %v432_v22 }
 0x18f   : > { %3566 = vmatmul.mubr.bf16.gmra.mrb[48].mxu0 %v5263_v26  ;;  %2949 = vmatprep.mubr.bf16.mxu1 %v5264_v27  ;;  %v4181_v26 = vcombine.low %v432_v22, %v432_v22  ;;  %v5334_v27 = vld [vmem:[%s5501_s26 + $0x370] ss:$52 sps:$4 sm:$0xff]  }
 0x190   : > { %3573 = vmatprep.mubr.bf16.mxu0 %v5266_v28  ;;  %4440 = vmatpush1.bf16.msra.mxu1 %v5377_v30  ;;  %v5337_v28 = vld [vmem:[%s5501_s26 + $0x42c] ss:$52 sps:$4 sm:$0xff]  }
 0x191   : > { %4425 = vmatprep.subr.bf16.mxu1 %v5395_v1  ;;  %v5338_v30 = vld [vmem:[%s5501_s26 + $0x3d8] ss:$52 sps:$4 sm:$0xff]  }
 0x194   : > { %4441 = vmatpush1.bf16.msra.mxu1 %v5378_v36  ;;  %v5345_v36 = vld [vmem:[%s5501_s26 + $0x4f8] ss:$52 sps:$4 sm:$0xff]  }
 0x195   : > { %4426 = vmatprep.subr.bf16.mxu1 %v5395_v1 }
 0x196   : > { %2950 = vmatmul.mubr.bf16.gmra.mrb[16].mxu1 %v5268_v31  ;;  %v5339_v31 = vld [vmem:[%s5501_s26 + $0x494] ss:$52 sps:$4 sm:$0xff]  }
 0x197   : > { %3574 = vmatmul.mubr.bf16.gmra.mrb[52].mxu0 %v5269_v32  ;;  %2957 = vmatprep.mubr.bf16.mxu1 %v5270_v33  ;;  %v5341_v32 = vld [vmem:[%s5501_s26 + $0x490] ss:$52 sps:$4 sm:$0xff]   ;;  %v5342_v33 = vld [vmem:[%s5501_s26 + $0x440] ss:$52 sps:$4 sm:$0xff]  }
 0x198   : > { %3581 = vmatprep.mubr.bf16.mxu0 %v5272_v35  ;;  %4442 = vmatpush1.bf16.msra.mxu1 %v5379_v37  ;;  %v5343_v35 = vld [vmem:[%s5501_s26 + $0x4fc] ss:$52 sps:$4 sm:$0xff]  }
 0x199   : > { %4427 = vmatprep.subr.bf16.mxu1 %v5395_v1  ;;  %v5346_v37 = vld [vmem:[%s5501_s26 + $0x4a8] ss:$52 sps:$4 sm:$0xff]  }
 0x19c   : > { %4443 = vmatpush1.bf16.msra.mxu1 %v5380_v42  ;;  %v5353_v42 = vld [vmem:[%s5501_s26 + $0x5c8] ss:$52 sps:$4 sm:$0xff]  }
 0x19d   : > { %4428 = vmatprep.subr.bf16.mxu1 %v5395_v1 }
 0x19e   : > { %2958 = vmatmul.mubr.bf16.gmra.mrb[20].mxu1 %v5274_v38  ;;  %v5347_v38 = vld [vmem:[%s5501_s26 + $0x564] ss:$52 sps:$4 sm:$0xff]  }
 0x19f   : > { %3582 = vmatmul.mubr.bf16.gmra.mrb[56].mxu0 %v5275_v39  ;;  %2965 = vmatprep.mubr.bf16.mxu1 %v5277_v40  ;;  %v5349_v39 = vld [vmem:[%s5501_s26 + $0x560] ss:$52 sps:$4 sm:$0xff]   ;;  %v5350_v40 = vld [vmem:[%s5501_s26 + $0x510] ss:$52 sps:$4 sm:$0xff]  }
 0x1a0   : > { %3589 = vmatprep.mubr.bf16.mxu0 %v5279_v41  ;;  %4444 = vmatpush1.bf16.msra.mxu1 %v5381_v43  ;;  %v5351_v41 = vld [vmem:[%s5501_s26 + $0x5cc] ss:$52 sps:$4 sm:$0xff]  }
 0x1a1   : > { %4429 = vmatprep.subr.bf16.mxu1 %v5395_v1  ;;  %v5354_v43 = vld [vmem:[%s5501_s26 + $0x578] ss:$52 sps:$4 sm:$0xff]  }
 0x1a4   : > { %4445 = vmatpush1.bf16.msra.mxu1 %v5382_v48  ;;  %v5361_v48 = vld [vmem:[%s5501_s26 + $0x698] ss:$52 sps:$4 sm:$0xff]  }
 0x1a5   : > { %4430 = vmatprep.subr.bf16.mxu1 %v5395_v1 }
 0x1a6   : > { %2966 = vmatmul.mubr.bf16.gmra.mrb[24].mxu1 %v5281_v44  ;;  %v5355_v44 = vld [vmem:[%s5501_s26 + $0x634] ss:$52 sps:$4 sm:$0xff]  }
 0x1a7   : > { %3590 = vmatmul.mubr.bf16.gmra.mrb[60].mxu0 %v5282_v45  ;;  %2973 = vmatprep.mubr.bf16.mxu1 %v5283_v46  ;;  %v5357_v45 = vld [vmem:[%s5501_s26 + $0x630] ss:$52 sps:$4 sm:$0xff]   ;;  %v5358_v46 = vld [vmem:[%s5501_s26 + $0x5e0] ss:$52 sps:$4 sm:$0xff]  }
 0x1a8   : > { %3597 = vmatprep.mubr.bf16.mxu0 %v5285_v47  ;;  %4446 = vmatpush1.bf16.msra.mxu1 %v5383_v49  ;;  %v5359_v47 = vld [vmem:[%s5501_s26 + $0x69c] ss:$52 sps:$4 sm:$0xff]  }
 0x1a9   : > { %4431 = vmatprep.subr.bf16.mxu1 %v5395_v1  ;;  %v5362_v49 = vld [vmem:[%s5501_s26 + $0x648] ss:$52 sps:$4 sm:$0xff]  }
 0x1ac   : > { %4447 = vmatpush1.bf16.msra.mxu1 %v5384_v54 }
 0x1ad   : > { %4432 = vmatprep.subr.bf16.mxu1 %v5395_v1 }
 0x1ae   : > { %2974 = vmatmul.mubr.bf16.gmra.mrb[28].mxu1 %v5287_v50  ;;  %v5363_v50 = vld [vmem:[%s5501_s26 + $0x704] ss:$52 sps:$4 sm:$0xff]  }
 0x1af   : > { %3598 = vmatmul.mubr.bf16.gmra.mrb[64].mxu0 %v5288_v51  ;;  %2981 = vmatprep.mubr.bf16.mxu1 %v5289_v52  ;;  %v433_v51 = vld [vmem:[%s5501_s26 + $0x768] sm:$0xff]  ;;  %v5365_v52 = vld [vmem:[%s5501_s26 + $0x700] ss:$52 sps:$4 sm:$0xff]  }
 0x1b0   : > { %3605 = vmatprep.mubr.bf16.mxu0 %v5291_v53  ;;  %4448 = vmatpush1.bf16.msra.mxu1 %v5385_v55  ;;  %v5366_v53 = vld [vmem:[%s5501_s26 + $0x6b0] ss:$52 sps:$4 sm:$0xff]   ;;  %v4184_v54 = vcombine.high %v433_v51, %v433_v51 }
 0x1b1   : > { %4433 = vmatprep.subr.bf16.mxu1 %v5395_v1  ;;  %v5300_v1 = vld [vmem:[%s5501_s26 + $0x424] ss:$52 sps:$4 sm:$0xff]  }
 0x1b4   : > { %4449 = vmatpush1.bf16.msra.mxu1 %v5386_v61 }
 0x1b6   : > { %2982 = vmatmul.mubr.bf16.gmra.mrb[32].mxu1 %v5293_v57  ;;  %v4183_v57 = vcombine.low %v433_v51, %v433_v51 }
 0x1b7   : > { %3606 = vmatmul.mubr.bf16.gmra.mrb[68].mxu0 %v5294_v58  ;;  %2989 = vmatprep.mubr.bf16.mxu1 %v5295_v59  ;;  %v5369_v59 = vld [vmem:[%s5501_s26 + $0x718] ss:$52 sps:$4 sm:$0xff]  }
 0x1b8   : > { %3613 = vmatprep.mubr.bf16.mxu0 %v4188_v60 }
 0x1be   : > { %2990 = vmatmul.mubr.bf16.gmra.mrb[36].mxu1 %v5298_v62 }
 0x1bf   : > { %3614 = vmatmul.mubr.bf16.gmra.mrb[72].mxu0 %v4187_v63  ;;  %2997 = vmatprep.mubr.bf16.mxu1 %v5300_v1  ;;  %v5370_v1 = vld [vmem:[%s5501_s26 + $0x780] ss:$0 sps:$4 sm:$0xff]  }
 0x1c0   : > { %4342 = vmatprep.mubr.msk.bf16.mxu0 %vm5397_vm0, %v5396_v34 }
 0x1c6   : > { %2998 = vmatmul.mubr.bf16.gmra.mrb[40].mxu1 %v5302_v0 }
 0x1c7   : > { %4343 = vmatmul.mubr.msk.bf16.vlgmr.msra.gmra.mrb[0].mxu0 %vm2459_vm1, %v5303_v2  ;;  %3005 = vmatprep.mubr.bf16.mxu1 %v5304_v3 }
 0x1c8   : > { %4346 = vmatprep.mubr.msk.bf16.mxu0 %vm5397_vm0, %v5396_v34 }
 0x1ce   : > { %3006 = vmatmul.mubr.bf16.gmra.mrb[44].mxu1 %v5306_v4 }
 0x1cf   : > { %4347 = vmatmul.mubr.msk.bf16.gmra.mrb[4].mxu0 %vm2459_vm1, %v5307_v5  ;;  %3013 = vmatprep.mubr.bf16.mxu1 %v5308_v6 }
 0x1d0   : > { %4350 = vmatprep.mubr.msk.bf16.mxu0 %vm5397_vm0, %v5396_v34 }
 0x1d6   : > { %3014 = vmatmul.mubr.bf16.gmra.mrb[48].mxu1 %v5310_v7 }
 0x1d7   : > { %4351 = vmatmul.mubr.msk.bf16.gmra.mrb[8].mxu0 %vm2459_vm1, %v5311_v8  ;;  %3021 = vmatprep.mubr.bf16.mxu1 %v5312_v9 }
 0x1d8   : > { %4354 = vmatprep.mubr.msk.bf16.mxu0 %vm5397_vm0, %v5396_v34 }
 0x1de   : > { %3022 = vmatmul.mubr.bf16.gmra.mrb[52].mxu1 %v5314_v10 }
 0x1df   : > { %4355 = vmatmul.mubr.msk.bf16.gmra.mrb[12].mxu0 %vm2459_vm1, %v5315_v11  ;;  %3029 = vmatprep.mubr.bf16.mxu1 %v5316_v12 }
 0x1e0   : > { %4358 = vmatprep.mubr.msk.bf16.mxu0 %vm5397_vm0, %v5396_v34 }
 0x1e6   : > { %3030 = vmatmul.mubr.bf16.gmra.mrb[56].mxu1 %v5318_v13 }
 0x1e7   : > { %4359 = vmatmul.mubr.msk.bf16.gmra.mrb[16].mxu0 %vm2459_vm1, %v5319_v14  ;;  %3037 = vmatprep.mubr.bf16.mxu1 %v5320_v15 }
 0x1e8   : > { %4362 = vmatprep.mubr.msk.bf16.mxu0 %vm5397_vm0, %v5396_v34 }
 0x1ee   : > { %3038 = vmatmul.mubr.bf16.gmra.mrb[60].mxu1 %v5322_v16 }
 0x1ef   : > { %4363 = vmatmul.mubr.msk.bf16.gmra.mrb[20].mxu0 %vm2459_vm1, %v5323_v17  ;;  %3045 = vmatprep.mubr.bf16.mxu1 %v5324_v18 }
 0x1f0   : > { %4366 = vmatprep.mubr.msk.bf16.mxu0 %vm5397_vm0, %v5396_v34 }
 0x1f6   : > { %3046 = vmatmul.mubr.bf16.gmra.mrb[64].mxu1 %v5326_v19 }
 0x1f7   : > { %4367 = vmatmul.mubr.msk.bf16.gmra.mrb[24].mxu0 %vm2459_vm1, %v5327_v20  ;;  %3053 = vmatprep.mubr.bf16.mxu1 %v5328_v21 }
 0x1f8   : > { %4370 = vmatprep.mubr.msk.bf16.mxu0 %vm5397_vm0, %v5396_v34 }
 0x1fe   : > { %3054 = vmatmul.mubr.bf16.gmra.mrb[68].mxu1 %v5330_v23 }
 0x1ff   : > { %4371 = vmatmul.mubr.msk.bf16.gmra.mrb[28].mxu0 %vm2459_vm1, %v5331_v24  ;;  %3061 = vmatprep.mubr.bf16.mxu1 %v4182_v25 }
 0x200   : > { %4374 = vmatprep.mubr.msk.bf16.mxu0 %vm5397_vm0, %v5396_v34 }
 0x206   : > { %3062 = vmatmul.mubr.bf16.gmra.mrb[72].mxu1 %v4181_v26 }
 0x207   : > { %4375 = vmatmul.mubr.msk.bf16.gmra.mrb[32].mxu0 %vm2459_vm1, %v5334_v27  ;;  %3181 = vmatprep.mubr.bf16.mxu1 %v5337_v28 }
 0x208   : > { %4378 = vmatprep.mubr.msk.bf16.mxu0 %vm5397_vm0, %v5396_v34 }
 0x20e   : > { %3182 = vmatmul.mubr.bf16.vlgmr.msra.gmra.mrb[40].mxu1 %v5335_v29 }
 0x20f   : > { %4379 = vmatmul.mubr.msk.bf16.gmra.mrb[36].mxu0 %vm2459_vm1, %v5338_v30  ;;  %3189 = vmatprep.mubr.bf16.mxu1 %v5339_v31 }
 0x210   : > { %4382 = vmatprep.mubr.msk.bf16.mxu0 %vm5397_vm0, %v5396_v34 }
 0x216   : > { %3190 = vmatmul.mubr.bf16.gmra.mrb[44].mxu1 %v5341_v32 }
 0x217   : > { %4383 = vmatmul.mubr.msk.bf16.gmra.mrb[40].mxu0 %vm2459_vm1, %v5342_v33  ;;  %3197 = vmatprep.mubr.bf16.mxu1 %v5343_v35  ;;  %v6229_v33 = vld [vmem:[%s6330_s2] ss:$0 sm:$0xff] }
 0x218   : > { %4386 = vmatprep.mubr.msk.bf16.mxu0 %vm5397_vm0, %v5396_v34 }
 0x21e   : > { %3198 = vmatmul.mubr.bf16.gmra.mrb[48].mxu1 %v5345_v36 }
 0x21f   : > { %4387 = vmatmul.mubr.msk.bf16.gmra.mrb[44].mxu0 %vm2459_vm1, %v5346_v37  ;;  %3205 = vmatprep.mubr.bf16.mxu1 %v5347_v38 }
 0x220   : > { %4390 = vmatprep.mubr.msk.bf16.mxu0 %vm5397_vm0, %v5396_v34 }
 0x226   : > { %3206 = vmatmul.mubr.bf16.gmra.mrb[52].mxu1 %v5349_v39 }
 0x227   : > { %4391 = vmatmul.mubr.msk.bf16.gmra.mrb[48].mxu0 %vm2459_vm1, %v5350_v40  ;;  %3213 = vmatprep.mubr.bf16.mxu1 %v5351_v41 }
 0x228   : > { %4394 = vmatprep.mubr.msk.bf16.mxu0 %vm5397_vm0, %v5396_v34 }
 0x22e   : > { %3214 = vmatmul.mubr.bf16.gmra.mrb[56].mxu1 %v5353_v42 }
 0x22f   : > { %4395 = vmatmul.mubr.msk.bf16.gmra.mrb[52].mxu0 %vm2459_vm1, %v5354_v43  ;;  %3221 = vmatprep.mubr.bf16.mxu1 %v5355_v44 }
 0x230   : > { %4398 = vmatprep.mubr.msk.bf16.mxu0 %vm5397_vm0, %v5396_v34 }
 0x236   : > { %3222 = vmatmul.mubr.bf16.gmra.mrb[60].mxu1 %v5357_v45 }
 0x237   : > { %4399 = vmatmul.mubr.msk.bf16.gmra.mrb[56].mxu0 %vm2459_vm1, %v5358_v46  ;;  %3229 = vmatprep.mubr.bf16.mxu1 %v5359_v47 }
 0x238   : > { %4402 = vmatprep.mubr.msk.bf16.mxu0 %vm5397_vm0, %v5396_v34 }
 0x23e   : > { %3230 = vmatmul.mubr.bf16.gmra.mrb[64].mxu1 %v5361_v48 }
 0x23f   : > { %4403 = vmatmul.mubr.msk.bf16.gmra.mrb[60].mxu0 %vm2459_vm1, %v5362_v49  ;;  %3237 = vmatprep.mubr.bf16.mxu1 %v5363_v50 }
 0x240   : > { %4406 = vmatprep.mubr.msk.bf16.mxu0 %vm5397_vm0, %v5396_v34 }
 0x246   : > { %3238 = vmatmul.mubr.bf16.gmra.mrb[68].mxu1 %v5365_v52 }
 0x247   : > { %4407 = vmatmul.mubr.msk.bf16.gmra.mrb[64].mxu0 %vm2459_vm1, %v5366_v53  ;;  %3245 = vmatprep.mubr.bf16.mxu1 %v4184_v54 }
 0x248   : > { %4410 = vmatprep.mubr.msk.bf16.mxu0 %vm5397_vm0, %v5396_v34 }
 0x249   : > { %v2919_v55 = vpop.f32.mrb[0].mxu1 }
 0x24a   : > { %v2921_v56 = vpop.f32.mrb[1].mxu1  ;;  %v4450_v35 = vadd.f32 %v6229_v33, %v2919_v55 }
 0x24b   : > { %v2922_v58 = vpop.f32.mrb[2].mxu1 }
 0x24c   : > { %v2924_v60 = vpop.f32.mrb[3].mxu1  ;;  %v4452_v37 = vadd.f32 %v6229_v33, %v2922_v58 }
 0x24e   : > { %3246 = vmatmul.mubr.bf16.gmra.mrb[72].mxu1 %v4183_v57 }
 0x24f   : > { %4411 = vmatmul.mubr.msk.bf16.gmra.mrb[68].mxu0 %vm2459_vm1, %v5369_v59 }
 0x250   : > { %4414 = vmatprep.mubr.msk.bf16.mxu0 %vm5397_vm0, %v5396_v34 }
 0x251   : > { %v2927_v61 = vpop.f32.mrb[4].mxu1 }
 0x252   : > { %v2929_v62 = vpop.f32.mrb[5].mxu1  ;;  %v4454_v45 = vadd.f32 %v6229_v33, %v2927_v61 }
 0x253   : > { %v2930_v63 = vpop.f32.mrb[6].mxu1 }
 0x254   : > { %v2932_v0 = vpop.f32.mrb[7].mxu1  ;;  %v4456_v47 = vadd.f32 %v6229_v33, %v2930_v63 }
 0x257   : > { %4415 = vmatmul.mubr.msk.bf16.gmra.mrb[72].mxu0 %vm2459_vm1, %v5370_v1 }
 0x259   : > { %v2935_v2 = vpop.f32.mrb[8].mxu1 }
 0x25a   : > { %v2937_v3 = vpop.f32.mrb[9].mxu1  ;;  %v4458_v55 = vadd.f32 %v6229_v33, %v2935_v2 }
 0x25b   : > { %v2938_v4 = vpop.f32.mrb[10].mxu1 }
 0x25c   : > { %v2940_v5 = vpop.f32.mrb[11].mxu1  ;;  %v4460_v57 = vadd.f32 %v6229_v33, %v2938_v4 }
 0x261   : > { %v6198_v6 = vpop.f32.mrb[12].mxu1 }
 0x262   : > { %v2945_v7 = vpop.f32.mrb[13].mxu1  ;;  %v4462_v0 = vadd.f32 %v6229_v33, %v6198_v6 }
 0x263   : > { %v6200_v8 = vpop.f32.mrb[14].mxu1 }
 0x264   : > { %v2948_v9 = vpop.f32.mrb[15].mxu1  ;;  %v4464_v2 = vadd.f32 %v6229_v33, %v6200_v8 }
 0x269   : > { %v6202_v10 = vpop.f32.mrb[16].mxu1 }
 0x26a   : > { %v2953_v34 = vpop.f32.mrb[17].mxu1 }
 0x26b   : > { %v6204_v11 = vpop.f32.mrb[18].mxu1 }
 0x26c   : > { %v2956_v12 = vpop.f32.mrb[19].mxu1 }
 0x271   : > { %v6206_v13 = vpop.f32.mrb[20].mxu1 }
 0x272   : > { %v2961_v14 = vpop.f32.mrb[21].mxu1 }
 0x273   : > { %v6208_v15 = vpop.f32.mrb[22].mxu1 }
 0x274   : > { %v2964_v16 = vpop.f32.mrb[23].mxu1 }
 0x275   : > { %v4466_v16 = vadd.f32 %v6229_v33, %v6202_v10 }
 0x279   : > { %v6210_v17 = vpop.f32.mrb[24].mxu1 }
 0x27a   : > { %v2969_v18 = vpop.f32.mrb[25].mxu1 }
 0x27b   : > { %v6212_v19 = vpop.f32.mrb[26].mxu1  ;;  %v4468_v18 = vadd.f32 %v6229_v33, %v6204_v11 }
 0x27c   : > { %v2972_v20 = vpop.f32.mrb[27].mxu1 }
 0x281   : > { %v6214_v21 = vpop.f32.mrb[28].mxu1 }
 0x282   : > { %v2977_v22 = vpop.f32.mrb[29].mxu1 }
 0x283   : > { %v6216_v23 = vpop.f32.mrb[30].mxu1 }
 0x284   : > { %v2980_v24 = vpop.f32.mrb[31].mxu1 }
 0x289   : > { %v6218_v25 = vpop.f32.mrb[32].mxu1 }
 0x28a   : > { %v2985_v26 = vpop.f32.mrb[33].mxu1 }
 0x28b   : > { %v6220_v27 = vpop.f32.mrb[34].mxu1 }
 0x28c   : > { %v2988_v28 = vpop.f32.mrb[35].mxu1 }
 0x291   : > { %v6222_v29 = vpop.f32.mrb[36].mxu1 }
 0x292   : > { %v2993_v30 = vpop.f32.mrb[37].mxu1 }
 0x293   : > { %v6224_v31 = vpop.f32.mrb[38].mxu1 }
 0x294   : > { %v2996_v32 = vpop.f32.mrb[39].mxu1 }
 0x295   : > { %v4470_v32 = vadd.f32 %v6229_v33, %v6206_v13 }
 0x29a   : > { %v3655_v36 = vpop.f32.mrb[0].mxu0 }
 0x29b   : > { %v4451_v38 = vadd.f32 %v4450_v35, %v3655_v36  ;;  %v4344_v39 = vpop.f32.mrb[1].mxu0  ;;  %v4472_v35 = vadd.f32 %v6229_v33, %v6208_v15 }
 0x29c   : > { %v3658_v40 = vpop.f32.mrb[2].mxu0 }
 0x29d   : > { %v3805_v41 = vmax.f32 %v4451_v38, 0.0  ;;  %v4453_v42 = vadd.f32 %v4452_v37, %v3658_v40  ;;  %v4345_v43 = vpop.f32.mrb[3].mxu0 }
 0x29e   : > { %v4476_v43 = vadd.f32 %v6229_v33, %v6212_v19 }
 0x29f   : > { %3842 = vst [vmem:[%s6237_s11] sm:$0xff] %v3805_v41  ;;  %v3806_v44 = vmax.f32 %v4453_v42, 0.0  ;;  %v4474_v42 = vadd.f32 %v6229_v33, %v6210_v17 }
 0x2a1   : > { %3843 = vst [vmem:[%s6237_s11 + $0x8] sm:$0xff] %v3806_v44 }
 0x2a2   : > { %v3663_v46 = vpop.f32.mrb[4].mxu0 }
 0x2a3   : > { %v4455_v48 = vadd.f32 %v4454_v45, %v3663_v46  ;;  %v4348_v49 = vpop.f32.mrb[5].mxu0 }
 0x2a4   : > { %v3666_v50 = vpop.f32.mrb[6].mxu0 }
 0x2a5   : > { %v3807_v51 = vmax.f32 %v4455_v48, 0.0  ;;  %v4457_v52 = vadd.f32 %v4456_v47, %v3666_v50  ;;  %v4349_v53 = vpop.f32.mrb[7].mxu0  ;;  %v4478_v50 = vadd.f32 %v6229_v33, %v6214_v21 }
 0x2a7   : > { %3844 = vst [vmem:[%s6237_s11 + $0x10] sm:$0xff] %v3807_v51  ;;  %v3808_v54 = vmax.f32 %v4457_v52, 0.0  ;;  %v4480_v51 = vadd.f32 %v6229_v33, %v6216_v23 }
 0x2a9   : > { %3845 = vst [vmem:[%s6237_s11 + $0x18] sm:$0xff] %v3808_v54 }
 0x2aa   : > { %v3671_v56 = vpop.f32.mrb[8].mxu0 }
 0x2ab   : > { %v4459_v58 = vadd.f32 %v4458_v55, %v3671_v56  ;;  %v4352_v59 = vpop.f32.mrb[9].mxu0 }
 0x2ac   : > { %v3674_v60 = vpop.f32.mrb[10].mxu0  ;;  %v4484_v59 = vadd.f32 %v6229_v33, %v6220_v27  ;;  %v4488_v27 = vadd.f32 %v6229_v33, %v6224_v31 }
 0x2ad   : > { %v3809_v61 = vmax.f32 %v4459_v58, 0.0  ;;  %v4461_v62 = vadd.f32 %v4460_v57, %v3674_v60  ;;  %v4353_v63 = vpop.f32.mrb[11].mxu0  ;;  %v4482_v58 = vadd.f32 %v6229_v33, %v6218_v25 }
 0x2af   : > { %3846 = vst [vmem:[%s6237_s11 + $0x20] sm:$0xff] %v3809_v61  ;;  %v3810_v1 = vmax.f32 %v4461_v62, 0.0 }
 0x2b1   : > { %3847 = vst [vmem:[%s6237_s11 + $0x28] sm:$0xff] %v3810_v1 }
 0x2b2   : > { %v3679_v3 = vpop.f32.mrb[12].mxu0 }
 0x2b3   : > { %v4463_v5 = vadd.f32 %v4462_v0, %v3679_v3  ;;  %v4356_v4 = vpop.f32.mrb[13].mxu0  ;;  %v4486_v3 = vadd.f32 %v6229_v33, %v6222_v29 }
 0x2b4   : > { %v3682_v7 = vpop.f32.mrb[14].mxu0 }
 0x2b5   : > { %v3811_v9 = vmax.f32 %v4463_v5, 0.0  ;;  %v4465_v34 = vadd.f32 %v4464_v2, %v3682_v7  ;;  %v4357_v12 = vpop.f32.mrb[15].mxu0 }
 0x2b7   : > { %3848 = vst [vmem:[%s6237_s11 + $0x30] sm:$0xff] %v3811_v9  ;;  %v3812_v14 = vmax.f32 %v4465_v34, 0.0 }
 0x2b9   : > { %3849 = vst [vmem:[%s6237_s11 + $0x38] sm:$0xff] %v3812_v14 }
 0x2ba   : > { %v3687_v6 = vpop.f32.mrb[16].mxu0 }
 0x2bb   : > { %v4467_v20 = vadd.f32 %v4466_v16, %v3687_v6  ;;  %v4360_v8 = vpop.f32.mrb[17].mxu0 }
 0x2bc   : > { %v3690_v22 = vpop.f32.mrb[18].mxu0 }
 0x2bd   : > { %v3813_v24 = vmax.f32 %v4467_v20, 0.0  ;;  %v4469_v26 = vadd.f32 %v4468_v18, %v3690_v22  ;;  %v4361_v28 = vpop.f32.mrb[19].mxu0 }
 0x2bf   : > { %3850 = vst [vmem:[%s6237_s11 + $0x40] sm:$0xff] %v3813_v24  ;;  %v3814_v30 = vmax.f32 %v4469_v26, 0.0 }
 0x2c1   : > { %3851 = vst [vmem:[%s6237_s11 + $0x48] sm:$0xff] %v3814_v30 }
 0x2c2   : > { %v3695_v10 = vpop.f32.mrb[20].mxu0 }
 0x2c3   : > { %v4471_v36 = vadd.f32 %v4470_v32, %v3695_v10  ;;  %v4364_v11 = vpop.f32.mrb[21].mxu0 }
 0x2c4   : > { %v3698_v37 = vpop.f32.mrb[22].mxu0 }
 0x2c5   : > { %v3815_v38 = vmax.f32 %v4471_v36, 0.0  ;;  %v4473_v39 = vadd.f32 %v4472_v35, %v3698_v37  ;;  %v4365_v40 = vpop.f32.mrb[23].mxu0 }
 0x2c7   : > { %3852 = vst [vmem:[%s6237_s11 + $0x50] sm:$0xff] %v3815_v38  ;;  %v3816_v41 = vmax.f32 %v4473_v39, 0.0 }
 0x2c9   : > { %3853 = vst [vmem:[%s6237_s11 + $0x58] sm:$0xff] %v3816_v41 }
 0x2ca   : > { %v3703_v13 = vpop.f32.mrb[24].mxu0 }
 0x2cb   : > { %v4475_v44 = vadd.f32 %v4474_v42, %v3703_v13  ;;  %v4368_v15 = vpop.f32.mrb[25].mxu0 }
 0x2cc   : > { %v3706_v45 = vpop.f32.mrb[26].mxu0 }
 0x2cd   : > { %v3817_v46 = vmax.f32 %v4475_v44, 0.0  ;;  %v4477_v47 = vadd.f32 %v4476_v43, %v3706_v45  ;;  %v4369_v48 = vpop.f32.mrb[27].mxu0 }
 0x2cf   : > { %3854 = vst [vmem:[%s6237_s11 + $0x60] sm:$0xff] %v3817_v46  ;;  %v3818_v49 = vmax.f32 %v4477_v47, 0.0 }
 0x2d1   : > { %3855 = vst [vmem:[%s6237_s11 + $0x68] sm:$0xff] %v3818_v49 }
 0x2d2   : > { %v3711_v17 = vpop.f32.mrb[28].mxu0 }
 0x2d3   : > { %v4479_v52 = vadd.f32 %v4478_v50, %v3711_v17  ;;  %v4372_v19 = vpop.f32.mrb[29].mxu0 }
 0x2d4   : > { %v3714_v53 = vpop.f32.mrb[30].mxu0 }
 0x2d5   : > { %v3819_v54 = vmax.f32 %v4479_v52, 0.0  ;;  %v4481_v55 = vadd.f32 %v4480_v51, %v3714_v53  ;;  %v4373_v56 = vpop.f32.mrb[31].mxu0 }
 0x2d7   : > { %3856 = vst [vmem:[%s6237_s11 + $0x70] sm:$0xff] %v3819_v54  ;;  %v3820_v57 = vmax.f32 %v4481_v55, 0.0 }
 0x2d9   : > { %3857 = vst [vmem:[%s6237_s11 + $0x78] sm:$0xff] %v3820_v57 }
 0x2da   : > { %v3719_v21 = vpop.f32.mrb[32].mxu0 }
 0x2db   : > { %v4483_v60 = vadd.f32 %v4482_v58, %v3719_v21  ;;  %v4376_v23 = vpop.f32.mrb[33].mxu0 }
 0x2dc   : > { %v3722_v61 = vpop.f32.mrb[34].mxu0 }
 0x2dd   : > { %v3821_v62 = vmax.f32 %v4483_v60, 0.0  ;;  %v4485_v63 = vadd.f32 %v4484_v59, %v3722_v61  ;;  %v4377_v1 = vpop.f32.mrb[35].mxu0 }
 0x2df   : > { %3858 = vst [vmem:[%s6237_s11 + $0x80] sm:$0xff] %v3821_v62  ;;  %v3822_v0 = vmax.f32 %v4485_v63, 0.0 }
 0x2e1   : > { %3859 = vst [vmem:[%s6237_s11 + $0x88] sm:$0xff] %v3822_v0  ;;  %v3183_v25 = vpop.f32.mrb[40].mxu1 }
 0x2e2   : > { %v3727_v2 = vpop.f32.mrb[36].mxu0  ;;  %v3185_v5 = vpop.f32.mrb[41].mxu1  ;;  %v4490_v29 = vadd.f32 %v6229_v33, %v3183_v25 }
 0x2e3   : > { %v4487_v4 = vadd.f32 %v4486_v3, %v3727_v2  ;;  %v4380_v7 = vpop.f32.mrb[37].mxu0  ;;  %v3186_v9 = vpop.f32.mrb[42].mxu1 }
 0x2e4   : > { %v3730_v34 = vpop.f32.mrb[38].mxu0  ;;  %v3188_v12 = vpop.f32.mrb[43].mxu1  ;;  %v4492_v31 = vadd.f32 %v6229_v33, %v3186_v9 }
 0x2e5   : > { %v3823_v14 = vmax.f32 %v4487_v4, 0.0  ;;  %v4489_v16 = vadd.f32 %v4488_v27, %v3730_v34  ;;  %v4381_v6 = vpop.f32.mrb[39].mxu0 }
 0x2e7   : > { %3860 = vst [vmem:[%s6237_s11 + $0x90] sm:$0xff] %v3823_v14  ;;  %v3824_v18 = vmax.f32 %v4489_v16, 0.0 }
 0x2e9   : > { %3861 = vst [vmem:[%s6237_s11 + $0x98] sm:$0xff] %v3824_v18  ;;  %v3191_v20 = vpop.f32.mrb[44].mxu1 }
 0x2ea   : > { %v3735_v8 = vpop.f32.mrb[40].mxu0  ;;  %v3193_v22 = vpop.f32.mrb[45].mxu1  ;;  %v4494_v37 = vadd.f32 %v6229_v33, %v3191_v20 }
 0x2eb   : > { %v4491_v24 = vadd.f32 %v4490_v29, %v3735_v8  ;;  %v4384_v26 = vpop.f32.mrb[41].mxu0  ;;  %v3194_v28 = vpop.f32.mrb[46].mxu1 }
 0x2ec   : > { %v3738_v30 = vpop.f32.mrb[42].mxu0  ;;  %v3196_v32 = vpop.f32.mrb[47].mxu1  ;;  %v4496_v41 = vadd.f32 %v6229_v33, %v3194_v28 }
 0x2ed   : > { %v3825_v10 = vmax.f32 %v4491_v24, 0.0  ;;  %v4493_v35 = vadd.f32 %v4492_v31, %v3738_v30  ;;  %v4385_v36 = vpop.f32.mrb[43].mxu0 }
 0x2ef   : > { %3862 = vst [vmem:[%s6237_s11 + $0xa0] sm:$0xff] %v3825_v10  ;;  %v3826_v11 = vmax.f32 %v4493_v35, 0.0 }
 0x2f1   : > { %3863 = vst [vmem:[%s6237_s11 + $0xa8] sm:$0xff] %v3826_v11  ;;  %v3199_v38 = vpop.f32.mrb[48].mxu1 }
 0x2f2   : > { %v3743_v39 = vpop.f32.mrb[44].mxu0  ;;  %v3201_v40 = vpop.f32.mrb[49].mxu1  ;;  %v4498_v49 = vadd.f32 %v6229_v33, %v3199_v38 }
 0x2f3   : > { %v4495_v42 = vadd.f32 %v4494_v37, %v3743_v39  ;;  %v4388_v13 = vpop.f32.mrb[45].mxu0  ;;  %v3202_v43 = vpop.f32.mrb[50].mxu1 }
 0x2f4   : > { %v3746_v44 = vpop.f32.mrb[46].mxu0  ;;  %v3204_v15 = vpop.f32.mrb[51].mxu1  ;;  %v4500_v52 = vadd.f32 %v6229_v33, %v3202_v43 }
 0x2f5   : > { %v3827_v45 = vmax.f32 %v4495_v42, 0.0  ;;  %v4497_v46 = vadd.f32 %v4496_v41, %v3746_v44  ;;  %v4389_v47 = vpop.f32.mrb[47].mxu0 }
 0x2f7   : > { %3864 = vst [vmem:[%s6237_s11 + $0xb0] sm:$0xff] %v3827_v45  ;;  %v3828_v48 = vmax.f32 %v4497_v46, 0.0 }
 0x2f9   : > { %3865 = vst [vmem:[%s6237_s11 + $0xb8] sm:$0xff] %v3828_v48  ;;  %v3207_v50 = vpop.f32.mrb[52].mxu1 }
 0x2fa   : > { %v3751_v17 = vpop.f32.mrb[48].mxu0  ;;  %v3209_v51 = vpop.f32.mrb[53].mxu1  ;;  %v4502_v60 = vadd.f32 %v6229_v33, %v3207_v50 }
 0x2fb   : > { %v4499_v19 = vadd.f32 %v4498_v49, %v3751_v17  ;;  %v4392_v53 = vpop.f32.mrb[49].mxu0  ;;  %v3210_v54 = vpop.f32.mrb[54].mxu1 }
 0x2fc   : > { %v3754_v55 = vpop.f32.mrb[50].mxu0  ;;  %v3212_v56 = vpop.f32.mrb[55].mxu1  ;;  %v4504_v63 = vadd.f32 %v6229_v33, %v3210_v54 }
 0x2fd   : > { %v3829_v57 = vmax.f32 %v4499_v19, 0.0  ;;  %v4501_v58 = vadd.f32 %v4500_v52, %v3754_v55  ;;  %v4393_v21 = vpop.f32.mrb[51].mxu0 }
 0x2ff   : > { %3866 = vst [vmem:[%s6237_s11 + $0xc0] sm:$0xff] %v3829_v57  ;;  %v3830_v59 = vmax.f32 %v4501_v58, 0.0 }
 0x301   : > { %3867 = vst [vmem:[%s6237_s11 + $0xc8] sm:$0xff] %v3830_v59  ;;  %v3215_v23 = vpop.f32.mrb[56].mxu1 }
 0x302   : > { %v3759_v61 = vpop.f32.mrb[52].mxu0  ;;  %v3217_v62 = vpop.f32.mrb[57].mxu1  ;;  %v4506_v9 = vadd.f32 %v6229_v33, %v3215_v23 }
 0x303   : > { %v4503_v1 = vadd.f32 %v4502_v60, %v3759_v61  ;;  %v4396_v0 = vpop.f32.mrb[53].mxu0  ;;  %v3218_v3 = vpop.f32.mrb[58].mxu1 }
 0x304   : > { %v3762_v25 = vpop.f32.mrb[54].mxu0  ;;  %v3220_v2 = vpop.f32.mrb[59].mxu1  ;;  %v4508_v16 = vadd.f32 %v6229_v33, %v3218_v3 }
 0x305   : > { %v3831_v5 = vmax.f32 %v4503_v1, 0.0  ;;  %v4505_v27 = vadd.f32 %v4504_v63, %v3762_v25  ;;  %v4397_v4 = vpop.f32.mrb[55].mxu0 }
 0x307   : > { %3868 = vst [vmem:[%s6237_s11 + $0xd0] sm:$0xff] %v3831_v5  ;;  %v3832_v7 = vmax.f32 %v4505_v27, 0.0 }
 0x309   : > { %3869 = vst [vmem:[%s6237_s11 + $0xd8] sm:$0xff] %v3832_v7  ;;  %v3223_v34 = vpop.f32.mrb[60].mxu1 }
 0x30a   : > { %v3767_v12 = vpop.f32.mrb[56].mxu0  ;;  %v3225_v14 = vpop.f32.mrb[61].mxu1  ;;  %v4510_v28 = vadd.f32 %v6229_v33, %v3223_v34 }
 0x30b   : > { %v4507_v6 = vadd.f32 %v4506_v9, %v3767_v12  ;;  %v4400_v18 = vpop.f32.mrb[57].mxu0  ;;  %v3226_v29 = vpop.f32.mrb[62].mxu1 }
 0x30c   : > { %v3770_v20 = vpop.f32.mrb[58].mxu0  ;;  %v3228_v8 = vpop.f32.mrb[63].mxu1  ;;  %v4512_v35 = vadd.f32 %v6229_v33, %v3226_v29 }
 0x30d   : > { %v3833_v22 = vmax.f32 %v4507_v6, 0.0  ;;  %v4509_v31 = vadd.f32 %v4508_v16, %v3770_v20  ;;  %v4401_v24 = vpop.f32.mrb[59].mxu0 }
 0x30f   : > { %3870 = vst [vmem:[%s6237_s11 + $0xe0] sm:$0xff] %v3833_v22  ;;  %v3834_v26 = vmax.f32 %v4509_v31, 0.0 }
 0x311   : > { %3871 = vst [vmem:[%s6237_s11 + $0xe8] sm:$0xff] %v3834_v26  ;;  %v3231_v30 = vpop.f32.mrb[64].mxu1 }
 0x312   : > { %v3775_v32 = vpop.f32.mrb[60].mxu0  ;;  %v3233_v10 = vpop.f32.mrb[65].mxu1  ;;  %v4514_v43 = vadd.f32 %v6229_v33, %v3231_v30 }
 0x313   : > { %v4511_v36 = vadd.f32 %v4510_v28, %v3775_v32  ;;  %v4404_v11 = vpop.f32.mrb[61].mxu0  ;;  %v3234_v37 = vpop.f32.mrb[66].mxu1 }
 0x314   : > { %v3778_v38 = vpop.f32.mrb[62].mxu0  ;;  %v3236_v39 = vpop.f32.mrb[67].mxu1  ;;  %v4516_v46 = vadd.f32 %v6229_v33, %v3234_v37 }
 0x315   : > { %v3835_v40 = vmax.f32 %v4511_v36, 0.0  ;;  %v4513_v41 = vadd.f32 %v4512_v35, %v3778_v38  ;;  %v4405_v42 = vpop.f32.mrb[63].mxu0 }
 0x317   : > { %3872 = vst [vmem:[%s6237_s11 + $0xf0] sm:$0xff] %v3835_v40  ;;  %v3836_v13 = vmax.f32 %v4513_v41, 0.0 }
 0x319   : > { %3873 = vst [vmem:[%s6237_s11 + $0xf8] sm:$0xff] %v3836_v13  ;;  %v3239_v44 = vpop.f32.mrb[68].mxu1 }
 0x31a   : > { %v3783_v15 = vpop.f32.mrb[64].mxu0  ;;  %v3241_v45 = vpop.f32.mrb[69].mxu1  ;;  %v4518_v54 = vadd.f32 %v6229_v33, %v3239_v44 }
 0x31b   : > { %v4515_v47 = vadd.f32 %v4514_v43, %v3783_v15  ;;  %v4408_v48 = vpop.f32.mrb[65].mxu0  ;;  %v3242_v49 = vpop.f32.mrb[70].mxu1 }
 0x31c   : > { %v3786_v50 = vpop.f32.mrb[66].mxu0  ;;  %v3244_v17 = vpop.f32.mrb[71].mxu1  ;;  %v4520_v58 = vadd.f32 %v6229_v33, %v3242_v49 }
 0x31d   : > { %v3837_v51 = vmax.f32 %v4515_v47, 0.0  ;;  %v4517_v52 = vadd.f32 %v4516_v46, %v3786_v50  ;;  %v4409_v19 = vpop.f32.mrb[67].mxu0 }
 0x31f   : > { %3874 = vst [vmem:[%s6237_s11 + $0x100] sm:$0xff] %v3837_v51  ;;  %v3838_v53 = vmax.f32 %v4517_v52, 0.0 }
 0x321   : > { %3875 = vst [vmem:[%s6237_s11 + $0x108] sm:$0xff] %v3838_v53  ;;  %v3247_v55 = vpop.f32.mrb[72].mxu1 }
 0x322   : > { %v3791_v56 = vpop.f32.mrb[68].mxu0  ;;  %v3249_v57 = vpop.f32.mrb[73].mxu1  ;;  %v4522_v3 = vadd.f32 %v6229_v33, %v3247_v55 }
 0x323   : > { %v4519_v21 = vadd.f32 %v4518_v54, %v3791_v56  ;;  %v4412_v59 = vpop.f32.mrb[69].mxu0  ;;  %v3250_v60 = vpop.f32.mrb[74].mxu1 }
 0x324   : > { %v3794_v23 = vpop.f32.mrb[70].mxu0  ;;  %v3251_v61 = vpop.f32.mrb[75].mxu1 }
 0x325   : > { %v3839_v62 = vmax.f32 %v4519_v21, 0.0  ;;  %v4521_v63 = vadd.f32 %v4520_v58, %v3794_v23  ;;  %v4413_v1 = vpop.f32.mrb[71].mxu0 }
 0x327   : > { %3876 = vst [vmem:[%s6237_s11 + $0x110] sm:$0xff] %v3839_v62  ;;  %v3840_v0 = vmax.f32 %v4521_v63, 0.0 }
 0x329   : > { %3877 = vst [vmem:[%s6237_s11 + $0x118] sm:$0xff] %v3840_v0 }
 0x32a   : > { %v3799_v25 = vpop.f32.mrb[72].mxu0 }
 0x32b   : > { %v4523_v2 = vadd.f32 %v4522_v3, %v3799_v25  ;;  %v4416_v5 = vpop.f32.mrb[73].mxu0 }
 0x32c   : > { %v3802_v27 = vpop.f32.mrb[74].mxu0 }
 0x32d   : > { %v3841_v4 = vmax.f32 %v4523_v2, 0.0  ;;  %v4417_v7 = vpop.f32.mrb[75].mxu0 }
 0x32f   : > { %3878 = vst [vmem:[%s6237_s11 + $0x120] sm:$0xff] %v3841_v4 }
 0x330 PF: > { %s13_s12 = sadd.s32 1, %s5393_s12  }
 0x331   : > { %p10_p4 = scmp.ge.s32.totalorder %s13_s12, 4  }
 0x333   :  { %12 = sbr.rel (!%p10_p4) target bundleno = 1 (0x1), region = 62 }

// kernel: vqvae_forward.15
= control target key start
LH: loop header
LB: loop body
LE: loop exit
PB: predicated region body
PF: predicated region fallthrough
CT: control target
= control target key end

     0   :  { %vm5406_vm0 = vmmov 0   ;;  %s6829_s1 = inlined_call_operand.vmem [shape: bf16[3200,128], index: 1, kind: input, shape index: {}]   ;;  %s6830_s0 = inlined_call_operand.vmem [shape: bf16[98,3200], index: 0, kind: input, shape index: {}]   ;;  %s6831_s2 = inlined_call_operand.vmem [shape: f32[1,128], index: 2, kind: input, shape index: {}]   ;;  %s6832_s3 = inlined_call_operand.vmem [shape: f32[98,128], index: 3, kind: output, shape index: {}]  }
   0x1   :  { %v4958_v0 = vld [vmem:[%s6829_s1 + $0x40] sm:$0xff]   ;;  %v4960_v2 = vld [vmem:[%s6829_s1 + $0x48] sm:$0xff]   ;;  %v4962_v4 = vld [vmem:[%s6829_s1 + $0x50] sm:$0xff]  }
   0x2   :  { %v4959_v1 = vld [vmem:[%s6829_s1] sm:$0xff]   ;;  %4940 = vmatprep.subr.bf16.mxu1 %v4958_v0  ;;  %4185 = vmatprep.subr.bf16.mxu0 %v4958_v0  ;;  %v4961_v3 = vld [vmem:[%s6829_s1 + $0x8] sm:$0xff]   ;;  %v4963_v5 = vld [vmem:[%s6829_s1 + $0x10] sm:$0xff]  }
   0x3   :  { %4948 = vmatpush3.bf16.msra.mxu1 %v4959_v1  ;;  %4186 = vmatpush3.bf16.msra.mxu0 %v4959_v1  ;;  %v4964_v6 = vld [vmem:[%s6829_s1 + $0x58] sm:$0xff]   ;;  %v4966_v8 = vld [vmem:[%s6829_s1 + $0x60] sm:$0xff]   ;;  %v4968_v10 = vld [vmem:[%s6829_s1 + $0x68] sm:$0xff]  }
   0x4   :  { %4941 = vmatprep.subr.bf16.mxu1 %v4960_v2  ;;  %4187 = vmatprep.subr.bf16.mxu0 %v4960_v2  ;;  %v4965_v7 = vld [vmem:[%s6829_s1 + $0x18] sm:$0xff]   ;;  %v4967_v9 = vld [vmem:[%s6829_s1 + $0x20] sm:$0xff]   ;;  %v4969_v12 = vld [vmem:[%s6829_s1 + $0x28] sm:$0xff]  }
   0x5   :  { %v4976_v11 = vld [vmem:[%s6830_s0 + $0x324] ss:$100 sps:$4 sm:$0xff]   ;;  %v4970_v14 = vld [vmem:[%s6829_s1 + $0x70] sm:$0xff]   ;;  %v4972_v16 = vld [vmem:[%s6829_s1 + $0x78] sm:$0xff]  }
   0x6   :  { %v4980_v13 = vld [vmem:[%s6830_s0 + $0x4] ss:$100 sps:$4 sm:$0xff]   ;;  %2699 = vmatprep.mubr.bf16.mxu1 %v4976_v11  ;;  %v4971_v15 = vld [vmem:[%s6829_s1 + $0x30] sm:$0xff]   ;;  %v4973_v17 = vld [vmem:[%s6829_s1 + $0x38] sm:$0xff]  }
   0x7   :  { %4949 = vmatpush3.bf16.msra.mxu1 %v4961_v3  ;;  %4188 = vmatpush3.bf16.msra.mxu0 %v4961_v3  ;;  %v4977_v18 = vld [vmem:[%s6829_s1 + $0xc0] sm:$0xff]   ;;  %v4984_v24 = vld [vmem:[%s6829_s1 + $0xc8] sm:$0xff]   ;;  %v4988_v30 = vld [vmem:[%s6829_s1 + $0xd0] sm:$0xff]  }
   0x8   :  { %4942 = vmatprep.subr.bf16.mxu1 %v4962_v4  ;;  %4189 = vmatprep.subr.bf16.mxu0 %v4962_v4  ;;  %v4974_v19 = vld [vmem:[%s6830_s0 + $0x320] ss:$100 sps:$4 sm:$0xff]   ;;  %v4986_v25 = vld [vmem:[%s6829_s1 + $0x148] sm:$0xff]   ;;  %v4993_v31 = vld [vmem:[%s6829_s1 + $0x150] sm:$0xff]  }
   0x9   :  { %2667 = vmatprep.mubr.bf16.mxu0 %v4980_v13  ;;  %v4978_v20 = vld [vmem:[%s6830_s0] ss:$100 sps:$4 sm:$0xff]   ;;  %v4989_v26 = vld [vmem:[%s6830_s0 + $0xcc] ss:$100 sps:$4 sm:$0xff]   ;;  %v4995_v36 = vld [vmem:[%s6829_s1 + $0xd8] sm:$0xff]  }
   0xa   :  { %v4982_v21 = vld [vmem:[%s6829_s1 + $0x140] sm:$0xff]   ;;  %v4985_v27 = vld [vmem:[%s6829_s1 + $0x88] sm:$0xff]   ;;  %v4991_v32 = vld [vmem:[%s6829_s1 + $0x90] sm:$0xff]  }
   0xb   :  { %4950 = vmatpush3.bf16.msra.mxu1 %v4963_v5  ;;  %4190 = vmatpush3.bf16.msra.mxu0 %v4963_v5  ;;  %v4981_v22 = vld [vmem:[%s6829_s1 + $0x80] sm:$0xff]   ;;  %v4996_v28 = vld [vmem:[%s6830_s0 + $0x3ec] ss:$100 sps:$4 sm:$0xff]   ;;  %v5000_v37 = vld [vmem:[%s6829_s1 + $0x158] sm:$0xff]  }
   0xc   :  { %4943 = vmatprep.subr.bf16.mxu1 %v4964_v6  ;;  %4191 = vmatprep.subr.bf16.mxu0 %v4964_v6  ;;  %v4983_v23 = vld [vmem:[%s6829_s1 + $0x100] sm:$0xff]   ;;  %v4987_v29 = vld [vmem:[%s6829_s1 + $0x108] sm:$0xff]   ;;  %v4994_v35 = vld [vmem:[%s6829_s1 + $0x110] sm:$0xff]  }
   0xd   :  { %v4992_v33 = vld [vmem:[%s6830_s0 + $0xc8] ss:$100 sps:$4 sm:$0xff]   ;;  %v4998_v38 = vld [vmem:[%s6829_s1 + $0x98] sm:$0xff]   ;;  %v5002_v41 = vld [vmem:[%s6829_s1 + $0xe0] sm:$0xff]  }
   0xe   :  { %v4999_v34 = vld [vmem:[%s6830_s0 + $0x3e8] ss:$100 sps:$4 sm:$0xff]   ;;  %v5003_v39 = vld [vmem:[%s6830_s0 + $0x194] ss:$100 sps:$4 sm:$0xff]   ;;  %v5007_v43 = vld [vmem:[%s6829_s1 + $0x160] sm:$0xff]  }
   0xf   :  { %4951 = vmatpush3.bf16.msra.mxu1 %v4965_v7  ;;  %4192 = vmatpush3.bf16.msra.mxu0 %v4965_v7  ;;  %v5001_v40 = vld [vmem:[%s6829_s1 + $0x118] sm:$0xff]   ;;  %v171_v42 = vld [vmem:[%s6830_s0 + $0x4b0] sm:$0x11]  ;;  %v5005_v45 = vld [vmem:[%s6829_s1 + $0xa0] sm:$0xff]  }
  0x10   :  { %4944 = vmatprep.subr.bf16.mxu1 %v4966_v8  ;;  %4193 = vmatprep.subr.bf16.mxu0 %v4966_v8  ;;  %v3961_v44 = vcombine.high %v171_v42, %v171_v42  ;;  %v5006_v46 = vld [vmem:[%s6830_s0 + $0x190] ss:$100 sps:$4 sm:$0xff]   ;;  %v5008_v47 = vld [vmem:[%s6829_s1 + $0x120] sm:$0xff]   ;;  %v3960_v48 = vcombine.low %v171_v42, %v171_v42  ;;  %v5009_v49 = vld [vmem:[%s6829_s1 + $0xe8] sm:$0xff]  }
  0x11   :  { %v5013_v50 = vld [vmem:[%s6829_s1 + $0x168] sm:$0xff]   ;;  %v5016_v52 = vld [vmem:[%s6830_s0 + $0x25c] ss:$100 sps:$4 sm:$0xff]   ;;  %v5015_v54 = vld [vmem:[%s6829_s1 + $0xf0] sm:$0xff]  }
  0x12   :  { %v5011_v51 = vld [vmem:[%s6829_s1 + $0xa8] sm:$0xff]   ;;  %v5020_v55 = vld [vmem:[%s6829_s1 + $0x170] sm:$0xff]   ;;  %v5019_v57 = vld [vmem:[%s6830_s0 + $0x258] ss:$100 sps:$4 sm:$0xff]  }
  0x13   :  { %4952 = vmatpush3.bf16.msra.mxu1 %v4967_v9  ;;  %4194 = vmatpush3.bf16.msra.mxu0 %v4967_v9  ;;  %v5014_v53 = vld [vmem:[%s6829_s1 + $0x128] sm:$0xff]   ;;  %v5018_v56 = vld [vmem:[%s6829_s1 + $0xb0] sm:$0xff]   ;;  %v5022_v59 = vld [vmem:[%s6829_s1 + $0xf8] sm:$0xff]  }
  0x14   :  { %4945 = vmatprep.subr.bf16.mxu1 %v4968_v10  ;;  %4195 = vmatprep.subr.bf16.mxu0 %v4968_v10  ;;  %v5021_v58 = vld [vmem:[%s6829_s1 + $0x130] sm:$0xff]   ;;  %v5024_v60 = vld [vmem:[%s6829_s1 + $0x178] sm:$0xff]   ;;  %v5029_v0 = vld [vmem:[%s6829_s1 + $0x1c0] sm:$0xff]  }
  0x15   :  { %v5027_v61 = vld [vmem:[%s6830_s0 + $0xc] ss:$100 sps:$4 sm:$0xff]   ;;  %v5023_v62 = vld [vmem:[%s6829_s1 + $0xb8] sm:$0xff]   ;;  %v5033_v4 = vld [vmem:[%s6829_s1 + $0x180] sm:$0xff]  }
  0x16   :  { %v5028_v63 = vld [vmem:[%s6829_s1 + $0x138] sm:$0xff]   ;;  %v5025_v2 = vld [vmem:[%s6830_s0 + $0x8] ss:$100 sps:$4 sm:$0xff]   ;;  %v5030_v3 = vld [vmem:[%s6830_s0 + $0x10] ss:$100 sps:$4 sm:$0xff]  }
  0x17   :  { %4953 = vmatpush3.bf16.msra.mxu1 %v4969_v12  ;;  %4196 = vmatpush3.bf16.msra.mxu0 %v4969_v12  ;;  %v5032_v1 = vld [vmem:[%s6830_s0 + $0x14] ss:$100 sps:$4 sm:$0xff]   ;;  %v5034_v5 = vld [vmem:[%s6829_s1 + $0x240] sm:$0xff]   ;;  %v5038_v8 = vld [vmem:[%s6829_s1 + $0x1c8] sm:$0xff]  }
  0x18   :  { %4946 = vmatprep.subr.bf16.mxu1 %v4970_v14  ;;  %4197 = vmatprep.subr.bf16.mxu0 %v4970_v14  ;;  %v5035_v6 = vld [vmem:[%s6829_s1 + $0x200] sm:$0xff]   ;;  %v5036_v7 = vld [vmem:[%s6830_s0 + $0xd4] ss:$100 sps:$4 sm:$0xff]   ;;  %v5040_v9 = vld [vmem:[%s6829_s1 + $0x188] sm:$0xff]  }
  0x19   :  { %v5041_v10 = vld [vmem:[%s6830_s0 + $0xdc] ss:$100 sps:$4 sm:$0xff]   ;;  %v5039_v11 = vld [vmem:[%s6830_s0 + $0xd0] ss:$100 sps:$4 sm:$0xff]   ;;  %v5044_v13 = vld [vmem:[%s6829_s1 + $0x248] sm:$0xff]  }
  0x1a   :  { %v5043_v12 = vld [vmem:[%s6830_s0 + $0xd8] ss:$100 sps:$4 sm:$0xff]   ;;  %v5045_v14 = vld [vmem:[%s6829_s1 + $0x208] sm:$0xff]  }
  0x1b   :  { %4954 = vmatpush3.bf16.msra.mxu1 %v4971_v15  ;;  %4198 = vmatpush3.bf16.msra.mxu0 %v4971_v15  ;;  %v5046_v15 = vld [vmem:[%s6829_s1 + $0x1d0] sm:$0xff]   ;;  %v5081_v42 = vld [vmem:[%s6829_s1 + $0x268] sm:$0xff]  }
  0x1c   :  { %4947 = vmatprep.subr.bf16.mxu1 %v4972_v16  ;;  %4199 = vmatprep.subr.bf16.mxu0 %v4972_v16  ;;  %v5047_v16 = vld [vmem:[%s6830_s0 + $0x19c] ss:$100 sps:$4 sm:$0xff]  }
  0x1f   :  { %4955 = vmatpush3.bf16.msra.mxu1 %v4973_v17  ;;  %4200 = vmatpush3.bf16.msra.mxu0 %v4973_v17  ;;  %v5049_v17 = vld [vmem:[%s6829_s1 + $0x190] sm:$0xff]  }
  0x20   :  { %4243 = vmatprep.subr.bf16.mxu1 %v4977_v18  ;;  %4301 = vmatprep.subr.bf16.mxu0 %v4982_v21  ;;  %v5051_v18 = vld [vmem:[%s6830_s0 + $0x1a4] ss:$100 sps:$4 sm:$0xff]  }
  0x21   :  { %v5053_v21 = vld [vmem:[%s6830_s0 + $0x1a0] ss:$100 sps:$4 sm:$0xff]  }
  0x22   :  { %2700 = vmatmul.mubr.bf16.vlgmr.msra.gmra.mrb[0].mxu1 %v4974_v19  ;;  %2668 = vmatmul.mubr.bf16.vlgmr.msra.gmra.mrb[0].mxu0 %v4978_v20  ;;  %v5054_v19 = vld [vmem:[%s6829_s1 + $0x250] sm:$0xff]   ;;  %v5050_v20 = vld [vmem:[%s6830_s0 + $0x198] ss:$100 sps:$4 sm:$0xff]  }
  0x23   :  { %4244 = vmatpush3.bf16.msra.mxu1 %v4981_v22  ;;  %4302 = vmatpush3.bf16.msra.mxu0 %v4983_v23  ;;  %v5055_v22 = vld [vmem:[%s6829_s1 + $0x210] sm:$0xff]   ;;  %v5056_v23 = vld [vmem:[%s6829_s1 + $0x1d8] sm:$0xff]  }
  0x24   :  { %4245 = vmatprep.subr.bf16.mxu1 %v4984_v24  ;;  %4303 = vmatprep.subr.bf16.mxu0 %v4986_v25  ;;  %v5057_v24 = vld [vmem:[%s6829_s1 + $0x198] sm:$0xff]   ;;  %v5058_v25 = vld [vmem:[%s6830_s0 + $0x264] ss:$100 sps:$4 sm:$0xff]  }
  0x25   :  { %2675 = vmatprep.mubr.bf16.mxu0 %v4989_v26  ;;  %2707 = vmatprep.mubr.bf16.mxu1 %v4996_v28  ;;  %v5061_v26 = vld [vmem:[%s6830_s0 + $0x26c] ss:$100 sps:$4 sm:$0xff]   ;;  %v5065_v28 = vld [vmem:[%s6829_s1 + $0x218] sm:$0xff]  }
  0x27   :  { %4246 = vmatpush3.bf16.msra.mxu1 %v4985_v27  ;;  %4304 = vmatpush3.bf16.msra.mxu0 %v4987_v29  ;;  %v5064_v27 = vld [vmem:[%s6829_s1 + $0x258] sm:$0xff]   ;;  %v5066_v29 = vld [vmem:[%s6829_s1 + $0x1e0] sm:$0xff]  }
  0x28   :  { %4247 = vmatprep.subr.bf16.mxu1 %v4988_v30  ;;  %4305 = vmatprep.subr.bf16.mxu0 %v4993_v31  ;;  %v5060_v30 = vld [vmem:[%s6830_s0 + $0x260] ss:$100 sps:$4 sm:$0xff]  }
  0x29   :  { %v5067_v31 = vld [vmem:[%s6829_s1 + $0x1a0] sm:$0xff]  }
  0x2a   :  { %2676 = vmatmul.mubr.bf16.gmra.mrb[4].mxu0 %v4992_v33  ;;  %2708 = vmatmul.mubr.bf16.gmra.mrb[4].mxu1 %v4999_v34  ;;  %v5068_v33 = vld [vmem:[%s6830_s0 + $0x32c] ss:$100 sps:$4 sm:$0xff]   ;;  %v5071_v34 = vld [vmem:[%s6830_s0 + $0x334] ss:$100 sps:$4 sm:$0xff]  }
  0x2b   :  { %4248 = vmatpush3.bf16.msra.mxu1 %v4991_v32  ;;  %4306 = vmatpush3.bf16.msra.mxu0 %v4994_v35  ;;  %v5063_v32 = vld [vmem:[%s6830_s0 + $0x268] ss:$100 sps:$4 sm:$0xff]   ;;  %v5073_v35 = vld [vmem:[%s6829_s1 + $0x260] sm:$0xff]  }
  0x2c   :  { %4249 = vmatprep.subr.bf16.mxu1 %v4995_v36  ;;  %4307 = vmatprep.subr.bf16.mxu0 %v5000_v37  ;;  %v5075_v36 = vld [vmem:[%s6829_s1 + $0x220] sm:$0xff]   ;;  %v5076_v37 = vld [vmem:[%s6829_s1 + $0x1e8] sm:$0xff]  }
  0x2d   :  { %2683 = vmatprep.mubr.bf16.mxu0 %v5003_v39  ;;  %2715 = vmatprep.mubr.bf16.mxu1 %v3961_v44  ;;  %v5070_v39 = vld [vmem:[%s6830_s0 + $0x328] ss:$100 sps:$4 sm:$0xff]  }
  0x2e   :  { %v5084_v44 = vld [vmem:[%s6829_s1 + $0x228] sm:$0xff]  }
  0x2f   :  { %4250 = vmatpush3.bf16.msra.mxu1 %v4998_v38  ;;  %4308 = vmatpush3.bf16.msra.mxu0 %v5001_v40  ;;  %v5077_v38 = vld [vmem:[%s6829_s1 + $0x1a8] sm:$0xff]   ;;  %v5074_v40 = vld [vmem:[%s6830_s0 + $0x330] ss:$100 sps:$4 sm:$0xff]  }
  0x30   :  { %4251 = vmatprep.subr.bf16.mxu1 %v5002_v41  ;;  %4309 = vmatprep.subr.bf16.mxu0 %v5007_v43  ;;  %v5078_v41 = vld [vmem:[%s6830_s0 + $0x3f4] ss:$100 sps:$4 sm:$0xff]   ;;  %v5082_v43 = vld [vmem:[%s6830_s0 + $0x3fc] ss:$100 sps:$4 sm:$0xff]  }
  0x32   :  { %2684 = vmatmul.mubr.bf16.gmra.mrb[8].mxu0 %v5006_v46  ;;  %2716 = vmatmul.mubr.bf16.gmra.mrb[8].mxu1 %v3960_v48  ;;  %v5087_v46 = vld [vmem:[%s6829_s1 + $0x1b0] sm:$0xff]  }
  0x33   :  { %4252 = vmatpush3.bf16.msra.mxu1 %v5005_v45  ;;  %4310 = vmatpush3.bf16.msra.mxu0 %v5008_v47  ;;  %v5086_v45 = vld [vmem:[%s6829_s1 + $0x1f0] sm:$0xff]   ;;  %v172_v47 = vld [vmem:[%s6830_s0 + $0x4b8] sm:$0x11] }
  0x34   :  { %4253 = vmatprep.subr.bf16.mxu1 %v5009_v49  ;;  %4311 = vmatprep.subr.bf16.mxu0 %v5013_v50  ;;  %v5089_v48 = vld [vmem:[%s6829_s1 + $0x270] sm:$0xff]   ;;  %v5085_v50 = vld [vmem:[%s6830_s0 + $0x3f8] ss:$100 sps:$4 sm:$0xff]  }
  0x35   :  { %2691 = vmatprep.mubr.bf16.mxu0 %v5016_v52  ;;  %2755 = vmatprep.mubr.bf16.mxu1 %v5027_v61  ;;  %v5080_v49 = vld [vmem:[%s6830_s0 + $0x3f0] ss:$100 sps:$4 sm:$0xff]   ;;  %v173_v52 = vld [vmem:[%s6830_s0 + $0x4c0] sm:$0x11]  ;;  %v3962_v61 = vcombine.low %v172_v47, %v172_v47 }
  0x37   :  { %4254 = vmatpush3.bf16.msra.mxu1 %v5011_v51  ;;  %4312 = vmatpush3.bf16.msra.mxu0 %v5014_v53  ;;  %v5091_v51 = vld [vmem:[%s6829_s1 + $0x230] sm:$0xff]   ;;  %v5093_v53 = vld [vmem:[%s6829_s1 + $0x1f8] sm:$0xff]  }
  0x38   :  { %4255 = vmatprep.subr.bf16.mxu1 %v5015_v54  ;;  %4313 = vmatprep.subr.bf16.mxu0 %v5020_v55  ;;  %v5095_v54 = vld [vmem:[%s6829_s1 + $0x1b8] sm:$0xff]   ;;  %v3963_v55 = vcombine.high %v172_v47, %v172_v47 }
  0x39   :  { %v5165_v47 = vld [vmem:[%s6829_s1 + $0x2f8] sm:$0xff]  }
  0x3a   :  { %2692 = vmatmul.mubr.bf16.gmra.mrb[12].mxu0 %v5019_v57  ;;  %v5096_v57 = vld [vmem:[%s6829_s1 + $0x278] sm:$0xff]  }
  0x3b   :  { %4256 = vmatpush3.bf16.msra.mxu1 %v5018_v56  ;;  %4314 = vmatpush3.bf16.msra.mxu0 %v5021_v58  ;;  %v3965_v56 = vcombine.high %v173_v52, %v173_v52  ;;  %v5100_v58 = vld [vmem:[%s6829_s1 + $0x238] sm:$0xff]  }
  0x3c   :  { %4257 = vmatprep.subr.bf16.mxu1 %v5022_v59  ;;  %4315 = vmatprep.subr.bf16.mxu0 %v5024_v60  ;;  %v5101_v59 = vld [vmem:[%s6829_s1 + $0x2c0] sm:$0xff]  }
  0x3d   :  { %2843 = vmatprep.mubr.bf16.mxu0 %v5032_v1  ;;  %v5099_v60 = vld [vmem:[%s6830_s0 + $0x1c] ss:$100 sps:$4 sm:$0xff]  }
  0x3e   :  { %v5097_v1 = vld [vmem:[%s6830_s0 + $0x18] ss:$100 sps:$4 sm:$0xff]  }
  0x3f   :  { %4258 = vmatpush3.bf16.msra.mxu1 %v5023_v62  ;;  %4316 = vmatpush3.bf16.msra.mxu0 %v5028_v63  ;;  %v3964_v62 = vcombine.low %v173_v52, %v173_v52  ;;  %v5106_v63 = vld [vmem:[%s6829_s1 + $0x340] sm:$0xff]  }
  0x40   :  { %4359 = vmatprep.subr.bf16.mxu1 %v5029_v0  ;;  %4417 = vmatprep.subr.bf16.mxu0 %v5034_v5  ;;  %v5104_v0 = vld [vmem:[%s6830_s0 + $0x24] ss:$100 sps:$4 sm:$0xff]  }
  0x41   :  { %v5108_v5 = vld [vmem:[%s6830_s0 + $0xe4] ss:$100 sps:$4 sm:$0xff]  }
  0x42   :  { %2756 = vmatmul.mubr.bf16.vlgmr.msra.gmra.mrb[12].mxu1 %v5025_v2  ;;  %2844 = vmatmul.mubr.bf16.vlgmr.msra.gmra.mrb[16].mxu0 %v5030_v3  ;;  %v5102_v2 = vld [vmem:[%s6830_s0 + $0x20] ss:$100 sps:$4 sm:$0xff]  }
  0x43   :  { %4360 = vmatpush3.bf16.msra.mxu1 %v5033_v4  ;;  %4418 = vmatpush3.bf16.msra.mxu0 %v5035_v6  ;;  %v5105_v3 = vld [vmem:[%s6829_s1 + $0x280] sm:$0xff]   ;;  %v5110_v6 = vld [vmem:[%s6829_s1 + $0x2c8] sm:$0xff]  }
  0x44   :  { %2763 = vmatprep.mubr.bf16.mxu1 %v5036_v7  ;;  %4361 = vmatprep.subr.bf16.mxu1 %v5038_v8  ;;  %v5107_v4 = vld [vmem:[%s6829_s1 + $0x300] sm:$0xff]   ;;  %v5113_v7 = vld [vmem:[%s6830_s0 + $0xec] ss:$100 sps:$4 sm:$0xff]  }
  0x45   :  { %2851 = vmatprep.mubr.bf16.mxu0 %v5041_v10  ;;  %4419 = vmatprep.subr.bf16.mxu0 %v5044_v13  ;;  %v5116_v8 = vld [vmem:[%s6829_s1 + $0x348] sm:$0xff]   ;;  %v5173_v52 = vld [vmem:[%s6829_s1 + $0x3c0] sm:$0xff]  }
  0x46   :  { %v5117_v10 = vld [vmem:[%s6829_s1 + $0x308] sm:$0xff]  }
  0x47   :  { %4362 = vmatpush3.bf16.msra.mxu1 %v5040_v9  ;;  %4420 = vmatpush3.bf16.msra.mxu0 %v5045_v14  ;;  %v5112_v9 = vld [vmem:[%s6829_s1 + $0x288] sm:$0xff]   ;;  %v5126_v14 = vld [vmem:[%s6829_s1 + $0x350] sm:$0xff]  }
  0x48   :  { %4363 = vmatprep.subr.bf16.mxu1 %v5046_v15  ;;  %4421 = vmatprep.subr.bf16.mxu0 %v5054_v19  ;;  %v5115_v13 = vld [vmem:[%s6830_s0 + $0xe8] ss:$100 sps:$4 sm:$0xff]   ;;  %v5128_v19 = vld [vmem:[%s6829_s1 + $0x2d8] sm:$0xff]  }
  0x49   :  { %v5119_v15 = vld [vmem:[%s6830_s0 + $0x1ac] ss:$100 sps:$4 sm:$0xff]  }
  0x4a   :  { %2764 = vmatmul.mubr.bf16.gmra.mrb[16].mxu1 %v5039_v11  ;;  %2852 = vmatmul.mubr.bf16.gmra.mrb[20].mxu0 %v5043_v12  ;;  %v5118_v11 = vld [vmem:[%s6829_s1 + $0x2d0] sm:$0xff]   ;;  %v5111_v12 = vld [vmem:[%s6830_s0 + $0xe0] ss:$100 sps:$4 sm:$0xff]  }
  0x4b   :  { %2771 = vmatprep.mubr.bf16.mxu1 %v5047_v16  ;;  %4364 = vmatpush3.bf16.msra.mxu1 %v5049_v17  ;;  %v5121_v16 = vld [vmem:[%s6829_s1 + $0x290] sm:$0xff]  }
  0x4c   :  { %2859 = vmatprep.mubr.bf16.mxu0 %v5051_v18  ;;  %4422 = vmatpush3.bf16.msra.mxu0 %v5055_v22  ;;  %v5123_v17 = vld [vmem:[%s6830_s0 + $0x1b4] ss:$100 sps:$4 sm:$0xff]  }
  0x4d   :  { %4365 = vmatprep.subr.bf16.mxu1 %v5056_v23  ;;  %4423 = vmatprep.subr.bf16.mxu0 %v5064_v27  ;;  %v5127_v18 = vld [vmem:[%s6829_s1 + $0x310] sm:$0xff]   ;;  %v5137_v22 = vld [vmem:[%s6829_s1 + $0x318] sm:$0xff]   ;;  %v5122_v23 = vld [vmem:[%s6830_s0 + $0x1a8] ss:$100 sps:$4 sm:$0xff]  }
  0x4e   :  { %v5133_v27 = vld [vmem:[%s6830_s0 + $0x27c] ss:$100 sps:$4 sm:$0xff]  }
  0x4f   :  { %4366 = vmatpush3.bf16.msra.mxu1 %v5057_v24  ;;  %v5138_v24 = vld [vmem:[%s6829_s1 + $0x2e0] sm:$0xff]  }
  0x50   :  { %4424 = vmatpush3.bf16.msra.mxu0 %v5065_v28  ;;  %4367 = vmatprep.subr.bf16.mxu1 %v5066_v29  ;;  %v5139_v28 = vld [vmem:[%s6829_s1 + $0x2a0] sm:$0xff]  }
  0x51   :  { %4425 = vmatprep.subr.bf16.mxu0 %v5073_v35  ;;  %v5145_v29 = vld [vmem:[%s6829_s1 + $0x360] sm:$0xff]  }
  0x52   :  { %2772 = vmatmul.mubr.bf16.gmra.mrb[20].mxu1 %v5050_v20  ;;  %2860 = vmatmul.mubr.bf16.gmra.mrb[24].mxu0 %v5053_v21  ;;  %v5129_v20 = vld [vmem:[%s6829_s1 + $0x298] sm:$0xff]  }
  0x53   :  { %2779 = vmatprep.mubr.bf16.mxu1 %v5058_v25  ;;  %2867 = vmatprep.mubr.bf16.mxu0 %v5061_v26  ;;  %v5136_v21 = vld [vmem:[%s6829_s1 + $0x358] sm:$0xff]   ;;  %v5125_v25 = vld [vmem:[%s6830_s0 + $0x1b0] ss:$100 sps:$4 sm:$0xff]  }
  0x54   :  { %4368 = vmatpush3.bf16.msra.mxu1 %v5067_v31  ;;  %4426 = vmatpush3.bf16.msra.mxu0 %v5075_v36  ;;  %v5130_v26 = vld [vmem:[%s6830_s0 + $0x274] ss:$100 sps:$4 sm:$0xff]   ;;  %v5148_v31 = vld [vmem:[%s6829_s1 + $0x2e8] sm:$0xff]   ;;  %v5140_v35 = vld [vmem:[%s6830_s0 + $0x33c] ss:$100 sps:$4 sm:$0xff]  }
  0x55   :  { %4369 = vmatprep.subr.bf16.mxu1 %v5076_v37  ;;  %4427 = vmatprep.subr.bf16.mxu0 %v5081_v42  ;;  %v5153_v36 = vld [vmem:[%s6829_s1 + $0x368] sm:$0xff]   ;;  %v5146_v42 = vld [vmem:[%s6830_s0 + $0x340] ss:$100 sps:$4 sm:$0xff]  }
  0x56   :  { %v5143_v37 = vld [vmem:[%s6830_s0 + $0x344] ss:$100 sps:$4 sm:$0xff]  }
  0x58   :  { %4370 = vmatpush3.bf16.msra.mxu1 %v5077_v38  ;;  %4428 = vmatpush3.bf16.msra.mxu0 %v5084_v44  ;;  %v5156_v38 = vld [vmem:[%s6829_s1 + $0x328] sm:$0xff]  }
  0x59   :  { %4371 = vmatprep.subr.bf16.mxu1 %v5086_v45  ;;  %4429 = vmatprep.subr.bf16.mxu0 %v5089_v48  ;;  %v5150_v44 = vld [vmem:[%s6830_s0 + $0x404] ss:$100 sps:$4 sm:$0xff]   ;;  %v5154_v45 = vld [vmem:[%s6830_s0 + $0x40c] ss:$100 sps:$4 sm:$0xff]   ;;  %v5167_v48 = vld [vmem:[%s6829_s1 + $0x2b8] sm:$0xff]  }
  0x5a   :  { %2780 = vmatmul.mubr.bf16.gmra.mrb[24].mxu1 %v5060_v30  ;;  %2868 = vmatmul.mubr.bf16.gmra.mrb[28].mxu0 %v5063_v32  ;;  %v5147_v30 = vld [vmem:[%s6829_s1 + $0x320] sm:$0xff]   ;;  %v5132_v32 = vld [vmem:[%s6830_s0 + $0x270] ss:$100 sps:$4 sm:$0xff]  }
  0x5b   :  { %2787 = vmatprep.mubr.bf16.mxu1 %v5068_v33  ;;  %2875 = vmatprep.mubr.bf16.mxu0 %v5071_v34  ;;  %v5149_v33 = vld [vmem:[%s6829_s1 + $0x2a8] sm:$0xff]   ;;  %v5135_v34 = vld [vmem:[%s6830_s0 + $0x278] ss:$100 sps:$4 sm:$0xff]  }
  0x5c   :  { %4372 = vmatpush3.bf16.msra.mxu1 %v5087_v46  ;;  %4430 = vmatpush3.bf16.msra.mxu0 %v5091_v51  ;;  %v5163_v46 = vld [vmem:[%s6829_s1 + $0x330] sm:$0xff]   ;;  %v5172_v51 = vld [vmem:[%s6829_s1 + $0x338] sm:$0xff]  }
  0x5d   :  { %4373 = vmatprep.subr.bf16.mxu1 %v5093_v53  ;;  %4431 = vmatprep.subr.bf16.mxu0 %v5096_v57  ;;  %v175_v53 = vld [vmem:[%s6830_s0 + $0x4d0] sm:$0x11] }
  0x5e   :  { %v3969_v57 = vcombine.high %v175_v53, %v175_v53 }
  0x60   :  { %4374 = vmatpush3.bf16.msra.mxu1 %v5095_v54  ;;  %4432 = vmatpush3.bf16.msra.mxu0 %v5100_v58  ;;  %v5152_v54 = vld [vmem:[%s6830_s0 + $0x400] ss:$100 sps:$4 sm:$0xff]  }
  0x61   :  { %4475 = vmatprep.subr.bf16.mxu1 %v5101_v59  ;;  %4533 = vmatprep.subr.bf16.mxu0 %v5106_v63  ;;  %v5178_v58 = vld [vmem:[%s6829_s1 + $0x440] sm:$0xff]   ;;  %v5169_v63 = vld [vmem:[%s6830_s0 + $0x28] ss:$100 sps:$4 sm:$0xff]  }
  0x62   :  { %2788 = vmatmul.mubr.bf16.gmra.mrb[28].mxu1 %v5070_v39  ;;  %2876 = vmatmul.mubr.bf16.gmra.mrb[32].mxu0 %v5074_v40  ;;  %v5158_v39 = vld [vmem:[%s6829_s1 + $0x2f0] sm:$0xff]  }
  0x63   :  { %2795 = vmatprep.mubr.bf16.mxu1 %v5078_v41  ;;  %2883 = vmatprep.mubr.bf16.mxu0 %v5082_v43  ;;  %v5159_v40 = vld [vmem:[%s6829_s1 + $0x2b0] sm:$0xff]   ;;  %v5142_v41 = vld [vmem:[%s6830_s0 + $0x338] ss:$100 sps:$4 sm:$0xff]  }
  0x64   :  { %v5161_v43 = vld [vmem:[%s6829_s1 + $0x370] sm:$0xff]  }
  0x6a   :  { %2796 = vmatmul.mubr.bf16.gmra.mrb[32].mxu1 %v5080_v49  ;;  %2884 = vmatmul.mubr.bf16.gmra.mrb[36].mxu0 %v5085_v50  ;;  %v5168_v49 = vld [vmem:[%s6829_s1 + $0x378] sm:$0xff]   ;;  %v174_v50 = vld [vmem:[%s6830_s0 + $0x4c8] sm:$0x11] }
  0x6b   :  { %2803 = vmatprep.mubr.bf16.mxu1 %v3963_v55  ;;  %2891 = vmatprep.mubr.bf16.mxu0 %v3965_v56  ;;  %v5157_v55 = vld [vmem:[%s6830_s0 + $0x408] ss:$100 sps:$4 sm:$0xff]   ;;  %v3967_v56 = vcombine.high %v174_v50, %v174_v50  ;;  %v3966_v59 = vcombine.low %v174_v50, %v174_v50  ;;  %v5250_v50 = vld [vmem:[%s6829_s1 + $0x540] sm:$0xff]  }
  0x72   :  { %2804 = vmatmul.mubr.bf16.gmra.mrb[36].mxu1 %v3962_v61  ;;  %2892 = vmatmul.mubr.bf16.gmra.mrb[40].mxu0 %v3964_v62  ;;  %v5171_v61 = vld [vmem:[%s6830_s0 + $0x2c] ss:$100 sps:$4 sm:$0xff]   ;;  %v5176_v62 = vld [vmem:[%s6830_s0 + $0x34] ss:$100 sps:$4 sm:$0xff]  }
  0x73   :  { %2931 = vmatprep.mubr.bf16.mxu1 %v5099_v60  ;;  %3019 = vmatprep.mubr.bf16.mxu0 %v5104_v0  ;;  %v3968_v60 = vcombine.low %v175_v53, %v175_v53  ;;  %v5174_v0 = vld [vmem:[%s6830_s0 + $0x30] ss:$100 sps:$4 sm:$0xff]  }
  0x74   :  { %v5224_v53 = vld [vmem:[%s6830_s0 + $0x410] ss:$100 sps:$4 sm:$0xff]  }
  0x7a   :  { %2932 = vmatmul.mubr.bf16.vlgmr.msra.gmra.mrb[40].mxu1 %v5097_v1  ;;  %3020 = vmatmul.mubr.bf16.vlgmr.msra.gmra.mrb[44].mxu0 %v5102_v2  ;;  %v5177_v1 = vld [vmem:[%s6829_s1 + $0x380] sm:$0xff]  }
  0x7b   :  { %4476 = vmatpush3.bf16.msra.mxu1 %v5105_v3  ;;  %4534 = vmatpush3.bf16.msra.mxu0 %v5107_v4  ;;  %v5179_v2 = vld [vmem:[%s6829_s1 + $0x400] sm:$0xff]   ;;  %v5180_v3 = vld [vmem:[%s6830_s0 + $0xf4] ss:$100 sps:$4 sm:$0xff]   ;;  %v5182_v4 = vld [vmem:[%s6829_s1 + $0x3c8] sm:$0xff]  }
  0x7c   :  { %2939 = vmatprep.mubr.bf16.mxu1 %v5108_v5  ;;  %4477 = vmatprep.subr.bf16.mxu1 %v5110_v6  ;;  %v5185_v5 = vld [vmem:[%s6830_s0 + $0xfc] ss:$100 sps:$4 sm:$0xff]   ;;  %v5184_v6 = vld [vmem:[%s6829_s1 + $0x388] sm:$0xff]  }
  0x7d   :  { %3027 = vmatprep.mubr.bf16.mxu0 %v5113_v7  ;;  %4535 = vmatprep.subr.bf16.mxu0 %v5116_v8  ;;  %v5188_v7 = vld [vmem:[%s6829_s1 + $0x448] sm:$0xff]  }
  0x7e   :  { %v5189_v8 = vld [vmem:[%s6829_s1 + $0x408] sm:$0xff]  }
  0x7f   :  { %4478 = vmatpush3.bf16.msra.mxu1 %v5112_v9  ;;  %4536 = vmatpush3.bf16.msra.mxu0 %v5117_v10  ;;  %v5190_v9 = vld [vmem:[%s6829_s1 + $0x3d0] sm:$0xff]  }
  0x80   :  { %4479 = vmatprep.subr.bf16.mxu1 %v5118_v11  ;;  %4537 = vmatprep.subr.bf16.mxu0 %v5126_v14  ;;  %v5183_v10 = vld [vmem:[%s6830_s0 + $0xf0] ss:$100 sps:$4 sm:$0xff]  }
  0x81   :  { %v5198_v11 = vld [vmem:[%s6829_s1 + $0x450] sm:$0xff]  }
  0x82   :  { %2940 = vmatmul.mubr.bf16.gmra.mrb[44].mxu1 %v5111_v12  ;;  %3028 = vmatmul.mubr.bf16.gmra.mrb[48].mxu0 %v5115_v13  ;;  %v5187_v12 = vld [vmem:[%s6830_s0 + $0xf8] ss:$100 sps:$4 sm:$0xff]   ;;  %v5193_v14 = vld [vmem:[%s6829_s1 + $0x390] sm:$0xff]  }
  0x83   :  { %2947 = vmatprep.mubr.bf16.mxu1 %v5119_v15  ;;  %4480 = vmatpush3.bf16.msra.mxu1 %v5121_v16  ;;  %v5191_v13 = vld [vmem:[%s6830_s0 + $0x1bc] ss:$100 sps:$4 sm:$0xff]   ;;  %v5195_v15 = vld [vmem:[%s6830_s0 + $0x1c4] ss:$100 sps:$4 sm:$0xff]   ;;  %v5199_v16 = vld [vmem:[%s6829_s1 + $0x410] sm:$0xff]  }
  0x84   :  { %3035 = vmatprep.mubr.bf16.mxu0 %v5123_v17  ;;  %4538 = vmatpush3.bf16.msra.mxu0 %v5127_v18  ;;  %v5200_v17 = vld [vmem:[%s6829_s1 + $0x3d8] sm:$0xff]  }
  0x85   :  { %4481 = vmatprep.subr.bf16.mxu1 %v5128_v19  ;;  %4539 = vmatprep.subr.bf16.mxu0 %v5136_v21  ;;  %v5208_v18 = vld [vmem:[%s6829_s1 + $0x458] sm:$0xff]  }
  0x86   :  { %v5201_v19 = vld [vmem:[%s6829_s1 + $0x398] sm:$0xff]  }
  0x87   :  { %4482 = vmatpush3.bf16.msra.mxu1 %v5129_v20  ;;  %v5209_v20 = vld [vmem:[%s6829_s1 + $0x418] sm:$0xff]  }
  0x88   :  { %4540 = vmatpush3.bf16.msra.mxu0 %v5137_v22  ;;  %4483 = vmatprep.subr.bf16.mxu1 %v5138_v24  ;;  %v5194_v21 = vld [vmem:[%s6830_s0 + $0x1b8] ss:$100 sps:$4 sm:$0xff]   ;;  %v5197_v22 = vld [vmem:[%s6830_s0 + $0x1c0] ss:$100 sps:$4 sm:$0xff]  }
  0x89   :  { %4541 = vmatprep.subr.bf16.mxu0 %v5145_v29  ;;  %v5202_v24 = vld [vmem:[%s6830_s0 + $0x284] ss:$100 sps:$4 sm:$0xff]  }
  0x8a   :  { %2948 = vmatmul.mubr.bf16.gmra.mrb[48].mxu1 %v5122_v23  ;;  %3036 = vmatmul.mubr.bf16.gmra.mrb[52].mxu0 %v5125_v25  ;;  %v5210_v23 = vld [vmem:[%s6829_s1 + $0x3e0] sm:$0xff]   ;;  %v5220_v29 = vld [vmem:[%s6829_s1 + $0x3e8] sm:$0xff]  }
  0x8b   :  { %2955 = vmatprep.mubr.bf16.mxu1 %v5130_v26  ;;  %3043 = vmatprep.mubr.bf16.mxu0 %v5133_v27  ;;  %v5217_v25 = vld [vmem:[%s6829_s1 + $0x460] sm:$0xff]   ;;  %v5205_v26 = vld [vmem:[%s6830_s0 + $0x28c] ss:$100 sps:$4 sm:$0xff]  }
  0x8c   :  { %4484 = vmatpush3.bf16.msra.mxu1 %v5139_v28  ;;  %4542 = vmatpush3.bf16.msra.mxu0 %v5147_v30  ;;  %v5211_v27 = vld [vmem:[%s6829_s1 + $0x3a0] sm:$0xff]   ;;  %v5225_v30 = vld [vmem:[%s6829_s1 + $0x468] sm:$0xff]  }
  0x8d   :  { %4485 = vmatprep.subr.bf16.mxu1 %v5148_v31  ;;  %4543 = vmatprep.subr.bf16.mxu0 %v5153_v36  ;;  %v5219_v28 = vld [vmem:[%s6829_s1 + $0x420] sm:$0xff]   ;;  %v5221_v31 = vld [vmem:[%s6829_s1 + $0x3a8] sm:$0xff]  }
  0x8e   :  { %v5212_v36 = vld [vmem:[%s6830_s0 + $0x34c] ss:$100 sps:$4 sm:$0xff]  }
  0x90   :  { %4486 = vmatpush3.bf16.msra.mxu1 %v5149_v33  ;;  %4544 = vmatpush3.bf16.msra.mxu0 %v5156_v38  ;;  %v5204_v33 = vld [vmem:[%s6830_s0 + $0x280] ss:$100 sps:$4 sm:$0xff]   ;;  %v5233_v38 = vld [vmem:[%s6829_s1 + $0x470] sm:$0xff]  }
  0x91   :  { %4487 = vmatprep.subr.bf16.mxu1 %v5158_v39  ;;  %4545 = vmatprep.subr.bf16.mxu0 %v5161_v43  ;;  %v5231_v39 = vld [vmem:[%s6829_s1 + $0x3b0] sm:$0xff]   ;;  %v5239_v43 = vld [vmem:[%s6829_s1 + $0x3b8] sm:$0xff]  }
  0x92   :  { %2956 = vmatmul.mubr.bf16.gmra.mrb[52].mxu1 %v5132_v32  ;;  %3044 = vmatmul.mubr.bf16.gmra.mrb[56].mxu0 %v5135_v34  ;;  %v5228_v32 = vld [vmem:[%s6829_s1 + $0x428] sm:$0xff]  }
  0x93   :  { %2963 = vmatprep.mubr.bf16.mxu1 %v5140_v35  ;;  %3051 = vmatprep.mubr.bf16.mxu0 %v5143_v37  ;;  %v5207_v34 = vld [vmem:[%s6830_s0 + $0x288] ss:$100 sps:$4 sm:$0xff]   ;;  %v5230_v35 = vld [vmem:[%s6829_s1 + $0x3f0] sm:$0xff]  }
  0x94   :  { %4488 = vmatpush3.bf16.msra.mxu1 %v5159_v40  ;;  %4546 = vmatpush3.bf16.msra.mxu0 %v5163_v46  ;;  %v5215_v37 = vld [vmem:[%s6830_s0 + $0x354] ss:$100 sps:$4 sm:$0xff]  }
  0x95   :  { %4489 = vmatprep.subr.bf16.mxu1 %v5165_v47  ;;  %4547 = vmatprep.subr.bf16.mxu0 %v5168_v49  ;;  %v5235_v40 = vld [vmem:[%s6829_s1 + $0x430] sm:$0xff]   ;;  %v5244_v46 = vld [vmem:[%s6829_s1 + $0x438] sm:$0xff]  }
  0x96   :  { %v5222_v47 = vld [vmem:[%s6830_s0 + $0x414] ss:$100 sps:$4 sm:$0xff]   ;;  %v5226_v49 = vld [vmem:[%s6830_s0 + $0x41c] ss:$100 sps:$4 sm:$0xff]  }
  0x98   :  { %4490 = vmatpush3.bf16.msra.mxu1 %v5167_v48  ;;  %4548 = vmatpush3.bf16.msra.mxu0 %v5172_v51  ;;  %v5245_v48 = vld [vmem:[%s6829_s1 + $0x4c0] sm:$0xff]   ;;  %v176_v51 = vld [vmem:[%s6830_s0 + $0x4d8] sm:$0x11] }
  0x99   :  { %4591 = vmatprep.subr.bf16.mxu1 %v5173_v52  ;;  %4649 = vmatprep.subr.bf16.mxu0 %v5178_v58  ;;  %v177_v52 = vld [vmem:[%s6830_s0 + $0x4e0] sm:$0x11] }
  0x9a   :  { %2964 = vmatmul.mubr.bf16.gmra.mrb[56].mxu1 %v5142_v41  ;;  %3052 = vmatmul.mubr.bf16.gmra.mrb[60].mxu0 %v5146_v42  ;;  %v5237_v41 = vld [vmem:[%s6829_s1 + $0x3f8] sm:$0xff]   ;;  %v3972_v58 = vcombine.low %v177_v52, %v177_v52 }
  0x9b   :  { %2971 = vmatprep.mubr.bf16.mxu1 %v5150_v44  ;;  %3059 = vmatprep.mubr.bf16.mxu0 %v5154_v45  ;;  %v5240_v42 = vld [vmem:[%s6829_s1 + $0x478] sm:$0xff]   ;;  %v5214_v44 = vld [vmem:[%s6830_s0 + $0x348] ss:$100 sps:$4 sm:$0xff]   ;;  %v5218_v45 = vld [vmem:[%s6830_s0 + $0x350] ss:$100 sps:$4 sm:$0xff]  }
  0xa2   :  { %2972 = vmatmul.mubr.bf16.gmra.mrb[60].mxu1 %v5152_v54  ;;  %3060 = vmatmul.mubr.bf16.gmra.mrb[64].mxu0 %v5157_v55  ;;  %v5229_v54 = vld [vmem:[%s6830_s0 + $0x418] ss:$100 sps:$4 sm:$0xff]   ;;  %v3971_v55 = vcombine.high %v176_v51, %v176_v51 }
  0xa3   :  { %2979 = vmatprep.mubr.bf16.mxu1 %v3967_v56  ;;  %3067 = vmatprep.mubr.bf16.mxu0 %v3969_v57  ;;  %v3973_v56 = vcombine.high %v177_v52, %v177_v52  ;;  %v3970_v57 = vcombine.low %v176_v51, %v176_v51 }
  0xaa   :  { %2980 = vmatmul.mubr.bf16.gmra.mrb[64].mxu1 %v3966_v59  ;;  %3068 = vmatmul.mubr.bf16.gmra.mrb[68].mxu0 %v3968_v60  ;;  %v5243_v59 = vld [vmem:[%s6830_s0 + $0x3c] ss:$100 sps:$4 sm:$0xff]   ;;  %v5248_v60 = vld [vmem:[%s6830_s0 + $0x44] ss:$100 sps:$4 sm:$0xff]  }
  0xab   :  { %3107 = vmatprep.mubr.bf16.mxu1 %v5171_v61  ;;  %3195 = vmatprep.mubr.bf16.mxu0 %v5176_v62  ;;  %v5241_v61 = vld [vmem:[%s6830_s0 + $0x38] ss:$100 sps:$4 sm:$0xff]   ;;  %v5246_v62 = vld [vmem:[%s6830_s0 + $0x40] ss:$100 sps:$4 sm:$0xff]  }
  0xb2   :  { %3108 = vmatmul.mubr.bf16.vlgmr.msra.gmra.mrb[68].mxu1 %v5169_v63  ;;  %3196 = vmatmul.mubr.bf16.vlgmr.msra.gmra.mrb[72].mxu0 %v5174_v0  ;;  %v5249_v63 = vld [vmem:[%s6829_s1 + $0x480] sm:$0xff]  }
  0xb3   :  { %4592 = vmatpush3.bf16.msra.mxu1 %v5177_v1  ;;  %4650 = vmatpush3.bf16.msra.mxu0 %v5179_v2  ;;  %v5251_v0 = vld [vmem:[%s6829_s1 + $0x500] sm:$0xff]   ;;  %v5254_v2 = vld [vmem:[%s6829_s1 + $0x4c8] sm:$0xff]  }
  0xb4   :  { %3115 = vmatprep.mubr.bf16.mxu1 %v5180_v3  ;;  %4593 = vmatprep.subr.bf16.mxu1 %v5182_v4  ;;  %v5252_v1 = vld [vmem:[%s6830_s0 + $0x104] ss:$100 sps:$4 sm:$0xff]   ;;  %v5257_v3 = vld [vmem:[%s6830_s0 + $0x10c] ss:$100 sps:$4 sm:$0xff]  }
  0xb5   :  { %3203 = vmatprep.mubr.bf16.mxu0 %v5185_v5  ;;  %4651 = vmatprep.subr.bf16.mxu0 %v5188_v7  ;;  %v5260_v4 = vld [vmem:[%s6829_s1 + $0x548] sm:$0xff]   ;;  %v5262_v7 = vld [vmem:[%s6829_s1 + $0x4d0] sm:$0xff]  }
  0xb6   :  { %v5256_v5 = vld [vmem:[%s6829_s1 + $0x488] sm:$0xff]  }
  0xb7   :  { %4594 = vmatpush3.bf16.msra.mxu1 %v5184_v6  ;;  %4652 = vmatpush3.bf16.msra.mxu0 %v5189_v8  ;;  %v5261_v6 = vld [vmem:[%s6829_s1 + $0x508] sm:$0xff]   ;;  %v5255_v8 = vld [vmem:[%s6830_s0 + $0x100] ss:$100 sps:$4 sm:$0xff]  }
  0xb8   :  { %4595 = vmatprep.subr.bf16.mxu1 %v5190_v9  ;;  %4653 = vmatprep.subr.bf16.mxu0 %v5198_v11  ;;  %v5259_v9 = vld [vmem:[%s6830_s0 + $0x108] ss:$100 sps:$4 sm:$0xff]  }
  0xb9   :  { %v5263_v11 = vld [vmem:[%s6830_s0 + $0x1cc] ss:$100 sps:$4 sm:$0xff]  }
  0xba   :  { %3116 = vmatmul.mubr.bf16.gmra.mrb[72].mxu1 %v5183_v10  ;;  %3204 = vmatmul.mubr.bf16.gmra.mrb[76].mxu0 %v5187_v12  ;;  %v5270_v10 = vld [vmem:[%s6829_s1 + $0x550] sm:$0xff]  }
  0xbb   :  { %3123 = vmatprep.mubr.bf16.mxu1 %v5191_v13  ;;  %4596 = vmatpush3.bf16.msra.mxu1 %v5193_v14  ;;  %v5265_v12 = vld [vmem:[%s6829_s1 + $0x490] sm:$0xff]  }
  0xbc   :  { %3211 = vmatprep.mubr.bf16.mxu0 %v5195_v15  ;;  %4654 = vmatpush3.bf16.msra.mxu0 %v5199_v16  ;;  %v5267_v13 = vld [vmem:[%s6830_s0 + $0x1d4] ss:$100 sps:$4 sm:$0xff]  }
  0xbd   :  { %4597 = vmatprep.subr.bf16.mxu1 %v5200_v17  ;;  %4655 = vmatprep.subr.bf16.mxu0 %v5208_v18  ;;  %v5271_v14 = vld [vmem:[%s6829_s1 + $0x510] sm:$0xff]   ;;  %v5272_v15 = vld [vmem:[%s6829_s1 + $0x4d8] sm:$0xff]  }
  0xbe   :  { %v5280_v16 = vld [vmem:[%s6829_s1 + $0x558] sm:$0xff]  }
  0xbf   :  { %4598 = vmatpush3.bf16.msra.mxu1 %v5201_v19  ;;  %v5273_v17 = vld [vmem:[%s6829_s1 + $0x498] sm:$0xff]   ;;  %v5266_v19 = vld [vmem:[%s6830_s0 + $0x1c8] ss:$100 sps:$4 sm:$0xff]  }
  0xc0   :  { %4656 = vmatpush3.bf16.msra.mxu0 %v5209_v20  ;;  %4599 = vmatprep.subr.bf16.mxu1 %v5210_v23  ;;  %v5281_v18 = vld [vmem:[%s6829_s1 + $0x518] sm:$0xff]   ;;  %v5269_v20 = vld [vmem:[%s6830_s0 + $0x1d0] ss:$100 sps:$4 sm:$0xff]  }
  0xc1   :  { %4657 = vmatprep.subr.bf16.mxu0 %v5217_v25  ;;  %v5274_v25 = vld [vmem:[%s6830_s0 + $0x294] ss:$100 sps:$4 sm:$0xff]  }
  0xc2   :  { %3124 = vmatmul.mubr.bf16.gmra.mrb[76].mxu1 %v5194_v21  ;;  %3212 = vmatmul.mubr.bf16.gmra.mrb[80].mxu0 %v5197_v22  ;;  %v5282_v21 = vld [vmem:[%s6829_s1 + $0x4e0] sm:$0xff]  }
  0xc3   :  { %3131 = vmatprep.mubr.bf16.mxu1 %v5202_v24  ;;  %3219 = vmatprep.mubr.bf16.mxu0 %v5205_v26  ;;  %v5289_v22 = vld [vmem:[%s6829_s1 + $0x560] sm:$0xff]  }
  0xc4   :  { %4600 = vmatpush3.bf16.msra.mxu1 %v5211_v27  ;;  %4658 = vmatpush3.bf16.msra.mxu0 %v5219_v28  ;;  %v5277_v26 = vld [vmem:[%s6830_s0 + $0x29c] ss:$100 sps:$4 sm:$0xff]  }
  0xc5   :  { %4601 = vmatprep.subr.bf16.mxu1 %v5220_v29  ;;  %4659 = vmatprep.subr.bf16.mxu0 %v5225_v30  ;;  %v5283_v29 = vld [vmem:[%s6829_s1 + $0x4a0] sm:$0xff]  }
  0xc8   :  { %4602 = vmatpush3.bf16.msra.mxu1 %v5221_v31  ;;  %4660 = vmatpush3.bf16.msra.mxu0 %v5228_v32 }
  0xc9   :  { %4603 = vmatprep.subr.bf16.mxu1 %v5230_v35  ;;  %4661 = vmatprep.subr.bf16.mxu0 %v5233_v38  ;;  %v5292_v35 = vld [vmem:[%s6829_s1 + $0x4e8] sm:$0xff]  }
  0xca   :  { %3132 = vmatmul.mubr.bf16.gmra.mrb[80].mxu1 %v5204_v33  ;;  %3220 = vmatmul.mubr.bf16.gmra.mrb[84].mxu0 %v5207_v34  ;;  %v5291_v34 = vld [vmem:[%s6829_s1 + $0x520] sm:$0xff]  }
  0xcb   :  { %3139 = vmatprep.mubr.bf16.mxu1 %v5212_v36  ;;  %3227 = vmatprep.mubr.bf16.mxu0 %v5215_v37 }
  0xcc   :  { %4604 = vmatpush3.bf16.msra.mxu1 %v5231_v39  ;;  %4662 = vmatpush3.bf16.msra.mxu0 %v5235_v40  ;;  %v5297_v40 = vld [vmem:[%s6829_s1 + $0x568] sm:$0xff]  }
  0xcd   :  { %4605 = vmatprep.subr.bf16.mxu1 %v5237_v41  ;;  %4663 = vmatprep.subr.bf16.mxu0 %v5240_v42  ;;  %v5276_v41 = vld [vmem:[%s6830_s0 + $0x290] ss:$100 sps:$4 sm:$0xff]   ;;  %v5279_v42 = vld [vmem:[%s6830_s0 + $0x298] ss:$100 sps:$4 sm:$0xff]  }
  0xd0   :  { %4606 = vmatpush3.bf16.msra.mxu1 %v5239_v43  ;;  %4664 = vmatpush3.bf16.msra.mxu0 %v5244_v46  ;;  %v5293_v43 = vld [vmem:[%s6829_s1 + $0x4a8] sm:$0xff]  }
  0xd1   :  { %4707 = vmatprep.subr.bf16.mxu1 %v5245_v48  ;;  %4765 = vmatprep.subr.bf16.mxu0 %v5250_v50  ;;  %v5287_v48 = vld [vmem:[%s6830_s0 + $0x364] ss:$100 sps:$4 sm:$0xff]  }
  0xd2   :  { %3140 = vmatmul.mubr.bf16.gmra.mrb[84].mxu1 %v5214_v44  ;;  %3228 = vmatmul.mubr.bf16.gmra.mrb[88].mxu0 %v5218_v45  ;;  %v5300_v44 = vld [vmem:[%s6829_s1 + $0x528] sm:$0xff]  }
  0xd3   :  { %3147 = vmatprep.mubr.bf16.mxu1 %v5222_v47  ;;  %3235 = vmatprep.mubr.bf16.mxu0 %v5226_v49  ;;  %v5284_v47 = vld [vmem:[%s6830_s0 + $0x35c] ss:$100 sps:$4 sm:$0xff]   ;;  %v5302_v49 = vld [vmem:[%s6829_s1 + $0x4f0] sm:$0xff]  }
  0xda   :  { %3148 = vmatmul.mubr.bf16.gmra.mrb[88].mxu1 %v5224_v53  ;;  %3236 = vmatmul.mubr.bf16.gmra.mrb[92].mxu0 %v5229_v54 }
  0xdb   :  { %3155 = vmatprep.mubr.bf16.mxu1 %v3971_v55  ;;  %3243 = vmatprep.mubr.bf16.mxu0 %v3973_v56  ;;  %v5303_v56 = vld [vmem:[%s6829_s1 + $0x4b0] sm:$0xff]  }
  0xe2   :  { %3156 = vmatmul.mubr.bf16.gmra.mrb[92].mxu1 %v3970_v57  ;;  %3244 = vmatmul.mubr.bf16.gmra.mrb[96].mxu0 %v3972_v58 }
  0xe3   :  { %3283 = vmatprep.mubr.bf16.mxu1 %v5243_v59  ;;  %3371 = vmatprep.mubr.bf16.mxu0 %v5248_v60  ;;  %v5305_v59 = vld [vmem:[%s6829_s1 + $0x570] sm:$0xff]  }
  0xe4   :  { %v5307_v60 = vld [vmem:[%s6829_s1 + $0x530] sm:$0xff]  }
  0xea   :  { %3284 = vmatmul.mubr.bf16.vlgmr.msra.gmra.mrb[96].mxu1 %v5241_v61  ;;  %3372 = vmatmul.mubr.bf16.vlgmr.msra.gmra.mrb[100].mxu0 %v5246_v62 }
  0xeb   :  { %4708 = vmatpush3.bf16.msra.mxu1 %v5249_v63  ;;  %4766 = vmatpush3.bf16.msra.mxu0 %v5251_v0  ;;  %v5309_v63 = vld [vmem:[%s6829_s1 + $0x4f8] sm:$0xff]  }
  0xec   :  { %3291 = vmatprep.mubr.bf16.mxu1 %v5252_v1  ;;  %4709 = vmatprep.subr.bf16.mxu1 %v5254_v2  ;;  %v5312_v0 = vld [vmem:[%s6829_s1 + $0x578] sm:$0xff]  }
  0xed   :  { %3379 = vmatprep.mubr.bf16.mxu0 %v5257_v3  ;;  %4767 = vmatprep.subr.bf16.mxu0 %v5260_v4  ;;  %v5311_v1 = vld [vmem:[%s6829_s1 + $0x4b8] sm:$0xff]   ;;  %v5317_v4 = vld [vmem:[%s6829_s1 + $0x5c0] sm:$0xff]  }
  0xee   :  { %v5286_v2 = vld [vmem:[%s6830_s0 + $0x358] ss:$100 sps:$4 sm:$0xff]  }
  0xef   :  { %4710 = vmatpush3.bf16.msra.mxu1 %v5256_v5  ;;  %4768 = vmatpush3.bf16.msra.mxu0 %v5261_v6  ;;  %v5316_v3 = vld [vmem:[%s6829_s1 + $0x538] sm:$0xff]  }
  0xf0   :  { %4711 = vmatprep.subr.bf16.mxu1 %v5262_v7  ;;  %4769 = vmatprep.subr.bf16.mxu0 %v5270_v10 }
  0xf2   :  { %3292 = vmatmul.mubr.bf16.gmra.mrb[100].mxu1 %v5255_v8  ;;  %3380 = vmatmul.mubr.bf16.gmra.mrb[104].mxu0 %v5259_v9  ;;  %v5290_v9 = vld [vmem:[%s6830_s0 + $0x360] ss:$100 sps:$4 sm:$0xff]  }
  0xf3   :  { %3299 = vmatprep.mubr.bf16.mxu1 %v5263_v11  ;;  %4712 = vmatpush3.bf16.msra.mxu1 %v5265_v12 }
  0xf4   :  { %3387 = vmatprep.mubr.bf16.mxu0 %v5267_v13  ;;  %4770 = vmatpush3.bf16.msra.mxu0 %v5271_v14  ;;  %v5294_v14 = vld [vmem:[%s6830_s0 + $0x424] ss:$100 sps:$4 sm:$0xff]  }
  0xf5   :  { %v4225_v23 = vpop.f32.mrb[0].mxu1  ;;  %v4201_v24 = vpop.f32.mrb[0].mxu0  ;;  %4713 = vmatprep.subr.bf16.mxu1 %v5272_v15  ;;  %4771 = vmatprep.subr.bf16.mxu0 %v5280_v16  ;;  %v5298_v15 = vld [vmem:[%s6830_s0 + $0x42c] ss:$100 sps:$4 sm:$0xff]  }
  0xf6   :  { %v4226_v27 = vpop.f32.mrb[1].mxu1  ;;  %v4202_v28 = vpop.f32.mrb[1].mxu0 }
  0xf7   :  { %v6231_v30 = vadd.f32 %v4226_v27, %v4225_v23  ;;  %v4228_v31 = vpop.f32.mrb[2].mxu1  ;;  %v6233_v32 = vadd.f32 %v4202_v28, %v4201_v24  ;;  %v4204_v33 = vpop.f32.mrb[2].mxu0  ;;  %4714 = vmatpush3.bf16.msra.mxu1 %v5273_v17  ;;  %v5296_v23 = vld [vmem:[%s6830_s0 + $0x420] ss:$100 sps:$4 sm:$0xff]   ;;  %v5301_v24 = vld [vmem:[%s6830_s0 + $0x428] ss:$100 sps:$4 sm:$0xff]  }
  0xf8   :  { %v4229_v36 = vpop.f32.mrb[3].mxu1  ;;  %v4205_v37 = vpop.f32.mrb[3].mxu0  ;;  %4772 = vmatpush3.bf16.msra.mxu0 %v5281_v18  ;;  %4715 = vmatprep.subr.bf16.mxu1 %v5282_v21  ;;  %v5405_v21 = vmov 0.0  }
  0xf9   :  { %v6241_v38 = vadd.f32 %v4229_v36, %v4228_v31  ;;  %v6243_v39 = vadd.f32 %v4205_v37, %v4204_v33  ;;  %4773 = vmatprep.subr.bf16.mxu0 %v5289_v22  ;;  %v5315_v37 = vld [vmem:[%s6830_s0 + $0x4c] ss:$100 sps:$4 sm:$0xff]  }
  0xfa   :  { %3300 = vmatmul.mubr.bf16.gmra.mrb[104].mxu1 %v5266_v19  ;;  %3388 = vmatmul.mubr.bf16.gmra.mrb[108].mxu0 %v5269_v20  ;;  %v178_v19 = vld [vmem:[%s6830_s0 + $0x4e8] sm:$0x11]  ;;  %v179_v20 = vld [vmem:[%s6830_s0 + $0x4f0] sm:$0x11] }
  0xfb   :  { %3307 = vmatprep.mubr.bf16.mxu1 %v5274_v25  ;;  %3395 = vmatprep.mubr.bf16.mxu0 %v5277_v26  ;;  %v3975_v28 = vcombine.high %v178_v19, %v178_v19 }
  0xfc   :  { %4716 = vmatpush3.bf16.msra.mxu1 %v5283_v29  ;;  %4774 = vmatpush3.bf16.msra.mxu0 %v5291_v34  ;;  %v3977_v29 = vcombine.high %v179_v20, %v179_v20  ;;  %v6339_v34 = vld [vmem:[%s6831_s2] ss:$0 sm:$0xff] }
  0xfd   :  { %v4207_v45 = vpop.f32.mrb[4].mxu0  ;;  %v4231_v46 = vpop.f32.mrb[4].mxu1  ;;  %4717 = vmatprep.subr.bf16.mxu1 %v5292_v35  ;;  %4775 = vmatprep.subr.bf16.mxu0 %v5297_v40 }
  0xfe   :  { %v4208_v50 = vpop.f32.mrb[5].mxu0  ;;  %v4232_v51 = vpop.f32.mrb[5].mxu1 }
  0xff   :  { %v6269_v52 = vadd.f32 %v4208_v50, %v4207_v45  ;;  %v4210_v53 = vpop.f32.mrb[6].mxu0  ;;  %v6271_v54 = vadd.f32 %v4232_v51, %v4231_v46  ;;  %v4234_v55 = vpop.f32.mrb[6].mxu1 }
 0x100   :  { %v4211_v57 = vpop.f32.mrb[7].mxu0  ;;  %v4235_v58 = vpop.f32.mrb[7].mxu1  ;;  %4718 = vmatpush3.bf16.msra.mxu1 %v5293_v43  ;;  %4776 = vmatpush3.bf16.msra.mxu0 %v5300_v44  ;;  %v3976_v43 = vcombine.low %v179_v20, %v179_v20  ;;  %v2670_v44 = vadd.f32 %v6233_v32, %v6339_v34  ;;  %v5328_v20 = vld [vmem:[%s6830_s0 + $0x11c] ss:$100 sps:$4 sm:$0xff]  }
 0x101   :  { %v6282_v61 = vadd.f32 %v4211_v57, %v4210_v53  ;;  %v6284_v62 = vadd.f32 %v4235_v58, %v4234_v55  ;;  %4719 = vmatprep.subr.bf16.mxu1 %v5302_v49  ;;  %4777 = vmatprep.subr.bf16.mxu0 %v5305_v59  ;;  %v5320_v49 = vld [vmem:[%s6830_s0 + $0x54] ss:$100 sps:$4 sm:$0xff]   ;;  %v2673_v53 = vadd.f32 %v6243_v39, %v6339_v34  ;;  %v5313_v59 = vld [vmem:[%s6830_s0 + $0x48] ss:$100 sps:$4 sm:$0xff]  }
 0x102   :  { %3308 = vmatmul.mubr.bf16.gmra.mrb[108].mxu1 %v5276_v41  ;;  %3396 = vmatmul.mubr.bf16.gmra.mrb[112].mxu0 %v5279_v42  ;;  %v3974_v42 = vcombine.low %v178_v19, %v178_v19  ;;  %v5318_v39 = vld [vmem:[%s6830_s0 + $0x50] ss:$100 sps:$4 sm:$0xff]  }
 0x103   :  { %3315 = vmatprep.mubr.bf16.mxu1 %v5284_v47  ;;  %3403 = vmatprep.mubr.bf16.mxu0 %v5287_v48 }
 0x104   :  { %4720 = vmatpush3.bf16.msra.mxu1 %v5303_v56  ;;  %4778 = vmatpush3.bf16.msra.mxu0 %v5307_v60 }
 0x105   :  { %v4213_v5 = vpop.f32.mrb[8].mxu0  ;;  %v4237_v6 = vpop.f32.mrb[8].mxu1  ;;  %4721 = vmatprep.subr.bf16.mxu1 %v5309_v63  ;;  %4779 = vmatprep.subr.bf16.mxu0 %v5312_v0 }
 0x106   :  { %v4214_v7 = vpop.f32.mrb[9].mxu0  ;;  %v4238_v8 = vpop.f32.mrb[9].mxu1 }
 0x107   :  { %v6307_v10 = vadd.f32 %v4214_v7, %v4213_v5  ;;  %v4216_v11 = vpop.f32.mrb[10].mxu0  ;;  %v6309_v12 = vadd.f32 %v4238_v8, %v4237_v6  ;;  %v4240_v13 = vpop.f32.mrb[10].mxu1  ;;  %v2678_v5 = vadd.f32 %v6269_v52, %v6339_v34 }
 0x108   :  { %v4217_v16 = vpop.f32.mrb[11].mxu0  ;;  %v4241_v17 = vpop.f32.mrb[11].mxu1  ;;  %4722 = vmatpush3.bf16.msra.mxu1 %v5311_v1  ;;  %4780 = vmatpush3.bf16.msra.mxu0 %v5316_v3  ;;  %v5321_v3 = vld [vmem:[%s6829_s1 + $0x580] sm:$0xff]  }
 0x109   :  { %v6317_v18 = vadd.f32 %v4217_v16, %v4216_v11  ;;  %4823 = vmatprep.subr.bf16.mxu1 %v5317_v4  ;;  %4896 = vmatprep.subr.bf16.mxu0 %v5405_v21  ;;  %v5322_v4 = vld [vmem:[%s6829_s1 + $0x600] sm:$0xff]   ;;  %v5323_v11 = vld [vmem:[%s6830_s0 + $0x114] ss:$100 sps:$4 sm:$0xff]   ;;  %v2681_v16 = vadd.f32 %v6282_v61, %v6339_v34  ;;  %v5331_v61 = vld [vmem:[%s6829_s1 + $0x608] sm:$0xff]  }
 0x10a   :  { %3316 = vmatmul.mubr.bf16.gmra.mrb[112].mxu1 %v5286_v2  ;;  %3404 = vmatmul.mubr.bf16.gmra.mrb[116].mxu0 %v5290_v9 }
 0x10b   :  { %3323 = vmatprep.mubr.bf16.mxu1 %v5294_v14  ;;  %3411 = vmatprep.mubr.bf16.mxu0 %v5298_v15  ;;  %v5325_v15 = vld [vmem:[%s6829_s1 + $0x5c8] sm:$0xff]  }
 0x10d   :  { %v4219_v22 = vpop.f32.mrb[12].mxu0 }
 0x10e   :  { %v4220_v25 = vpop.f32.mrb[13].mxu0 }
 0x10f   :  { %v6332_v26 = vadd.f32 %v4220_v25, %v4219_v22  ;;  %v4222_v27 = vpop.f32.mrb[14].mxu0  ;;  %v5327_v22 = vld [vmem:[%s6829_s1 + $0x588] sm:$0xff]   ;;  %v5326_v25 = vld [vmem:[%s6830_s0 + $0x110] ss:$100 sps:$4 sm:$0xff]  }
 0x110   :  { %v4223_v31 = vpop.f32.mrb[15].mxu0 }
 0x111   :  { %v6334_v33 = vadd.f32 %v4223_v31, %v4222_v27  ;;  %v5330_v27 = vld [vmem:[%s6830_s0 + $0x118] ss:$100 sps:$4 sm:$0xff]  }
 0x112   :  { %3324 = vmatmul.mubr.bf16.gmra.mrb[116].mxu1 %v5296_v23  ;;  %3412 = vmatmul.mubr.bf16.gmra.mrb[120].mxu0 %v5301_v24 }
 0x113   :  { %3331 = vmatprep.mubr.bf16.mxu1 %v3975_v28  ;;  %3419 = vmatprep.mubr.bf16.mxu0 %v3977_v29  ;;  %v5332_v28 = vld [vmem:[%s6829_s1 + $0x5d0] sm:$0xff]  }
 0x115   :  { %v4259_v35 = vpop.f32.mrb[12].mxu1  ;;  %v4317_v36 = vpop.f32.mrb[16].mxu0 }
 0x116   :  { %v4260_v40 = vpop.f32.mrb[13].mxu1  ;;  %v4318_v41 = vpop.f32.mrb[17].mxu0 }
 0x117   :  { %v4261_v45 = vadd.f32 %v4260_v40, %v4259_v35  ;;  %v4262_v46 = vpop.f32.mrb[14].mxu1  ;;  %v4319_v47 = vadd.f32 %v4318_v41, %v4317_v36  ;;  %v4320_v48 = vpop.f32.mrb[18].mxu0  ;;  %v5333_v36 = vld [vmem:[%s6830_s0 + $0x1dc] ss:$100 sps:$4 sm:$0xff]  }
 0x118   :  { %v4263_v50 = vpop.f32.mrb[15].mxu1  ;;  %v4321_v51 = vpop.f32.mrb[19].mxu0 }
 0x119   :  { %v2758_v55 = vadd.f32 %v4261_v45, %v2670_v44  ;;  %v4264_v56 = vadd.f32 %v4263_v50, %v4262_v46  ;;  %v4322_v57 = vadd.f32 %v4321_v51, %v4320_v48  ;;  %v5340_v50 = vld [vmem:[%s6829_s1 + $0x610] sm:$0xff]  }
 0x11a   :  { %3332 = vmatmul.mubr.bf16.gmra.mrb[120].mxu1 %v3974_v42  ;;  %3420 = vmatmul.mubr.bf16.gmra.mrb[124].mxu0 %v3976_v43  ;;  %v2686_v42 = vadd.f32 %v6307_v10, %v6339_v34  ;;  %v2689_v10 = vadd.f32 %v6317_v18, %v6339_v34  ;;  %v5349_v18 = vld [vmem:[%s6829_s1 + $0x618] sm:$0xff]  }
 0x11b   :  { %v2761_v58 = vadd.f32 %v4264_v56, %v2673_v53  ;;  %v6351_v32 = vadd.f32 %v4319_v47, %v2758_v55  ;;  %3459 = vmatprep.mubr.bf16.mxu1 %v5315_v37  ;;  %3547 = vmatprep.mubr.bf16.mxu0 %v5320_v49  ;;  %v5335_v37 = vld [vmem:[%s6829_s1 + $0x590] sm:$0xff]   ;;  %v5337_v47 = vld [vmem:[%s6830_s0 + $0x1e4] ss:$100 sps:$4 sm:$0xff]   ;;  %v5341_v56 = vld [vmem:[%s6829_s1 + $0x5d8] sm:$0xff]  }
 0x11d   :  { %v6356_v60 = vadd.f32 %v4322_v57, %v2761_v58  ;;  %v4265_v63 = vpop.f32.mrb[16].mxu1  ;;  %v4323_v0 = vpop.f32.mrb[20].mxu0 }
 0x11e   :  { %v4266_v1 = vpop.f32.mrb[17].mxu1  ;;  %v4324_v2 = vpop.f32.mrb[21].mxu0 }
 0x11f   :  { %v4267_v6 = vadd.f32 %v4266_v1, %v4265_v63  ;;  %v4268_v7 = vpop.f32.mrb[18].mxu1  ;;  %v4325_v8 = vadd.f32 %v4324_v2, %v4323_v0  ;;  %v4326_v9 = vpop.f32.mrb[22].mxu0  ;;  %v5336_v63 = vld [vmem:[%s6830_s0 + $0x1d8] ss:$100 sps:$4 sm:$0xff]   ;;  %v5339_v0 = vld [vmem:[%s6830_s0 + $0x1e0] ss:$100 sps:$4 sm:$0xff]  }
 0x120   :  { %v4269_v13 = vpop.f32.mrb[19].mxu1  ;;  %v4327_v14 = vpop.f32.mrb[23].mxu0 }
 0x121   :  { %v2766_v17 = vadd.f32 %v4267_v6, %v2678_v5  ;;  %v4270_v19 = vadd.f32 %v4269_v13, %v4268_v7  ;;  %v4328_v52 = vadd.f32 %v4327_v14, %v4326_v9  ;;  %v5346_v7 = vld [vmem:[%s6830_s0 + $0x2ac] ss:$100 sps:$4 sm:$0xff]  }
 0x122   :  { %3460 = vmatmul.mubr.bf16.vlgmr.msra.gmra.mrb[124].mxu1 %v5313_v59  ;;  %3548 = vmatmul.mubr.bf16.vlgmr.msra.gmra.mrb[128].mxu0 %v5318_v39  ;;  %v5342_v59 = vld [vmem:[%s6829_s1 + $0x598] sm:$0xff]   ;;  %v5350_v39 = vld [vmem:[%s6829_s1 + $0x5e0] sm:$0xff]  }
 0x123   :  { %v2769_v23 = vadd.f32 %v4270_v19, %v2681_v16  ;;  %v6383_v24 = vadd.f32 %v4325_v8, %v2766_v17  ;;  %4824 = vmatpush3.bf16.msra.mxu1 %v5321_v3  ;;  %4897 = vmatpush3.bf16.msra.mxu0 %v5322_v4  ;;  %v5343_v4 = vld [vmem:[%s6830_s0 + $0x2a4] ss:$100 sps:$4 sm:$0xff]   ;;  %v2694_v8 = vadd.f32 %v6332_v26, %v6339_v34 }
 0x124   :  { %3467 = vmatprep.mubr.bf16.mxu1 %v5323_v11  ;;  %4825 = vmatprep.subr.bf16.mxu1 %v5325_v15  ;;  %v5351_v15 = vld [vmem:[%s6829_s1 + $0x5a0] sm:$0xff]   ;;  %v2697_v26 = vadd.f32 %v6334_v33, %v6339_v34  ;;  %v5360_v33 = vld [vmem:[%s6829_s1 + $0x5a8] sm:$0xff]  }
 0x125   :  { %v6397_v29 = vadd.f32 %v4328_v52, %v2769_v23  ;;  %v4271_v31 = vpop.f32.mrb[20].mxu1  ;;  %v4329_v35 = vpop.f32.mrb[24].mxu0  ;;  %3555 = vmatprep.mubr.bf16.mxu0 %v5328_v20  ;;  %4898 = vmatprep.subr.bf16.mxu0 %v5405_v21  ;;  %v5358_v19 = vld [vmem:[%s6829_s1 + $0x620] sm:$0xff]   ;;  %v5359_v23 = vld [vmem:[%s6829_s1 + $0x5e8] sm:$0xff]  }
 0x126   :  { %v4272_v40 = vpop.f32.mrb[21].mxu1  ;;  %v4330_v41 = vpop.f32.mrb[25].mxu0 }
 0x127   :  { %v4273_v43 = vadd.f32 %v4272_v40, %v4271_v31  ;;  %v4274_v44 = vpop.f32.mrb[22].mxu1  ;;  %v4331_v45 = vadd.f32 %v4330_v41, %v4329_v35  ;;  %v4332_v46 = vpop.f32.mrb[26].mxu0  ;;  %4826 = vmatpush3.bf16.msra.mxu1 %v5327_v22  ;;  %4899 = vmatpush3.bf16.msra.mxu0 %v5331_v61  ;;  %v5368_v40 = vld [vmem:[%s6829_s1 + $0x5f0] sm:$0xff]  }
 0x128   :  { %v4275_v48 = vpop.f32.mrb[23].mxu1  ;;  %v4333_v49 = vpop.f32.mrb[27].mxu0  ;;  %4827 = vmatprep.subr.bf16.mxu1 %v5332_v28  ;;  %4900 = vmatprep.subr.bf16.mxu0 %v5405_v21  ;;  %v5366_v28 = vld [vmem:[%s6829_s1 + $0x628] sm:$0xff]  }
 0x129   :  { %v2774_v51 = vadd.f32 %v4273_v43, %v2686_v42  ;;  %v4276_v53 = vadd.f32 %v4275_v48, %v4274_v44  ;;  %v4334_v55 = vadd.f32 %v4333_v49, %v4332_v46  ;;  %v5352_v43 = vld [vmem:[%s6830_s0 + $0x36c] ss:$100 sps:$4 sm:$0xff]   ;;  %v2702_v44 = vadd.f32 %v6231_v30, %v6339_v34  ;;  %v5355_v49 = vld [vmem:[%s6830_s0 + $0x374] ss:$100 sps:$4 sm:$0xff]  }
 0x12a   :  { %3468 = vmatmul.mubr.bf16.gmra.mrb[128].mxu1 %v5326_v25  ;;  %3556 = vmatmul.mubr.bf16.gmra.mrb[132].mxu0 %v5330_v27  ;;  %v5345_v27 = vld [vmem:[%s6830_s0 + $0x2a0] ss:$100 sps:$4 sm:$0xff]   ;;  %v5372_v30 = vld [vmem:[%s6829_s1 + $0x630] sm:$0xff]  }
 0x12b   :  { %v2777_v57 = vadd.f32 %v4276_v53, %v2689_v10  ;;  %v6420_v58 = vadd.f32 %v4331_v45, %v2774_v51  ;;  %3475 = vmatprep.mubr.bf16.mxu1 %v5333_v36  ;;  %4828 = vmatpush3.bf16.msra.mxu1 %v5335_v37  ;;  %v5348_v37 = vld [vmem:[%s6830_s0 + $0x2a8] ss:$100 sps:$4 sm:$0xff]   ;;  %v5369_v53 = vld [vmem:[%s6829_s1 + $0x5b0] sm:$0xff]  }
 0x12c   :  { %3563 = vmatprep.mubr.bf16.mxu0 %v5337_v47  ;;  %4901 = vmatpush3.bf16.msra.mxu0 %v5340_v50  ;;  %v2705_v50 = vadd.f32 %v6241_v38, %v6339_v34  ;;  %v5374_v38 = vld [vmem:[%s6829_s1 + $0x5f8] sm:$0xff]  }
 0x12d   :  { %v6437_v1 = vadd.f32 %v4334_v55, %v2777_v57  ;;  %v4277_v2 = vpop.f32.mrb[24].mxu1  ;;  %v4335_v3 = vpop.f32.mrb[28].mxu0  ;;  %4829 = vmatprep.subr.bf16.mxu1 %v5341_v56  ;;  %4902 = vmatprep.subr.bf16.mxu0 %v5405_v21 }
 0x12e   :  { %v4278_v5 = vpop.f32.mrb[25].mxu1  ;;  %v4336_v6 = vpop.f32.mrb[29].mxu0 }
 0x12f   :  { %v4279_v9 = vadd.f32 %v4278_v5, %v4277_v2  ;;  %v4280_v11 = vpop.f32.mrb[26].mxu1  ;;  %v4337_v13 = vadd.f32 %v4336_v6, %v4335_v3  ;;  %v4338_v14 = vpop.f32.mrb[30].mxu0  ;;  %4830 = vmatpush3.bf16.msra.mxu1 %v5342_v59  ;;  %v5354_v6 = vld [vmem:[%s6830_s0 + $0x368] ss:$100 sps:$4 sm:$0xff]  }
 0x130   :  { %v4281_v16 = vpop.f32.mrb[27].mxu1  ;;  %v4339_v17 = vpop.f32.mrb[31].mxu0  ;;  %4903 = vmatpush3.bf16.msra.mxu0 %v5349_v18  ;;  %4831 = vmatprep.subr.bf16.mxu1 %v5350_v39 }
 0x131   :  { %v2782_v52 = vadd.f32 %v4279_v9, %v2694_v8  ;;  %v4282_v20 = vadd.f32 %v4281_v16, %v4280_v11  ;;  %v4340_v22 = vadd.f32 %v4339_v17, %v4338_v14  ;;  %4904 = vmatprep.subr.bf16.mxu0 %v5405_v21  ;;  %v2710_v8 = vadd.f32 %v6271_v54, %v6339_v34  ;;  %v5364_v16 = vld [vmem:[%s6830_s0 + $0x43c] ss:$100 sps:$4 sm:$0xff]  }
 0x132   :  { %3476 = vmatmul.mubr.bf16.gmra.mrb[132].mxu1 %v5336_v63  ;;  %3564 = vmatmul.mubr.bf16.gmra.mrb[136].mxu0 %v5339_v0  ;;  %v5376_v63 = vld [vmem:[%s6829_s1 + $0x5b8] sm:$0xff]  }
 0x133   :  { %v2785_v61 = vadd.f32 %v4282_v20, %v2697_v26  ;;  %v6460_v25 = vadd.f32 %v4337_v13, %v2782_v52  ;;  %3483 = vmatprep.mubr.bf16.mxu1 %v5343_v4  ;;  %3571 = vmatprep.mubr.bf16.mxu0 %v5346_v7  ;;  %v5380_v0 = vld [vmem:[%s6829_s1 + $0x638] sm:$0xff]   ;;  %v5357_v7 = vld [vmem:[%s6830_s0 + $0x370] ss:$100 sps:$4 sm:$0xff]   ;;  %v2713_v26 = vadd.f32 %v6284_v62, %v6339_v34 }
 0x134   :  { %4832 = vmatpush3.bf16.msra.mxu1 %v5351_v15  ;;  %4905 = vmatpush3.bf16.msra.mxu0 %v5358_v19  ;;  %v5361_v15 = vld [vmem:[%s6830_s0 + $0x434] ss:$100 sps:$4 sm:$0xff]  }
 0x135   :  { %v6471_v31 = vadd.f32 %v4340_v22, %v2785_v61  ;;  %v4283_v35 = vpop.f32.mrb[28].mxu1  ;;  %v4341_v36 = vpop.f32.mrb[32].mxu0  ;;  %4833 = vmatprep.subr.bf16.mxu1 %v5359_v23  ;;  %4906 = vmatprep.subr.bf16.mxu0 %v5405_v21  ;;  %v180_v61 = vld [vmem:[%s6830_s0 + $0x4f8] sm:$0x11] }
 0x136   :  { %v4284_v41 = vpop.f32.mrb[29].mxu1  ;;  %v4342_v42 = vpop.f32.mrb[33].mxu0 }
 0x137   :  { %v4285_v45 = vadd.f32 %v4284_v41, %v4283_v35  ;;  %v4286_v46 = vpop.f32.mrb[30].mxu1  ;;  %v4343_v47 = vadd.f32 %v4342_v42, %v4341_v36  ;;  %v4344_v48 = vpop.f32.mrb[34].mxu0  ;;  %v2718_v35 = vadd.f32 %v6309_v12, %v6339_v34  ;;  %v5367_v41 = vld [vmem:[%s6830_s0 + $0x438] ss:$100 sps:$4 sm:$0xff]  }
 0x138   :  { %v4287_v10 = vpop.f32.mrb[31].mxu1  ;;  %v4345_v51 = vpop.f32.mrb[35].mxu0  ;;  %4834 = vmatpush3.bf16.msra.mxu1 %v5360_v33  ;;  %4907 = vmatpush3.bf16.msra.mxu0 %v5366_v28  ;;  %v181_v33 = vld [vmem:[%s6830_s0 + $0x500] sm:$0x11] }
 0x139   :  { %v2790_v55 = vadd.f32 %v4285_v45, %v2702_v44  ;;  %v4288_v56 = vadd.f32 %v4287_v10, %v4286_v46  ;;  %v4346_v57 = vadd.f32 %v4345_v51, %v4344_v48  ;;  %4835 = vmatprep.subr.bf16.mxu1 %v5368_v40  ;;  %4908 = vmatprep.subr.bf16.mxu0 %v5405_v21  ;;  %v5363_v40 = vld [vmem:[%s6830_s0 + $0x430] ss:$100 sps:$4 sm:$0xff]  }
 0x13a   :  { %3484 = vmatmul.mubr.bf16.gmra.mrb[136].mxu1 %v5345_v27  ;;  %3572 = vmatmul.mubr.bf16.gmra.mrb[140].mxu0 %v5348_v37  ;;  %v3979_v46 = vcombine.high %v180_v61, %v180_v61 }
 0x13b   :  { %v2793_v59 = vadd.f32 %v4288_v56, %v2705_v50  ;;  %v6500_v18 = vadd.f32 %v4343_v47, %v2790_v55  ;;  %3491 = vmatprep.mubr.bf16.mxu1 %v5352_v43  ;;  %3579 = vmatprep.mubr.bf16.mxu0 %v5355_v49  ;;  %v3981_v47 = vcombine.high %v181_v33, %v181_v33 }
 0x13c   :  { %4836 = vmatpush3.bf16.msra.mxu1 %v5369_v53  ;;  %4909 = vmatpush3.bf16.msra.mxu0 %v5372_v30  ;;  %v3978_v30 = vcombine.low %v180_v61, %v180_v61  ;;  %v3980_v55 = vcombine.low %v181_v33, %v181_v33 }
 0x13d   :  { %v6508_v39 = vadd.f32 %v4346_v57, %v2793_v59  ;;  %v4289_v2 = vpop.f32.mrb[32].mxu1  ;;  %v4347_v3 = vpop.f32.mrb[36].mxu0  ;;  %4837 = vmatprep.subr.bf16.mxu1 %v5374_v38  ;;  %4910 = vmatprep.subr.bf16.mxu0 %v5405_v21 }
 0x13e   :  { %v4290_v4 = vpop.f32.mrb[33].mxu1  ;;  %v4348_v5 = vpop.f32.mrb[37].mxu0 }
 0x13f   :  { %v4291_v9 = vadd.f32 %v4290_v4, %v4289_v2  ;;  %v4292_v11 = vpop.f32.mrb[34].mxu1  ;;  %v4349_v13 = vadd.f32 %v4348_v5, %v4347_v3  ;;  %v4350_v14 = vpop.f32.mrb[38].mxu0 }
 0x140   :  { %v4293_v17 = vpop.f32.mrb[35].mxu1  ;;  %v4351_v19 = vpop.f32.mrb[39].mxu0  ;;  %4838 = vmatpush3.bf16.msra.mxu1 %v5376_v63  ;;  %4911 = vmatpush3.bf16.msra.mxu0 %v5380_v0  ;;  %v5379_v63 = vld [vmem:[%s6830_s0 + $0x5c] ss:$100 sps:$4 sm:$0xff]  }
 0x141   :  { %v2798_v54 = vadd.f32 %v4291_v9, %v2710_v8  ;;  %v4294_v52 = vadd.f32 %v4293_v17, %v4292_v11  ;;  %v4352_v20 = vadd.f32 %v4351_v19, %v4350_v14 }
 0x142   :  { %3492 = vmatmul.mubr.bf16.gmra.mrb[140].mxu1 %v5354_v6  ;;  %3580 = vmatmul.mubr.bf16.gmra.mrb[144].mxu0 %v5357_v7 }
 0x143   :  { %v2801_v22 = vadd.f32 %v4294_v52, %v2713_v26  ;;  %v6527_v23 = vadd.f32 %v4349_v13, %v2798_v54  ;;  %3499 = vmatprep.mubr.bf16.mxu1 %v5361_v15  ;;  %3587 = vmatprep.mubr.bf16.mxu0 %v5364_v16  ;;  %v5382_v26 = vld [vmem:[%s6830_s0 + $0x124] ss:$100 sps:$4 sm:$0xff]  }
 0x145   :  { %v6535_v27 = vadd.f32 %v4352_v20, %v2801_v22  ;;  %v4295_v62 = vpop.f32.mrb[36].mxu1  ;;  %v4353_v28 = vpop.f32.mrb[40].mxu0 }
 0x146   :  { %v4296_v36 = vpop.f32.mrb[37].mxu1  ;;  %v4354_v37 = vpop.f32.mrb[41].mxu0 }
 0x147   :  { %v4297_v42 = vadd.f32 %v4296_v36, %v4295_v62  ;;  %v4298_v43 = vpop.f32.mrb[38].mxu1  ;;  %v4355_v44 = vadd.f32 %v4354_v37, %v4353_v28  ;;  %v4356_v45 = vpop.f32.mrb[42].mxu0 }
 0x148   :  { %v4299_v48 = vpop.f32.mrb[39].mxu1  ;;  %v4357_v49 = vpop.f32.mrb[43].mxu0  ;;  %v5386_v45 = vld [vmem:[%s6830_s0 + $0x1ec] ss:$100 sps:$4 sm:$0xff]  }
 0x149   :  { %v2806_v50 = vadd.f32 %v4297_v42, %v2718_v35 }
 0x14a   :  { %3500 = vmatmul.mubr.bf16.gmra.mrb[144].mxu1 %v5363_v40  ;;  %3588 = vmatmul.mubr.bf16.gmra.mrb[148].mxu0 %v5367_v41 }
 0x14b   :  { %v6545_v12 = vadd.f32 %v4355_v44, %v2806_v50  ;;  %3507 = vmatprep.mubr.bf16.mxu1 %v3979_v46  ;;  %3595 = vmatprep.mubr.bf16.mxu0 %v3981_v47 }
 0x14d   :  { %v4375_v34 = vpop.f32.mrb[40].mxu1  ;;  %v4433_v10 = vpop.f32.mrb[44].mxu0 }
 0x14e   :  { %v4376_v51 = vpop.f32.mrb[41].mxu1  ;;  %v4434_v53 = vpop.f32.mrb[45].mxu0 }
 0x14f   :  { %v4377_v56 = vadd.f32 %v4376_v51, %v4375_v34  ;;  %v4378_v57 = vpop.f32.mrb[42].mxu1  ;;  %v4435_v38 = vadd.f32 %v4434_v53, %v4433_v10  ;;  %v4436_v59 = vpop.f32.mrb[46].mxu0 }
 0x150   :  { %v4379_v0 = vpop.f32.mrb[43].mxu1  ;;  %v4437_v2 = vpop.f32.mrb[47].mxu0 }
 0x151   :  { %v2934_v3 = vadd.f32 %v4377_v56, %v6351_v32  ;;  %v4380_v4 = vadd.f32 %v4379_v0, %v4378_v57  ;;  %v4438_v5 = vadd.f32 %v4437_v2, %v4436_v59  ;;  %v5377_v32 = vld [vmem:[%s6830_s0 + $0x58] ss:$100 sps:$4 sm:$0xff]  }
 0x152   :  { %3508 = vmatmul.mubr.bf16.gmra.mrb[148].mxu1 %v3978_v30  ;;  %3596 = vmatmul.mubr.bf16.gmra.mrb[152].mxu0 %v3980_v55  ;;  %v5390_v0 = vld [vmem:[%s6830_s0 + $0x2b4] ss:$100 sps:$4 sm:$0xff]  }
 0x153   :  { %v2937_v6 = vadd.f32 %v4380_v4, %v6356_v60  ;;  %v6552_v7 = vadd.f32 %v4435_v38, %v2934_v3  ;;  %3635 = vmatprep.mubr.bf16.mxu1 %v5379_v63  ;;  %4912 = vmatprep.mubr.msk.bf16.mxu0 %vm5406_vm0, %v5405_v21  ;;  %v5381_v60 = vld [vmem:[%s6830_s0 + $0x60] ss:$100 sps:$4 sm:$0xff]  }
 0x155   :  { %v6556_v8 = vadd.f32 %v4438_v5, %v2937_v6  ;;  %v4381_v9 = vpop.f32.mrb[44].mxu1  ;;  %v4439_v11 = vpop.f32.mrb[48].mxu0 }
 0x156   :  { %v4382_v13 = vpop.f32.mrb[45].mxu1  ;;  %v4440_v14 = vpop.f32.mrb[49].mxu0 }
 0x157   :  { %v4383_v15 = vadd.f32 %v4382_v13, %v4381_v9  ;;  %v4384_v16 = vpop.f32.mrb[46].mxu1  ;;  %v4441_v17 = vadd.f32 %v4440_v14, %v4439_v11  ;;  %v4442_v19 = vpop.f32.mrb[50].mxu0 }
 0x158   :  { %v4385_v54 = vpop.f32.mrb[47].mxu1  ;;  %v4443_v52 = vpop.f32.mrb[51].mxu0 }
 0x159   :  { %v2942_v20 = vadd.f32 %v4383_v15, %v6383_v24  ;;  %v4386_v22 = vadd.f32 %v4385_v54, %v4384_v16  ;;  %v4444_v61 = vadd.f32 %v4443_v52, %v4442_v19  ;;  %v5384_v24 = vld [vmem:[%s6830_s0 + $0x120] ss:$100 sps:$4 sm:$0xff]  }
 0x15a   :  { %3636 = vmatmul.mubr.bf16.vlgmr.msra.gmra.mrb[152].mxu1 %v5377_v32  ;;  %4913 = vmatmul.mubr.bf16.vlgmr.msra.gmra.mrb[156].mxu0 %v5381_v60  ;;  %v5394_v54 = vld [vmem:[%s6830_s0 + $0x37c] ss:$100 sps:$4 sm:$0xff]  }
 0x15b   :  { %v2945_v33 = vadd.f32 %v4386_v22, %v6397_v29  ;;  %v6569_v62 = vadd.f32 %v4441_v17, %v2942_v20  ;;  %3643 = vmatprep.mubr.bf16.mxu1 %v5382_v26  ;;  %4916 = vmatprep.mubr.msk.bf16.mxu0 %vm5406_vm0, %v5405_v21  ;;  %v5385_v29 = vld [vmem:[%s6830_s0 + $0x128] ss:$100 sps:$4 sm:$0xff]  }
 0x15d   :  { %v6573_v28 = vadd.f32 %v4444_v61, %v2945_v33  ;;  %v4387_v35 = vpop.f32.mrb[48].mxu1  ;;  %v4445_v36 = vpop.f32.mrb[52].mxu0 }
 0x15e   :  { %v4388_v37 = vpop.f32.mrb[49].mxu1  ;;  %v4446_v40 = vpop.f32.mrb[53].mxu0 }
 0x15f   :  { %v4389_v41 = vadd.f32 %v4388_v37, %v4387_v35  ;;  %v4390_v42 = vpop.f32.mrb[50].mxu1  ;;  %v4447_v43 = vadd.f32 %v4446_v40, %v4445_v36  ;;  %v4448_v44 = vpop.f32.mrb[54].mxu0 }
 0x160   :  { %v4391_v46 = vpop.f32.mrb[51].mxu1  ;;  %v4449_v47 = vpop.f32.mrb[55].mxu0 }
 0x161   :  { %v2950_v48 = vadd.f32 %v4389_v41, %v6420_v58  ;;  %v4392_v49 = vadd.f32 %v4391_v46, %v4390_v42  ;;  %v4450_v50 = vadd.f32 %v4449_v47, %v4448_v44  ;;  %v5388_v58 = vld [vmem:[%s6830_s0 + $0x1e8] ss:$100 sps:$4 sm:$0xff]  }
 0x162   :  { %3644 = vmatmul.mubr.bf16.gmra.mrb[156].mxu1 %v5384_v24  ;;  %4917 = vmatmul.mubr.bf16.gmra.mrb[160].mxu0 %v5385_v29  ;;  %v5398_v46 = vld [vmem:[%s6830_s0 + $0x444] ss:$100 sps:$4 sm:$0xff]  }
 0x163   :  { %v2953_v34 = vadd.f32 %v4392_v49, %v6437_v1  ;;  %v6586_v10 = vadd.f32 %v4447_v43, %v2950_v48  ;;  %3651 = vmatprep.mubr.bf16.mxu1 %v5386_v45  ;;  %4920 = vmatprep.mubr.msk.bf16.mxu0 %vm5406_vm0, %v5405_v21  ;;  %v5389_v1 = vld [vmem:[%s6830_s0 + $0x1f0] ss:$100 sps:$4 sm:$0xff]  }
 0x165   :  { %v6590_v51 = vadd.f32 %v4450_v50, %v2953_v34  ;;  %v4393_v53 = vpop.f32.mrb[52].mxu1  ;;  %v4451_v30 = vpop.f32.mrb[56].mxu0 }
 0x166   :  { %v4394_v55 = vpop.f32.mrb[53].mxu1  ;;  %v4452_v56 = vpop.f32.mrb[57].mxu0 }
 0x167   :  { %v4395_v57 = vadd.f32 %v4394_v55, %v4393_v53  ;;  %v4396_v38 = vpop.f32.mrb[54].mxu1  ;;  %v4453_v59 = vadd.f32 %v4452_v56, %v4451_v30  ;;  %v4454_v63 = vpop.f32.mrb[58].mxu0  ;;  %v182_v55 = vld [vmem:[%s6830_s0 + $0x508] sm:$0x11] }
 0x168   :  { %v4397_v2 = vpop.f32.mrb[55].mxu1  ;;  %v4455_v3 = vpop.f32.mrb[59].mxu0 }
 0x169   :  { %v2958_v4 = vadd.f32 %v4395_v57, %v6460_v25  ;;  %v4398_v5 = vadd.f32 %v4397_v2, %v4396_v38  ;;  %v4456_v6 = vadd.f32 %v4455_v3, %v4454_v63  ;;  %v5392_v25 = vld [vmem:[%s6830_s0 + $0x2b0] ss:$100 sps:$4 sm:$0xff]   ;;  %v5401_v38 = vld [vmem:[%s6830_s0 + $0x448] ss:$100 sps:$4 sm:$0xff]   ;;  %v3983_v3 = vcombine.high %v182_v55, %v182_v55 }
 0x16a   :  { %3652 = vmatmul.mubr.bf16.gmra.mrb[160].mxu1 %v5388_v58  ;;  %4921 = vmatmul.mubr.bf16.gmra.mrb[164].mxu0 %v5389_v1 }
 0x16b   :  { %v2961_v9 = vadd.f32 %v4398_v5, %v6471_v31  ;;  %v6603_v11 = vadd.f32 %v4453_v59, %v2958_v4  ;;  %3659 = vmatprep.mubr.bf16.mxu1 %v5390_v0  ;;  %4924 = vmatprep.mubr.msk.bf16.mxu0 %vm5406_vm0, %v5405_v21  ;;  %v5393_v31 = vld [vmem:[%s6830_s0 + $0x2b8] ss:$100 sps:$4 sm:$0xff]  }
 0x16d   :  { %v6607_v13 = vadd.f32 %v4456_v6, %v2961_v9  ;;  %v4399_v14 = vpop.f32.mrb[56].mxu1  ;;  %v4457_v32 = vpop.f32.mrb[60].mxu0 }
 0x16e   :  { %v4400_v60 = vpop.f32.mrb[57].mxu1  ;;  %v4458_v15 = vpop.f32.mrb[61].mxu0 }
 0x16f   :  { %v4401_v16 = vadd.f32 %v4400_v60, %v4399_v14  ;;  %v4402_v17 = vpop.f32.mrb[58].mxu1  ;;  %v4459_v19 = vadd.f32 %v4458_v15, %v4457_v32  ;;  %v4460_v26 = vpop.f32.mrb[62].mxu0 }
 0x170   :  { %v4403_v52 = vpop.f32.mrb[59].mxu1  ;;  %v4461_v20 = vpop.f32.mrb[63].mxu0 }
 0x171   :  { %v2966_v22 = vadd.f32 %v4401_v16, %v6500_v18  ;;  %v4404_v61 = vadd.f32 %v4403_v52, %v4402_v17  ;;  %v4462_v33 = vadd.f32 %v4461_v20, %v4460_v26  ;;  %v5396_v18 = vld [vmem:[%s6830_s0 + $0x378] ss:$100 sps:$4 sm:$0xff]  }
 0x172   :  { %3660 = vmatmul.mubr.bf16.gmra.mrb[164].mxu1 %v5392_v25  ;;  %4925 = vmatmul.mubr.bf16.gmra.mrb[168].mxu0 %v5393_v31  ;;  %v3982_v25 = vcombine.low %v182_v55, %v182_v55  ;;  %v5404_v31 = vld [vmem:[%s6830_s0 + $0x510] ss:$0 sps:$4 sm:$0x11]  }
 0x173   :  { %v2969_v35 = vadd.f32 %v4404_v61, %v6508_v39  ;;  %v6620_v36 = vadd.f32 %v4459_v19, %v2966_v22  ;;  %3667 = vmatprep.mubr.bf16.mxu1 %v5394_v54  ;;  %4928 = vmatprep.mubr.msk.bf16.mxu0 %vm5406_vm0, %v5405_v21  ;;  %v5397_v39 = vld [vmem:[%s6830_s0 + $0x380] ss:$100 sps:$4 sm:$0xff]  }
 0x175   :  { %v6624_v37 = vadd.f32 %v4462_v33, %v2969_v35  ;;  %v4405_v40 = vpop.f32.mrb[60].mxu1  ;;  %v4463_v24 = vpop.f32.mrb[64].mxu0 }
 0x176   :  { %v4406_v29 = vpop.f32.mrb[61].mxu1  ;;  %v4464_v41 = vpop.f32.mrb[65].mxu0 }
 0x177   :  { %v4407_v42 = vadd.f32 %v4406_v29, %v4405_v40  ;;  %v4408_v43 = vpop.f32.mrb[62].mxu1  ;;  %v4465_v44 = vadd.f32 %v4464_v41, %v4463_v24  ;;  %v4466_v45 = vpop.f32.mrb[66].mxu0 }
 0x178   :  { %v4409_v47 = vpop.f32.mrb[63].mxu1  ;;  %v4467_v48 = vpop.f32.mrb[67].mxu0 }
 0x179   :  { %v2974_v49 = vadd.f32 %v4407_v42, %v6527_v23  ;;  %v4410_v50 = vadd.f32 %v4409_v47, %v4408_v43  ;;  %v4468_v34 = vadd.f32 %v4467_v48, %v4466_v45 }
 0x17a   :  { %3668 = vmatmul.mubr.bf16.gmra.mrb[168].mxu1 %v5396_v18  ;;  %4929 = vmatmul.mubr.bf16.gmra.mrb[172].mxu0 %v5397_v39 }
 0x17b   :  { %v2977_v53 = vadd.f32 %v4410_v50, %v6535_v27  ;;  %v6637_v30 = vadd.f32 %v4465_v44, %v2974_v49  ;;  %3675 = vmatprep.mubr.bf16.mxu1 %v5398_v46  ;;  %4932 = vmatprep.mubr.msk.bf16.mxu0 %vm5406_vm0, %v5405_v21  ;;  %v5400_v27 = vld [vmem:[%s6830_s0 + $0x440] ss:$100 sps:$4 sm:$0xff]  }
 0x17d   :  { %v6644_v56 = vadd.f32 %v4468_v34, %v2977_v53  ;;  %v4411_v58 = vpop.f32.mrb[64].mxu1  ;;  %v4469_v23 = vpop.f32.mrb[68].mxu0 }
 0x17e   :  { %v4412_v1 = vpop.f32.mrb[65].mxu1  ;;  %v4470_v57 = vpop.f32.mrb[69].mxu0 }
 0x17f   :  { %v4413_v59 = vadd.f32 %v4412_v1, %v4411_v58  ;;  %v4414_v63 = vpop.f32.mrb[66].mxu1  ;;  %v4471_v0 = vadd.f32 %v4470_v57, %v4469_v23  ;;  %v4472_v2 = vpop.f32.mrb[70].mxu0 }
 0x180   :  { %v4415_v4 = vpop.f32.mrb[67].mxu1  ;;  %v4473_v5 = vpop.f32.mrb[71].mxu0 }
 0x181   :  { %v2982_v6 = vadd.f32 %v4413_v59, %v6545_v12 }
 0x182   :  { %3676 = vmatmul.mubr.bf16.gmra.mrb[172].mxu1 %v5400_v27  ;;  %4933 = vmatmul.mubr.bf16.gmra.mrb[176].mxu0 %v5401_v38 }
 0x183   :  { %v6653_v9 = vadd.f32 %v4471_v0, %v2982_v6  ;;  %3683 = vmatprep.mubr.bf16.mxu1 %v3983_v3  ;;  %4936 = vmatprep.mubr.msk.bf16.mxu0 %vm5406_vm0, %v5405_v21 }
 0x185   :  { %v4491_v14 = vpop.f32.mrb[68].mxu1  ;;  %v4549_v32 = vpop.f32.mrb[72].mxu0 }
 0x186   :  { %v4492_v60 = vpop.f32.mrb[69].mxu1  ;;  %v4550_v15 = vpop.f32.mrb[73].mxu0 }
 0x187   :  { %v4493_v16 = vadd.f32 %v4492_v60, %v4491_v14  ;;  %v4494_v17 = vpop.f32.mrb[70].mxu1  ;;  %v4551_v12 = vadd.f32 %v4550_v15, %v4549_v32  ;;  %v4552_v19 = vpop.f32.mrb[74].mxu0 }
 0x188   :  { %v4495_v26 = vpop.f32.mrb[71].mxu1  ;;  %v4553_v54 = vpop.f32.mrb[75].mxu0 }
 0x189   :  { %v3110_v52 = vadd.f32 %v4493_v16, %v6552_v7  ;;  %v4496_v20 = vadd.f32 %v4495_v26, %v4494_v17  ;;  %v4554_v22 = vadd.f32 %v4553_v54, %v4552_v19 }
 0x18a   :  { %3684 = vmatmul.mubr.bf16.gmra.mrb[176].mxu1 %v3982_v25  ;;  %4937 = vmatmul.mubr.bf16.gmra.mrb[180].mxu0 %v5404_v31 }
 0x18b   :  { %v3113_v21 = vadd.f32 %v4496_v20, %v6556_v8  ;;  %v6662_v61 = vadd.f32 %v4551_v12, %v3110_v52 }
 0x18d   :  { %v6664_v33 = vadd.f32 %v4554_v22, %v3113_v21  ;;  %v4497_v35 = vpop.f32.mrb[72].mxu1  ;;  %v4555_v40 = vpop.f32.mrb[76].mxu0 }
 0x18e   :  { %v4498_v24 = vpop.f32.mrb[73].mxu1  ;;  %v4556_v29 = vpop.f32.mrb[77].mxu0 }
 0x18f   :  { %v4499_v41 = vadd.f32 %v4498_v24, %v4497_v35  ;;  %v4500_v18 = vpop.f32.mrb[74].mxu1  ;;  %v4557_v39 = vadd.f32 %v4556_v29, %v4555_v40  ;;  %v4558_v42 = vpop.f32.mrb[78].mxu0 }
 0x190   :  { %v4501_v43 = vpop.f32.mrb[75].mxu1  ;;  %v4559_v7 = vpop.f32.mrb[79].mxu0 }
 0x191   :  { %v3118_v44 = vadd.f32 %v4499_v41, %v6569_v62  ;;  %v4502_v45 = vadd.f32 %v4501_v43, %v4500_v18  ;;  %v4560_v46 = vadd.f32 %v4559_v7, %v4558_v42 }
 0x193   :  { %v3121_v8 = vadd.f32 %v4502_v45, %v6573_v28  ;;  %v6668_v47 = vadd.f32 %v4557_v39, %v3118_v44 }
 0x195   :  { %v6670_v48 = vadd.f32 %v4560_v46, %v3121_v8  ;;  %v4503_v49 = vpop.f32.mrb[76].mxu1  ;;  %v4561_v50 = vpop.f32.mrb[80].mxu0 }
 0x196   :  { %v4504_v34 = vpop.f32.mrb[77].mxu1  ;;  %v4562_v53 = vpop.f32.mrb[81].mxu0 }
 0x197   :  { %v4505_v55 = vadd.f32 %v4504_v34, %v4503_v49  ;;  %v4506_v58 = vpop.f32.mrb[78].mxu1  ;;  %v4563_v23 = vadd.f32 %v4562_v53, %v4561_v50  ;;  %v4564_v1 = vpop.f32.mrb[82].mxu0 }
 0x198   :  { %v4507_v57 = vpop.f32.mrb[79].mxu1  ;;  %v4565_v27 = vpop.f32.mrb[83].mxu0 }
 0x199   :  { %v3126_v62 = vadd.f32 %v4505_v55, %v6586_v10  ;;  %v4508_v38 = vadd.f32 %v4507_v57, %v4506_v58  ;;  %v4566_v59 = vadd.f32 %v4565_v27, %v4564_v1 }
 0x19b   :  { %v3129_v28 = vadd.f32 %v4508_v38, %v6590_v51  ;;  %v6674_v63 = vadd.f32 %v4563_v23, %v3126_v62 }
 0x19d   :  { %v6676_v0 = vadd.f32 %v4566_v59, %v3129_v28  ;;  %v4509_v2 = vpop.f32.mrb[80].mxu1  ;;  %v4567_v3 = vpop.f32.mrb[84].mxu0 }
 0x19e   :  { %v4510_v4 = vpop.f32.mrb[81].mxu1  ;;  %v4568_v5 = vpop.f32.mrb[85].mxu0 }
 0x19f   :  { %v4511_v6 = vadd.f32 %v4510_v4, %v4509_v2  ;;  %v4512_v14 = vpop.f32.mrb[82].mxu1  ;;  %v4569_v32 = vadd.f32 %v4568_v5, %v4567_v3  ;;  %v4570_v60 = vpop.f32.mrb[86].mxu0 }
 0x1a0   :  { %v4513_v15 = vpop.f32.mrb[83].mxu1  ;;  %v4571_v25 = vpop.f32.mrb[87].mxu0 }
 0x1a1   :  { %v3134_v10 = vadd.f32 %v4511_v6, %v6603_v11  ;;  %v4514_v31 = vadd.f32 %v4513_v15, %v4512_v14  ;;  %v4572_v16 = vadd.f32 %v4571_v25, %v4570_v60 }
 0x1a3   :  { %v3137_v51 = vadd.f32 %v4514_v31, %v6607_v13  ;;  %v6680_v17 = vadd.f32 %v4569_v32, %v3134_v10 }
 0x1a5   :  { %v6682_v12 = vadd.f32 %v4572_v16, %v3137_v51  ;;  %v4515_v19 = vpop.f32.mrb[84].mxu1  ;;  %v4573_v26 = vpop.f32.mrb[88].mxu0 }
 0x1a6   :  { %v4516_v54 = vpop.f32.mrb[85].mxu1  ;;  %v4574_v52 = vpop.f32.mrb[89].mxu0 }
 0x1a7   :  { %v4517_v20 = vadd.f32 %v4516_v54, %v4515_v19  ;;  %v4518_v22 = vpop.f32.mrb[86].mxu1  ;;  %v4575_v21 = vadd.f32 %v4574_v52, %v4573_v26  ;;  %v4576_v35 = vpop.f32.mrb[90].mxu0 }
 0x1a8   :  { %v4519_v40 = vpop.f32.mrb[87].mxu1  ;;  %v4577_v24 = vpop.f32.mrb[91].mxu0 }
 0x1a9   :  { %v3142_v11 = vadd.f32 %v4517_v20, %v6620_v36  ;;  %v4520_v29 = vadd.f32 %v4519_v40, %v4518_v22  ;;  %v4578_v41 = vadd.f32 %v4577_v24, %v4576_v35 }
 0x1ab   :  { %v3145_v13 = vadd.f32 %v4520_v29, %v6624_v37  ;;  %v6686_v18 = vadd.f32 %v4575_v21, %v3142_v11 }
 0x1ad   :  { %v6688_v39 = vadd.f32 %v4578_v41, %v3145_v13  ;;  %v4521_v42 = vpop.f32.mrb[88].mxu1  ;;  %v4579_v43 = vpop.f32.mrb[92].mxu0 }
 0x1ae   :  { %v4522_v7 = vpop.f32.mrb[89].mxu1  ;;  %v4580_v44 = vpop.f32.mrb[93].mxu0 }
 0x1af   :  { %v4523_v45 = vadd.f32 %v4522_v7, %v4521_v42  ;;  %v4524_v46 = vpop.f32.mrb[90].mxu1  ;;  %v4581_v8 = vadd.f32 %v4580_v44, %v4579_v43  ;;  %v4582_v49 = vpop.f32.mrb[94].mxu0 }
 0x1b0   :  { %v4525_v50 = vpop.f32.mrb[91].mxu1  ;;  %v4583_v34 = vpop.f32.mrb[95].mxu0 }
 0x1b1   :  { %v3150_v36 = vadd.f32 %v4523_v45, %v6637_v30  ;;  %v4526_v53 = vadd.f32 %v4525_v50, %v4524_v46  ;;  %v4584_v55 = vadd.f32 %v4583_v34, %v4582_v49 }
 0x1b3   :  { %v3153_v37 = vadd.f32 %v4526_v53, %v6644_v56  ;;  %v6692_v58 = vadd.f32 %v4581_v8, %v3150_v36 }
 0x1b5   :  { %v6694_v23 = vadd.f32 %v4584_v55, %v3153_v37  ;;  %v4527_v1 = vpop.f32.mrb[92].mxu1  ;;  %v4585_v57 = vpop.f32.mrb[96].mxu0 }
 0x1b6   :  { %v4528_v27 = vpop.f32.mrb[93].mxu1  ;;  %v4586_v62 = vpop.f32.mrb[97].mxu0 }
 0x1b7   :  { %v4529_v38 = vadd.f32 %v4528_v27, %v4527_v1  ;;  %v4530_v59 = vpop.f32.mrb[94].mxu1  ;;  %v4587_v28 = vadd.f32 %v4586_v62, %v4585_v57  ;;  %v4588_v2 = vpop.f32.mrb[98].mxu0 }
 0x1b8   :  { %v4531_v3 = vpop.f32.mrb[95].mxu1  ;;  %v4589_v4 = vpop.f32.mrb[99].mxu0 }
 0x1b9   :  { %v3158_v30 = vadd.f32 %v4529_v38, %v6653_v9 }
 0x1bb   :  { %v6697_v5 = vadd.f32 %v4587_v28, %v3158_v30 }
 0x1bd   :  { %v4607_v6 = vpop.f32.mrb[96].mxu1  ;;  %v4665_v56 = vpop.f32.mrb[100].mxu0 }
 0x1be   :  { %v4608_v14 = vpop.f32.mrb[97].mxu1  ;;  %v4666_v32 = vpop.f32.mrb[101].mxu0 }
 0x1bf   :  { %v4609_v60 = vadd.f32 %v4608_v14, %v4607_v6  ;;  %v4610_v15 = vpop.f32.mrb[98].mxu1  ;;  %v4667_v25 = vadd.f32 %v4666_v32, %v4665_v56  ;;  %v4668_v10 = vpop.f32.mrb[102].mxu0 }
 0x1c0   :  { %v4611_v31 = vpop.f32.mrb[99].mxu1  ;;  %v4669_v16 = vpop.f32.mrb[103].mxu0 }
 0x1c1   :  { %v3286_v51 = vadd.f32 %v4609_v60, %v6662_v61  ;;  %v4612_v19 = vadd.f32 %v4611_v31, %v4610_v15  ;;  %v4670_v26 = vadd.f32 %v4669_v16, %v4668_v10 }
 0x1c3   :  { %v3289_v54 = vadd.f32 %v4612_v19, %v6664_v33  ;;  %v6701_v52 = vadd.f32 %v4667_v25, %v3286_v51 }
 0x1c5   :  { %v6703_v9 = vadd.f32 %v4670_v26, %v3289_v54  ;;  %v4613_v20 = vpop.f32.mrb[100].mxu1  ;;  %v4671_v22 = vpop.f32.mrb[104].mxu0 }
 0x1c6   :  { %v4614_v21 = vpop.f32.mrb[101].mxu1  ;;  %v4672_v35 = vpop.f32.mrb[105].mxu0 }
 0x1c7   :  { %v4615_v40 = vadd.f32 %v4614_v21, %v4613_v20  ;;  %v4616_v24 = vpop.f32.mrb[102].mxu1  ;;  %v4673_v11 = vadd.f32 %v4672_v35, %v4671_v22  ;;  %v4674_v29 = vpop.f32.mrb[106].mxu0 }
 0x1c8   :  { %v4617_v41 = vpop.f32.mrb[103].mxu1  ;;  %v4675_v13 = vpop.f32.mrb[107].mxu0 }
 0x1c9   :  { %v3294_v61 = vadd.f32 %v4615_v40, %v6668_v47  ;;  %v4618_v42 = vadd.f32 %v4617_v41, %v4616_v24  ;;  %v4676_v43 = vadd.f32 %v4675_v13, %v4674_v29 }
 0x1cb   :  { %v3297_v33 = vadd.f32 %v4618_v42, %v6670_v48  ;;  %v6707_v7 = vadd.f32 %v4673_v11, %v3294_v61 }
 0x1cd   :  { %v6709_v44 = vadd.f32 %v4676_v43, %v3297_v33  ;;  %v4619_v45 = vpop.f32.mrb[104].mxu1  ;;  %v4677_v46 = vpop.f32.mrb[108].mxu0 }
 0x1ce   :  { %v4620_v8 = vpop.f32.mrb[105].mxu1  ;;  %v4678_v49 = vpop.f32.mrb[109].mxu0 }
 0x1cf   :  { %v4621_v50 = vadd.f32 %v4620_v8, %v4619_v45  ;;  %v4622_v34 = vpop.f32.mrb[106].mxu1  ;;  %v4679_v36 = vadd.f32 %v4678_v49, %v4677_v46  ;;  %v4680_v53 = vpop.f32.mrb[110].mxu0 }
 0x1d0   :  { %v4623_v55 = vpop.f32.mrb[107].mxu1  ;;  %v4681_v37 = vpop.f32.mrb[111].mxu0 }
 0x1d1   :  { %v3302_v47 = vadd.f32 %v4621_v50, %v6674_v63  ;;  %v4624_v1 = vadd.f32 %v4623_v55, %v4622_v34  ;;  %v4682_v57 = vadd.f32 %v4681_v37, %v4680_v53 }
 0x1d3   :  { %v3305_v48 = vadd.f32 %v4624_v1, %v6676_v0  ;;  %v6713_v27 = vadd.f32 %v4679_v36, %v3302_v47 }
 0x1d5   :  { %v6715_v62 = vadd.f32 %v4682_v57, %v3305_v48  ;;  %v4625_v38 = vpop.f32.mrb[108].mxu1  ;;  %v4683_v59 = vpop.f32.mrb[112].mxu0 }
 0x1d6   :  { %v4626_v28 = vpop.f32.mrb[109].mxu1  ;;  %v4684_v2 = vpop.f32.mrb[113].mxu0 }
 0x1d7   :  { %v4627_v3 = vadd.f32 %v4626_v28, %v4625_v38  ;;  %v4628_v4 = vpop.f32.mrb[110].mxu1  ;;  %v4685_v30 = vadd.f32 %v4684_v2, %v4683_v59  ;;  %v4686_v6 = vpop.f32.mrb[114].mxu0 }
 0x1d8   :  { %v4629_v56 = vpop.f32.mrb[111].mxu1  ;;  %v4687_v14 = vpop.f32.mrb[115].mxu0 }
 0x1d9   :  { %v3310_v63 = vadd.f32 %v4627_v3, %v6680_v17  ;;  %v4630_v32 = vadd.f32 %v4629_v56, %v4628_v4  ;;  %v4688_v60 = vadd.f32 %v4687_v14, %v4686_v6 }
 0x1db   :  { %v3313_v0 = vadd.f32 %v4630_v32, %v6682_v12  ;;  %v6719_v15 = vadd.f32 %v4685_v30, %v3310_v63 }
 0x1dd   :  { %v6721_v25 = vadd.f32 %v4688_v60, %v3313_v0  ;;  %v4631_v10 = vpop.f32.mrb[112].mxu1  ;;  %v4689_v31 = vpop.f32.mrb[116].mxu0 }
 0x1de   :  { %v4632_v16 = vpop.f32.mrb[113].mxu1  ;;  %v4690_v51 = vpop.f32.mrb[117].mxu0 }
 0x1df   :  { %v4633_v19 = vadd.f32 %v4632_v16, %v4631_v10  ;;  %v4634_v26 = vpop.f32.mrb[114].mxu1  ;;  %v4691_v54 = vadd.f32 %v4690_v51, %v4689_v31  ;;  %v4692_v20 = vpop.f32.mrb[118].mxu0 }
 0x1e0   :  { %v4635_v22 = vpop.f32.mrb[115].mxu1  ;;  %v4693_v21 = vpop.f32.mrb[119].mxu0 }
 0x1e1   :  { %v3318_v17 = vadd.f32 %v4633_v19, %v6686_v18  ;;  %v4636_v35 = vadd.f32 %v4635_v22, %v4634_v26  ;;  %v4694_v40 = vadd.f32 %v4693_v21, %v4692_v20 }
 0x1e3   :  { %v3321_v12 = vadd.f32 %v4636_v35, %v6688_v39  ;;  %v6725_v24 = vadd.f32 %v4691_v54, %v3318_v17 }
 0x1e5   :  { %v6727_v11 = vadd.f32 %v4694_v40, %v3321_v12  ;;  %v4637_v29 = vpop.f32.mrb[116].mxu1  ;;  %v4695_v41 = vpop.f32.mrb[120].mxu0 }
 0x1e6   :  { %v4638_v13 = vpop.f32.mrb[117].mxu1  ;;  %v4696_v61 = vpop.f32.mrb[121].mxu0 }
 0x1e7   :  { %v4639_v42 = vadd.f32 %v4638_v13, %v4637_v29  ;;  %v4640_v43 = vpop.f32.mrb[118].mxu1  ;;  %v4697_v33 = vadd.f32 %v4696_v61, %v4695_v41  ;;  %v4698_v45 = vpop.f32.mrb[122].mxu0 }
 0x1e8   :  { %v4641_v46 = vpop.f32.mrb[119].mxu1  ;;  %v4699_v8 = vpop.f32.mrb[123].mxu0 }
 0x1e9   :  { %v3326_v18 = vadd.f32 %v4639_v42, %v6692_v58  ;;  %v4642_v49 = vadd.f32 %v4641_v46, %v4640_v43  ;;  %v4700_v50 = vadd.f32 %v4699_v8, %v4698_v45 }
 0x1eb   :  { %v3329_v39 = vadd.f32 %v4642_v49, %v6694_v23  ;;  %v6731_v34 = vadd.f32 %v4697_v33, %v3326_v18 }
 0x1ed   :  { %v6733_v36 = vadd.f32 %v4700_v50, %v3329_v39  ;;  %v4643_v53 = vpop.f32.mrb[120].mxu1  ;;  %v4701_v55 = vpop.f32.mrb[124].mxu0 }
 0x1ee   :  { %v4644_v37 = vpop.f32.mrb[121].mxu1  ;;  %v4702_v47 = vpop.f32.mrb[125].mxu0 }
 0x1ef   :  { %v4645_v1 = vadd.f32 %v4644_v37, %v4643_v53  ;;  %v4646_v57 = vpop.f32.mrb[122].mxu1  ;;  %v4703_v48 = vadd.f32 %v4702_v47, %v4701_v55  ;;  %v4704_v38 = vpop.f32.mrb[126].mxu0 }
 0x1f0   :  { %v4647_v59 = vpop.f32.mrb[123].mxu1  ;;  %v4705_v28 = vpop.f32.mrb[127].mxu0 }
 0x1f1   :  { %v3334_v58 = vadd.f32 %v4645_v1, %v6697_v5 }
 0x1f3   :  { %v6736_v2 = vadd.f32 %v4703_v48, %v3334_v58 }
 0x1f5   :  { %v4723_v3 = vpop.f32.mrb[124].mxu1  ;;  %v4781_v23 = vpop.f32.mrb[128].mxu0 }
 0x1f6   :  { %v4724_v4 = vpop.f32.mrb[125].mxu1  ;;  %v4782_v30 = vpop.f32.mrb[129].mxu0 }
 0x1f7   :  { %v4725_v6 = vadd.f32 %v4724_v4, %v4723_v3  ;;  %v4726_v56 = vpop.f32.mrb[126].mxu1  ;;  %v4783_v14 = vadd.f32 %v4782_v30, %v4781_v23  ;;  %v4784_v63 = vpop.f32.mrb[130].mxu0 }
 0x1f8   :  { %v4727_v32 = vpop.f32.mrb[127].mxu1  ;;  %v4785_v60 = vpop.f32.mrb[131].mxu0 }
 0x1f9   :  { %v3462_v0 = vadd.f32 %v4725_v6, %v6701_v52  ;;  %v4728_v10 = vadd.f32 %v4727_v32, %v4726_v56  ;;  %v4786_v31 = vadd.f32 %v4785_v60, %v4784_v63 }
 0x1fb   :  { %v3465_v16 = vadd.f32 %v4728_v10, %v6703_v9  ;;  %v6740_v51 = vadd.f32 %v4783_v14, %v3462_v0 }
 0x1fd   :  { %v6742_v5 = vadd.f32 %v4786_v31, %v3465_v16  ;;  %v4729_v19 = vpop.f32.mrb[128].mxu1  ;;  %v4787_v26 = vpop.f32.mrb[132].mxu0 }
 0x1fe   :  { %v4730_v54 = vpop.f32.mrb[129].mxu1  ;;  %v4788_v20 = vpop.f32.mrb[133].mxu0 }
 0x1ff   :  { %v4731_v22 = vadd.f32 %v4730_v54, %v4729_v19  ;;  %v4732_v21 = vpop.f32.mrb[130].mxu1  ;;  %v4789_v17 = vadd.f32 %v4788_v20, %v4787_v26  ;;  %v4790_v35 = vpop.f32.mrb[134].mxu0 }
 0x200   :  { %v4733_v40 = vpop.f32.mrb[131].mxu1  ;;  %v4791_v12 = vpop.f32.mrb[135].mxu0 }
 0x201   :  { %v3470_v52 = vadd.f32 %v4731_v22, %v6707_v7  ;;  %v4734_v29 = vadd.f32 %v4733_v40, %v4732_v21  ;;  %v4792_v41 = vadd.f32 %v4791_v12, %v4790_v35 }
 0x203   :  { %v3473_v9 = vadd.f32 %v4734_v29, %v6709_v44  ;;  %v6746_v13 = vadd.f32 %v4789_v17, %v3470_v52 }
 0x205   :  { %v6748_v61 = vadd.f32 %v4792_v41, %v3473_v9  ;;  %v4735_v42 = vpop.f32.mrb[132].mxu1  ;;  %v4793_v43 = vpop.f32.mrb[136].mxu0 }
 0x206   :  { %v4736_v33 = vpop.f32.mrb[133].mxu1  ;;  %v4794_v45 = vpop.f32.mrb[137].mxu0 }
 0x207   :  { %v4737_v46 = vadd.f32 %v4736_v33, %v4735_v42  ;;  %v4738_v8 = vpop.f32.mrb[134].mxu1  ;;  %v4795_v18 = vadd.f32 %v4794_v45, %v4793_v43  ;;  %v4796_v49 = vpop.f32.mrb[138].mxu0 }
 0x208   :  { %v4739_v50 = vpop.f32.mrb[135].mxu1  ;;  %v4797_v39 = vpop.f32.mrb[139].mxu0 }
 0x209   :  { %v3478_v7 = vadd.f32 %v4737_v46, %v6713_v27  ;;  %v4740_v53 = vadd.f32 %v4739_v50, %v4738_v8  ;;  %v4798_v55 = vadd.f32 %v4797_v39, %v4796_v49 }
 0x20b   :  { %v3481_v44 = vadd.f32 %v4740_v53, %v6715_v62  ;;  %v6752_v37 = vadd.f32 %v4795_v18, %v3478_v7 }
 0x20d   :  { %v6754_v47 = vadd.f32 %v4798_v55, %v3481_v44  ;;  %v4741_v1 = vpop.f32.mrb[136].mxu1  ;;  %v4799_v57 = vpop.f32.mrb[140].mxu0 }
 0x20e   :  { %v4742_v48 = vpop.f32.mrb[137].mxu1  ;;  %v4800_v38 = vpop.f32.mrb[141].mxu0 }
 0x20f   :  { %v4743_v59 = vadd.f32 %v4742_v48, %v4741_v1  ;;  %v4744_v28 = vpop.f32.mrb[138].mxu1  ;;  %v4801_v58 = vadd.f32 %v4800_v38, %v4799_v57  ;;  %v4802_v3 = vpop.f32.mrb[142].mxu0 }
 0x210   :  { %v4745_v23 = vpop.f32.mrb[139].mxu1  ;;  %v4803_v4 = vpop.f32.mrb[143].mxu0 }
 0x211   :  { %v3486_v27 = vadd.f32 %v4743_v59, %v6719_v15  ;;  %v4746_v30 = vadd.f32 %v4745_v23, %v4744_v28  ;;  %v4804_v6 = vadd.f32 %v4803_v4, %v4802_v3 }
 0x213   :  { %v3489_v62 = vadd.f32 %v4746_v30, %v6721_v25  ;;  %v6758_v56 = vadd.f32 %v4801_v58, %v3486_v27 }
 0x215   :  { %v6760_v14 = vadd.f32 %v4804_v6, %v3489_v62  ;;  %v4747_v63 = vpop.f32.mrb[140].mxu1  ;;  %v4805_v32 = vpop.f32.mrb[144].mxu0 }
 0x216   :  { %v4748_v60 = vpop.f32.mrb[141].mxu1  ;;  %v4806_v0 = vpop.f32.mrb[145].mxu0 }
 0x217   :  { %v4749_v10 = vadd.f32 %v4748_v60, %v4747_v63  ;;  %v4750_v31 = vpop.f32.mrb[142].mxu1  ;;  %v4807_v16 = vadd.f32 %v4806_v0, %v4805_v32  ;;  %v4808_v19 = vpop.f32.mrb[146].mxu0 }
 0x218   :  { %v4751_v26 = vpop.f32.mrb[143].mxu1  ;;  %v4809_v54 = vpop.f32.mrb[147].mxu0 }
 0x219   :  { %v3494_v15 = vadd.f32 %v4749_v10, %v6725_v24  ;;  %v4752_v20 = vadd.f32 %v4751_v26, %v4750_v31  ;;  %v4810_v22 = vadd.f32 %v4809_v54, %v4808_v19 }
 0x21b   :  { %v3497_v25 = vadd.f32 %v4752_v20, %v6727_v11  ;;  %v6764_v21 = vadd.f32 %v4807_v16, %v3494_v15 }
 0x21d   :  { %v6766_v17 = vadd.f32 %v4810_v22, %v3497_v25  ;;  %v4753_v35 = vpop.f32.mrb[144].mxu1  ;;  %v4811_v40 = vpop.f32.mrb[148].mxu0 }
 0x21e   :  { %v4754_v12 = vpop.f32.mrb[145].mxu1  ;;  %v4812_v52 = vpop.f32.mrb[149].mxu0 }
 0x21f   :  { %v4755_v29 = vadd.f32 %v4754_v12, %v4753_v35  ;;  %v4756_v41 = vpop.f32.mrb[146].mxu1  ;;  %v4813_v9 = vadd.f32 %v4812_v52, %v4811_v40  ;;  %v4814_v42 = vpop.f32.mrb[150].mxu0 }
 0x220   :  { %v4757_v43 = vpop.f32.mrb[147].mxu1  ;;  %v4815_v33 = vpop.f32.mrb[151].mxu0 }
 0x221   :  { %v3502_v24 = vadd.f32 %v4755_v29, %v6731_v34  ;;  %v4758_v45 = vadd.f32 %v4757_v43, %v4756_v41  ;;  %v4816_v46 = vadd.f32 %v4815_v33, %v4814_v42 }
 0x223   :  { %v3505_v11 = vadd.f32 %v4758_v45, %v6733_v36  ;;  %v6770_v8 = vadd.f32 %v4813_v9, %v3502_v24 }
 0x225   :  { %v6772_v18 = vadd.f32 %v4816_v46, %v3505_v11  ;;  %v4759_v49 = vpop.f32.mrb[148].mxu1  ;;  %v4817_v50 = vpop.f32.mrb[152].mxu0 }
 0x226   :  { %v4760_v39 = vpop.f32.mrb[149].mxu1  ;;  %v4818_v7 = vpop.f32.mrb[153].mxu0 }
 0x227   :  { %v4761_v53 = vadd.f32 %v4760_v39, %v4759_v49  ;;  %v4762_v55 = vpop.f32.mrb[150].mxu1  ;;  %v4819_v44 = vadd.f32 %v4818_v7, %v4817_v50  ;;  %v4820_v1 = vpop.f32.mrb[154].mxu0 }
 0x228   :  { %v4763_v57 = vpop.f32.mrb[151].mxu1  ;;  %v4821_v48 = vpop.f32.mrb[155].mxu0 }
 0x229   :  { %v3510_v34 = vadd.f32 %v4761_v53, %v6736_v2 }
 0x22b   :  { %v6775_v38 = vadd.f32 %v4819_v44, %v3510_v34 }
 0x22d   :  { %v4839_v59 = vpop.f32.mrb[152].mxu1  ;;  %v3725_v36 = vpop.f32.mrb[156].mxu0 }
 0x22e   :  { %v4840_v28 = vpop.f32.mrb[153].mxu1  ;;  %v4914_v58 = vpop.f32.mrb[157].mxu0 }
 0x22f   :  { %v4841_v3 = vadd.f32 %v4840_v28, %v4839_v59  ;;  %v4842_v23 = vpop.f32.mrb[154].mxu1  ;;  %v3728_v4 = vpop.f32.mrb[158].mxu0 }
 0x230   :  { %v4843_v27 = vpop.f32.mrb[155].mxu1  ;;  %v4915_v30 = vpop.f32.mrb[159].mxu0 }
 0x231   :  { %v4844_v6 = vadd.f32 %v4843_v27, %v4842_v23  ;;  %v3638_v62 = vadd.f32 %v4841_v3, %v6740_v51 }
 0x233   :  { %v3726_v63 = vadd.f32 %v3725_v36, %v3638_v62  ;;  %v3641_v32 = vadd.f32 %v4844_v6, %v6742_v5 }
 0x235   :  { %v3779_v60 = vmax.f32 %v3726_v63, 0.0  ;;  %v3729_v0 = vadd.f32 %v3728_v4, %v3641_v32  ;;  %v4845_v2 = vpop.f32.mrb[156].mxu1  ;;  %v3733_v10 = vpop.f32.mrb[160].mxu0 }
 0x236   :  { %v4846_v31 = vpop.f32.mrb[157].mxu1  ;;  %v4918_v16 = vpop.f32.mrb[161].mxu0 }
 0x237   :  { %3792 = vst [vmem:[%s6832_s3] sm:$0xff] %v3779_v60  ;;  %v3780_v19 = vmax.f32 %v3729_v0, 0.0  ;;  %v4847_v26 = vadd.f32 %v4846_v31, %v4845_v2  ;;  %v4848_v54 = vpop.f32.mrb[158].mxu1  ;;  %v3736_v15 = vpop.f32.mrb[162].mxu0 }
 0x238   :  { %v4849_v20 = vpop.f32.mrb[159].mxu1  ;;  %v4919_v22 = vpop.f32.mrb[163].mxu0 }
 0x239   :  { %3793 = vst [vmem:[%s6832_s3 + $0x8] sm:$0xff] %v3780_v19  ;;  %v4850_v51 = vadd.f32 %v4849_v20, %v4848_v54  ;;  %v3646_v5 = vadd.f32 %v4847_v26, %v6746_v13 }
 0x23b   :  { %v3734_v25 = vadd.f32 %v3733_v10, %v3646_v5  ;;  %v3649_v35 = vadd.f32 %v4850_v51, %v6748_v61 }
 0x23d   :  { %v3781_v40 = vmax.f32 %v3734_v25, 0.0  ;;  %v3737_v12 = vadd.f32 %v3736_v15, %v3649_v35  ;;  %v4851_v52 = vpop.f32.mrb[160].mxu1  ;;  %v3741_v29 = vpop.f32.mrb[164].mxu0 }
 0x23e   :  { %v4852_v41 = vpop.f32.mrb[161].mxu1  ;;  %v4922_v9 = vpop.f32.mrb[165].mxu0 }
 0x23f   :  { %3794 = vst [vmem:[%s6832_s3 + $0x10] sm:$0xff] %v3781_v40  ;;  %v3782_v42 = vmax.f32 %v3737_v12, 0.0  ;;  %v4853_v43 = vadd.f32 %v4852_v41, %v4851_v52  ;;  %v4854_v33 = vpop.f32.mrb[162].mxu1  ;;  %v3744_v24 = vpop.f32.mrb[166].mxu0 }
 0x240   :  { %v4855_v45 = vpop.f32.mrb[163].mxu1  ;;  %v4923_v46 = vpop.f32.mrb[167].mxu0 }
 0x241   :  { %3795 = vst [vmem:[%s6832_s3 + $0x18] sm:$0xff] %v3782_v42  ;;  %v4856_v13 = vadd.f32 %v4855_v45, %v4854_v33  ;;  %v3654_v61 = vadd.f32 %v4853_v43, %v6752_v37 }
 0x243   :  { %v3742_v11 = vadd.f32 %v3741_v29, %v3654_v61  ;;  %v3657_v49 = vadd.f32 %v4856_v13, %v6754_v47 }
 0x245   :  { %v3783_v50 = vmax.f32 %v3742_v11, 0.0  ;;  %v3745_v39 = vadd.f32 %v3744_v24, %v3657_v49  ;;  %v4857_v7 = vpop.f32.mrb[164].mxu1  ;;  %v3749_v53 = vpop.f32.mrb[168].mxu0 }
 0x246   :  { %v4858_v55 = vpop.f32.mrb[165].mxu1  ;;  %v4926_v44 = vpop.f32.mrb[169].mxu0 }
 0x247   :  { %3796 = vst [vmem:[%s6832_s3 + $0x20] sm:$0xff] %v3783_v50  ;;  %v3784_v1 = vmax.f32 %v3745_v39, 0.0  ;;  %v4859_v57 = vadd.f32 %v4858_v55, %v4857_v7  ;;  %v4860_v48 = vpop.f32.mrb[166].mxu1  ;;  %v3752_v34 = vpop.f32.mrb[170].mxu0 }
 0x248   :  { %v4861_v59 = vpop.f32.mrb[167].mxu1  ;;  %v4927_v36 = vpop.f32.mrb[171].mxu0 }
 0x249   :  { %3797 = vst [vmem:[%s6832_s3 + $0x28] sm:$0xff] %v3784_v1  ;;  %v4862_v37 = vadd.f32 %v4861_v59, %v4860_v48  ;;  %v3662_v47 = vadd.f32 %v4859_v57, %v6758_v56 }
 0x24b   :  { %v3750_v28 = vadd.f32 %v3749_v53, %v3662_v47  ;;  %v3665_v58 = vadd.f32 %v4862_v37, %v6760_v14 }
 0x24d   :  { %v3785_v3 = vmax.f32 %v3750_v28, 0.0  ;;  %v3753_v23 = vadd.f32 %v3752_v34, %v3665_v58  ;;  %v4863_v4 = vpop.f32.mrb[168].mxu1  ;;  %v3757_v27 = vpop.f32.mrb[172].mxu0 }
 0x24e   :  { %v4864_v30 = vpop.f32.mrb[169].mxu1  ;;  %v4930_v6 = vpop.f32.mrb[173].mxu0 }
 0x24f   :  { %3798 = vst [vmem:[%s6832_s3 + $0x30] sm:$0xff] %v3785_v3  ;;  %v3786_v62 = vmax.f32 %v3753_v23, 0.0  ;;  %v4865_v63 = vadd.f32 %v4864_v30, %v4863_v4  ;;  %v4866_v32 = vpop.f32.mrb[170].mxu1  ;;  %v3760_v60 = vpop.f32.mrb[174].mxu0 }
 0x250   :  { %v4867_v0 = vpop.f32.mrb[171].mxu1  ;;  %v4931_v2 = vpop.f32.mrb[175].mxu0 }
 0x251   :  { %3799 = vst [vmem:[%s6832_s3 + $0x38] sm:$0xff] %v3786_v62  ;;  %v4868_v56 = vadd.f32 %v4867_v0, %v4866_v32  ;;  %v3670_v14 = vadd.f32 %v4865_v63, %v6764_v21 }
 0x253   :  { %v3758_v10 = vadd.f32 %v3757_v27, %v3670_v14  ;;  %v3673_v31 = vadd.f32 %v4868_v56, %v6766_v17 }
 0x255   :  { %v3787_v16 = vmax.f32 %v3758_v10, 0.0  ;;  %v3761_v19 = vadd.f32 %v3760_v60, %v3673_v31  ;;  %v4869_v26 = vpop.f32.mrb[172].mxu1  ;;  %v3765_v54 = vpop.f32.mrb[176].mxu0 }
 0x256   :  { %v4870_v15 = vpop.f32.mrb[173].mxu1  ;;  %v4934_v20 = vpop.f32.mrb[177].mxu0 }
 0x257   :  { %3800 = vst [vmem:[%s6832_s3 + $0x40] sm:$0xff] %v3787_v16  ;;  %v3788_v22 = vmax.f32 %v3761_v19, 0.0  ;;  %v4871_v51 = vadd.f32 %v4870_v15, %v4869_v26  ;;  %v4872_v5 = vpop.f32.mrb[174].mxu1  ;;  %v3768_v25 = vpop.f32.mrb[178].mxu0 }
 0x258   :  { %v4873_v35 = vpop.f32.mrb[175].mxu1  ;;  %v4935_v40 = vpop.f32.mrb[179].mxu0 }
 0x259   :  { %3801 = vst [vmem:[%s6832_s3 + $0x48] sm:$0xff] %v3788_v22  ;;  %v4874_v21 = vadd.f32 %v4873_v35, %v4872_v5  ;;  %v3678_v17 = vadd.f32 %v4871_v51, %v6770_v8 }
 0x25b   :  { %v3766_v12 = vadd.f32 %v3765_v54, %v3678_v17  ;;  %v3681_v52 = vadd.f32 %v4874_v21, %v6772_v18 }
 0x25d   :  { %v3789_v29 = vmax.f32 %v3766_v12, 0.0  ;;  %v3769_v41 = vadd.f32 %v3768_v25, %v3681_v52  ;;  %v4875_v9 = vpop.f32.mrb[176].mxu1  ;;  %v3773_v42 = vpop.f32.mrb[180].mxu0 }
 0x25e   :  { %v4876_v43 = vpop.f32.mrb[177].mxu1  ;;  %v4938_v33 = vpop.f32.mrb[181].mxu0 }
 0x25f   :  { %3802 = vst [vmem:[%s6832_s3 + $0x50] sm:$0xff] %v3789_v29  ;;  %v3790_v24 = vmax.f32 %v3769_v41, 0.0  ;;  %v4877_v45 = vadd.f32 %v4876_v43, %v4875_v9  ;;  %v4878_v46 = vpop.f32.mrb[178].mxu1  ;;  %v3776_v13 = vpop.f32.mrb[182].mxu0 }
 0x260   :  { %v4879_v61 = vpop.f32.mrb[179].mxu1  ;;  %v4939_v11 = vpop.f32.mrb[183].mxu0 }
 0x261   :  { %3803 = vst [vmem:[%s6832_s3 + $0x58] sm:$0xff] %v3790_v24  ;;  %v3686_v8 = vadd.f32 %v4877_v45, %v6775_v38 }
 0x263   :  { %v3774_v18 = vadd.f32 %v3773_v42, %v3686_v8 }
 0x265   :  { %v3791_v49 = vmax.f32 %v3774_v18, 0.0 }
 0x267   :  { %3804 = vst [vmem:[%s6832_s3 + $0x60] sm:$0x3] %v3791_v49 }

// kernel: vqvae_forward.17
= control target key start
LH: loop header
LB: loop body
LE: loop exit
PB: predicated region body
PF: predicated region fallthrough
CT: control target
= control target key end

     0   :  { %vm1884_vm0 = vmmov 0   ;;  %s2297_s0 = inlined_call_operand.vmem [shape: bf16[8,1600], index: 0, kind: input, shape index: {}]   ;;  %s2298_s1 = inlined_call_operand.vmem [shape: bf16[1600,64], index: 1, kind: input, shape index: {}]   ;;  %s2299_s2 = inlined_call_operand.vmem [shape: f32[1,64], index: 2, kind: input, shape index: {}]   ;;  %s2300_s3 = inlined_call_operand.vmem [shape: f32[64,128], index: 3, kind: input, shape index: {}]   ;;  %s2301_s4 = inlined_call_operand.hbm [shape: f32[8,64], index: 4, kind: output, shape index: {0}]   ;;  %s2302_s5 = inlined_call_operand.vmem [shape: s32[8,1], index: 5, kind: output, shape index: {1}]   ;;  %s2303_s6 = inlined_call_operand.vmem [shape: f32[8,64], index: 6, kind: output, shape index: {2}]  }
   0x1   :  { %v1746_v0 = vld [vmem:[%s2298_s1 + $0x40] sm:$0xff]   ;;  %v1750_v4 = vld [vmem:[%s2298_s1 + $0x48] sm:$0xff]   ;;  %v1754_v8 = vld [vmem:[%s2298_s1 + $0x50] sm:$0xff]  }
   0x2   :  { %v1747_v1 = vld [vmem:[%s2298_s1 + $0xc0] sm:$0xff]   ;;  %1512 = vmatprep.subr.bf16.mxu0 %v1746_v0  ;;  %v1751_v5 = vld [vmem:[%s2298_s1 + $0xc8] sm:$0xff]   ;;  %v1755_v9 = vld [vmem:[%s2298_s1 + $0xd0] sm:$0xff]  }
   0x3   :  { %v1748_v2 = vld [vmem:[%s2298_s1] sm:$0xff]   ;;  %1534 = vmatprep.subr.bf16.mxu1 %v1747_v1  ;;  %v1752_v6 = vld [vmem:[%s2298_s1 + $0x8] sm:$0xff]   ;;  %v1756_v10 = vld [vmem:[%s2298_s1 + $0x10] sm:$0xff]  }
   0x4   :  { %v1749_v3 = vld [vmem:[%s2298_s1 + $0x80] sm:$0xff]   ;;  %1513 = vmatpush3.bf16.msra.mxu0 %v1748_v2  ;;  %v1753_v7 = vld [vmem:[%s2298_s1 + $0x88] sm:$0xff]   ;;  %v1757_v11 = vld [vmem:[%s2298_s1 + $0x90] sm:$0xff]  }
   0x5   :  { %1535 = vmatpush3.bf16.msra.mxu1 %v1749_v3  ;;  %1514 = vmatprep.subr.bf16.mxu0 %v1750_v4  ;;  %v1758_v12 = vld [vmem:[%s2298_s1 + $0x58] sm:$0xff]   ;;  %v1762_v16 = vld [vmem:[%s2298_s1 + $0x60] sm:$0xff]   ;;  %v1766_v20 = vld [vmem:[%s2298_s1 + $0x68] sm:$0xff]  }
   0x6   :  { %1536 = vmatprep.subr.bf16.mxu1 %v1751_v5  ;;  %v1759_v13 = vld [vmem:[%s2298_s1 + $0xd8] sm:$0xff]   ;;  %v1763_v17 = vld [vmem:[%s2298_s1 + $0xe0] sm:$0xff]   ;;  %v1767_v21 = vld [vmem:[%s2298_s1 + $0xe8] sm:$0xff]  }
   0x7   :  { %v1760_v14 = vld [vmem:[%s2298_s1 + $0x18] sm:$0xff]   ;;  %v1764_v18 = vld [vmem:[%s2298_s1 + $0x20] sm:$0xff]   ;;  %v1768_v22 = vld [vmem:[%s2298_s1 + $0x28] sm:$0xff]  }
   0x8   :  { %1515 = vmatpush3.bf16.msra.mxu0 %v1752_v6  ;;  %v1761_v15 = vld [vmem:[%s2298_s1 + $0x98] sm:$0xff]   ;;  %v1765_v19 = vld [vmem:[%s2298_s1 + $0xa0] sm:$0xff]   ;;  %v1769_v23 = vld [vmem:[%s2298_s1 + $0xa8] sm:$0xff]  }
   0x9   :  { %1537 = vmatpush3.bf16.msra.mxu1 %v1753_v7  ;;  %1516 = vmatprep.subr.bf16.mxu0 %v1754_v8  ;;  %v1770_v24 = vld [vmem:[%s2298_s1 + $0x70] sm:$0xff]   ;;  %v1774_v28 = vld [vmem:[%s2298_s1 + $0x78] sm:$0xff]   ;;  %v22_v32 = vld [vmem:[%s2297_s0] sm:$0xff] }
   0xa   :  { %1538 = vmatprep.subr.bf16.mxu1 %v1755_v9  ;;  %v1771_v25 = vld [vmem:[%s2298_s1 + $0xf0] sm:$0xff]   ;;  %v1775_v29 = vld [vmem:[%s2298_s1 + $0xf8] sm:$0xff]   ;;  %v23_v33 = vld [vmem:[%s2297_s0 + $0x8] sm:$0xff]  ;;  %v1395_v34 = vcombine.low %v22_v32, %v22_v32  ;;  %v1396_v35 = vcombine.high %v22_v32, %v22_v32 }
   0xb   :  { %v1772_v26 = vld [vmem:[%s2298_s1 + $0x30] sm:$0xff]   ;;  %v1776_v30 = vld [vmem:[%s2298_s1 + $0x38] sm:$0xff]   ;;  %v1397_v36 = vcombine.low %v23_v33, %v23_v33  ;;  %v1398_v37 = vcombine.high %v23_v33, %v23_v33  ;;  %v1782_v38 = vld [vmem:[%s2298_s1 + $0x140] sm:$0xff]  }
   0xc   :  { %1517 = vmatpush3.bf16.msra.mxu0 %v1756_v10  ;;  %v1773_v27 = vld [vmem:[%s2298_s1 + $0xb0] sm:$0xff]   ;;  %v1777_v31 = vld [vmem:[%s2298_s1 + $0xb8] sm:$0xff]   ;;  %v1783_v39 = vld [vmem:[%s2298_s1 + $0x1c0] sm:$0xff]   ;;  %917 = vmatprep.mubr.bf16.mxu0 %v1396_v35 }
   0xd   :  { %1539 = vmatpush3.bf16.msra.mxu1 %v1757_v11  ;;  %1518 = vmatprep.subr.bf16.mxu0 %v1758_v12  ;;  %v1784_v40 = vld [vmem:[%s2298_s1 + $0x100] sm:$0xff]   ;;  %v1786_v42 = vld [vmem:[%s2298_s1 + $0x148] sm:$0xff]   ;;  %v1790_v46 = vld [vmem:[%s2298_s1 + $0x150] sm:$0xff]  }
   0xe   :  { %1540 = vmatprep.subr.bf16.mxu1 %v1759_v13  ;;  %957 = vmatprep.mubr.bf16.mxu1 %v1398_v37  ;;  %v1785_v41 = vld [vmem:[%s2298_s1 + $0x180] sm:$0xff]   ;;  %v1787_v43 = vld [vmem:[%s2298_s1 + $0x1c8] sm:$0xff]   ;;  %v1791_v47 = vld [vmem:[%s2298_s1 + $0x1d0] sm:$0xff]  }
   0xf   :  { %v1788_v44 = vld [vmem:[%s2298_s1 + $0x108] sm:$0xff]   ;;  %v1792_v48 = vld [vmem:[%s2298_s1 + $0x110] sm:$0xff]   ;;  %v1794_v50 = vld [vmem:[%s2298_s1 + $0x158] sm:$0xff]  }
  0x10   :  { %1519 = vmatpush3.bf16.msra.mxu0 %v1760_v14  ;;  %v1789_v45 = vld [vmem:[%s2298_s1 + $0x188] sm:$0xff]   ;;  %v1793_v49 = vld [vmem:[%s2298_s1 + $0x190] sm:$0xff]   ;;  %v1795_v51 = vld [vmem:[%s2298_s1 + $0x1d8] sm:$0xff]  }
  0x11   :  { %1541 = vmatpush3.bf16.msra.mxu1 %v1761_v15  ;;  %1520 = vmatprep.subr.bf16.mxu0 %v1762_v16  ;;  %v1796_v52 = vld [vmem:[%s2298_s1 + $0x118] sm:$0xff]   ;;  %v1798_v54 = vld [vmem:[%s2298_s1 + $0x160] sm:$0xff]   ;;  %v1802_v58 = vld [vmem:[%s2298_s1 + $0x168] sm:$0xff]  }
  0x12   :  { %1542 = vmatprep.subr.bf16.mxu1 %v1763_v17  ;;  %v1797_v53 = vld [vmem:[%s2298_s1 + $0x198] sm:$0xff]   ;;  %v1799_v55 = vld [vmem:[%s2298_s1 + $0x1e0] sm:$0xff]   ;;  %v1803_v59 = vld [vmem:[%s2298_s1 + $0x1e8] sm:$0xff]  }
  0x13   :  { %v1800_v56 = vld [vmem:[%s2298_s1 + $0x120] sm:$0xff]   ;;  %v1804_v60 = vld [vmem:[%s2298_s1 + $0x128] sm:$0xff]   ;;  %v1806_v62 = vld [vmem:[%s2298_s1 + $0x170] sm:$0xff]  }
  0x14   :  { %1521 = vmatpush3.bf16.msra.mxu0 %v1764_v18  ;;  %v1801_v57 = vld [vmem:[%s2298_s1 + $0x1a0] sm:$0xff]   ;;  %v1805_v61 = vld [vmem:[%s2298_s1 + $0x1a8] sm:$0xff]   ;;  %v1807_v63 = vld [vmem:[%s2298_s1 + $0x1f0] sm:$0xff]  }
  0x15   :  { %1543 = vmatpush3.bf16.msra.mxu1 %v1765_v19  ;;  %1522 = vmatprep.subr.bf16.mxu0 %v1766_v20  ;;  %v1808_v0 = vld [vmem:[%s2298_s1 + $0x130] sm:$0xff]   ;;  %v1810_v2 = vld [vmem:[%s2298_s1 + $0x178] sm:$0xff]   ;;  %v1818_v12 = vld [vmem:[%s2298_s1 + $0x240] sm:$0xff]  }
  0x16   :  { %1544 = vmatprep.subr.bf16.mxu1 %v1767_v21  ;;  %v1809_v1 = vld [vmem:[%s2298_s1 + $0x1b0] sm:$0xff]   ;;  %v1811_v3 = vld [vmem:[%s2298_s1 + $0x1f8] sm:$0xff]   ;;  %v1819_v13 = vld [vmem:[%s2298_s1 + $0x2c0] sm:$0xff]  }
  0x17   :  { %v1812_v4 = vld [vmem:[%s2298_s1 + $0x138] sm:$0xff]   ;;  %v24_v6 = vld [vmem:[%s2297_s0 + $0x10] sm:$0xff]  ;;  %v1820_v14 = vld [vmem:[%s2298_s1 + $0x200] sm:$0xff]  }
  0x18   :  { %1523 = vmatpush3.bf16.msra.mxu0 %v1768_v22  ;;  %v1813_v5 = vld [vmem:[%s2298_s1 + $0x1b8] sm:$0xff]   ;;  %v1399_v7 = vcombine.low %v24_v6, %v24_v6  ;;  %v1400_v8 = vcombine.high %v24_v6, %v24_v6  ;;  %v1821_v15 = vld [vmem:[%s2298_s1 + $0x280] sm:$0xff]   ;;  %v1822_v16 = vld [vmem:[%s2298_s1 + $0x248] sm:$0xff]  }
  0x19   :  { %1545 = vmatpush3.bf16.msra.mxu1 %v1769_v23  ;;  %1524 = vmatprep.subr.bf16.mxu0 %v1770_v24  ;;  %v25_v9 = vld [vmem:[%s2297_s0 + $0x18] sm:$0xff]  ;;  %v1823_v17 = vld [vmem:[%s2298_s1 + $0x2c8] sm:$0xff]   ;;  %v1826_v20 = vld [vmem:[%s2298_s1 + $0x250] sm:$0xff]  }
  0x1a   :  { %1546 = vmatprep.subr.bf16.mxu1 %v1771_v25  ;;  %v1401_v10 = vcombine.low %v25_v9, %v25_v9  ;;  %v1402_v11 = vcombine.high %v25_v9, %v25_v9  ;;  %v1824_v18 = vld [vmem:[%s2298_s1 + $0x208] sm:$0xff]   ;;  %v1827_v21 = vld [vmem:[%s2298_s1 + $0x2d0] sm:$0xff]   ;;  %v1830_v24 = vld [vmem:[%s2298_s1 + $0x258] sm:$0xff]  }
  0x1b   :  { %v1825_v19 = vld [vmem:[%s2298_s1 + $0x288] sm:$0xff]   ;;  %v1828_v22 = vld [vmem:[%s2298_s1 + $0x210] sm:$0xff]   ;;  %v1831_v25 = vld [vmem:[%s2298_s1 + $0x2d8] sm:$0xff]  }
  0x1c   :  { %1525 = vmatpush3.bf16.msra.mxu0 %v1772_v26  ;;  %v1829_v23 = vld [vmem:[%s2298_s1 + $0x290] sm:$0xff]   ;;  %v1832_v26 = vld [vmem:[%s2298_s1 + $0x218] sm:$0xff]   ;;  %v1838_v32 = vld [vmem:[%s2298_s1 + $0x268] sm:$0xff]  }
  0x1d   :  { %1547 = vmatpush3.bf16.msra.mxu1 %v1773_v27  ;;  %1526 = vmatprep.subr.bf16.mxu0 %v1774_v28  ;;  %v1833_v27 = vld [vmem:[%s2298_s1 + $0x298] sm:$0xff]   ;;  %v1834_v28 = vld [vmem:[%s2298_s1 + $0x260] sm:$0xff]   ;;  %v1839_v33 = vld [vmem:[%s2298_s1 + $0x2e8] sm:$0xff]  }
  0x1e   :  { %1548 = vmatprep.subr.bf16.mxu1 %v1775_v29  ;;  %v1835_v29 = vld [vmem:[%s2298_s1 + $0x2e0] sm:$0xff]   ;;  %v1841_v35 = vld [vmem:[%s2298_s1 + $0x2a8] sm:$0xff]   ;;  %v1843_v37 = vld [vmem:[%s2298_s1 + $0x2f0] sm:$0xff]  }
  0x20   :  { %1527 = vmatpush3.bf16.msra.mxu0 %v1776_v30  ;;  %v1836_v30 = vld [vmem:[%s2298_s1 + $0x220] sm:$0xff]  }
  0x21   :  { %1549 = vmatpush3.bf16.msra.mxu1 %v1777_v31  ;;  %1556 = vmatprep.subr.bf16.mxu0 %v1782_v38  ;;  %v1837_v31 = vld [vmem:[%s2298_s1 + $0x2a0] sm:$0xff]   ;;  %v1844_v38 = vld [vmem:[%s2298_s1 + $0x230] sm:$0xff]  }
  0x22   :  { %1578 = vmatprep.subr.bf16.mxu1 %v1783_v39  ;;  %v1845_v39 = vld [vmem:[%s2298_s1 + $0x2b0] sm:$0xff]  }
  0x23   :  { %918 = vmatmul.mubr.bf16.vlgmr.msra.gmra.mrb[0].mxu0 %v1395_v34  ;;  %v1840_v34 = vld [vmem:[%s2298_s1 + $0x228] sm:$0xff]  }
  0x24   :  { %958 = vmatmul.mubr.bf16.vlgmr.msra.gmra.mrb[0].mxu1 %v1397_v36  ;;  %1557 = vmatpush3.bf16.msra.mxu0 %v1784_v40  ;;  %v1842_v36 = vld [vmem:[%s2298_s1 + $0x270] sm:$0xff]   ;;  %v1846_v40 = vld [vmem:[%s2298_s1 + $0x278] sm:$0xff]  }
  0x25   :  { %1579 = vmatpush3.bf16.msra.mxu1 %v1785_v41  ;;  %1558 = vmatprep.subr.bf16.mxu0 %v1786_v42  ;;  %v1847_v41 = vld [vmem:[%s2298_s1 + $0x2f8] sm:$0xff]  }
  0x26   :  { %1580 = vmatprep.subr.bf16.mxu1 %v1787_v43  ;;  %997 = vmatprep.mubr.bf16.mxu0 %v1400_v8  ;;  %v1848_v42 = vld [vmem:[%s2298_s1 + $0x238] sm:$0xff]  }
  0x27   :  { %1037 = vmatprep.mubr.bf16.mxu1 %v1402_v11  ;;  %v1849_v43 = vld [vmem:[%s2298_s1 + $0x2b8] sm:$0xff]  }
  0x28   :  { %1559 = vmatpush3.bf16.msra.mxu0 %v1788_v44  ;;  %v26_v44 = vld [vmem:[%s2297_s0 + $0x20] sm:$0xff] }
  0x29   :  { %1581 = vmatpush3.bf16.msra.mxu1 %v1789_v45  ;;  %1560 = vmatprep.subr.bf16.mxu0 %v1790_v46  ;;  %v27_v45 = vld [vmem:[%s2297_s0 + $0x28] sm:$0xff]  ;;  %v1403_v46 = vcombine.low %v26_v44, %v26_v44 }
  0x2a   :  { %1582 = vmatprep.subr.bf16.mxu1 %v1791_v47  ;;  %v1404_v47 = vcombine.high %v26_v44, %v26_v44 }
  0x2c   :  { %1561 = vmatpush3.bf16.msra.mxu0 %v1792_v48  ;;  %v1405_v48 = vcombine.low %v27_v45, %v27_v45 }
  0x2d   :  { %1583 = vmatpush3.bf16.msra.mxu1 %v1793_v49  ;;  %1562 = vmatprep.subr.bf16.mxu0 %v1794_v50  ;;  %v1406_v49 = vcombine.high %v27_v45, %v27_v45  ;;  %v1854_v50 = vld [vmem:[%s2298_s1 + $0x300] sm:$0xff]  }
  0x2e   :  { %1584 = vmatprep.subr.bf16.mxu1 %v1795_v51  ;;  %v1883_v51 = vmov 0.0  }
  0x30   :  { %1563 = vmatpush3.bf16.msra.mxu0 %v1796_v52 }
  0x31   :  { %1585 = vmatpush3.bf16.msra.mxu1 %v1797_v53  ;;  %1564 = vmatprep.subr.bf16.mxu0 %v1798_v54 }
  0x32   :  { %1586 = vmatprep.subr.bf16.mxu1 %v1799_v55 }
  0x34   :  { %1565 = vmatpush3.bf16.msra.mxu0 %v1800_v56 }
  0x35   :  { %1587 = vmatpush3.bf16.msra.mxu1 %v1801_v57  ;;  %1566 = vmatprep.subr.bf16.mxu0 %v1802_v58 }
  0x36   :  { %1588 = vmatprep.subr.bf16.mxu1 %v1803_v59 }
  0x38   :  { %1567 = vmatpush3.bf16.msra.mxu0 %v1804_v60 }
  0x39   :  { %1589 = vmatpush3.bf16.msra.mxu1 %v1805_v61  ;;  %1568 = vmatprep.subr.bf16.mxu0 %v1806_v62 }
  0x3a   :  { %1590 = vmatprep.subr.bf16.mxu1 %v1807_v63 }
  0x3c   :  { %1569 = vmatpush3.bf16.msra.mxu0 %v1808_v0 }
  0x3d   :  { %1591 = vmatpush3.bf16.msra.mxu1 %v1809_v1  ;;  %1570 = vmatprep.subr.bf16.mxu0 %v1810_v2 }
  0x3e   :  { %1592 = vmatprep.subr.bf16.mxu1 %v1811_v3 }
  0x40   :  { %1571 = vmatpush3.bf16.msra.mxu0 %v1812_v4 }
  0x41   :  { %1593 = vmatpush3.bf16.msra.mxu1 %v1813_v5  ;;  %1600 = vmatprep.subr.bf16.mxu0 %v1818_v12 }
  0x42   :  { %1622 = vmatprep.subr.bf16.mxu1 %v1819_v13 }
  0x43   :  { %998 = vmatmul.mubr.bf16.vlgmr.msra.gmra.mrb[4].mxu0 %v1399_v7 }
  0x44   :  { %1038 = vmatmul.mubr.bf16.vlgmr.msra.gmra.mrb[4].mxu1 %v1401_v10  ;;  %1601 = vmatpush3.bf16.msra.mxu0 %v1820_v14 }
  0x45   :  { %1623 = vmatpush3.bf16.msra.mxu1 %v1821_v15  ;;  %1602 = vmatprep.subr.bf16.mxu0 %v1822_v16 }
  0x46   :  { %1624 = vmatprep.subr.bf16.mxu1 %v1823_v17  ;;  %1077 = vmatprep.mubr.bf16.mxu0 %v1404_v47 }
  0x47   :  { %1117 = vmatprep.mubr.bf16.mxu1 %v1406_v49 }
  0x48   :  { %1603 = vmatpush3.bf16.msra.mxu0 %v1824_v18 }
  0x49   :  { %1625 = vmatpush3.bf16.msra.mxu1 %v1825_v19  ;;  %1604 = vmatprep.subr.bf16.mxu0 %v1826_v20 }
  0x4a   :  { %1626 = vmatprep.subr.bf16.mxu1 %v1827_v21 }
  0x4c   :  { %1605 = vmatpush3.bf16.msra.mxu0 %v1828_v22 }
  0x4d   :  { %1627 = vmatpush3.bf16.msra.mxu1 %v1829_v23  ;;  %1606 = vmatprep.subr.bf16.mxu0 %v1830_v24 }
  0x4e   :  { %1628 = vmatprep.subr.bf16.mxu1 %v1831_v25 }
  0x50   :  { %1607 = vmatpush3.bf16.msra.mxu0 %v1832_v26 }
  0x51   :  { %1629 = vmatpush3.bf16.msra.mxu1 %v1833_v27  ;;  %1608 = vmatprep.subr.bf16.mxu0 %v1834_v28 }
  0x52   :  { %1630 = vmatprep.subr.bf16.mxu1 %v1835_v29 }
  0x54   :  { %1609 = vmatpush3.bf16.msra.mxu0 %v1836_v30 }
  0x55   :  { %1631 = vmatpush3.bf16.msra.mxu1 %v1837_v31  ;;  %1610 = vmatprep.subr.bf16.mxu0 %v1838_v32 }
  0x56   :  { %1632 = vmatprep.subr.bf16.mxu1 %v1839_v33 }
  0x58   :  { %1611 = vmatpush3.bf16.msra.mxu0 %v1840_v34 }
  0x59   :  { %1633 = vmatpush3.bf16.msra.mxu1 %v1841_v35  ;;  %1612 = vmatprep.subr.bf16.mxu0 %v1842_v36 }
  0x5a   :  { %1634 = vmatprep.subr.bf16.mxu1 %v1843_v37 }
  0x5c   :  { %1613 = vmatpush3.bf16.msra.mxu0 %v1844_v38 }
  0x5d   :  { %1635 = vmatpush3.bf16.msra.mxu1 %v1845_v39  ;;  %1614 = vmatprep.subr.bf16.mxu0 %v1846_v40 }
  0x5e   :  { %1636 = vmatprep.subr.bf16.mxu1 %v1847_v41 }
  0x60   :  { %1615 = vmatpush3.bf16.msra.mxu0 %v1848_v42 }
  0x61   :  { %1637 = vmatpush3.bf16.msra.mxu1 %v1849_v43 }
  0x62   :  { %1667 = vmatprep.subr.bf16.mxu1 %v1883_v51 }
  0x63   :  { %1078 = vmatmul.mubr.bf16.vlgmr.msra.gmra.mrb[8].mxu0 %v1403_v46 }
  0x64   :  { %1118 = vmatmul.mubr.bf16.vlgmr.msra.gmra.mrb[8].mxu1 %v1405_v48  ;;  %1714 = vmatprep.mubr.msk.f32.mxu0 %vm1884_vm0, %v1883_v51 }
  0x65   :  { %12 = vsyncpa [#allocation3], 0  ;;  %1668 = vmatpush3.bf16.msra.mxu1 %v1854_v50  ;;  %v1855_v52 = vld [vmem:[%s2298_s1 + $0x308] sm:$0xff]   ;;  %1675 = vmatprep.mubr.msk.bf16.mxu1 %vm1884_vm0, %v1883_v51  ;;  %v1856_v53 = vld [vmem:[%s2298_s1 + $0x310] sm:$0xff]   ;;  %vm881_vm1 = vcmask 523264   ;;  %v1885_v59 = vmov 0.0|0.0  }
  0x66   :  { %1669 = vmatprep.subr.bf16.mxu1 %v1883_v51  ;;  %v1857_v54 = vld [vmem:[%s2298_s1 + $0x318] sm:$0xff]   ;;  %v1858_v55 = vld [vmem:[%s2297_s0 + $0x30] ss:$0 sps:$4 sm:$0xff]   ;;  %v1166_v56 = vld [vmem:[%s2300_s3] sm:$0xff]  ;;  %1729 = vmatprep.subr.bf16.mxu0 %v1885_v59  ;;  %vm1369_vm4 = vcmask 7168   ;;  %s1887_s11 = smov [#allocation2]  }
  0x67   :  { %v1167_v57 = vld [vmem:[%s2300_s3 + $0x8] sm:$0xff]  ;;  %v1168_v58 = vld [vmem:[%s2300_s3 + $0x10] sm:$0xff]  ;;  %v1178_v60 = vmul.f32 %v1166_v56, %v1166_v56  ;;  %v1169_v63 = vld [vmem:[%s2300_s3 + $0x18] sm:$0xff]  ;;  %s1378_s12 = sshll.u32 %s1887_s11, 4  ;;  %s1379_s12 = int_to_ptr.vmem [resolvable:$true] %s1378_s12 }
  0x68   :  { %v1179_v61 = vmul.f32 %v1167_v57, %v1167_v57  ;;  %v1718_v62 = vpack.c.bf16 %v1167_v57, %v1166_v56  ;;  %v1180_v0 = vmul.f32 %v1168_v58, %v1168_v58  ;;  %v1181_v2 = vmul.f32 %v1169_v63, %v1169_v63  ;;  %v1170_v4 = vld [vmem:[%s2300_s3 + $0x20] sm:$0xff]  ;;  %v1171_v5 = vld [vmem:[%s2300_s3 + $0x28] sm:$0xff]  ;;  %v1172_v13 = vld [vmem:[%s2300_s3 + $0x30] sm:$0xff]  ;;  %s1859_s13 = scalar_lea.vmem %s1379_s12, 128  ;;  %p1864_p1 = scmp.lt.s32.totalorder %s1379_s12, %s1379_s12 }
  0x69   :  { %1670 = vmatpush3.bf16.msra.mxu1 %v1855_v52  ;;  %v1721_v3 = vpack.c.bf16 %v1169_v63, %v1168_v58  ;;  %v1182_v7 = vmul.f32 %v1170_v4, %v1170_v4  ;;  %v1183_v9 = vmul.f32 %v1171_v5, %v1171_v5  ;;  %v1724_v10 = vpack.c.bf16 %v1171_v5, %v1170_v4  ;;  %v1173_v14 = vld [vmem:[%s2300_s3 + $0x38] sm:$0xff]  ;;  %v1394_v18 = vld [vmem:[%s2299_s2] ss:$0 sm:$0xff]  ;;  %p1860_p0 = scmp.ne.s32.totalorder %s1379_s12, %s1859_s13  ;;  %p1865_p2 = scmp.lt.s32.totalorder %s1859_s13, %s1859_s13 }
  0x6a   :  { %1671 = vmatprep.subr.bf16.mxu1 %v1883_v51  ;;  %v1186_v1 = vadd.f32 %v1179_v61, %v1178_v60  ;;  %1731 = vmatpush3.bf16.xpose.msra.mxu0 %v1718_v62  ;;  %v1727_v15 = vpack.c.bf16 %v1173_v14, %v1172_v13  ;;  %v1184_v61 = vmul.f32 %v1172_v13, %v1172_v13 }
  0x6b   :  { %1732 = vmatprep.subr.bf16.mxu0 %v1885_v59  ;;  %p1866_p3 = por %p1865_p2, %p1864_p1 }
  0x6c   :  { %v1187_v6 = vadd.f32 %v1186_v1, %v1180_v0 }
  0x6d   :  { %1672 = vmatpush3.bf16.msra.mxu1 %v1856_v53  ;;  %p1867_p4 = pnand %p1866_p3, %p1860_p0 }
  0x6e   :  { %1673 = vmatprep.subr.bf16.mxu1 %v1883_v51  ;;  %v1188_v8 = vadd.f32 %v1187_v6, %v1181_v2 }
  0x70   :  { %v1189_v11 = vadd.f32 %v1188_v8, %v1182_v7 }
  0x71   :  { %1674 = vmatpush3.bf16.msra.mxu1 %v1857_v54 }
  0x72   :  { %1717 = vmatprep.subr.bf16.mxu1 %v1885_v59  ;;  %v1190_v12 = vadd.f32 %v1189_v11, %v1183_v9  ;;  %1734 = vmatpush3.bf16.xpose.msra.mxu0 %v1721_v3 }
  0x73   :  { %1735 = vmatprep.subr.bf16.mxu0 %v1885_v59 }
  0x74   :  { %1676 = vmatmul.mubr.msk.bf16.vlgmr.msra.gmra.mrb[12].mxu1 %vm881_vm1, %v1858_v55  ;;  %v1191_v63 = vadd.f32 %v1190_v12, %v1184_v61 }
  0x75   :  { %1695 = vmatprep.mubr.msk.f32.mxu1 %vm1884_vm0, %v1883_v51  ;;  %1719 = vmatpush3.bf16.msra.mxu1 %v1718_v62  ;;  %v1185_v62 = vmul.f32 %v1173_v14, %v1173_v14 }
  0x76   :  { %1720 = vmatprep.subr.bf16.mxu1 %v1885_v59 }
  0x77   :  { %v1192_v0 = vadd.f32 %v1191_v63, %v1185_v62 }
  0x79   :  { %1722 = vmatpush3.bf16.msra.mxu1 %v1721_v3  ;;  %v1193_v1 = vrot.slane %v1192_v0, 4 }
  0x7a   :  { %1723 = vmatprep.subr.bf16.mxu1 %v1885_v59  ;;  %1737 = vmatpush3.bf16.xpose.msra.mxu0 %v1724_v10 }
  0x7b   :  { %1738 = vmatprep.subr.bf16.mxu0 %v1885_v59  ;;  %v1194_v2 = vadd.f32 %v1193_v1, %v1192_v0 }
  0x7d   :  { %1725 = vmatpush3.bf16.msra.mxu1 %v1724_v10  ;;  %v1195_v3 = vrot.slane %v1194_v2, 2 }
  0x7e   :  { %1726 = vmatprep.subr.bf16.mxu1 %v1885_v59 }
  0x7f   :  { %v1196_v4 = vadd.f32 %v1195_v3, %v1194_v2 }
  0x81   :  { %1728 = vmatpush3.bf16.msra.mxu1 %v1727_v15  ;;  %v1197_v5 = vrot.slane %v1196_v4, 1 }
  0x82   :  { %1740 = vmatpush3.bf16.xpose.msra.mxu0 %v1727_v15 }
  0x83   :  { %v1198_v9 = vadd.f32 %v1197_v5, %v1196_v4 }
  0xf6   :  { %v1528_v16 = vpop.f32.mrb[0].mxu0 }
  0xf7   :  { %v1550_v17 = vpop.f32.mrb[0].mxu1  ;;  %v1529_v19 = vpop.f32.mrb[1].mxu0 }
  0xf8   :  { %v1551_v20 = vpop.f32.mrb[1].mxu1  ;;  %v1530_v21 = vadd.f32 %v1529_v19, %v1528_v16  ;;  %v1531_v24 = vpop.f32.mrb[2].mxu0  ;;  %v1277_v16 = vlaneseq }
  0xf9   :  { %v1552_v22 = vadd.f32 %v1551_v20, %v1550_v17  ;;  %v1553_v23 = vpop.f32.mrb[2].mxu1  ;;  %v1532_v26 = vpop.f32.mrb[3].mxu0 }
  0xfa   :  { %v1554_v25 = vpop.f32.mrb[3].mxu1  ;;  %v920_v27 = vadd.f32 %v1530_v21, %v1394_v18  ;;  %v1278_v17 = vand.u32 127, %v1277_v16 }
  0xfc   :  { %v960_v28 = vadd.f32 %v1552_v22, %v920_v27 }
 0x116   :  { %v1572_v29 = vpop.f32.mrb[4].mxu0 }
 0x117   :  { %v1594_v30 = vpop.f32.mrb[4].mxu1  ;;  %v1573_v31 = vpop.f32.mrb[5].mxu0 }
 0x118   :  { %v1595_v32 = vpop.f32.mrb[5].mxu1  ;;  %v1574_v33 = vadd.f32 %v1573_v31, %v1572_v29  ;;  %v1575_v36 = vpop.f32.mrb[6].mxu0 }
 0x119   :  { %v1596_v34 = vadd.f32 %v1595_v32, %v1594_v30  ;;  %v1597_v35 = vpop.f32.mrb[6].mxu1  ;;  %v1576_v38 = vpop.f32.mrb[7].mxu0 }
 0x11a   :  { %v1598_v37 = vpop.f32.mrb[7].mxu1  ;;  %v1000_v39 = vadd.f32 %v1574_v33, %v960_v28  ;;  %v1886_v28 = vmov 1.0  }
 0x11c   :  { %v1040_v40 = vadd.f32 %v1596_v34, %v1000_v39 }
 0x136   :  { %v1616_v41 = vpop.f32.mrb[8].mxu0 }
 0x137   :  { %v1638_v42 = vpop.f32.mrb[8].mxu1  ;;  %v1617_v43 = vpop.f32.mrb[9].mxu0 }
 0x138   :  { %v1618_v44 = vadd.f32 %v1617_v43, %v1616_v41  ;;  %v1639_v45 = vpop.f32.mrb[9].mxu1  ;;  %v1619_v46 = vpop.f32.mrb[10].mxu0 }
 0x139   :  { %v1640_v47 = vadd.f32 %v1639_v45, %v1638_v42  ;;  %v1641_v48 = vpop.f32.mrb[10].mxu1  ;;  %v1620_v49 = vpop.f32.mrb[11].mxu0 }
 0x13a   :  { %v1080_v50 = vadd.f32 %v1618_v44, %v1040_v40  ;;  %v1642_v51 = vpop.f32.mrb[11].mxu1 }
 0x13c   :  { %v1120_v52 = vadd.f32 %v1640_v47, %v1080_v50 }
 0x147   :  { %v1159_v53 = vpop.f32.mrb[12].mxu1 }
 0x148   :  { %v1160_v54 = vadd.f32 %v1159_v53, %v1120_v52  ;;  %v1677_v55 = vpop.f32.mrb[13].mxu1 }
 0x149   :  { %v1162_v56 = vpop.f32.mrb[14].mxu1 }
 0x14a   :  { %v1165_v57 = vmax.f32 %v1160_v54, 0.0  ;;  %v1678_v58 = vpop.f32.mrb[15].mxu1 }
 0x14c   :  { %1368 = vst.msk [vmem:[#allocation2] sm:$0xff] %vm881_vm1, %v1165_v57  ;;  %1696 = vmatmul.mubr.msk.f32.vlgmr.msra.gmra.mrb[16].mxu1 %vm881_vm1, %v1165_v57  ;;  %v1174_v59 = vmul.f32 %v1165_v57, %v1165_v57 }
 0x14e   :  { %v1175_v60 = vsel %vm881_vm1, %v1174_v59, 0.0 }
 0x14f   :  { %1176 = vadd.xlane.f32.xlu0 %v1175_v60 }
 0x1dc   :  { %v1177_v10 = vpop.xlane.xlu0 %1176 }
 0x21f   :  { %v1268_v6 = vpop.f32.mrb[16].mxu1 }
 0x220   :  { %v1272_v7 = vmul.f32 2.0, %v1268_v6  ;;  %v1697_v8 = vpop.f32.mrb[17].mxu1 }
 0x222   :  { %v1273_v11 = vsub.f32 %v1177_v10, %v1272_v7 }
 0x224   :  { %v1274_v15 = vadd.f32 %v1273_v11, %v1198_v9 }
 0x226   :  { %1275 = vmin.xlane.f32.xlu0 %v1274_v15 }
 0x2b3   :  { %v1276_v18 = vpop.xlane.xlu0 %1275 }
 0x2b4   :  { %vm1279_vm2 = vcmp.le.f32.partialorder %v1274_v15, %v1276_v18 }
 0x2b5   :  { %v1280_v13 = vsel %vm1279_vm2, %v1278_v17, 128 }
 0x2b6   :  { %v1282_v12 = vshra.s32 %v1280_v13, 16  ;;  %v1281_v19 = vand.u32 65535, %v1280_v13 }
 0x2b8   :  { %v1284_v14 = vcvt.s32.f32 %v1282_v12  ;;  %v1283_v21 = vcvt.s32.f32 %v1281_v19 }
 0x2ba   :  { %1285 = vmin.xlane.f32.xlu1 %v1284_v14 }
 0x347   :  { %v1286_v20 = vpop.xlane.xlu1 %1285 }
 0x348   :  { %vm1287_vm3 = vcmp.eq.f32.partialorder %v1284_v14, %v1286_v20  ;;  %v1292_v23 = vcvt.f32.s32 %v1286_v20 }
 0x349   :  { %v1288_v22 = vsel %vm1287_vm3, %v1283_v21, inf }
 0x34a   :  { %1289 = vmin.xlane.f32.xlu1 %v1288_v22  ;;  %v1293_v25 = vshll.u32 %v1292_v23, 16 }
 0x3d7   :  { %v1290_v24 = vpop.xlane.xlu1 %1289 }
 0x3d8   :  { %v1291_v26 = vcvt.f32.s32 %v1290_v24 }
 0x3da   :  { %v1294_v27 = vadd.s32 %v1293_v25, %v1291_v26 }
 0x3dc   :  { %vm1295_vm5 = vcmp.eq.s32.totalorder %v1278_v17, %v1294_v27  ;;  %1370 = vst.msk [vmem:[%s2302_s5] sm:$0xff] %vm1369_vm4, %v1294_v27 }
 0x3dd   :  { %1715 = vmatmul.mubr.msk.f32.vlgmr.msra.gmra.mrb[12].mxu0 %vm1295_vm5, %v1886_v28 }
 0x3de   :  { %1870 = shalt.err (!%p1867_p4)
}
 0x3df   :  { %s1871_s16 = scalar_lea.hbm %s2301_s4, 128 }
 0x3e0   :  { %p1872_p5 = scmp.ne.s32.totalorder %s2301_s4, %s1871_s16  ;;  %p1875_p6 = scmp.lt.u32.totalorder %s1871_s16, %s2301_s4 }
 0x3e2   :  { %p1877_p7 = pnand %p1875_p6, %p1872_p5 }
 0x3e4   :  { %1880 = shalt.err (!%p1877_p7)
}
 0x3e5   :  { %1381 = dma.vmem_to_hbm [thread:$0]  %s1379_s12, 128, %s2301_s4, [#allocation3]  }
 0x4b0   :  { %v1364_v29 = vpop.f32.mrb[12].mxu0 }
 0x4b1   :  { %1371 = vst.msk [vmem:[%s2303_s6] sm:$0xff] %vm881_vm1, %v1364_v29  ;;  %v1716_v30 = vpop.f32.mrb[13].mxu0 }
 0x4b2   :  { %1881 = dma.done.wait [#allocation3], 128  }
 0x4b3   :  { %1882 = vsyncadd [#allocation3], 4294967168 }
 0x4b4   :  { %1393 = vsyncpa [#allocation3], 1 }

// kernel: tile.18
= control target key start
LH: loop header
LB: loop body
LE: loop exit
PB: predicated region body
PF: predicated region fallthrough
CT: control target
= control target key end

     0   :  { %s22_s0 = inlined_call_operand.vmem [shape: f32[128], index: 0, kind: input, shape index: {}]   ;;  %s23_s1 = inlined_call_operand.vmem [shape: f32[4,128], index: 1, kind: output, shape index: {}]  }
   0x1   :  { %v4_v0 = vld [vmem:[%s22_s0] ss:$0 sm:$0xff] }
   0x2   :  { %5 = vst [vmem:[%s23_s1] sm:$0xf] %v4_v0 }

// kernel: vqvae_forward.18
= control target key start
LH: loop header
LB: loop body
LE: loop exit
PB: predicated region body
PF: predicated region fallthrough
CT: control target
= control target key end

     0   :  { %vm963_vm0 = vcmask 523264   ;;  %s2295_s1 = inlined_call_operand.vmem [shape: bf16[576,512], index: 1, kind: input, shape index: {}]   ;;  %s2296_s0 = inlined_call_operand.vmem [shape: bf16[32,576], index: 0, kind: input, shape index: {}]   ;;  %s2297_s2 = inlined_call_operand.vmem [shape: f32[1,512], index: 2, kind: input, shape index: {}]   ;;  %s2298_s3 = inlined_call_operand.vmem [shape: f32[32,512], index: 3, kind: output, shape index: {}]  }
   0x1   :  { %v1531_v0 = vld [vmem:[%s2295_s1 + $0x4] ss:$16 sps:$4 sm:$0xff]   ;;  %v1533_v1 = vld [vmem:[%s2295_s1 + $0xc] ss:$16 sps:$4 sm:$0xff]   ;;  %v1535_v2 = vld [vmem:[%s2295_s1] ss:$16 sps:$4 sm:$0xff]  }
   0x2   :  { %970 = vmatprep.subr.bf16.mxu0 %v1531_v0  ;;  %v1536_v3 = vld [vmem:[%s2295_s1 + $0x8] ss:$16 sps:$4 sm:$0xff]   ;;  %1129 = vmatprep.subr.bf16.mxu1 %v1533_v1  ;;  %v1537_v4 = vld [vmem:[%s2295_s1 + $0x24] ss:$16 sps:$4 sm:$0xff]   ;;  %v1539_v5 = vld [vmem:[%s2295_s1 + $0x2c] ss:$16 sps:$4 sm:$0xff]  }
   0x3   :  { %971 = vmatpush1.bf16.msra.mxu0 %v1535_v2  ;;  %1130 = vmatpush1.bf16.msra.mxu1 %v1536_v3  ;;  %v1541_v6 = vld [vmem:[%s2295_s1 + $0x20] ss:$16 sps:$4 sm:$0xff]   ;;  %v1542_v7 = vld [vmem:[%s2295_s1 + $0x28] ss:$16 sps:$4 sm:$0xff]   ;;  %v1543_v8 = vld [vmem:[%s2295_s1 + $0x44] ss:$16 sps:$4 sm:$0xff]  }
   0x4   :  { %972 = vmatprep.subr.bf16.mxu0 %v1537_v4  ;;  %1131 = vmatprep.subr.bf16.mxu1 %v1539_v5  ;;  %v1545_v9 = vld [vmem:[%s2295_s1 + $0x4c] ss:$16 sps:$4 sm:$0xff]   ;;  %v1547_v10 = vld [vmem:[%s2295_s1 + $0x40] ss:$16 sps:$4 sm:$0xff]   ;;  %v1548_v11 = vld [vmem:[%s2295_s1 + $0x48] ss:$16 sps:$4 sm:$0xff]  }
   0x5   :  { %v1549_v12 = vld [vmem:[%s2295_s1 + $0x64] ss:$16 sps:$4 sm:$0xff]   ;;  %v1551_v13 = vld [vmem:[%s2295_s1 + $0x6c] ss:$16 sps:$4 sm:$0xff]   ;;  %v1553_v14 = vld [vmem:[%s2295_s1 + $0x60] ss:$16 sps:$4 sm:$0xff]  }
   0x6   :  { %v1554_v15 = vld [vmem:[%s2295_s1 + $0x68] ss:$16 sps:$4 sm:$0xff]   ;;  %v1555_v16 = vld [vmem:[%s2295_s1 + $0x84] ss:$16 sps:$4 sm:$0xff]   ;;  %v1557_v17 = vld [vmem:[%s2295_s1 + $0x8c] ss:$16 sps:$4 sm:$0xff]  }
   0x7   :  { %973 = vmatpush1.bf16.msra.mxu0 %v1541_v6  ;;  %1132 = vmatpush1.bf16.msra.mxu1 %v1542_v7  ;;  %v1559_v18 = vld [vmem:[%s2295_s1 + $0x80] ss:$16 sps:$4 sm:$0xff]   ;;  %v1560_v19 = vld [vmem:[%s2295_s1 + $0x88] ss:$16 sps:$4 sm:$0xff]   ;;  %v1561_v20 = vld [vmem:[%s2295_s1 + $0xa4] ss:$16 sps:$4 sm:$0xff]  }
   0x8   :  { %974 = vmatprep.subr.bf16.mxu0 %v1543_v8  ;;  %1133 = vmatprep.subr.bf16.mxu1 %v1545_v9  ;;  %v1563_v21 = vld [vmem:[%s2295_s1 + $0xac] ss:$16 sps:$4 sm:$0xff]   ;;  %v1565_v22 = vld [vmem:[%s2295_s1 + $0xa0] ss:$16 sps:$4 sm:$0xff]   ;;  %v1566_v23 = vld [vmem:[%s2295_s1 + $0xa8] ss:$16 sps:$4 sm:$0xff]  }
   0x9   :  { %v1567_v24 = vld [vmem:[%s2295_s1 + $0xc4] ss:$16 sps:$4 sm:$0xff]   ;;  %v1569_v25 = vld [vmem:[%s2295_s1 + $0xcc] ss:$16 sps:$4 sm:$0xff]   ;;  %v1571_v26 = vld [vmem:[%s2295_s1 + $0xc0] ss:$16 sps:$4 sm:$0xff]  }
   0xa   :  { %v1572_v27 = vld [vmem:[%s2295_s1 + $0xc8] ss:$16 sps:$4 sm:$0xff]   ;;  %v1573_v28 = vld [vmem:[%s2295_s1 + $0xe4] ss:$16 sps:$4 sm:$0xff]   ;;  %v1575_v29 = vld [vmem:[%s2295_s1 + $0xec] ss:$16 sps:$4 sm:$0xff]  }
   0xb   :  { %975 = vmatpush1.bf16.msra.mxu0 %v1547_v10  ;;  %1134 = vmatpush1.bf16.msra.mxu1 %v1548_v11  ;;  %v1577_v30 = vld [vmem:[%s2295_s1 + $0xe0] ss:$16 sps:$4 sm:$0xff]   ;;  %v1578_v31 = vld [vmem:[%s2295_s1 + $0xe8] ss:$16 sps:$4 sm:$0xff]   ;;  %v1579_v32 = vld [vmem:[%s2295_s1 + $0x104] ss:$16 sps:$4 sm:$0xff]  }
   0xc   :  { %976 = vmatprep.subr.bf16.mxu0 %v1549_v12  ;;  %1135 = vmatprep.subr.bf16.mxu1 %v1551_v13  ;;  %v1581_v33 = vld [vmem:[%s2295_s1 + $0x10c] ss:$16 sps:$4 sm:$0xff]   ;;  %v1583_v34 = vld [vmem:[%s2295_s1 + $0x100] ss:$16 sps:$4 sm:$0xff]   ;;  %v1584_v35 = vld [vmem:[%s2295_s1 + $0x108] ss:$16 sps:$4 sm:$0xff]  }
   0xd   :  { %v1585_v36 = vld [vmem:[%s2295_s1 + $0x124] ss:$16 sps:$4 sm:$0xff]   ;;  %v1587_v37 = vld [vmem:[%s2295_s1 + $0x12c] ss:$16 sps:$4 sm:$0xff]   ;;  %v1589_v38 = vld [vmem:[%s2295_s1 + $0x120] ss:$16 sps:$4 sm:$0xff]  }
   0xe   :  { %v1590_v39 = vld [vmem:[%s2295_s1 + $0x128] ss:$16 sps:$4 sm:$0xff]   ;;  %v1591_v40 = vld [vmem:[%s2295_s1 + $0x144] ss:$16 sps:$4 sm:$0xff]   ;;  %v1593_v41 = vld [vmem:[%s2295_s1 + $0x14c] ss:$16 sps:$4 sm:$0xff]  }
   0xf   :  { %977 = vmatpush1.bf16.msra.mxu0 %v1553_v14  ;;  %1136 = vmatpush1.bf16.msra.mxu1 %v1554_v15  ;;  %v1595_v42 = vld [vmem:[%s2295_s1 + $0x140] ss:$16 sps:$4 sm:$0xff]   ;;  %v1596_v43 = vld [vmem:[%s2295_s1 + $0x148] ss:$16 sps:$4 sm:$0xff]   ;;  %v1597_v44 = vld [vmem:[%s2295_s1 + $0x164] ss:$16 sps:$4 sm:$0xff]  }
  0x10   :  { %978 = vmatprep.subr.bf16.mxu0 %v1555_v16  ;;  %1137 = vmatprep.subr.bf16.mxu1 %v1557_v17  ;;  %v1599_v45 = vld [vmem:[%s2295_s1 + $0x16c] ss:$16 sps:$4 sm:$0xff]   ;;  %v1601_v46 = vld [vmem:[%s2295_s1 + $0x160] ss:$16 sps:$4 sm:$0xff]   ;;  %v1602_v47 = vld [vmem:[%s2295_s1 + $0x168] ss:$16 sps:$4 sm:$0xff]  }
  0x11   :  { %v1629_v48 = vld [vmem:[%s2296_s0 + $0x4] ss:$20 sps:$4 sm:$0xff]   ;;  %v1605_v50 = vld [vmem:[%s2295_s1 + $0x18c] ss:$16 sps:$4 sm:$0xff]   ;;  %v1607_v51 = vld [vmem:[%s2295_s1 + $0x180] ss:$16 sps:$4 sm:$0xff]  }
  0x12   :  { %v1603_v49 = vld [vmem:[%s2295_s1 + $0x184] ss:$16 sps:$4 sm:$0xff]   ;;  %1002 = vmatprep.mubr.bf16.mxu0 %v1629_v48  ;;  %1161 = vmatprep.mubr.bf16.mxu1 %v1629_v48  ;;  %v1608_v52 = vld [vmem:[%s2295_s1 + $0x188] ss:$16 sps:$4 sm:$0xff]   ;;  %v1611_v54 = vld [vmem:[%s2295_s1 + $0x1ac] ss:$16 sps:$4 sm:$0xff]  }
  0x13   :  { %979 = vmatpush1.bf16.msra.mxu0 %v1559_v18  ;;  %1138 = vmatpush1.bf16.msra.mxu1 %v1560_v19  ;;  %v1609_v53 = vld [vmem:[%s2295_s1 + $0x1a4] ss:$16 sps:$4 sm:$0xff]   ;;  %v1613_v55 = vld [vmem:[%s2295_s1 + $0x1a0] ss:$16 sps:$4 sm:$0xff]   ;;  %v1614_v56 = vld [vmem:[%s2295_s1 + $0x1a8] ss:$16 sps:$4 sm:$0xff]  }
  0x14   :  { %980 = vmatprep.subr.bf16.mxu0 %v1561_v20  ;;  %1139 = vmatprep.subr.bf16.mxu1 %v1563_v21  ;;  %v1615_v57 = vld [vmem:[%s2295_s1 + $0x1c4] ss:$16 sps:$4 sm:$0xff]   ;;  %v1617_v58 = vld [vmem:[%s2295_s1 + $0x1cc] ss:$16 sps:$4 sm:$0xff]   ;;  %v1619_v59 = vld [vmem:[%s2295_s1 + $0x1c0] ss:$16 sps:$4 sm:$0xff]  }
  0x15   :  { %v1620_v60 = vld [vmem:[%s2295_s1 + $0x1c8] ss:$16 sps:$4 sm:$0xff]   ;;  %v1621_v61 = vld [vmem:[%s2295_s1 + $0x1e4] ss:$16 sps:$4 sm:$0xff]   ;;  %v1623_v62 = vld [vmem:[%s2295_s1 + $0x1ec] ss:$16 sps:$4 sm:$0xff]  }
  0x16   :  { %v1625_v63 = vld [vmem:[%s2295_s1 + $0x1e0] ss:$16 sps:$4 sm:$0xff]   ;;  %v1626_v0 = vld [vmem:[%s2295_s1 + $0x1e8] ss:$16 sps:$4 sm:$0xff]   ;;  %v1632_v1 = vld [vmem:[%s2295_s1 + $0x204] ss:$16 sps:$4 sm:$0xff]  }
  0x17   :  { %981 = vmatpush1.bf16.msra.mxu0 %v1565_v22  ;;  %1140 = vmatpush1.bf16.msra.mxu1 %v1566_v23  ;;  %v1635_v2 = vld [vmem:[%s2295_s1 + $0x20c] ss:$16 sps:$4 sm:$0xff]   ;;  %v1627_v3 = vld [vmem:[%s2296_s0] ss:$20 sps:$4 sm:$0xff]   ;;  %v1633_v5 = vld [vmem:[%s2295_s1 + $0x208] ss:$16 sps:$4 sm:$0xff]  }
  0x18   :  { %982 = vmatprep.subr.bf16.mxu0 %v1567_v24  ;;  %1141 = vmatprep.subr.bf16.mxu1 %v1569_v25  ;;  %v1630_v4 = vld [vmem:[%s2295_s1 + $0x200] ss:$16 sps:$4 sm:$0xff]   ;;  %v1638_v6 = vld [vmem:[%s2295_s1 + $0x224] ss:$16 sps:$4 sm:$0xff]   ;;  %v1641_v7 = vld [vmem:[%s2295_s1 + $0x22c] ss:$16 sps:$4 sm:$0xff]  }
  0x19   :  { %v1636_v8 = vld [vmem:[%s2295_s1 + $0x220] ss:$16 sps:$4 sm:$0xff]   ;;  %v1639_v9 = vld [vmem:[%s2295_s1 + $0x228] ss:$16 sps:$4 sm:$0xff]   ;;  %v1644_v10 = vld [vmem:[%s2295_s1 + $0x244] ss:$16 sps:$4 sm:$0xff]  }
  0x1a   :  { %v1647_v11 = vld [vmem:[%s2295_s1 + $0x24c] ss:$16 sps:$4 sm:$0xff]   ;;  %v1642_v12 = vld [vmem:[%s2295_s1 + $0x240] ss:$16 sps:$4 sm:$0xff]   ;;  %v1645_v13 = vld [vmem:[%s2295_s1 + $0x248] ss:$16 sps:$4 sm:$0xff]  }
  0x1b   :  { %983 = vmatpush1.bf16.msra.mxu0 %v1571_v26  ;;  %1142 = vmatpush1.bf16.msra.mxu1 %v1572_v27  ;;  %v1650_v14 = vld [vmem:[%s2295_s1 + $0x264] ss:$16 sps:$4 sm:$0xff]   ;;  %v1653_v15 = vld [vmem:[%s2295_s1 + $0x26c] ss:$16 sps:$4 sm:$0xff]   ;;  %v1648_v16 = vld [vmem:[%s2295_s1 + $0x260] ss:$16 sps:$4 sm:$0xff]  }
  0x1c   :  { %984 = vmatprep.subr.bf16.mxu0 %v1573_v28  ;;  %1143 = vmatprep.subr.bf16.mxu1 %v1575_v29  ;;  %v1651_v17 = vld [vmem:[%s2295_s1 + $0x268] ss:$16 sps:$4 sm:$0xff]   ;;  %v1656_v18 = vld [vmem:[%s2295_s1 + $0x284] ss:$16 sps:$4 sm:$0xff]   ;;  %v1659_v19 = vld [vmem:[%s2295_s1 + $0x28c] ss:$16 sps:$4 sm:$0xff]  }
  0x1d   :  { %v1654_v20 = vld [vmem:[%s2295_s1 + $0x280] ss:$16 sps:$4 sm:$0xff]   ;;  %v1657_v21 = vld [vmem:[%s2295_s1 + $0x288] ss:$16 sps:$4 sm:$0xff]   ;;  %v1662_v22 = vld [vmem:[%s2295_s1 + $0x2a4] ss:$16 sps:$4 sm:$0xff]  }
  0x1e   :  { %v1665_v23 = vld [vmem:[%s2295_s1 + $0x2ac] ss:$16 sps:$4 sm:$0xff]   ;;  %v1660_v24 = vld [vmem:[%s2295_s1 + $0x2a0] ss:$16 sps:$4 sm:$0xff]   ;;  %v1663_v26 = vld [vmem:[%s2295_s1 + $0x2a8] ss:$16 sps:$4 sm:$0xff]  }
  0x1f   :  { %985 = vmatpush1.bf16.msra.mxu0 %v1577_v30  ;;  %1144 = vmatpush1.bf16.msra.mxu1 %v1578_v31  ;;  %v1714_v25 = vld [vmem:[%s2296_s0 + $0x2c] ss:$20 sps:$4 sm:$0xff]   ;;  %v1716_v27 = vld [vmem:[%s2296_s0 + $0x28] ss:$20 sps:$4 sm:$0xff]   ;;  %v1668_v28 = vld [vmem:[%s2295_s1 + $0x2c4] ss:$16 sps:$4 sm:$0xff]  }
  0x20   :  { %986 = vmatprep.subr.bf16.mxu0 %v1579_v32  ;;  %1145 = vmatprep.subr.bf16.mxu1 %v1581_v33  ;;  %v1671_v29 = vld [vmem:[%s2295_s1 + $0x2cc] ss:$16 sps:$4 sm:$0xff]   ;;  %v1666_v30 = vld [vmem:[%s2295_s1 + $0x2c0] ss:$16 sps:$4 sm:$0xff]   ;;  %v1669_v31 = vld [vmem:[%s2295_s1 + $0x2c8] ss:$16 sps:$4 sm:$0xff]  }
  0x21   :  { %v1674_v32 = vld [vmem:[%s2295_s1 + $0x2e4] ss:$16 sps:$4 sm:$0xff]   ;;  %v1677_v33 = vld [vmem:[%s2295_s1 + $0x2ec] ss:$16 sps:$4 sm:$0xff]   ;;  %v1693_v48 = vld [vmem:[%s2295_s1 + $0x348] ss:$16 sps:$4 sm:$0xff]  }
  0x23   :  { %987 = vmatpush1.bf16.msra.mxu0 %v1583_v34  ;;  %1146 = vmatpush1.bf16.msra.mxu1 %v1584_v35  ;;  %v1731_v34 = vld [vmem:[%s2296_s0 + $0xc] ss:$20 sps:$4 sm:$0xff]  }
  0x24   :  { %988 = vmatprep.subr.bf16.mxu0 %v1585_v36  ;;  %1147 = vmatprep.subr.bf16.mxu1 %v1587_v37  ;;  %v1672_v35 = vld [vmem:[%s2295_s1 + $0x2e0] ss:$16 sps:$4 sm:$0xff]   ;;  %v1675_v36 = vld [vmem:[%s2295_s1 + $0x2e8] ss:$16 sps:$4 sm:$0xff]   ;;  %v1680_v37 = vld [vmem:[%s2295_s1 + $0x304] ss:$16 sps:$4 sm:$0xff]  }
  0x27   :  { %989 = vmatpush1.bf16.msra.mxu0 %v1589_v38  ;;  %1148 = vmatpush1.bf16.msra.mxu1 %v1590_v39  ;;  %v1683_v38 = vld [vmem:[%s2295_s1 + $0x30c] ss:$16 sps:$4 sm:$0xff]   ;;  %v1678_v39 = vld [vmem:[%s2295_s1 + $0x300] ss:$16 sps:$4 sm:$0xff]  }
  0x28   :  { %990 = vmatprep.subr.bf16.mxu0 %v1591_v40  ;;  %1149 = vmatprep.subr.bf16.mxu1 %v1593_v41  ;;  %v1681_v40 = vld [vmem:[%s2295_s1 + $0x308] ss:$16 sps:$4 sm:$0xff]   ;;  %v1686_v41 = vld [vmem:[%s2295_s1 + $0x324] ss:$16 sps:$4 sm:$0xff]  }
  0x2b   :  { %991 = vmatpush1.bf16.msra.mxu0 %v1595_v42  ;;  %1150 = vmatpush1.bf16.msra.mxu1 %v1596_v43  ;;  %v1689_v42 = vld [vmem:[%s2295_s1 + $0x32c] ss:$16 sps:$4 sm:$0xff]   ;;  %v1684_v43 = vld [vmem:[%s2295_s1 + $0x320] ss:$16 sps:$4 sm:$0xff]  }
  0x2c   :  { %992 = vmatprep.subr.bf16.mxu0 %v1597_v44  ;;  %1151 = vmatprep.subr.bf16.mxu1 %v1599_v45  ;;  %v1687_v44 = vld [vmem:[%s2295_s1 + $0x328] ss:$16 sps:$4 sm:$0xff]   ;;  %v1692_v45 = vld [vmem:[%s2295_s1 + $0x344] ss:$16 sps:$4 sm:$0xff]  }
  0x2f   :  { %993 = vmatpush1.bf16.msra.mxu0 %v1601_v46  ;;  %1152 = vmatpush1.bf16.msra.mxu1 %v1602_v47  ;;  %v1695_v46 = vld [vmem:[%s2295_s1 + $0x34c] ss:$16 sps:$4 sm:$0xff]   ;;  %v1690_v47 = vld [vmem:[%s2295_s1 + $0x340] ss:$16 sps:$4 sm:$0xff]  }
  0x30   :  { %994 = vmatprep.subr.bf16.mxu0 %v1603_v49  ;;  %1153 = vmatprep.subr.bf16.mxu1 %v1605_v50  ;;  %v1698_v49 = vld [vmem:[%s2295_s1 + $0x364] ss:$16 sps:$4 sm:$0xff]   ;;  %v1701_v50 = vld [vmem:[%s2295_s1 + $0x36c] ss:$16 sps:$4 sm:$0xff]  }
  0x33   :  { %995 = vmatpush1.bf16.msra.mxu0 %v1607_v51  ;;  %1154 = vmatpush1.bf16.msra.mxu1 %v1608_v52  ;;  %v1696_v51 = vld [vmem:[%s2295_s1 + $0x360] ss:$16 sps:$4 sm:$0xff]   ;;  %v1699_v52 = vld [vmem:[%s2295_s1 + $0x368] ss:$16 sps:$4 sm:$0xff]  }
  0x34   :  { %996 = vmatprep.subr.bf16.mxu0 %v1609_v53  ;;  %1155 = vmatprep.subr.bf16.mxu1 %v1611_v54  ;;  %v1704_v53 = vld [vmem:[%s2295_s1 + $0x384] ss:$16 sps:$4 sm:$0xff]   ;;  %v1707_v54 = vld [vmem:[%s2295_s1 + $0x38c] ss:$16 sps:$4 sm:$0xff]  }
  0x37   :  { %997 = vmatpush1.bf16.msra.mxu0 %v1613_v55  ;;  %1156 = vmatpush1.bf16.msra.mxu1 %v1614_v56  ;;  %v1702_v55 = vld [vmem:[%s2295_s1 + $0x380] ss:$16 sps:$4 sm:$0xff]   ;;  %v1705_v56 = vld [vmem:[%s2295_s1 + $0x388] ss:$16 sps:$4 sm:$0xff]  }
  0x38   :  { %998 = vmatprep.subr.bf16.mxu0 %v1615_v57  ;;  %1157 = vmatprep.subr.bf16.mxu1 %v1617_v58  ;;  %v1710_v57 = vld [vmem:[%s2295_s1 + $0x3a4] ss:$16 sps:$4 sm:$0xff]   ;;  %v1713_v58 = vld [vmem:[%s2295_s1 + $0x3ac] ss:$16 sps:$4 sm:$0xff]  }
  0x3b   :  { %999 = vmatpush1.bf16.msra.mxu0 %v1619_v59  ;;  %1158 = vmatpush1.bf16.msra.mxu1 %v1620_v60  ;;  %v1708_v59 = vld [vmem:[%s2295_s1 + $0x3a0] ss:$16 sps:$4 sm:$0xff]   ;;  %v1711_v60 = vld [vmem:[%s2295_s1 + $0x3a8] ss:$16 sps:$4 sm:$0xff]  }
  0x3c   :  { %1000 = vmatprep.subr.bf16.mxu0 %v1621_v61  ;;  %1159 = vmatprep.subr.bf16.mxu1 %v1623_v62  ;;  %v1719_v61 = vld [vmem:[%s2295_s1 + $0x3c4] ss:$16 sps:$4 sm:$0xff]   ;;  %v1722_v62 = vld [vmem:[%s2295_s1 + $0x3cc] ss:$16 sps:$4 sm:$0xff]  }
  0x3f   :  { %1001 = vmatpush1.bf16.msra.mxu0 %v1625_v63  ;;  %1160 = vmatpush1.bf16.msra.mxu1 %v1626_v0  ;;  %v1717_v63 = vld [vmem:[%s2295_s1 + $0x3c0] ss:$16 sps:$4 sm:$0xff]   ;;  %v1720_v0 = vld [vmem:[%s2295_s1 + $0x3c8] ss:$16 sps:$4 sm:$0xff]  }
  0x40   :  { %1023 = vmatprep.subr.bf16.mxu0 %v1632_v1  ;;  %1182 = vmatprep.subr.bf16.mxu1 %v1635_v2  ;;  %v1725_v1 = vld [vmem:[%s2295_s1 + $0x3e4] ss:$16 sps:$4 sm:$0xff]   ;;  %v1728_v2 = vld [vmem:[%s2295_s1 + $0x3ec] ss:$16 sps:$4 sm:$0xff]  }
  0x42   :  { %1003 = vmatmul.mubr.bf16.vlgmr.msra.gmra.mrb[0].mxu0 %v1627_v3  ;;  %1162 = vmatmul.mubr.bf16.vlgmr.msra.gmra.mrb[0].mxu1 %v1627_v3  ;;  %v1723_v3 = vld [vmem:[%s2295_s1 + $0x3e0] ss:$16 sps:$4 sm:$0xff]  }
  0x43   :  { %1024 = vmatpush1.bf16.msra.mxu0 %v1630_v4  ;;  %1183 = vmatpush1.bf16.msra.mxu1 %v1633_v5  ;;  %v1726_v4 = vld [vmem:[%s2295_s1 + $0x3e8] ss:$16 sps:$4 sm:$0xff]   ;;  %v1734_v5 = vld [vmem:[%s2295_s1 + $0x404] ss:$16 sps:$4 sm:$0xff]  }
  0x44   :  { %1025 = vmatprep.subr.bf16.mxu0 %v1638_v6  ;;  %1184 = vmatprep.subr.bf16.mxu1 %v1641_v7  ;;  %v1737_v6 = vld [vmem:[%s2295_s1 + $0x40c] ss:$16 sps:$4 sm:$0xff]  }
  0x45   :  { %1012 = vmatprep.mubr.bf16.mxu0 %v1714_v25  ;;  %1171 = vmatprep.mubr.bf16.mxu1 %v1714_v25  ;;  %v1729_v7 = vld [vmem:[%s2296_s0 + $0x8] ss:$20 sps:$4 sm:$0xff]   ;;  %v1759_v25 = vld [vmem:[%s2296_s0 + $0x10] ss:$20 sps:$4 sm:$0xff]  }
  0x47   :  { %1026 = vmatpush1.bf16.msra.mxu0 %v1636_v8  ;;  %1185 = vmatpush1.bf16.msra.mxu1 %v1639_v9  ;;  %v1732_v8 = vld [vmem:[%s2295_s1 + $0x400] ss:$16 sps:$4 sm:$0xff]   ;;  %v1735_v9 = vld [vmem:[%s2295_s1 + $0x408] ss:$16 sps:$4 sm:$0xff]  }
  0x48   :  { %1027 = vmatprep.subr.bf16.mxu0 %v1644_v10  ;;  %1186 = vmatprep.subr.bf16.mxu1 %v1647_v11  ;;  %v1740_v10 = vld [vmem:[%s2295_s1 + $0x424] ss:$16 sps:$4 sm:$0xff]   ;;  %v1743_v11 = vld [vmem:[%s2295_s1 + $0x42c] ss:$16 sps:$4 sm:$0xff]  }
  0x4a   :  { %1013 = vmatmul.mubr.bf16.gmra.mrb[4].mxu0 %v1716_v27  ;;  %1172 = vmatmul.mubr.bf16.gmra.mrb[4].mxu1 %v1716_v27  ;;  %v173_v27 = vlaneseq }
  0x4b   :  { %1028 = vmatpush1.bf16.msra.mxu0 %v1642_v12  ;;  %1187 = vmatpush1.bf16.msra.mxu1 %v1645_v13  ;;  %v1744_v12 = vld [vmem:[%s2296_s0 + $0x34] ss:$20 sps:$4 sm:$0xff]   ;;  %v1738_v13 = vld [vmem:[%s2295_s1 + $0x420] ss:$16 sps:$4 sm:$0xff]  }
  0x4c   :  { %1029 = vmatprep.subr.bf16.mxu0 %v1650_v14  ;;  %1188 = vmatprep.subr.bf16.mxu1 %v1653_v15  ;;  %v1741_v14 = vld [vmem:[%s2295_s1 + $0x428] ss:$16 sps:$4 sm:$0xff]   ;;  %v1749_v15 = vld [vmem:[%s2295_s1 + $0x444] ss:$16 sps:$4 sm:$0xff]  }
  0x4d   :  { %1055 = vmatprep.mubr.bf16.mxu0 %v1731_v34  ;;  %1214 = vmatprep.mubr.bf16.mxu1 %v1731_v34 }
  0x4f   :  { %1030 = vmatpush1.bf16.msra.mxu0 %v1648_v16  ;;  %1189 = vmatpush1.bf16.msra.mxu1 %v1651_v17  ;;  %v1752_v16 = vld [vmem:[%s2295_s1 + $0x44c] ss:$16 sps:$4 sm:$0xff]   ;;  %v1746_v17 = vld [vmem:[%s2296_s0 + $0x30] ss:$20 sps:$4 sm:$0xff]  }
  0x50   :  { %1031 = vmatprep.subr.bf16.mxu0 %v1656_v18  ;;  %1190 = vmatprep.subr.bf16.mxu1 %v1659_v19  ;;  %v1747_v18 = vld [vmem:[%s2295_s1 + $0x440] ss:$16 sps:$4 sm:$0xff]   ;;  %v1750_v19 = vld [vmem:[%s2295_s1 + $0x448] ss:$16 sps:$4 sm:$0xff]  }
  0x53   :  { %1032 = vmatpush1.bf16.msra.mxu0 %v1654_v20  ;;  %1191 = vmatpush1.bf16.msra.mxu1 %v1657_v21  ;;  %v1755_v20 = vld [vmem:[%s2295_s1 + $0x464] ss:$16 sps:$4 sm:$0xff]   ;;  %v1758_v21 = vld [vmem:[%s2295_s1 + $0x46c] ss:$16 sps:$4 sm:$0xff]  }
  0x54   :  { %1033 = vmatprep.subr.bf16.mxu0 %v1662_v22  ;;  %1192 = vmatprep.subr.bf16.mxu1 %v1665_v23  ;;  %v1753_v22 = vld [vmem:[%s2295_s1 + $0x460] ss:$16 sps:$4 sm:$0xff]   ;;  %v1756_v23 = vld [vmem:[%s2295_s1 + $0x468] ss:$16 sps:$4 sm:$0xff]  }
  0x57   :  { %1034 = vmatpush1.bf16.msra.mxu0 %v1660_v24  ;;  %1193 = vmatpush1.bf16.msra.mxu1 %v1663_v26  ;;  %v1761_v24 = vmov 0   ;;  %v1760_v26 = vld [vmem:[%s2296_s0 + $0x38] ss:$20 sps:$4 sm:$0xff]  }
  0x58   :  { %1035 = vmatprep.subr.bf16.mxu0 %v1668_v28  ;;  %1194 = vmatprep.subr.bf16.mxu1 %v1671_v29  ;;  %v174_v28 = vshrl.u32 %v173_v27, 7 }
  0x5a   :  { %v175_v29 = vsub.s32 0, %v174_v28 }
  0x5b   :  { %1036 = vmatpush1.bf16.msra.mxu0 %v1666_v30  ;;  %1195 = vmatpush1.bf16.msra.mxu1 %v1669_v31  ;;  %v183_v30 = vsub.s32 2, %v174_v28  ;;  %v171_v31 = vld [vmem:[%s2297_s2] sm:$0xf] }
  0x5c   :  { %1037 = vmatprep.subr.bf16.mxu0 %v1674_v32  ;;  %1196 = vmatprep.subr.bf16.mxu1 %v1677_v33  ;;  %v179_v32 = vsub.s32 1, %v174_v28  ;;  %v187_v33 = vsub.s32 3, %v174_v28  ;;  %v176_v34 = vrot.slane %v171_v31, %v175_v29 }
  0x5f   :  { %1038 = vmatpush1.bf16.msra.mxu0 %v1672_v35  ;;  %1197 = vmatpush1.bf16.msra.mxu1 %v1675_v36  ;;  %v184_v35 = vrot.slane %v171_v31, %v183_v30  ;;  %v180_v36 = vrot.slane %v171_v31, %v179_v32 }
  0x60   :  { %1039 = vmatprep.subr.bf16.mxu0 %v1680_v37  ;;  %1198 = vmatprep.subr.bf16.mxu1 %v1683_v38  ;;  %v188_v37 = vrot.slane %v171_v31, %v187_v33 }
  0x63   :  { %1040 = vmatpush1.bf16.msra.mxu0 %v1678_v39  ;;  %1199 = vmatpush1.bf16.msra.mxu1 %v1681_v40 }
  0x64   :  { %1041 = vmatprep.subr.bf16.mxu0 %v1686_v41  ;;  %1200 = vmatprep.subr.bf16.mxu1 %v1689_v42 }
  0x67   :  { %1042 = vmatpush1.bf16.msra.mxu0 %v1684_v43  ;;  %1201 = vmatpush1.bf16.msra.mxu1 %v1687_v44 }
  0x68   :  { %1043 = vmatprep.subr.bf16.mxu0 %v1692_v45  ;;  %1202 = vmatprep.subr.bf16.mxu1 %v1695_v46 }
  0x6b   :  { %1044 = vmatpush1.bf16.msra.mxu0 %v1690_v47  ;;  %1203 = vmatpush1.bf16.msra.mxu1 %v1693_v48 }
  0x6c   :  { %1045 = vmatprep.subr.bf16.mxu0 %v1698_v49  ;;  %1204 = vmatprep.subr.bf16.mxu1 %v1701_v50 }
  0x6f   :  { %1046 = vmatpush1.bf16.msra.mxu0 %v1696_v51  ;;  %1205 = vmatpush1.bf16.msra.mxu1 %v1699_v52 }
  0x70   :  { %1047 = vmatprep.subr.bf16.mxu0 %v1704_v53  ;;  %1206 = vmatprep.subr.bf16.mxu1 %v1707_v54 }
  0x73   :  { %1048 = vmatpush1.bf16.msra.mxu0 %v1702_v55  ;;  %1207 = vmatpush1.bf16.msra.mxu1 %v1705_v56 }
  0x74   :  { %1049 = vmatprep.subr.bf16.mxu0 %v1710_v57  ;;  %1208 = vmatprep.subr.bf16.mxu1 %v1713_v58 }
  0x77   :  { %1050 = vmatpush1.bf16.msra.mxu0 %v1708_v59  ;;  %1209 = vmatpush1.bf16.msra.mxu1 %v1711_v60 }
  0x78   :  { %1051 = vmatprep.subr.bf16.mxu0 %v1719_v61  ;;  %1210 = vmatprep.subr.bf16.mxu1 %v1722_v62 }
  0x7b   :  { %1052 = vmatpush1.bf16.msra.mxu0 %v1717_v63  ;;  %1211 = vmatpush1.bf16.msra.mxu1 %v1720_v0 }
  0x7c   :  { %1053 = vmatprep.subr.bf16.mxu0 %v1725_v1  ;;  %1212 = vmatprep.subr.bf16.mxu1 %v1728_v2 }
  0x7f   :  { %1054 = vmatpush1.bf16.msra.mxu0 %v1723_v3  ;;  %1213 = vmatpush1.bf16.msra.mxu1 %v1726_v4 }
  0x80   :  { %1076 = vmatprep.subr.bf16.mxu0 %v1734_v5  ;;  %1235 = vmatprep.subr.bf16.mxu1 %v1737_v6 }
  0x82   :  { %1056 = vmatmul.mubr.bf16.vlgmr.msra.gmra.mrb[0].mxu0 %v1729_v7  ;;  %1215 = vmatmul.mubr.bf16.vlgmr.msra.gmra.mrb[0].mxu1 %v1729_v7 }
  0x83   :  { %1077 = vmatpush1.bf16.msra.mxu0 %v1732_v8  ;;  %1236 = vmatpush1.bf16.msra.mxu1 %v1735_v9 }
  0x84   :  { %1078 = vmatprep.subr.bf16.mxu0 %v1740_v10  ;;  %1237 = vmatprep.subr.bf16.mxu1 %v1743_v11 }
  0x85   :  { %1065 = vmatprep.mubr.bf16.mxu0 %v1744_v12  ;;  %1224 = vmatprep.mubr.bf16.mxu1 %v1744_v12 }
  0x87   :  { %1079 = vmatpush1.bf16.msra.mxu0 %v1738_v13  ;;  %1238 = vmatpush1.bf16.msra.mxu1 %v1741_v14 }
  0x88   :  { %1080 = vmatprep.subr.bf16.mxu0 %v1749_v15  ;;  %1239 = vmatprep.subr.bf16.mxu1 %v1752_v16 }
  0x8a   :  { %1066 = vmatmul.mubr.bf16.gmra.mrb[4].mxu0 %v1746_v17  ;;  %1225 = vmatmul.mubr.bf16.gmra.mrb[4].mxu1 %v1746_v17 }
  0x8b   :  { %1081 = vmatpush1.bf16.msra.mxu0 %v1747_v18  ;;  %1240 = vmatpush1.bf16.msra.mxu1 %v1750_v19 }
  0x8c   :  { %1082 = vmatprep.subr.bf16.mxu0 %v1755_v20  ;;  %1241 = vmatprep.subr.bf16.mxu1 %v1758_v21 }
  0x8d   :  { %1108 = vmatprep.mubr.bf16.mxu0 %v1761_v24  ;;  %1267 = vmatprep.mubr.bf16.mxu1 %v1761_v24 }
  0x8f   :  { %1083 = vmatpush1.bf16.msra.mxu0 %v1753_v22  ;;  %1242 = vmatpush1.bf16.msra.mxu1 %v1756_v23 }
  0x92   :  { %1478 = vmatmul.mubr.msk.bf16.vlgmr.msra.gmra.mrb[0].mxu0 %vm963_vm0, %v1759_v25  ;;  %1480 = vmatmul.mubr.msk.bf16.vlgmr.msra.gmra.mrb[0].mxu1 %vm963_vm0, %v1759_v25 }
  0x93   :  { %1118 = vmatprep.mubr.bf16.mxu0 %v1761_v24  ;;  %1277 = vmatprep.mubr.bf16.mxu1 %v1761_v24 }
  0x9a   :  { %1479 = vmatmul.mubr.msk.bf16.gmra.mrb[4].mxu0 %vm963_vm0, %v1760_v26  ;;  %1481 = vmatmul.mubr.msk.bf16.gmra.mrb[4].mxu1 %vm963_vm0, %v1760_v26 }
 0x165   :  { %v1110_v38 = vpop.f32.mrb[0].mxu0  ;;  %v1269_v39 = vpop.f32.mrb[0].mxu1 }
 0x166   :  { %v1482_v40 = vadd.f32 %v1110_v38, %v176_v34  ;;  %v1490_v41 = vadd.f32 %v1269_v39, %v184_v35  ;;  %v1112_v42 = vpop.f32.mrb[1].mxu0  ;;  %v1271_v43 = vpop.f32.mrb[1].mxu1 }
 0x167   :  { %v1483_v44 = vadd.f32 %v1112_v42, %v180_v36  ;;  %v1491_v45 = vadd.f32 %v1271_v43, %v188_v37  ;;  %v1114_v46 = vpop.f32.mrb[2].mxu0  ;;  %v1273_v47 = vpop.f32.mrb[2].mxu1 }
 0x168   :  { %v1288_v48 = vmax.f32 %v1482_v40, 0.0  ;;  %v1290_v49 = vmax.f32 %v1490_v41, 0.0  ;;  %v1484_v50 = vadd.f32 %v1114_v46, %v176_v34  ;;  %v1492_v51 = vadd.f32 %v1273_v47, %v184_v35  ;;  %v1116_v52 = vpop.f32.mrb[3].mxu0  ;;  %v1275_v53 = vpop.f32.mrb[3].mxu1 }
 0x169   :  { %v1289_v54 = vmax.f32 %v1483_v44, 0.0  ;;  %v1291_v55 = vmax.f32 %v1491_v45, 0.0  ;;  %v1485_v56 = vadd.f32 %v1116_v52, %v180_v36  ;;  %v1493_v57 = vadd.f32 %v1275_v53, %v188_v37 }
 0x16a   :  { %1304 = vst [vmem:[%s2298_s3] sm:$0xff] %v1288_v48  ;;  %1306 = vst [vmem:[%s2298_s3 + $0x10] sm:$0xff] %v1290_v49  ;;  %v1292_v58 = vmax.f32 %v1484_v50, 0.0  ;;  %v1294_v59 = vmax.f32 %v1492_v51, 0.0 }
 0x16b   :  { %1305 = vst [vmem:[%s2298_s3 + $0x8] sm:$0xff] %v1289_v54  ;;  %1307 = vst [vmem:[%s2298_s3 + $0x18] sm:$0xff] %v1291_v55  ;;  %v1293_v60 = vmax.f32 %v1485_v56, 0.0  ;;  %v1295_v61 = vmax.f32 %v1493_v57, 0.0 }
 0x16c   :  { %1308 = vst [vmem:[%s2298_s3 + $0x20] sm:$0xff] %v1292_v58  ;;  %1310 = vst [vmem:[%s2298_s3 + $0x30] sm:$0xff] %v1294_v59 }
 0x16d   :  { %1309 = vst [vmem:[%s2298_s3 + $0x28] sm:$0xff] %v1293_v60  ;;  %1311 = vst [vmem:[%s2298_s3 + $0x38] sm:$0xff] %v1295_v61  ;;  %v1120_v62 = vpop.f32.mrb[4].mxu0  ;;  %v1279_v63 = vpop.f32.mrb[4].mxu1 }
 0x16e   :  { %v1486_v0 = vadd.f32 %v1120_v62, %v176_v34  ;;  %v1494_v1 = vadd.f32 %v1279_v63, %v184_v35  ;;  %v1122_v2 = vpop.f32.mrb[5].mxu0  ;;  %v1281_v3 = vpop.f32.mrb[5].mxu1 }
 0x16f   :  { %v1487_v4 = vadd.f32 %v1122_v2, %v180_v36  ;;  %v1495_v5 = vadd.f32 %v1281_v3, %v188_v37  ;;  %v1124_v6 = vpop.f32.mrb[6].mxu0  ;;  %v1283_v7 = vpop.f32.mrb[6].mxu1 }
 0x170   :  { %v1296_v8 = vmax.f32 %v1486_v0, 0.0  ;;  %v1298_v9 = vmax.f32 %v1494_v1, 0.0  ;;  %v1488_v10 = vadd.f32 %v1124_v6, %v176_v34  ;;  %v1496_v11 = vadd.f32 %v1283_v7, %v184_v35  ;;  %v1126_v12 = vpop.f32.mrb[7].mxu0  ;;  %v1285_v13 = vpop.f32.mrb[7].mxu1 }
 0x171   :  { %v1297_v14 = vmax.f32 %v1487_v4, 0.0  ;;  %v1299_v15 = vmax.f32 %v1495_v5, 0.0  ;;  %v1489_v16 = vadd.f32 %v1126_v12, %v180_v36  ;;  %v1497_v17 = vadd.f32 %v1285_v13, %v188_v37 }
 0x172   :  { %1312 = vst [vmem:[%s2298_s3 + $0x40] sm:$0xff] %v1296_v8  ;;  %1314 = vst [vmem:[%s2298_s3 + $0x50] sm:$0xff] %v1298_v9  ;;  %v1300_v18 = vmax.f32 %v1488_v10, 0.0  ;;  %v1302_v19 = vmax.f32 %v1496_v11, 0.0 }
 0x173   :  { %1313 = vst [vmem:[%s2298_s3 + $0x48] sm:$0xff] %v1297_v14  ;;  %1315 = vst [vmem:[%s2298_s3 + $0x58] sm:$0xff] %v1299_v15  ;;  %v1301_v20 = vmax.f32 %v1489_v16, 0.0  ;;  %v1303_v21 = vmax.f32 %v1497_v17, 0.0 }
 0x174   :  { %1316 = vst [vmem:[%s2298_s3 + $0x60] sm:$0xff] %v1300_v18  ;;  %1318 = vst [vmem:[%s2298_s3 + $0x70] sm:$0xff] %v1302_v19 }
 0x175   :  { %1317 = vst [vmem:[%s2298_s3 + $0x68] sm:$0xff] %v1301_v20  ;;  %1319 = vst [vmem:[%s2298_s3 + $0x78] sm:$0xff] %v1303_v21 }

// kernel: tile.23
= control target key start
LH: loop header
LB: loop body
LE: loop exit
PB: predicated region body
PF: predicated region fallthrough
CT: control target
= control target key end

     0   :  { %s22_s0 = inlined_call_operand.vmem [shape: f32[64], index: 0, kind: input, shape index: {}]   ;;  %s23_s1 = inlined_call_operand.vmem [shape: f32[4,64], index: 1, kind: output, shape index: {}]  }
   0x1   :  { %v4_v0 = vld [vmem:[%s22_s0] ss:$0 sm:$0xff] }
   0x2   :  { %5 = vst [vmem:[%s23_s1] sm:$0xf] %v4_v0 }

// kernel: tile.24
= control target key start
LH: loop header
LB: loop body
LE: loop exit
PB: predicated region body
PF: predicated region fallthrough
CT: control target
= control target key end

     0   :  { %s6_s8 = smov 3  ;;  %vm8_vm0 = vcmask 523264   ;;  %s30_s9 = smov 64   ;;  %vm15_vm1 = vcmask 1048064   ;;  %s50_s0 = inlined_call_operand.vmem [shape: f32[4,64], index: 0, kind: input, shape index: {}]   ;;  %s51_s1 = inlined_call_operand.vmem [shape: f32[1,256], index: 1, kind: output, shape index: {}]  }
   0x1   :  { %v4_v0 = vld [vmem:[%s50_s0] sm:$0xf]  ;;  %s11_s0 = smov 3 }
   0x2   :  { %5 = vst [vmem:[#allocation1] sm:$0xf] %v4_v0 }
   0x9   :  { %v12_v1 = vld [vmem:[#allocation1 + $0x1] ss:$2 sm:%s11_s0]   ;;  %v7_v2 = vld [vmem:[#allocation1] ss:$2 sm:%s6_s8]  }
   0xa   :  { %13 = vrot.lane.b32.xlu0 %v12_v1, %s30_s9  ;;  %9 = vst.msk [vmem:[#allocation0] ss:$8 sm:$0x3] %vm8_vm0, %v7_v2  }
  0x7c   :  { %v14_v3 = vpop.permute.xlu0 %13  }
  0x7d   :  { %16 = vst.msk [vmem:[#allocation0] ss:$8 sm:$0x3] %vm15_vm1, %v14_v3  }
  0x84   :  { %v20_v4 = vld [vmem:[#allocation0] sm:$0x1]  ;;  %v24_v5 = vld [vmem:[#allocation0 + $0x8] sm:$0x1] }
  0x85   :  { %22 = vst [vmem:[%s51_s1] sm:$0x1] %v20_v4  ;;  %28 = vst [vmem:[%s51_s1 + $0x1] sm:$0x1] %v24_v5 }

// kernel: vqvae_forward.20
= control target key start
LH: loop header
LB: loop body
LE: loop exit
PB: predicated region body
PF: predicated region fallthrough
CT: control target
= control target key end

     0   :  { %s4338_s1 = inlined_call_operand.vmem [shape: bf16[1152,256], index: 1, kind: input, shape index: {}]   ;;  %s4339_s0 = inlined_call_operand.vmem [shape: bf16[162,1152], index: 0, kind: input, shape index: {}]   ;;  %s4340_s2 = inlined_call_operand.vmem [shape: f32[1,256], index: 2, kind: input, shape index: {}]   ;;  %s4341_s3 = inlined_call_operand.vmem [shape: f32[162,256], index: 3, kind: output, shape index: {}]  }
   0x1   :  { %v2769_v0 = vld [vmem:[%s4338_s1 + $0x4] ss:$8 sps:$4 sm:$0xff]   ;;  %v2773_v2 = vld [vmem:[%s4338_s1] ss:$8 sps:$4 sm:$0xff]   ;;  %v2775_v4 = vld [vmem:[%s4338_s1 + $0x14] ss:$8 sps:$4 sm:$0xff]  }
   0x2   :  { %v2771_v1 = vld [vmem:[%s4338_s1 + $0x204] ss:$8 sps:$4 sm:$0xff]   ;;  %1488 = vmatprep.subr.bf16.mxu1 %v2769_v0  ;;  %v2774_v3 = vld [vmem:[%s4338_s1 + $0x200] ss:$8 sps:$4 sm:$0xff]   ;;  %v2777_v5 = vld [vmem:[%s4338_s1 + $0x214] ss:$8 sps:$4 sm:$0xff]  }
   0x3   :  { %1770 = vmatprep.subr.bf16.mxu0 %v2771_v1  ;;  %1489 = vmatpush1.bf16.msra.mxu1 %v2773_v2  ;;  %v2779_v6 = vld [vmem:[%s4338_s1 + $0x10] ss:$8 sps:$4 sm:$0xff]   ;;  %v2781_v8 = vld [vmem:[%s4338_s1 + $0x24] ss:$8 sps:$4 sm:$0xff]   ;;  %v2785_v10 = vld [vmem:[%s4338_s1 + $0x20] ss:$8 sps:$4 sm:$0xff]  }
   0x4   :  { %1771 = vmatpush1.bf16.msra.mxu0 %v2774_v3  ;;  %1490 = vmatprep.subr.bf16.mxu1 %v2775_v4  ;;  %v2780_v7 = vld [vmem:[%s4338_s1 + $0x210] ss:$8 sps:$4 sm:$0xff]   ;;  %v2783_v9 = vld [vmem:[%s4338_s1 + $0x224] ss:$8 sps:$4 sm:$0xff]   ;;  %v2786_v11 = vld [vmem:[%s4338_s1 + $0x220] ss:$8 sps:$4 sm:$0xff]  }
   0x5   :  { %1772 = vmatprep.subr.bf16.mxu0 %v2777_v5  ;;  %v2787_v12 = vld [vmem:[%s4338_s1 + $0x34] ss:$8 sps:$4 sm:$0xff]   ;;  %v2791_v14 = vld [vmem:[%s4338_s1 + $0x30] ss:$8 sps:$4 sm:$0xff]   ;;  %v2793_v16 = vld [vmem:[%s4338_s1 + $0x44] ss:$8 sps:$4 sm:$0xff]  }
   0x6   :  { %v2789_v13 = vld [vmem:[%s4338_s1 + $0x234] ss:$8 sps:$4 sm:$0xff]   ;;  %v2792_v15 = vld [vmem:[%s4338_s1 + $0x230] ss:$8 sps:$4 sm:$0xff]   ;;  %v2795_v17 = vld [vmem:[%s4338_s1 + $0x244] ss:$8 sps:$4 sm:$0xff]  }
   0x7   :  { %1491 = vmatpush1.bf16.msra.mxu1 %v2779_v6  ;;  %v2797_v18 = vld [vmem:[%s4338_s1 + $0x40] ss:$8 sps:$4 sm:$0xff]   ;;  %v2799_v20 = vld [vmem:[%s4338_s1 + $0x54] ss:$8 sps:$4 sm:$0xff]   ;;  %v2803_v22 = vld [vmem:[%s4338_s1 + $0x50] ss:$8 sps:$4 sm:$0xff]  }
   0x8   :  { %1773 = vmatpush1.bf16.msra.mxu0 %v2780_v7  ;;  %1492 = vmatprep.subr.bf16.mxu1 %v2781_v8  ;;  %v2798_v19 = vld [vmem:[%s4338_s1 + $0x240] ss:$8 sps:$4 sm:$0xff]   ;;  %v2801_v21 = vld [vmem:[%s4338_s1 + $0x254] ss:$8 sps:$4 sm:$0xff]   ;;  %v2804_v23 = vld [vmem:[%s4338_s1 + $0x250] ss:$8 sps:$4 sm:$0xff]  }
   0x9   :  { %1774 = vmatprep.subr.bf16.mxu0 %v2783_v9  ;;  %v2805_v24 = vld [vmem:[%s4338_s1 + $0x64] ss:$8 sps:$4 sm:$0xff]   ;;  %v2809_v26 = vld [vmem:[%s4338_s1 + $0x60] ss:$8 sps:$4 sm:$0xff]   ;;  %v2811_v28 = vld [vmem:[%s4338_s1 + $0x74] ss:$8 sps:$4 sm:$0xff]  }
   0xa   :  { %v2807_v25 = vld [vmem:[%s4338_s1 + $0x264] ss:$8 sps:$4 sm:$0xff]   ;;  %v2810_v27 = vld [vmem:[%s4338_s1 + $0x260] ss:$8 sps:$4 sm:$0xff]   ;;  %v2813_v29 = vld [vmem:[%s4338_s1 + $0x274] ss:$8 sps:$4 sm:$0xff]  }
   0xb   :  { %1493 = vmatpush1.bf16.msra.mxu1 %v2785_v10  ;;  %v2815_v30 = vld [vmem:[%s4338_s1 + $0x70] ss:$8 sps:$4 sm:$0xff]   ;;  %v2817_v32 = vld [vmem:[%s4338_s1 + $0x84] ss:$8 sps:$4 sm:$0xff]   ;;  %v2821_v34 = vld [vmem:[%s4338_s1 + $0x80] ss:$8 sps:$4 sm:$0xff]  }
   0xc   :  { %1775 = vmatpush1.bf16.msra.mxu0 %v2786_v11  ;;  %1494 = vmatprep.subr.bf16.mxu1 %v2787_v12  ;;  %v2816_v31 = vld [vmem:[%s4338_s1 + $0x270] ss:$8 sps:$4 sm:$0xff]   ;;  %v2819_v33 = vld [vmem:[%s4338_s1 + $0x284] ss:$8 sps:$4 sm:$0xff]   ;;  %v2822_v35 = vld [vmem:[%s4338_s1 + $0x280] ss:$8 sps:$4 sm:$0xff]  }
   0xd   :  { %1776 = vmatprep.subr.bf16.mxu0 %v2789_v13  ;;  %v2823_v36 = vld [vmem:[%s4338_s1 + $0x94] ss:$8 sps:$4 sm:$0xff]   ;;  %v2827_v38 = vld [vmem:[%s4338_s1 + $0x90] ss:$8 sps:$4 sm:$0xff]   ;;  %v2829_v40 = vld [vmem:[%s4338_s1 + $0xa4] ss:$8 sps:$4 sm:$0xff]  }
   0xe   :  { %v2825_v37 = vld [vmem:[%s4338_s1 + $0x294] ss:$8 sps:$4 sm:$0xff]   ;;  %v2828_v39 = vld [vmem:[%s4338_s1 + $0x290] ss:$8 sps:$4 sm:$0xff]   ;;  %v2831_v41 = vld [vmem:[%s4338_s1 + $0x2a4] ss:$8 sps:$4 sm:$0xff]  }
   0xf   :  { %1495 = vmatpush1.bf16.msra.mxu1 %v2791_v14  ;;  %v2833_v42 = vld [vmem:[%s4338_s1 + $0xa0] ss:$8 sps:$4 sm:$0xff]   ;;  %v2835_v44 = vld [vmem:[%s4338_s1 + $0xb4] ss:$8 sps:$4 sm:$0xff]   ;;  %v2839_v46 = vld [vmem:[%s4338_s1 + $0xb0] ss:$8 sps:$4 sm:$0xff]  }
  0x10   :  { %1777 = vmatpush1.bf16.msra.mxu0 %v2792_v15  ;;  %1496 = vmatprep.subr.bf16.mxu1 %v2793_v16  ;;  %v2834_v43 = vld [vmem:[%s4338_s1 + $0x2a0] ss:$8 sps:$4 sm:$0xff]   ;;  %v2837_v45 = vld [vmem:[%s4338_s1 + $0x2b4] ss:$8 sps:$4 sm:$0xff]   ;;  %v2840_v47 = vld [vmem:[%s4338_s1 + $0x2b0] ss:$8 sps:$4 sm:$0xff]  }
  0x11   :  { %1778 = vmatprep.subr.bf16.mxu0 %v2795_v17  ;;  %v2841_v48 = vld [vmem:[%s4338_s1 + $0xc4] ss:$8 sps:$4 sm:$0xff]   ;;  %v2870_v51 = vld [vmem:[%s4339_s0 + $0x14] ss:$36 sps:$4 sm:$0xff]   ;;  %v2845_v52 = vld [vmem:[%s4338_s1 + $0xc0] ss:$8 sps:$4 sm:$0xff]  }
  0x12   :  { %v2867_v49 = vld [vmem:[%s4339_s0 + $0x4] ss:$36 sps:$4 sm:$0xff]   ;;  %1802 = vmatprep.mubr.bf16.mxu0 %v2870_v51  ;;  %v2847_v54 = vld [vmem:[%s4338_s1 + $0xd4] ss:$8 sps:$4 sm:$0xff]   ;;  %v2851_v56 = vld [vmem:[%s4338_s1 + $0xd0] ss:$8 sps:$4 sm:$0xff]  }
  0x13   :  { %1497 = vmatpush1.bf16.msra.mxu1 %v2797_v18  ;;  %v2843_v50 = vld [vmem:[%s4338_s1 + $0x2c4] ss:$8 sps:$4 sm:$0xff]   ;;  %1520 = vmatprep.mubr.bf16.mxu1 %v2867_v49  ;;  %v2846_v53 = vld [vmem:[%s4338_s1 + $0x2c0] ss:$8 sps:$4 sm:$0xff]   ;;  %v2849_v55 = vld [vmem:[%s4338_s1 + $0x2d4] ss:$8 sps:$4 sm:$0xff]  }
  0x14   :  { %1779 = vmatpush1.bf16.msra.mxu0 %v2798_v19  ;;  %1498 = vmatprep.subr.bf16.mxu1 %v2799_v20  ;;  %v2852_v57 = vld [vmem:[%s4338_s1 + $0x2d0] ss:$8 sps:$4 sm:$0xff]   ;;  %v2853_v58 = vld [vmem:[%s4338_s1 + $0xe4] ss:$8 sps:$4 sm:$0xff]   ;;  %v2857_v60 = vld [vmem:[%s4338_s1 + $0xe0] ss:$8 sps:$4 sm:$0xff]  }
  0x15   :  { %1780 = vmatprep.subr.bf16.mxu0 %v2801_v21  ;;  %v2855_v59 = vld [vmem:[%s4338_s1 + $0x2e4] ss:$8 sps:$4 sm:$0xff]   ;;  %v2858_v61 = vld [vmem:[%s4338_s1 + $0x2e0] ss:$8 sps:$4 sm:$0xff]   ;;  %v2859_v62 = vld [vmem:[%s4338_s1 + $0xf4] ss:$8 sps:$4 sm:$0xff]  }
  0x16   :  { %v2861_v63 = vld [vmem:[%s4338_s1 + $0x2f4] ss:$8 sps:$4 sm:$0xff]   ;;  %v2863_v0 = vld [vmem:[%s4338_s1 + $0xf0] ss:$8 sps:$4 sm:$0xff]   ;;  %v3346_v2 = vld [vmem:[%s4338_s1 + $0x304] ss:$8 sps:$4 sm:$0xff]  }
  0x17   :  { %1499 = vmatpush1.bf16.msra.mxu1 %v2803_v22  ;;  %v2864_v1 = vld [vmem:[%s4338_s1 + $0x2f0] ss:$8 sps:$4 sm:$0xff]   ;;  %v2876_v3 = vld [vmem:[%s4338_s1 + $0x104] ss:$8 sps:$4 sm:$0xff]   ;;  %v3360_v6 = vld [vmem:[%s4338_s1 + $0x300] ss:$8 sps:$4 sm:$0xff]  }
  0x18   :  { %1781 = vmatpush1.bf16.msra.mxu0 %v2804_v23  ;;  %1500 = vmatprep.subr.bf16.mxu1 %v2805_v24  ;;  %v2865_v4 = vld [vmem:[%s4339_s0] ss:$36 sps:$4 sm:$0xff]   ;;  %v2868_v5 = vld [vmem:[%s4339_s0 + $0x10] ss:$36 sps:$4 sm:$0xff]   ;;  %v2884_v14 = vld [vmem:[%s4339_s0 + $0x48] ss:$36 sps:$4 sm:$0xff]  }
  0x19   :  { %1782 = vmatprep.subr.bf16.mxu0 %v2807_v25  ;;  %v2874_v7 = vld [vmem:[%s4338_s1 + $0x100] ss:$8 sps:$4 sm:$0xff]   ;;  %v2880_v8 = vld [vmem:[%s4339_s0 + $0x4c] ss:$36 sps:$4 sm:$0xff]   ;;  %v3372_v9 = vld [vmem:[%s4338_s1 + $0x314] ss:$8 sps:$4 sm:$0xff]  }
  0x1a   :  { %v2882_v10 = vld [vmem:[%s4339_s0 + $0x5c] ss:$36 sps:$4 sm:$0xff]   ;;  %v3383_v12 = vld [vmem:[%s4338_s1 + $0x310] ss:$8 sps:$4 sm:$0xff]   ;;  %v3389_v13 = vld [vmem:[%s4338_s1 + $0x324] ss:$8 sps:$4 sm:$0xff]  }
  0x1b   :  { %1501 = vmatpush1.bf16.msra.mxu1 %v2809_v26  ;;  %v2891_v11 = vld [vmem:[%s4338_s1 + $0x114] ss:$8 sps:$4 sm:$0xff]   ;;  %v2889_v15 = vld [vmem:[%s4338_s1 + $0x110] ss:$8 sps:$4 sm:$0xff]   ;;  %v2900_v17 = vld [vmem:[%s4338_s1 + $0x124] ss:$8 sps:$4 sm:$0xff]  }
  0x1c   :  { %1783 = vmatpush1.bf16.msra.mxu0 %v2810_v27  ;;  %1502 = vmatprep.subr.bf16.mxu1 %v2811_v28  ;;  %v2885_v16 = vld [vmem:[%s4339_s0 + $0x58] ss:$36 sps:$4 sm:$0xff]   ;;  %v3407_v18 = vld [vmem:[%s4338_s1 + $0x320] ss:$8 sps:$4 sm:$0xff]   ;;  %v2896_v25 = vld [vmem:[%s4339_s0 + $0x90] ss:$36 sps:$4 sm:$0xff]  }
  0x1d   :  { %1784 = vmatprep.subr.bf16.mxu0 %v2813_v29  ;;  %v2892_v19 = vld [vmem:[%s4339_s0 + $0x94] ss:$36 sps:$4 sm:$0xff]   ;;  %v2894_v20 = vld [vmem:[%s4339_s0 + $0xa4] ss:$36 sps:$4 sm:$0xff]  }
  0x1e   :  { %v3420_v21 = vld [vmem:[%s4338_s1 + $0x334] ss:$8 sps:$4 sm:$0xff]   ;;  %v2898_v22 = vld [vmem:[%s4338_s1 + $0x120] ss:$8 sps:$4 sm:$0xff]   ;;  %v3432_v24 = vld [vmem:[%s4338_s1 + $0x330] ss:$8 sps:$4 sm:$0xff]  }
  0x1f   :  { %1503 = vmatpush1.bf16.msra.mxu1 %v2815_v30  ;;  %v2911_v23 = vld [vmem:[%s4338_s1 + $0x134] ss:$8 sps:$4 sm:$0xff]   ;;  %v3441_v26 = vld [vmem:[%s4338_s1 + $0x344] ss:$8 sps:$4 sm:$0xff]   ;;  %v2909_v28 = vld [vmem:[%s4338_s1 + $0x130] ss:$8 sps:$4 sm:$0xff]  }
  0x20   :  { %1785 = vmatpush1.bf16.msra.mxu0 %v2816_v31  ;;  %1504 = vmatprep.subr.bf16.mxu1 %v2817_v32  ;;  %v2897_v27 = vld [vmem:[%s4339_s0 + $0xa0] ss:$36 sps:$4 sm:$0xff]   ;;  %v2912_v31 = vld [vmem:[%s4339_s0 + $0xec] ss:$36 sps:$4 sm:$0xff]  }
  0x21   :  { %1786 = vmatprep.subr.bf16.mxu0 %v2819_v33  ;;  %v3452_v29 = vld [vmem:[%s4338_s1 + $0x340] ss:$8 sps:$4 sm:$0xff]   ;;  %v2918_v33 = vld [vmem:[%s4338_s1 + $0x144] ss:$8 sps:$4 sm:$0xff]   ;;  %v2927_v49 = vld [vmem:[%s4339_s0 + $0x130] ss:$36 sps:$4 sm:$0xff]  }
  0x22   :  { %v2907_v30 = vld [vmem:[%s4339_s0 + $0xdc] ss:$36 sps:$4 sm:$0xff]   ;;  %v3540_v51 = vld [vmem:[%s4338_s1 + $0x384] ss:$8 sps:$4 sm:$0xff]  }
  0x23   :  { %1505 = vmatpush1.bf16.msra.mxu1 %v2821_v34  ;;  %v2916_v32 = vld [vmem:[%s4338_s1 + $0x140] ss:$8 sps:$4 sm:$0xff]   ;;  %v3471_v34 = vld [vmem:[%s4338_s1 + $0x354] ss:$8 sps:$4 sm:$0xff]  }
  0x24   :  { %1787 = vmatpush1.bf16.msra.mxu0 %v2822_v35  ;;  %1506 = vmatprep.subr.bf16.mxu1 %v2823_v36  ;;  %v2933_v35 = vld [vmem:[%s4338_s1 + $0x154] ss:$8 sps:$4 sm:$0xff]  }
  0x25   :  { %1788 = vmatprep.subr.bf16.mxu0 %v2825_v37  ;;  %v2914_v36 = vld [vmem:[%s4339_s0 + $0xd8] ss:$36 sps:$4 sm:$0xff]   ;;  %v2915_v37 = vld [vmem:[%s4339_s0 + $0xe8] ss:$36 sps:$4 sm:$0xff]  }
  0x27   :  { %1507 = vmatpush1.bf16.msra.mxu1 %v2827_v38  ;;  %v3486_v38 = vld [vmem:[%s4338_s1 + $0x350] ss:$8 sps:$4 sm:$0xff]  }
  0x28   :  { %1789 = vmatpush1.bf16.msra.mxu0 %v2828_v39  ;;  %1508 = vmatprep.subr.bf16.mxu1 %v2829_v40  ;;  %v2922_v39 = vld [vmem:[%s4339_s0 + $0x124] ss:$36 sps:$4 sm:$0xff]  }
  0x29   :  { %1790 = vmatprep.subr.bf16.mxu0 %v2831_v41  ;;  %v3495_v40 = vld [vmem:[%s4338_s1 + $0x364] ss:$8 sps:$4 sm:$0xff]   ;;  %v2931_v41 = vld [vmem:[%s4338_s1 + $0x150] ss:$8 sps:$4 sm:$0xff]  }
  0x2b   :  { %1509 = vmatpush1.bf16.msra.mxu1 %v2833_v42  ;;  %v2924_v42 = vld [vmem:[%s4339_s0 + $0x134] ss:$36 sps:$4 sm:$0xff]  }
  0x2c   :  { %1791 = vmatpush1.bf16.msra.mxu0 %v2834_v43  ;;  %1510 = vmatprep.subr.bf16.mxu1 %v2835_v44  ;;  %v3506_v43 = vld [vmem:[%s4338_s1 + $0x360] ss:$8 sps:$4 sm:$0xff]  }
  0x2d   :  { %1792 = vmatprep.subr.bf16.mxu0 %v2837_v45  ;;  %v2936_v44 = vld [vmem:[%s4338_s1 + $0x160] ss:$8 sps:$4 sm:$0xff]   ;;  %v2938_v45 = vld [vmem:[%s4338_s1 + $0x164] ss:$8 sps:$4 sm:$0xff]  }
  0x2f   :  { %1511 = vmatpush1.bf16.msra.mxu1 %v2839_v46  ;;  %v3519_v46 = vld [vmem:[%s4338_s1 + $0x374] ss:$8 sps:$4 sm:$0xff]  }
  0x30   :  { %1793 = vmatpush1.bf16.msra.mxu0 %v2840_v47  ;;  %1512 = vmatprep.subr.bf16.mxu1 %v2841_v48  ;;  %v2951_v47 = vld [vmem:[%s4338_s1 + $0x174] ss:$8 sps:$4 sm:$0xff]   ;;  %v2926_v48 = vld [vmem:[%s4339_s0 + $0x120] ss:$36 sps:$4 sm:$0xff]  }
  0x31   :  { %1794 = vmatprep.subr.bf16.mxu0 %v2843_v50  ;;  %v3534_v50 = vld [vmem:[%s4338_s1 + $0x370] ss:$8 sps:$4 sm:$0xff]  }
  0x33   :  { %1513 = vmatpush1.bf16.msra.mxu1 %v2845_v52  ;;  %v2949_v52 = vld [vmem:[%s4338_s1 + $0x170] ss:$8 sps:$4 sm:$0xff]  }
  0x34   :  { %1795 = vmatpush1.bf16.msra.mxu0 %v2846_v53  ;;  %1514 = vmatprep.subr.bf16.mxu1 %v2847_v54  ;;  %v2934_v53 = vld [vmem:[%s4339_s0 + $0x16c] ss:$36 sps:$4 sm:$0xff]   ;;  %v2939_v54 = vld [vmem:[%s4339_s0 + $0x17c] ss:$36 sps:$4 sm:$0xff]  }
  0x35   :  { %1796 = vmatprep.subr.bf16.mxu0 %v2849_v55  ;;  %v3554_v55 = vld [vmem:[%s4338_s1 + $0x380] ss:$8 sps:$4 sm:$0xff]  }
  0x37   :  { %1515 = vmatpush1.bf16.msra.mxu1 %v2851_v56  ;;  %v2960_v56 = vld [vmem:[%s4338_s1 + $0x184] ss:$8 sps:$4 sm:$0xff]  }
  0x38   :  { %1797 = vmatpush1.bf16.msra.mxu0 %v2852_v57  ;;  %1516 = vmatprep.subr.bf16.mxu1 %v2853_v58  ;;  %v2958_v57 = vld [vmem:[%s4338_s1 + $0x180] ss:$8 sps:$4 sm:$0xff]   ;;  %v3567_v58 = vld [vmem:[%s4338_s1 + $0x394] ss:$8 sps:$4 sm:$0xff]  }
  0x39   :  { %1798 = vmatprep.subr.bf16.mxu0 %v2855_v59  ;;  %v2974_v59 = vld [vmem:[%s4338_s1 + $0x194] ss:$8 sps:$4 sm:$0xff]  }
  0x3b   :  { %1517 = vmatpush1.bf16.msra.mxu1 %v2857_v60  ;;  %v3575_v60 = vld [vmem:[%s4338_s1 + $0x390] ss:$8 sps:$4 sm:$0xff]  }
  0x3c   :  { %1799 = vmatpush1.bf16.msra.mxu0 %v2858_v61  ;;  %1518 = vmatprep.subr.bf16.mxu1 %v2859_v62  ;;  %v2944_v61 = vld [vmem:[%s4339_s0 + $0x168] ss:$36 sps:$4 sm:$0xff]  }
  0x3d   :  { %1800 = vmatprep.subr.bf16.mxu0 %v2861_v63  ;;  %v3584_v62 = vld [vmem:[%s4338_s1 + $0x3a4] ss:$8 sps:$4 sm:$0xff]   ;;  %v2972_v63 = vld [vmem:[%s4338_s1 + $0x190] ss:$8 sps:$4 sm:$0xff]  }
  0x3f   :  { %1519 = vmatpush1.bf16.msra.mxu1 %v2863_v0  ;;  %v2945_v0 = vld [vmem:[%s4339_s0 + $0x178] ss:$36 sps:$4 sm:$0xff]  }
  0x40   :  { %1801 = vmatpush1.bf16.msra.mxu0 %v2864_v1  ;;  %1629 = vmatprep.subr.bf16.mxu1 %v2876_v3  ;;  %v2952_v1 = vld [vmem:[%s4339_s0 + $0x1b4] ss:$36 sps:$4 sm:$0xff]   ;;  %v2954_v3 = vld [vmem:[%s4339_s0 + $0x1c4] ss:$36 sps:$4 sm:$0xff]  }
  0x41   :  { %1911 = vmatprep.subr.bf16.mxu0 %v3346_v2 }
  0x42   :  { %1521 = vmatmul.mubr.bf16.vlgmr.msra.gmra.mrb[0].mxu1 %v2865_v4  ;;  %v3602_v4 = vld [vmem:[%s4338_s1 + $0x3a0] ss:$8 sps:$4 sm:$0xff]  }
  0x43   :  { %1803 = vmatmul.mubr.bf16.vlgmr.msra.gmra.mrb[0].mxu0 %v2868_v5  ;;  %1530 = vmatprep.mubr.bf16.mxu1 %v2880_v8  ;;  %v2978_v5 = vld [vmem:[%s4338_s1 + $0x1a4] ss:$8 sps:$4 sm:$0xff]   ;;  %v3615_v8 = vld [vmem:[%s4338_s1 + $0x3b4] ss:$8 sps:$4 sm:$0xff]  }
  0x44   :  { %1912 = vmatpush1.bf16.msra.mxu0 %v3360_v6  ;;  %1630 = vmatpush1.bf16.msra.mxu1 %v2874_v7  ;;  %v2976_v7 = vld [vmem:[%s4338_s1 + $0x1a0] ss:$8 sps:$4 sm:$0xff]  }
  0x45   :  { %1913 = vmatprep.subr.bf16.mxu0 %v3372_v9  ;;  %1812 = vmatprep.mubr.bf16.mxu0 %v2882_v10  ;;  %v2993_v10 = vld [vmem:[%s4338_s1 + $0x1b4] ss:$8 sps:$4 sm:$0xff]  }
  0x46   :  { %1631 = vmatprep.subr.bf16.mxu1 %v2891_v11  ;;  %v2956_v11 = vld [vmem:[%s4339_s0 + $0x1b0] ss:$36 sps:$4 sm:$0xff]  }
  0x48   :  { %1914 = vmatpush1.bf16.msra.mxu0 %v3383_v12  ;;  %1632 = vmatpush1.bf16.msra.mxu1 %v2889_v15  ;;  %v3630_v15 = vld [vmem:[%s4338_s1 + $0x3b0] ss:$8 sps:$4 sm:$0xff]  }
  0x49   :  { %1915 = vmatprep.subr.bf16.mxu0 %v3389_v13  ;;  %1633 = vmatprep.subr.bf16.mxu1 %v2900_v17  ;;  %v2991_v17 = vld [vmem:[%s4338_s1 + $0x1b0] ss:$8 sps:$4 sm:$0xff]  }
  0x4a   :  { %1531 = vmatmul.mubr.bf16.gmra.mrb[4].mxu1 %v2884_v14  ;;  %v2957_v14 = vld [vmem:[%s4339_s0 + $0x1c0] ss:$36 sps:$4 sm:$0xff]  }
  0x4b   :  { %1813 = vmatmul.mubr.bf16.gmra.mrb[4].mxu0 %v2885_v16  ;;  %1540 = vmatprep.mubr.bf16.mxu1 %v2892_v19  ;;  %v3635_v16 = vld [vmem:[%s4338_s1 + $0x3c4] ss:$8 sps:$4 sm:$0xff]   ;;  %v2964_v19 = vld [vmem:[%s4339_s0 + $0x1fc] ss:$36 sps:$4 sm:$0xff]  }
  0x4c   :  { %1916 = vmatpush1.bf16.msra.mxu0 %v3407_v18  ;;  %1822 = vmatprep.mubr.bf16.mxu0 %v2894_v20  ;;  %v2966_v20 = vld [vmem:[%s4339_s0 + $0x20c] ss:$36 sps:$4 sm:$0xff]  }
  0x4d   :  { %1917 = vmatprep.subr.bf16.mxu0 %v3420_v21  ;;  %1634 = vmatpush1.bf16.msra.mxu1 %v2898_v22  ;;  %v3650_v22 = vld [vmem:[%s4338_s1 + $0x3c0] ss:$8 sps:$4 sm:$0xff]  }
  0x4e   :  { %1635 = vmatprep.subr.bf16.mxu1 %v2911_v23  ;;  %v2999_v23 = vld [vmem:[%s4338_s1 + $0x1c0] ss:$8 sps:$4 sm:$0xff]  }
  0x50   :  { %1918 = vmatpush1.bf16.msra.mxu0 %v3432_v24 }
  0x51   :  { %1919 = vmatprep.subr.bf16.mxu0 %v3441_v26  ;;  %1636 = vmatpush1.bf16.msra.mxu1 %v2909_v28  ;;  %v3008_v28 = vld [vmem:[%s4338_s1 + $0x1d4] ss:$8 sps:$4 sm:$0xff]  }
  0x52   :  { %1541 = vmatmul.mubr.bf16.gmra.mrb[8].mxu1 %v2896_v25  ;;  %1637 = vmatprep.subr.bf16.mxu1 %v2918_v33  ;;  %v3001_v25 = vld [vmem:[%s4338_s1 + $0x1c4] ss:$8 sps:$4 sm:$0xff]   ;;  %v3006_v33 = vld [vmem:[%s4338_s1 + $0x1d0] ss:$8 sps:$4 sm:$0xff]  }
  0x53   :  { %1823 = vmatmul.mubr.bf16.gmra.mrb[8].mxu0 %v2897_v27  ;;  %1550 = vmatprep.mubr.bf16.mxu1 %v2907_v30  ;;  %v3663_v27 = vld [vmem:[%s4338_s1 + $0x3d4] ss:$8 sps:$4 sm:$0xff]  }
  0x54   :  { %1832 = vmatprep.mubr.bf16.mxu0 %v2912_v31  ;;  %1920 = vmatpush1.bf16.msra.mxu0 %v3452_v29  ;;  %v2971_v30 = vld [vmem:[%s4339_s0 + $0x1f8] ss:$36 sps:$4 sm:$0xff]   ;;  %v2975_v31 = vld [vmem:[%s4339_s0 + $0x208] ss:$36 sps:$4 sm:$0xff]  }
  0x55   :  { %1921 = vmatprep.subr.bf16.mxu0 %v3471_v34  ;;  %1638 = vmatpush1.bf16.msra.mxu1 %v2916_v32  ;;  %v3678_v32 = vld [vmem:[%s4338_s1 + $0x3d0] ss:$8 sps:$4 sm:$0xff]  }
  0x56   :  { %1639 = vmatprep.subr.bf16.mxu1 %v2933_v35  ;;  %v3687_v35 = vld [vmem:[%s4338_s1 + $0x3e4] ss:$8 sps:$4 sm:$0xff]  }
  0x58   :  { %1922 = vmatpush1.bf16.msra.mxu0 %v3486_v38 }
  0x59   :  { %1923 = vmatprep.subr.bf16.mxu0 %v3495_v40  ;;  %1640 = vmatpush1.bf16.msra.mxu1 %v2931_v41  ;;  %v3015_v41 = vld [vmem:[%s4338_s1 + $0x1e0] ss:$8 sps:$4 sm:$0xff]  }
  0x5a   :  { %1551 = vmatmul.mubr.bf16.gmra.mrb[12].mxu1 %v2914_v36  ;;  %1641 = vmatprep.subr.bf16.mxu1 %v2938_v45  ;;  %v2982_v36 = vld [vmem:[%s4339_s0 + $0x244] ss:$36 sps:$4 sm:$0xff]   ;;  %v3024_v45 = vld [vmem:[%s4338_s1 + $0x1f4] ss:$8 sps:$4 sm:$0xff]  }
  0x5b   :  { %1833 = vmatmul.mubr.bf16.gmra.mrb[12].mxu0 %v2915_v37  ;;  %1560 = vmatprep.mubr.bf16.mxu1 %v2922_v39  ;;  %v2984_v37 = vld [vmem:[%s4339_s0 + $0x254] ss:$36 sps:$4 sm:$0xff]   ;;  %v3698_v39 = vld [vmem:[%s4338_s1 + $0x3e0] ss:$8 sps:$4 sm:$0xff]  }
  0x5c   :  { %1842 = vmatprep.mubr.bf16.mxu0 %v2924_v42  ;;  %1924 = vmatpush1.bf16.msra.mxu0 %v3506_v43  ;;  %v3017_v42 = vld [vmem:[%s4338_s1 + $0x1e4] ss:$8 sps:$4 sm:$0xff]  }
  0x5d   :  { %1925 = vmatprep.subr.bf16.mxu0 %v3519_v46  ;;  %1642 = vmatpush1.bf16.msra.mxu1 %v2936_v44  ;;  %v3711_v44 = vld [vmem:[%s4338_s1 + $0x3f4] ss:$8 sps:$4 sm:$0xff]  }
  0x5e   :  { %1643 = vmatprep.subr.bf16.mxu1 %v2951_v47  ;;  %v2986_v47 = vld [vmem:[%s4339_s0 + $0x240] ss:$36 sps:$4 sm:$0xff]  }
  0x60   :  { %1926 = vmatpush1.bf16.msra.mxu0 %v3534_v50 }
  0x61   :  { %1927 = vmatprep.subr.bf16.mxu0 %v3540_v51  ;;  %1644 = vmatpush1.bf16.msra.mxu1 %v2949_v52  ;;  %v3033_v52 = vld [vmem:[%s4338_s1 + $0x404] ss:$8 sps:$4 sm:$0xff]  }
  0x62   :  { %1561 = vmatmul.mubr.bf16.gmra.mrb[16].mxu1 %v2926_v48  ;;  %1645 = vmatprep.subr.bf16.mxu1 %v2960_v56  ;;  %v3723_v48 = vld [vmem:[%s4338_s1 + $0x3f0] ss:$8 sps:$4 sm:$0xff]   ;;  %v2996_v56 = vld [vmem:[%s4339_s0 + $0x29c] ss:$36 sps:$4 sm:$0xff]  }
  0x63   :  { %1843 = vmatmul.mubr.bf16.gmra.mrb[16].mxu0 %v2927_v49  ;;  %1570 = vmatprep.mubr.bf16.mxu1 %v2934_v53  ;;  %v3022_v49 = vld [vmem:[%s4338_s1 + $0x1f0] ss:$8 sps:$4 sm:$0xff]  }
  0x64   :  { %1852 = vmatprep.mubr.bf16.mxu0 %v2939_v54  ;;  %1928 = vmatpush1.bf16.msra.mxu0 %v3554_v55  ;;  %v2987_v53 = vld [vmem:[%s4339_s0 + $0x250] ss:$36 sps:$4 sm:$0xff]  }
  0x65   :  { %1929 = vmatprep.subr.bf16.mxu0 %v3567_v58  ;;  %1646 = vmatpush1.bf16.msra.mxu1 %v2958_v57  ;;  %v2994_v54 = vld [vmem:[%s4339_s0 + $0x28c] ss:$36 sps:$4 sm:$0xff]  }
  0x66   :  { %1647 = vmatprep.subr.bf16.mxu1 %v2974_v59  ;;  %v115_v57 = vld [vmem:[%s4339_s0 + $0x2d0] sm:$0x11]  ;;  %v117_v59 = vld [vmem:[%s4339_s0 + $0x2e0] sm:$0x11] }
  0x68   :  { %1930 = vmatpush1.bf16.msra.mxu0 %v3575_v60 }
  0x69   :  { %1931 = vmatprep.subr.bf16.mxu0 %v3584_v62  ;;  %1648 = vmatpush1.bf16.msra.mxu1 %v2972_v63  ;;  %v3002_v63 = vld [vmem:[%s4339_s0 + $0x298] ss:$36 sps:$4 sm:$0xff]  }
  0x6a   :  { %1571 = vmatmul.mubr.bf16.gmra.mrb[20].mxu1 %v2944_v61  ;;  %1649 = vmatprep.subr.bf16.mxu1 %v2978_v5  ;;  %v2998_v61 = vld [vmem:[%s4339_s0 + $0x288] ss:$36 sps:$4 sm:$0xff]   ;;  %v2375_v5 = vcombine.low %v117_v59, %v117_v59 }
  0x6b   :  { %1853 = vmatmul.mubr.bf16.gmra.mrb[20].mxu0 %v2945_v0  ;;  %1580 = vmatprep.mubr.bf16.mxu1 %v2952_v1  ;;  %v2372_v0 = vcombine.high %v115_v57, %v115_v57  ;;  %v2376_v1 = vcombine.high %v117_v59, %v117_v59  ;;  %v3104_v59 = vld [vmem:[%s4339_s0 + $0x1c8] ss:$36 sps:$4 sm:$0xff]  }
  0x6c   :  { %1862 = vmatprep.mubr.bf16.mxu0 %v2954_v3  ;;  %1932 = vmatpush1.bf16.msra.mxu0 %v3602_v4  ;;  %v2371_v3 = vcombine.low %v115_v57, %v115_v57  ;;  %v3106_v57 = vld [vmem:[%s4339_s0 + $0x1cc] ss:$36 sps:$4 sm:$0xff]  }
  0x6d   :  { %1933 = vmatprep.subr.bf16.mxu0 %v3615_v8  ;;  %1650 = vmatpush1.bf16.msra.mxu1 %v2976_v7  ;;  %v3030_v7 = vld [vmem:[%s4339_s0 + $0x1c] ss:$36 sps:$4 sm:$0xff]  }
  0x6e   :  { %1651 = vmatprep.subr.bf16.mxu1 %v2993_v10  ;;  %v3025_v10 = vld [vmem:[%s4339_s0 + $0x8] ss:$36 sps:$4 sm:$0xff]  }
  0x70   :  { %1934 = vmatpush1.bf16.msra.mxu0 %v3630_v15 }
  0x71   :  { %1935 = vmatprep.subr.bf16.mxu0 %v3635_v16  ;;  %1652 = vmatpush1.bf16.msra.mxu1 %v2991_v17  ;;  %v3037_v17 = vld [vmem:[%s4339_s0 + $0x54] ss:$36 sps:$4 sm:$0xff]  }
  0x72   :  { %1581 = vmatmul.mubr.bf16.gmra.mrb[24].mxu1 %v2956_v11  ;;  %1653 = vmatprep.subr.bf16.mxu1 %v3001_v25  ;;  %v3028_v11 = vld [vmem:[%s4339_s0 + $0x18] ss:$36 sps:$4 sm:$0xff]   ;;  %v3045_v25 = vld [vmem:[%s4338_s1 + $0x424] ss:$8 sps:$4 sm:$0xff]  }
  0x73   :  { %1863 = vmatmul.mubr.bf16.gmra.mrb[24].mxu0 %v2957_v14  ;;  %1590 = vmatprep.mubr.bf16.mxu1 %v2964_v19  ;;  %v3031_v14 = vld [vmem:[%s4338_s1 + $0x400] ss:$8 sps:$4 sm:$0xff]   ;;  %v3036_v19 = vld [vmem:[%s4338_s1 + $0x414] ss:$8 sps:$4 sm:$0xff]  }
  0x74   :  { %1872 = vmatprep.mubr.bf16.mxu0 %v2966_v20  ;;  %1936 = vmatpush1.bf16.msra.mxu0 %v3650_v22  ;;  %v3039_v20 = vld [vmem:[%s4339_s0 + $0x64] ss:$36 sps:$4 sm:$0xff]  }
  0x75   :  { %1937 = vmatprep.subr.bf16.mxu0 %v3663_v27  ;;  %1654 = vmatpush1.bf16.msra.mxu1 %v2999_v23  ;;  %v3034_v23 = vld [vmem:[%s4338_s1 + $0x410] ss:$8 sps:$4 sm:$0xff]  }
  0x76   :  { %1655 = vmatprep.subr.bf16.mxu1 %v3008_v28  ;;  %v3041_v28 = vld [vmem:[%s4339_s0 + $0x50] ss:$36 sps:$4 sm:$0xff]  }
  0x78   :  { %1938 = vmatpush1.bf16.msra.mxu0 %v3678_v32 }
  0x79   :  { %1656 = vmatpush1.bf16.msra.mxu1 %v3006_v33  ;;  %1939 = vmatprep.subr.bf16.mxu0 %v3687_v35  ;;  %v3054_v33 = vld [vmem:[%s4338_s1 + $0x434] ss:$8 sps:$4 sm:$0xff]  }
  0x7a   :  { %1591 = vmatmul.mubr.bf16.gmra.mrb[28].mxu1 %v2971_v30  ;;  %1657 = vmatprep.subr.bf16.mxu1 %v3017_v42  ;;  %v3042_v30 = vld [vmem:[%s4339_s0 + $0x60] ss:$36 sps:$4 sm:$0xff]   ;;  %v3066_v42 = vld [vmem:[%s4338_s1 + $0x454] ss:$8 sps:$4 sm:$0xff]  }
  0x7b   :  { %1873 = vmatmul.mubr.bf16.gmra.mrb[28].mxu0 %v2975_v31  ;;  %1600 = vmatprep.mubr.bf16.mxu1 %v2982_v36  ;;  %v3043_v31 = vld [vmem:[%s4338_s1 + $0x420] ss:$8 sps:$4 sm:$0xff]   ;;  %v3052_v36 = vld [vmem:[%s4338_s1 + $0x430] ss:$8 sps:$4 sm:$0xff]  }
  0x7c   :  { %1882 = vmatprep.mubr.bf16.mxu0 %v2984_v37  ;;  %1940 = vmatpush1.bf16.msra.mxu0 %v3698_v39  ;;  %v3051_v37 = vld [vmem:[%s4339_s0 + $0xa8] ss:$36 sps:$4 sm:$0xff]  }
  0x7d   :  { %1658 = vmatpush1.bf16.msra.mxu1 %v3015_v41  ;;  %1941 = vmatprep.subr.bf16.mxu0 %v3711_v44  ;;  %v3057_v41 = vld [vmem:[%s4339_s0 + $0xf4] ss:$36 sps:$4 sm:$0xff]  }
  0x7e   :  { %1659 = vmatprep.subr.bf16.mxu1 %v3024_v45  ;;  %v3059_v45 = vld [vmem:[%s4339_s0 + $0xe0] ss:$36 sps:$4 sm:$0xff]  }
  0x80   :  { %1942 = vmatpush1.bf16.msra.mxu0 %v3723_v48 }
  0x81   :  { %1660 = vmatpush1.bf16.msra.mxu1 %v3022_v49  ;;  %2052 = vmatprep.subr.bf16.mxu0 %v3033_v52  ;;  %v3073_v49 = vld [vmem:[%s4338_s1 + $0x460] ss:$8 sps:$4 sm:$0xff]   ;;  %v3084_v52 = vld [vmem:[%s4338_s1 + $0x474] ss:$8 sps:$4 sm:$0xff]  }
  0x82   :  { %1601 = vmatmul.mubr.bf16.gmra.mrb[32].mxu1 %v2986_v47  ;;  %2524 = vmatprep.subr.bf16.mxu1 %v3346_v2  ;;  %v3027_v2 = vld [vmem:[%s4339_s0 + $0xc] ss:$36 sps:$4 sm:$0xff]  }
  0x83   :  { %1883 = vmatmul.mubr.bf16.gmra.mrb[32].mxu0 %v2987_v53  ;;  %1610 = vmatprep.mubr.bf16.mxu1 %v2994_v54  ;;  %v3060_v47 = vld [vmem:[%s4339_s0 + $0xf0] ss:$36 sps:$4 sm:$0xff]   ;;  %v3072_v53 = vld [vmem:[%s4339_s0 + $0x138] ss:$36 sps:$4 sm:$0xff]  }
  0x84   :  { %1892 = vmatprep.mubr.bf16.mxu0 %v2996_v56  ;;  %v3076_v54 = vld [vmem:[%s4339_s0 + $0x174] ss:$36 sps:$4 sm:$0xff]   ;;  %v3081_v56 = vld [vmem:[%s4339_s0 + $0x180] ss:$36 sps:$4 sm:$0xff]  }
  0x8a   :  { %1611 = vmatmul.mubr.bf16.gmra.mrb[36].mxu1 %v2998_v61  ;;  %v3107_v61 = vld [vmem:[%s4339_s0 + $0x188] ss:$36 sps:$4 sm:$0xff]  }
  0x8b   :  { %1893 = vmatmul.mubr.bf16.gmra.mrb[36].mxu0 %v3002_v63  ;;  %1620 = vmatprep.mubr.bf16.mxu1 %v2372_v0  ;;  %v3108_v63 = vld [vmem:[%s4339_s0 + $0x214] ss:$36 sps:$4 sm:$0xff]  }
  0x8c   :  { %1902 = vmatprep.mubr.bf16.mxu0 %v2376_v1  ;;  %v3110_v0 = vld [vmem:[%s4339_s0 + $0x210] ss:$36 sps:$4 sm:$0xff]  }
  0x8d   :  { %v3111_v1 = vld [vmem:[%s4339_s0 + $0x1d0] ss:$36 sps:$4 sm:$0xff]  }
  0x92   :  { %1621 = vmatmul.mubr.bf16.gmra.mrb[40].mxu1 %v2371_v3  ;;  %v3112_v3 = vld [vmem:[%s4339_s0 + $0x25c] ss:$36 sps:$4 sm:$0xff]  }
  0x93   :  { %1903 = vmatmul.mubr.bf16.gmra.mrb[40].mxu0 %v2375_v5  ;;  %1661 = vmatprep.mubr.bf16.mxu1 %v3027_v2  ;;  %v3114_v5 = vld [vmem:[%s4339_s0 + $0x258] ss:$36 sps:$4 sm:$0xff]  }
  0x94   :  { %1943 = vmatprep.mubr.bf16.mxu0 %v3030_v7  ;;  %v3115_v2 = vld [vmem:[%s4339_s0 + $0x218] ss:$36 sps:$4 sm:$0xff]   ;;  %v3116_v7 = vld [vmem:[%s4339_s0 + $0x2a4] ss:$36 sps:$4 sm:$0xff]  }
  0x9a   :  { %1662 = vmatmul.mubr.bf16.vlgmr.msra.gmra.mrb[0].mxu1 %v3025_v10  ;;  %v118_v10 = vld [vmem:[%s4339_s0 + $0x2e8] sm:$0x11] }
  0x9b   :  { %1944 = vmatmul.mubr.bf16.vlgmr.msra.gmra.mrb[0].mxu0 %v3028_v11  ;;  %1671 = vmatprep.mubr.bf16.mxu1 %v3037_v17  ;;  %v3118_v11 = vld [vmem:[%s4339_s0 + $0x2a0] ss:$36 sps:$4 sm:$0xff]   ;;  %v2378_v17 = vcombine.high %v118_v10, %v118_v10 }
  0x9c   :  { %2053 = vmatpush1.bf16.msra.mxu0 %v3031_v14  ;;  %2540 = vmatpush1.bf16.msra.mxu1 %v3360_v6  ;;  %v3046_v6 = vld [vmem:[%s4339_s0 + $0x9c] ss:$36 sps:$4 sm:$0xff]  }
  0x9d   :  { %2054 = vmatprep.subr.bf16.mxu0 %v3036_v19  ;;  %1953 = vmatprep.mubr.bf16.mxu0 %v3039_v20  ;;  %v3119_v14 = vld [vmem:[%s4339_s0 + $0x260] ss:$36 sps:$4 sm:$0xff]   ;;  %v2377_v19 = vcombine.low %v118_v10, %v118_v10  ;;  %v3122_v20 = vld [vmem:[%s4339_s0 + $0x2a8] ss:$36 sps:$4 sm:$0xff]  }
  0x9e   :  { %2525 = vmatprep.subr.bf16.mxu1 %v3372_v9  ;;  %v3048_v9 = vld [vmem:[%s4339_s0 + $0xac] ss:$36 sps:$4 sm:$0xff]  }
  0xa0   :  { %2055 = vmatpush1.bf16.msra.mxu0 %v3034_v23  ;;  %2541 = vmatpush1.bf16.msra.mxu1 %v3383_v12  ;;  %v3063_v12 = vld [vmem:[%s4338_s1 + $0x444] ss:$8 sps:$4 sm:$0xff]   ;;  %v3123_v23 = vld [vmem:[%s4339_s0 + $0x2f0] ss:$0 sps:$4 sm:$0x11]  }
  0xa1   :  { %2056 = vmatprep.subr.bf16.mxu0 %v3045_v25  ;;  %2526 = vmatprep.subr.bf16.mxu1 %v3389_v13  ;;  %v3050_v13 = vld [vmem:[%s4339_s0 + $0x98] ss:$36 sps:$4 sm:$0xff]  }
  0xa2   :  { %1672 = vmatmul.mubr.bf16.gmra.mrb[4].mxu1 %v3041_v28 }
  0xa3   :  { %1954 = vmatmul.mubr.bf16.gmra.mrb[4].mxu0 %v3042_v30  ;;  %1681 = vmatprep.mubr.bf16.mxu1 %v3046_v6 }
  0xa4   :  { %2057 = vmatpush1.bf16.msra.mxu0 %v3043_v31  ;;  %1963 = vmatprep.mubr.bf16.mxu0 %v3048_v9 }
  0xa5   :  { %2542 = vmatpush1.bf16.msra.mxu1 %v3407_v18  ;;  %2058 = vmatprep.subr.bf16.mxu0 %v3054_v33  ;;  %v3055_v18 = vld [vmem:[%s4339_s0 + $0xe4] ss:$36 sps:$4 sm:$0xff]  }
  0xa6   :  { %2527 = vmatprep.subr.bf16.mxu1 %v3420_v21  ;;  %v3061_v21 = vld [vmem:[%s4338_s1 + $0x440] ss:$8 sps:$4 sm:$0xff]  }
  0xa8   :  { %2059 = vmatpush1.bf16.msra.mxu0 %v3052_v36 }
  0xa9   :  { %2543 = vmatpush1.bf16.msra.mxu1 %v3432_v24  ;;  %2060 = vmatprep.subr.bf16.mxu0 %v3063_v12  ;;  %v3064_v24 = vld [vmem:[%s4338_s1 + $0x450] ss:$8 sps:$4 sm:$0xff]  }
  0xaa   :  { %2528 = vmatprep.subr.bf16.mxu1 %v3441_v26  ;;  %1682 = vmatmul.mubr.bf16.gmra.mrb[8].mxu1 %v3050_v13  ;;  %v3075_v26 = vld [vmem:[%s4338_s1 + $0x464] ss:$8 sps:$4 sm:$0xff]  }
  0xab   :  { %1964 = vmatmul.mubr.bf16.gmra.mrb[8].mxu0 %v3051_v37  ;;  %1691 = vmatprep.mubr.bf16.mxu1 %v3055_v18 }
  0xac   :  { %1973 = vmatprep.mubr.bf16.mxu0 %v3057_v41  ;;  %2061 = vmatpush1.bf16.msra.mxu0 %v3061_v21 }
  0xad   :  { %2544 = vmatpush1.bf16.msra.mxu1 %v3452_v29  ;;  %2062 = vmatprep.subr.bf16.mxu0 %v3066_v42  ;;  %v3067_v29 = vld [vmem:[%s4339_s0 + $0x12c] ss:$36 sps:$4 sm:$0xff]  }
  0xae   :  { %2529 = vmatprep.subr.bf16.mxu1 %v3471_v34  ;;  %v3069_v34 = vld [vmem:[%s4339_s0 + $0x13c] ss:$36 sps:$4 sm:$0xff]  }
  0xb0   :  { %2063 = vmatpush1.bf16.msra.mxu0 %v3064_v24 }
  0xb1   :  { %2545 = vmatpush1.bf16.msra.mxu1 %v3486_v38  ;;  %2064 = vmatprep.subr.bf16.mxu0 %v3075_v26  ;;  %v3082_v38 = vld [vmem:[%s4338_s1 + $0x470] ss:$8 sps:$4 sm:$0xff]  }
  0xb2   :  { %2530 = vmatprep.subr.bf16.mxu1 %v3495_v40  ;;  %1692 = vmatmul.mubr.bf16.gmra.mrb[12].mxu1 %v3059_v45  ;;  %v3071_v40 = vld [vmem:[%s4339_s0 + $0x128] ss:$36 sps:$4 sm:$0xff]  }
  0xb3   :  { %1974 = vmatmul.mubr.bf16.gmra.mrb[12].mxu0 %v3060_v47  ;;  %1701 = vmatprep.mubr.bf16.mxu1 %v3067_v29 }
  0xb4   :  { %1983 = vmatprep.mubr.bf16.mxu0 %v3069_v34  ;;  %2065 = vmatpush1.bf16.msra.mxu0 %v3073_v49 }
  0xb5   :  { %2546 = vmatpush1.bf16.msra.mxu1 %v3506_v43  ;;  %2066 = vmatprep.subr.bf16.mxu0 %v3084_v52  ;;  %v3078_v43 = vld [vmem:[%s4339_s0 + $0x184] ss:$36 sps:$4 sm:$0xff]  }
  0xb6   :  { %2531 = vmatprep.subr.bf16.mxu1 %v3519_v46  ;;  %v3080_v46 = vld [vmem:[%s4339_s0 + $0x170] ss:$36 sps:$4 sm:$0xff]  }
  0xb8   :  { %2067 = vmatpush1.bf16.msra.mxu0 %v3082_v38 }
  0xb9   :  { %2547 = vmatpush1.bf16.msra.mxu1 %v3534_v50  ;;  %v3085_v50 = vld [vmem:[%s4339_s0 + $0x1bc] ss:$36 sps:$4 sm:$0xff]  }
  0xba   :  { %2532 = vmatprep.subr.bf16.mxu1 %v3540_v51  ;;  %1702 = vmatmul.mubr.bf16.gmra.mrb[16].mxu1 %v3071_v40  ;;  %v3124_v51 = vmov 0  }
  0xbb   :  { %1984 = vmatmul.mubr.bf16.gmra.mrb[16].mxu0 %v3072_v53  ;;  %1711 = vmatprep.mubr.bf16.mxu1 %v3076_v54 }
  0xbc   :  { %1993 = vmatprep.mubr.bf16.mxu0 %v3078_v43 }
  0xbd   :  { %2548 = vmatpush1.bf16.msra.mxu1 %v3554_v55  ;;  %v3087_v55 = vld [vmem:[%s4339_s0 + $0x1b8] ss:$36 sps:$4 sm:$0xff]  }
  0xbe   :  { %2533 = vmatprep.subr.bf16.mxu1 %v3567_v58  ;;  %v3088_v58 = vld [vmem:[%s4339_s0 + $0x20] ss:$36 sps:$4 sm:$0xff]  }
  0xc1   :  { %2549 = vmatpush1.bf16.msra.mxu1 %v3575_v60  ;;  %v3089_v60 = vld [vmem:[%s4339_s0 + $0x204] ss:$36 sps:$4 sm:$0xff]  }
  0xc2   :  { %2534 = vmatprep.subr.bf16.mxu1 %v3584_v62  ;;  %1712 = vmatmul.mubr.bf16.gmra.mrb[20].mxu1 %v3080_v46  ;;  %v3091_v62 = vld [vmem:[%s4339_s0 + $0x200] ss:$36 sps:$4 sm:$0xff]  }
  0xc3   :  { %1994 = vmatmul.mubr.bf16.gmra.mrb[20].mxu0 %v3081_v56  ;;  %1721 = vmatprep.mubr.bf16.mxu1 %v3085_v50 }
  0xc4   :  { %2084 = vmatprep.mubr.bf16.mxu0 %v3124_v51 }
  0xc5   :  { %2550 = vmatpush1.bf16.msra.mxu1 %v3602_v4  ;;  %v3092_v4 = vld [vmem:[%s4339_s0 + $0x68] ss:$36 sps:$4 sm:$0xff]  }
  0xc6   :  { %2535 = vmatprep.subr.bf16.mxu1 %v3615_v8  ;;  %v3093_v8 = vld [vmem:[%s4339_s0 + $0x24c] ss:$36 sps:$4 sm:$0xff]  }
  0xc9   :  { %2551 = vmatpush1.bf16.msra.mxu1 %v3630_v15  ;;  %v3095_v15 = vld [vmem:[%s4339_s0 + $0x248] ss:$36 sps:$4 sm:$0xff]  }
  0xca   :  { %2536 = vmatprep.subr.bf16.mxu1 %v3635_v16  ;;  %1722 = vmatmul.mubr.bf16.gmra.mrb[24].mxu1 %v3087_v55  ;;  %v3096_v16 = vld [vmem:[%s4339_s0 + $0xb0] ss:$36 sps:$4 sm:$0xff]  }
  0xcb   :  { %2085 = vmatmul.mubr.bf16.vlgmr.msra.gmra.mrb[0].mxu0 %v3088_v58  ;;  %1731 = vmatprep.mubr.bf16.mxu1 %v3089_v60 }
  0xcc   :  { %2094 = vmatprep.mubr.bf16.mxu0 %v3124_v51 }
  0xcd   :  { %2552 = vmatpush1.bf16.msra.mxu1 %v3650_v22  ;;  %v3097_v22 = vld [vmem:[%s4339_s0 + $0x294] ss:$36 sps:$4 sm:$0xff]  }
  0xce   :  { %2537 = vmatprep.subr.bf16.mxu1 %v3663_v27  ;;  %v116_v27 = vld [vmem:[%s4339_s0 + $0x2d8] sm:$0x11] }
  0xd1   :  { %2553 = vmatpush1.bf16.msra.mxu1 %v3678_v32  ;;  %v3099_v32 = vld [vmem:[%s4339_s0 + $0x290] ss:$36 sps:$4 sm:$0xff]  }
  0xd2   :  { %2538 = vmatprep.subr.bf16.mxu1 %v3687_v35  ;;  %1732 = vmatmul.mubr.bf16.gmra.mrb[28].mxu1 %v3091_v62  ;;  %v3100_v35 = vld [vmem:[%s4339_s0 + $0xf8] ss:$36 sps:$4 sm:$0xff]  }
  0xd3   :  { %2095 = vmatmul.mubr.bf16.gmra.mrb[4].mxu0 %v3092_v4  ;;  %1741 = vmatprep.mubr.bf16.mxu1 %v3093_v8  ;;  %v266_v4 = vlaneseq }
  0xd4   :  { %2104 = vmatprep.mubr.bf16.mxu0 %v3124_v51 }
  0xd5   :  { %2554 = vmatpush1.bf16.msra.mxu1 %v3698_v39  ;;  %v2374_v39 = vcombine.high %v116_v27, %v116_v27 }
  0xd6   :  { %2539 = vmatprep.subr.bf16.mxu1 %v3711_v44  ;;  %v2373_v44 = vcombine.low %v116_v27, %v116_v27 }
  0xd9   :  { %2555 = vmatpush1.bf16.msra.mxu1 %v3723_v48  ;;  %v3103_v48 = vld [vmem:[%s4339_s0 + $0x140] ss:$36 sps:$4 sm:$0xff]  }
  0xda   :  { %1742 = vmatmul.mubr.bf16.gmra.mrb[32].mxu1 %v3095_v15 }
  0xdb   :  { %2105 = vmatmul.mubr.bf16.gmra.mrb[8].mxu0 %v3096_v16  ;;  %1751 = vmatprep.mubr.bf16.mxu1 %v3097_v22  ;;  %v267_v22 = vshrl.u32 %v266_v4, 7 }
  0xdc   :  { %2114 = vmatprep.mubr.bf16.mxu0 %v3124_v51 }
  0xe2   :  { %1752 = vmatmul.mubr.bf16.gmra.mrb[36].mxu1 %v3099_v32  ;;  %v268_v32 = vsub.s32 0, %v267_v22 }
  0xe3   :  { %2115 = vmatmul.mubr.bf16.gmra.mrb[12].mxu0 %v3100_v35  ;;  %1761 = vmatprep.mubr.bf16.mxu1 %v2374_v39  ;;  %v264_v35 = vld [vmem:[%s4340_s2] sm:$0x3]  ;;  %v272_v39 = vsub.s32 1, %v267_v22 }
  0xe4   :  { %2124 = vmatprep.mubr.bf16.mxu0 %v3124_v51 }
  0xea   :  { %1762 = vmatmul.mubr.bf16.gmra.mrb[40].mxu1 %v2373_v44 }
  0xeb   :  { %2125 = vmatmul.mubr.bf16.gmra.mrb[16].mxu0 %v3103_v48  ;;  %2003 = vmatprep.mubr.bf16.mxu1 %v3106_v57 }
  0xec   :  { %2134 = vmatprep.mubr.bf16.mxu0 %v3124_v51 }
  0xf2   :  { %2004 = vmatmul.mubr.bf16.vlgmr.msra.gmra.mrb[44].mxu1 %v3104_v59  ;;  %v4074_v59 = vrot.slane %v264_v35, %v268_v32 }
  0xf3   :  { %2135 = vmatmul.mubr.bf16.gmra.mrb[20].mxu0 %v3107_v61  ;;  %2013 = vmatprep.mubr.bf16.mxu1 %v3108_v63  ;;  %v4078_v63 = vrot.slane %v264_v35, %v272_v39 }
  0xf4   :  { %2144 = vmatprep.mubr.bf16.mxu0 %v3124_v51 }
  0xfa   :  { %2014 = vmatmul.mubr.bf16.gmra.mrb[48].mxu1 %v3110_v0 }
  0xfb   :  { %2145 = vmatmul.mubr.bf16.gmra.mrb[44].mxu0 %v3111_v1  ;;  %2023 = vmatprep.mubr.bf16.mxu1 %v3112_v3 }
  0xfc   :  { %2154 = vmatprep.mubr.bf16.mxu0 %v3124_v51 }
 0x102   :  { %2024 = vmatmul.mubr.bf16.gmra.mrb[52].mxu1 %v3114_v5 }
 0x103   :  { %2155 = vmatmul.mubr.bf16.gmra.mrb[48].mxu0 %v3115_v2  ;;  %2033 = vmatprep.mubr.bf16.mxu1 %v3116_v7 }
 0x104   :  { %2164 = vmatprep.mubr.bf16.mxu0 %v3124_v51 }
 0x10a   :  { %2034 = vmatmul.mubr.bf16.gmra.mrb[56].mxu1 %v3118_v11 }
 0x10b   :  { %2165 = vmatmul.mubr.bf16.gmra.mrb[52].mxu0 %v3119_v14  ;;  %2043 = vmatprep.mubr.bf16.mxu1 %v2378_v17 }
 0x10c   :  { %2174 = vmatprep.mubr.bf16.mxu0 %v3124_v51 }
 0x112   :  { %2044 = vmatmul.mubr.bf16.gmra.mrb[60].mxu1 %v2377_v19 }
 0x113   :  { %2175 = vmatmul.mubr.bf16.gmra.mrb[56].mxu0 %v3122_v20 }
 0x114   :  { %2184 = vmatprep.mubr.bf16.mxu0 %v3124_v51 }
 0x11b   :  { %2185 = vmatmul.mubr.bf16.gmra.mrb[60].mxu0 %v3123_v23 }
 0x146   :  { %v4001_v25 = vpop.f32.mrb[24].mxu0 }
 0x147   :  { %v4003_v28 = vpop.f32.mrb[25].mxu0 }
 0x148   :  { %v4005_v30 = vpop.f32.mrb[26].mxu0 }
 0x149   :  { %v4007_v31 = vpop.f32.mrb[27].mxu0 }
 0x14e   :  { %v4009_v6 = vpop.f32.mrb[28].mxu0 }
 0x14f   :  { %v4011_v9 = vpop.f32.mrb[29].mxu0 }
 0x150   :  { %v4013_v33 = vpop.f32.mrb[30].mxu0 }
 0x151   :  { %v4015_v36 = vpop.f32.mrb[31].mxu0 }
 0x156   :  { %v4017_v12 = vpop.f32.mrb[32].mxu0 }
 0x157   :  { %v4019_v13 = vpop.f32.mrb[33].mxu0 }
 0x158   :  { %v4021_v37 = vpop.f32.mrb[34].mxu0 }
 0x159   :  { %v4023_v18 = vpop.f32.mrb[35].mxu0 }
 0x15e   :  { %v4025_v41 = vpop.f32.mrb[36].mxu0 }
 0x15f   :  { %v4027_v21 = vpop.f32.mrb[37].mxu0 }
 0x160   :  { %v4029_v42 = vpop.f32.mrb[38].mxu0 }
 0x161   :  { %v4031_v24 = vpop.f32.mrb[39].mxu0 }
 0x166   :  { %v4033_v26 = vpop.f32.mrb[40].mxu0 }
 0x167   :  { %v4035_v45 = vpop.f32.mrb[41].mxu0 }
 0x168   :  { %v1908_v47 = vpop.f32.mrb[42].mxu0 }
 0x169   :  { %v1909_v29 = vpop.f32.mrb[43].mxu0 }
 0x16d   :  { %v1663_v34 = vpop.f32.mrb[0].mxu1 }
 0x16e   :  { %v1665_v49 = vpop.f32.mrb[1].mxu1  ;;  %v2556_v0 = vadd.f32 %v1663_v34, %v4074_v59 }
 0x16f   :  { %v1667_v52 = vpop.f32.mrb[2].mxu1  ;;  %v2558_v1 = vadd.f32 %v1665_v49, %v4078_v63 }
 0x170   :  { %v1669_v38 = vpop.f32.mrb[3].mxu1  ;;  %v2560_v2 = vadd.f32 %v1667_v52, %v4074_v59 }
 0x171   :  { %v2562_v17 = vadd.f32 %v1669_v38, %v4078_v63 }
 0x175   :  { %v1673_v40 = vpop.f32.mrb[4].mxu1 }
 0x176   :  { %v1675_v53 = vpop.f32.mrb[5].mxu1 }
 0x177   :  { %v4037_v54 = vpop.f32.mrb[6].mxu1 }
 0x178   :  { %v4039_v43 = vpop.f32.mrb[7].mxu1 }
 0x17d   :  { %v4041_v46 = vpop.f32.mrb[8].mxu1 }
 0x17e   :  { %v4043_v56 = vpop.f32.mrb[9].mxu1 }
 0x17f   :  { %v4045_v50 = vpop.f32.mrb[10].mxu1 }
 0x180   :  { %v4047_v51 = vpop.f32.mrb[11].mxu1 }
 0x185   :  { %v4049_v55 = vpop.f32.mrb[12].mxu1 }
 0x186   :  { %v4051_v58 = vpop.f32.mrb[13].mxu1 }
 0x187   :  { %v4053_v60 = vpop.f32.mrb[14].mxu1 }
 0x188   :  { %v4055_v62 = vpop.f32.mrb[15].mxu1 }
 0x18d   :  { %v4057_v8 = vpop.f32.mrb[16].mxu1 }
 0x18e   :  { %v4059_v15 = vpop.f32.mrb[17].mxu1 }
 0x18f   :  { %v4061_v16 = vpop.f32.mrb[18].mxu1 }
 0x190   :  { %v4063_v27 = vpop.f32.mrb[19].mxu1 }
 0x195   :  { %v4068_v44 = vpop.f32.mrb[20].mxu1 }
 0x196   :  { %v4070_v48 = vpop.f32.mrb[21].mxu1 }
 0x197   :  { %v4072_v57 = vpop.f32.mrb[22].mxu1 }
 0x198   :  { %v4076_v61 = vpop.f32.mrb[23].mxu1 }
 0x19d   :  { %v1723_v3 = vpop.f32.mrb[24].mxu1 }
 0x19e   :  { %v2086_v5 = vpop.f32.mrb[0].mxu0  ;;  %v2604_v7 = vadd.f32 %v1723_v3, %v4074_v59  ;;  %v1725_v11 = vpop.f32.mrb[25].mxu1 }
 0x19f   :  { %v2557_v10 = vadd.f32 %v2556_v0, %v2086_v5  ;;  %v2088_v14 = vpop.f32.mrb[1].mxu0  ;;  %v2608_v19 = vadd.f32 %v1725_v11, %v4078_v63  ;;  %v1727_v23 = vpop.f32.mrb[26].mxu1  ;;  %v2564_v5 = vadd.f32 %v1673_v40, %v4074_v59 }
 0x1a0   :  { %v2559_v20 = vadd.f32 %v2558_v1, %v2088_v14  ;;  %v2090_v47 = vpop.f32.mrb[2].mxu0  ;;  %v2612_v34 = vadd.f32 %v1727_v23, %v4074_v59  ;;  %v1729_v4 = vpop.f32.mrb[27].mxu1  ;;  %v4088_v52 = vadd.f32 %v2604_v7, %v4001_v25  ;;  %v2568_v7 = vadd.f32 %v4037_v54, %v4074_v59 }
 0x1a1   :  { %v2193_v29 = vmax.f32 %v2557_v10, 0.0  ;;  %v2561_v49 = vadd.f32 %v2560_v2, %v2090_v47  ;;  %v2092_v22 = vpop.f32.mrb[3].mxu0  ;;  %v2616_v35 = vadd.f32 %v1729_v4, %v4078_v63  ;;  %v4092_v38 = vadd.f32 %v2608_v19, %v4003_v28 }
 0x1a2   :  { %v2194_v32 = vmax.f32 %v2559_v20, 0.0  ;;  %v2563_v39 = vadd.f32 %v2562_v17, %v2092_v22  ;;  %v4098_v1 = vadd.f32 %v2612_v34, %v4005_v30  ;;  %v2566_v28 = vadd.f32 %v1675_v53, %v4078_v63 }
 0x1a3   :  { %2235 = vst [vmem:[%s4341_s3] sm:$0xff] %v2193_v29  ;;  %v2195_v0 = vmax.f32 %v2561_v49, 0.0  ;;  %v4104_v3 = vadd.f32 %v2616_v35, %v4007_v31  ;;  %v2570_v14 = vadd.f32 %v4039_v43, %v4078_v63 }
 0x1a4   :  { %2236 = vst [vmem:[%s4341_s3 + $0x8] sm:$0xff] %v2194_v32  ;;  %v2196_v25 = vmax.f32 %v2563_v39, 0.0 }
 0x1a5   :  { %2237 = vst [vmem:[%s4341_s3 + $0x10] sm:$0xff] %v2195_v0  ;;  %v1733_v30 = vpop.f32.mrb[28].mxu1 }
 0x1a6   :  { %2238 = vst [vmem:[%s4341_s3 + $0x18] sm:$0xff] %v2196_v25  ;;  %v2096_v2 = vpop.f32.mrb[4].mxu0  ;;  %v2620_v31 = vadd.f32 %v1733_v30, %v4074_v59  ;;  %v1735_v11 = vpop.f32.mrb[29].mxu1  ;;  %v2574_v25 = vadd.f32 %v4043_v56, %v4078_v63 }
 0x1a7   :  { %v2565_v10 = vadd.f32 %v2564_v5, %v2096_v2  ;;  %v2098_v40 = vpop.f32.mrb[5].mxu0  ;;  %v2624_v17 = vadd.f32 %v1735_v11, %v4078_v63  ;;  %v1737_v19 = vpop.f32.mrb[30].mxu1 }
 0x1a8   :  { %v2567_v53 = vadd.f32 %v2566_v28, %v2098_v40  ;;  %v2100_v20 = vpop.f32.mrb[6].mxu0  ;;  %v2628_v47 = vadd.f32 %v1737_v19, %v4074_v59  ;;  %v1739_v34 = vpop.f32.mrb[31].mxu1  ;;  %v4122_v54 = vadd.f32 %v2620_v31, %v4009_v6 }
 0x1a9   :  { %v2197_v23 = vmax.f32 %v2565_v10, 0.0  ;;  %v2569_v29 = vadd.f32 %v2568_v7, %v2100_v20  ;;  %v2102_v49 = vpop.f32.mrb[7].mxu0  ;;  %v2632_v22 = vadd.f32 %v1739_v34, %v4078_v63  ;;  %v4126_v43 = vadd.f32 %v2624_v17, %v4011_v9 }
 0x1aa   :  { %v2198_v4 = vmax.f32 %v2567_v53, 0.0  ;;  %v2571_v32 = vadd.f32 %v2570_v14, %v2102_v49  ;;  %v4132_v39 = vadd.f32 %v2628_v47, %v4013_v33  ;;  %v2572_v9 = vadd.f32 %v4041_v46, %v4074_v59 }
 0x1ab   :  { %2239 = vst [vmem:[%s4341_s3 + $0x20] sm:$0xff] %v2197_v23  ;;  %v2199_v35 = vmax.f32 %v2569_v29, 0.0  ;;  %v4138_v0 = vadd.f32 %v2632_v22, %v4015_v36  ;;  %v2576_v36 = vadd.f32 %v4045_v50, %v4074_v59  ;;  %v2578_v7 = vadd.f32 %v4047_v51, %v4078_v63 }
 0x1ac   :  { %2240 = vst [vmem:[%s4341_s3 + $0x28] sm:$0xff] %v2198_v4  ;;  %v2200_v6 = vmax.f32 %v2571_v32, 0.0  ;;  %v2582_v4 = vadd.f32 %v4051_v58, %v4078_v63 }
 0x1ad   :  { %2241 = vst [vmem:[%s4341_s3 + $0x30] sm:$0xff] %v2199_v35  ;;  %v1743_v33 = vpop.f32.mrb[32].mxu1 }
 0x1ae   :  { %2242 = vst [vmem:[%s4341_s3 + $0x38] sm:$0xff] %v2200_v6  ;;  %v2106_v5 = vpop.f32.mrb[8].mxu0  ;;  %v2636_v28 = vadd.f32 %v1743_v33, %v4074_v59  ;;  %v1745_v46 = vpop.f32.mrb[33].mxu1 }
 0x1af   :  { %v2573_v30 = vadd.f32 %v2572_v9, %v2106_v5  ;;  %v2108_v2 = vpop.f32.mrb[9].mxu0  ;;  %v2640_v31 = vadd.f32 %v1745_v46, %v4078_v63  ;;  %v1747_v10 = vpop.f32.mrb[34].mxu1  ;;  %v2586_v9 = vadd.f32 %v4055_v62, %v4078_v63 }
 0x1b0   :  { %v2575_v56 = vadd.f32 %v2574_v25, %v2108_v2  ;;  %v2110_v11 = vpop.f32.mrb[10].mxu0  ;;  %v2644_v14 = vadd.f32 %v1747_v10, %v4074_v59  ;;  %v1749_v53 = vpop.f32.mrb[35].mxu1  ;;  %v4158_v50 = vadd.f32 %v2636_v28, %v4017_v12 }
 0x1b1   :  { %v2201_v40 = vmax.f32 %v2573_v30, 0.0  ;;  %v2577_v17 = vadd.f32 %v2576_v36, %v2110_v11  ;;  %v2112_v19 = vpop.f32.mrb[11].mxu0  ;;  %v2648_v23 = vadd.f32 %v1749_v53, %v4078_v63  ;;  %v4162_v51 = vadd.f32 %v2640_v31, %v4019_v13 }
 0x1b2   :  { %v2202_v20 = vmax.f32 %v2575_v56, 0.0  ;;  %v2579_v47 = vadd.f32 %v2578_v7, %v2112_v19  ;;  %v4168_v34 = vadd.f32 %v2644_v14, %v4021_v37  ;;  %v2580_v13 = vadd.f32 %v4049_v55, %v4074_v59 }
 0x1b3   :  { %2243 = vst [vmem:[%s4341_s3 + $0x40] sm:$0xff] %v2201_v40  ;;  %v2203_v29 = vmax.f32 %v2577_v17, 0.0  ;;  %v4174_v49 = vadd.f32 %v2648_v23, %v4023_v18  ;;  %v2584_v18 = vadd.f32 %v4053_v60, %v4074_v59  ;;  %v2590_v14 = vadd.f32 %v4059_v15, %v4078_v63 }
 0x1b4   :  { %2244 = vst [vmem:[%s4341_s3 + $0x48] sm:$0xff] %v2202_v20  ;;  %v2204_v12 = vmax.f32 %v2579_v47, 0.0  ;;  %v2594_v23 = vadd.f32 %v4063_v27, %v4078_v63 }
 0x1b5   :  { %2245 = vst [vmem:[%s4341_s3 + $0x50] sm:$0xff] %v2203_v29  ;;  %v1753_v37 = vpop.f32.mrb[36].mxu1 }
 0x1b6   :  { %2246 = vst [vmem:[%s4341_s3 + $0x58] sm:$0xff] %v2204_v12  ;;  %v2116_v22 = vpop.f32.mrb[12].mxu0  ;;  %v2652_v32 = vadd.f32 %v1753_v37, %v4074_v59  ;;  %v1755_v55 = vpop.f32.mrb[37].mxu1 }
 0x1b7   :  { %v2581_v35 = vadd.f32 %v2580_v13, %v2116_v22  ;;  %v2118_v6 = vpop.f32.mrb[13].mxu0  ;;  %v2656_v25 = vadd.f32 %v1755_v55, %v4078_v63  ;;  %v1757_v33 = vpop.f32.mrb[38].mxu1 }
 0x1b8   :  { %v2583_v58 = vadd.f32 %v2582_v4, %v2118_v6  ;;  %v2120_v5 = vpop.f32.mrb[14].mxu0  ;;  %v2660_v28 = vadd.f32 %v1757_v33, %v4074_v59  ;;  %v1759_v46 = vpop.f32.mrb[39].mxu1  ;;  %v4194_v60 = vadd.f32 %v2652_v32, %v4025_v41  ;;  %v2596_v6 = vadd.f32 %v4068_v44, %v4074_v59 }
 0x1b9   :  { %v2205_v36 = vmax.f32 %v2581_v35, 0.0  ;;  %v2585_v30 = vadd.f32 %v2584_v18, %v2120_v5  ;;  %v2122_v2 = vpop.f32.mrb[15].mxu0  ;;  %v2664_v31 = vadd.f32 %v1759_v46, %v4078_v63  ;;  %v4198_v62 = vadd.f32 %v2656_v25, %v4027_v21 }
 0x1ba   :  { %v2206_v7 = vmax.f32 %v2583_v58, 0.0  ;;  %v2587_v56 = vadd.f32 %v2586_v9, %v2122_v2  ;;  %v4204_v11 = vadd.f32 %v2660_v28, %v4029_v42  ;;  %v2588_v21 = vadd.f32 %v4057_v8, %v4074_v59 }
 0x1bb   :  { %2247 = vst [vmem:[%s4341_s3 + $0x60] sm:$0xff] %v2205_v36  ;;  %v2207_v10 = vmax.f32 %v2585_v30, 0.0  ;;  %v4210_v40 = vadd.f32 %v2664_v31, %v4031_v24  ;;  %v2592_v24 = vadd.f32 %v4061_v16, %v4074_v59  ;;  %v2600_v25 = vadd.f32 %v4072_v57, %v4074_v59 }
 0x1bc   :  { %2248 = vst [vmem:[%s4341_s3 + $0x68] sm:$0xff] %v2206_v7  ;;  %v2208_v41 = vmax.f32 %v2587_v56, 0.0  ;;  %v2602_v36 = vadd.f32 %v4076_v61, %v4078_v63 }
 0x1bd   :  { %2249 = vst [vmem:[%s4341_s3 + $0x70] sm:$0xff] %v2207_v10  ;;  %v1763_v42 = vpop.f32.mrb[40].mxu1 }
 0x1be   :  { %2250 = vst [vmem:[%s4341_s3 + $0x78] sm:$0xff] %v2208_v41  ;;  %v2126_v17 = vpop.f32.mrb[16].mxu0  ;;  %v2668_v53 = vadd.f32 %v1763_v42, %v4074_v59  ;;  %v1765_v8 = vpop.f32.mrb[41].mxu1 }
 0x1bf   :  { %v2589_v19 = vadd.f32 %v2588_v21, %v2126_v17  ;;  %v2128_v20 = vpop.f32.mrb[17].mxu0  ;;  %v2672_v47 = vadd.f32 %v1765_v8, %v4078_v63  ;;  %v1767_v29 = vpop.f32.mrb[42].mxu1 }
 0x1c0   :  { %v2591_v15 = vadd.f32 %v2590_v14, %v2128_v20  ;;  %v2130_v12 = vpop.f32.mrb[18].mxu0  ;;  %v1768_v37 = vpop.f32.mrb[43].mxu1  ;;  %v4229_v18 = vadd.f32 %v2668_v53, %v4033_v26  ;;  %v2598_v26 = vadd.f32 %v4070_v48, %v4078_v63 }
 0x1c1   :  { %v2209_v13 = vmax.f32 %v2589_v19, 0.0  ;;  %v2593_v4 = vadd.f32 %v2592_v24, %v2130_v12  ;;  %v2132_v22 = vpop.f32.mrb[19].mxu0  ;;  %v4232_v35 = vadd.f32 %v2672_v47, %v4035_v45 }
 0x1c2   :  { %v2210_v16 = vmax.f32 %v2591_v15, 0.0  ;;  %v2595_v32 = vadd.f32 %v2594_v23, %v2132_v22 }
 0x1c3   :  { %2251 = vst [vmem:[%s4341_s3 + $0x80] sm:$0xff] %v2209_v13  ;;  %v2211_v27 = vmax.f32 %v2593_v4, 0.0 }
 0x1c4   :  { %2252 = vst [vmem:[%s4341_s3 + $0x88] sm:$0xff] %v2210_v16  ;;  %v2212_v55 = vmax.f32 %v2595_v32, 0.0 }
 0x1c5   :  { %2253 = vst [vmem:[%s4341_s3 + $0x90] sm:$0xff] %v2211_v27  ;;  %v2005_v45 = vpop.f32.mrb[44].mxu1 }
 0x1c6   :  { %2254 = vst [vmem:[%s4341_s3 + $0x98] sm:$0xff] %v2212_v55  ;;  %v2136_v9 = vpop.f32.mrb[20].mxu0  ;;  %v2606_v58 = vadd.f32 %v4088_v52, %v2005_v45  ;;  %v2007_v44 = vpop.f32.mrb[45].mxu1 }
 0x1c7   :  { %v2597_v33 = vadd.f32 %v2596_v6, %v2136_v9  ;;  %v2138_v5 = vpop.f32.mrb[21].mxu0  ;;  %v2610_v28 = vadd.f32 %v4092_v38, %v2007_v44  ;;  %v2009_v30 = vpop.f32.mrb[46].mxu1 }
 0x1c8   :  { %v2599_v48 = vadd.f32 %v2598_v26, %v2138_v5  ;;  %v2140_v46 = vpop.f32.mrb[22].mxu0  ;;  %v2614_v7 = vadd.f32 %v4098_v1, %v2009_v30  ;;  %v2011_v56 = vpop.f32.mrb[47].mxu1 }
 0x1c9   :  { %v2213_v2 = vmax.f32 %v2597_v33, 0.0  ;;  %v2601_v31 = vadd.f32 %v2600_v25, %v2140_v46  ;;  %v2142_v10 = vpop.f32.mrb[23].mxu0  ;;  %v2618_v59 = vadd.f32 %v4104_v3, %v2011_v56 }
 0x1ca   :  { %v2214_v57 = vmax.f32 %v2599_v48, 0.0  ;;  %v2603_v52 = vadd.f32 %v2602_v36, %v2142_v10 }
 0x1cb   :  { %2255 = vst [vmem:[%s4341_s3 + $0xa0] sm:$0xff] %v2213_v2  ;;  %v2215_v61 = vmax.f32 %v2601_v31, 0.0 }
 0x1cc   :  { %2256 = vst [vmem:[%s4341_s3 + $0xa8] sm:$0xff] %v2214_v57  ;;  %v2216_v63 = vmax.f32 %v2603_v52, 0.0 }
 0x1cd   :  { %2257 = vst [vmem:[%s4341_s3 + $0xb0] sm:$0xff] %v2215_v61  ;;  %v2015_v38 = vpop.f32.mrb[48].mxu1 }
 0x1ce   :  { %2258 = vst [vmem:[%s4341_s3 + $0xb8] sm:$0xff] %v2216_v63  ;;  %v2146_v1 = vpop.f32.mrb[44].mxu0  ;;  %v2622_v3 = vadd.f32 %v4122_v54, %v2015_v38  ;;  %v2017_v21 = vpop.f32.mrb[49].mxu1 }
 0x1cf   :  { %v2607_v41 = vadd.f32 %v2606_v58, %v2146_v1  ;;  %v2148_v14 = vpop.f32.mrb[45].mxu0  ;;  %v2626_v42 = vadd.f32 %v4126_v43, %v2017_v21  ;;  %v2019_v24 = vpop.f32.mrb[50].mxu1 }
 0x1d0   :  { %v2611_v17 = vadd.f32 %v2610_v28, %v2148_v14  ;;  %v2150_v53 = vpop.f32.mrb[46].mxu0  ;;  %v2630_v8 = vadd.f32 %v4132_v39, %v2019_v24  ;;  %v2021_v23 = vpop.f32.mrb[51].mxu1 }
 0x1d1   :  { %v2217_v19 = vmax.f32 %v2607_v41, 0.0  ;;  %v2615_v20 = vadd.f32 %v2614_v7, %v2150_v53  ;;  %v2152_v47 = vpop.f32.mrb[47].mxu0  ;;  %v2634_v29 = vadd.f32 %v4138_v0, %v2021_v23 }
 0x1d2   :  { %v2218_v15 = vmax.f32 %v2611_v17, 0.0  ;;  %v2619_v12 = vadd.f32 %v2618_v59, %v2152_v47 }
 0x1d3   :  { %2259 = vst [vmem:[%s4341_s3 + $0xc0] sm:$0xff] %v2217_v19  ;;  %v2219_v54 = vmax.f32 %v2615_v20, 0.0 }
 0x1d4   :  { %2260 = vst [vmem:[%s4341_s3 + $0xc8] sm:$0xff] %v2218_v15  ;;  %v2220_v43 = vmax.f32 %v2619_v12, 0.0 }
 0x1d5   :  { %2261 = vst [vmem:[%s4341_s3 + $0xd0] sm:$0xff] %v2219_v54  ;;  %v2025_v39 = vpop.f32.mrb[52].mxu1 }
 0x1d6   :  { %2262 = vst [vmem:[%s4341_s3 + $0xd8] sm:$0xff] %v2220_v43  ;;  %v2156_v0 = vpop.f32.mrb[48].mxu0  ;;  %v2638_v13 = vadd.f32 %v4158_v50, %v2025_v39  ;;  %v2027_v37 = vpop.f32.mrb[53].mxu1 }
 0x1d7   :  { %v2623_v4 = vadd.f32 %v2622_v3, %v2156_v0  ;;  %v2158_v22 = vpop.f32.mrb[49].mxu0  ;;  %v2642_v16 = vadd.f32 %v4162_v51, %v2027_v37  ;;  %v2029_v27 = vpop.f32.mrb[54].mxu1 }
 0x1d8   :  { %v2627_v32 = vadd.f32 %v2626_v42, %v2158_v22  ;;  %v2160_v55 = vpop.f32.mrb[50].mxu0  ;;  %v2646_v26 = vadd.f32 %v4168_v34, %v2029_v27  ;;  %v2031_v9 = vpop.f32.mrb[55].mxu1 }
 0x1d9   :  { %v2221_v6 = vmax.f32 %v2623_v4, 0.0  ;;  %v2631_v45 = vadd.f32 %v2630_v8, %v2160_v55  ;;  %v2162_v25 = vpop.f32.mrb[51].mxu0  ;;  %v2650_v33 = vadd.f32 %v4174_v49, %v2031_v9 }
 0x1da   :  { %v2222_v58 = vmax.f32 %v2627_v32, 0.0  ;;  %v2635_v44 = vadd.f32 %v2634_v29, %v2162_v25 }
 0x1db   :  { %2263 = vst [vmem:[%s4341_s3 + $0xe0] sm:$0xff] %v2221_v6  ;;  %v2223_v50 = vmax.f32 %v2631_v45, 0.0 }
 0x1dc   :  { %2264 = vst [vmem:[%s4341_s3 + $0xe8] sm:$0xff] %v2222_v58  ;;  %v2224_v51 = vmax.f32 %v2635_v44, 0.0 }
 0x1dd   :  { %2265 = vst [vmem:[%s4341_s3 + $0xf0] sm:$0xff] %v2223_v50  ;;  %v2035_v34 = vpop.f32.mrb[56].mxu1 }
 0x1de   :  { %2266 = vst [vmem:[%s4341_s3 + $0xf8] sm:$0xff] %v2224_v51  ;;  %v2166_v49 = vpop.f32.mrb[52].mxu0  ;;  %v2654_v5 = vadd.f32 %v4194_v60, %v2035_v34  ;;  %v2037_v28 = vpop.f32.mrb[57].mxu1 }
 0x1df   :  { %v2639_v36 = vadd.f32 %v2638_v13, %v2166_v49  ;;  %v2168_v48 = vpop.f32.mrb[53].mxu0  ;;  %v2658_v30 = vadd.f32 %v4198_v62, %v2037_v28  ;;  %v2039_v2 = vpop.f32.mrb[58].mxu1 }
 0x1e0   :  { %v2643_v46 = vadd.f32 %v2642_v16, %v2168_v48  ;;  %v2170_v7 = vpop.f32.mrb[54].mxu0  ;;  %v2662_v56 = vadd.f32 %v4204_v11, %v2039_v2  ;;  %v2041_v57 = vpop.f32.mrb[59].mxu1 }
 0x1e1   :  { %v2225_v31 = vmax.f32 %v2639_v36, 0.0  ;;  %v2647_v10 = vadd.f32 %v2646_v26, %v2170_v7  ;;  %v2172_v59 = vpop.f32.mrb[55].mxu0  ;;  %v2666_v61 = vadd.f32 %v4210_v40, %v2041_v57 }
 0x1e2   :  { %v2226_v52 = vmax.f32 %v2643_v46, 0.0  ;;  %v2651_v63 = vadd.f32 %v2650_v33, %v2172_v59 }
 0x1e3   :  { %2267 = vst [vmem:[%s4341_s3 + $0x100] sm:$0xff] %v2225_v31  ;;  %v2227_v60 = vmax.f32 %v2647_v10, 0.0 }
 0x1e4   :  { %2268 = vst [vmem:[%s4341_s3 + $0x108] sm:$0xff] %v2226_v52  ;;  %v2228_v62 = vmax.f32 %v2651_v63, 0.0 }
 0x1e5   :  { %2269 = vst [vmem:[%s4341_s3 + $0x110] sm:$0xff] %v2227_v60  ;;  %v2045_v11 = vpop.f32.mrb[60].mxu1 }
 0x1e6   :  { %2270 = vst [vmem:[%s4341_s3 + $0x118] sm:$0xff] %v2228_v62  ;;  %v2176_v40 = vpop.f32.mrb[56].mxu0  ;;  %v2670_v38 = vadd.f32 %v4229_v18, %v2045_v11  ;;  %v2047_v3 = vpop.f32.mrb[61].mxu1 }
 0x1e7   :  { %v2655_v1 = vadd.f32 %v2654_v5, %v2176_v40  ;;  %v2178_v41 = vpop.f32.mrb[57].mxu0  ;;  %v2674_v21 = vadd.f32 %v4232_v35, %v2047_v3  ;;  %v2049_v17 = vpop.f32.mrb[62].mxu1 }
 0x1e8   :  { %v2659_v14 = vadd.f32 %v2658_v30, %v2178_v41  ;;  %v2180_v42 = vpop.f32.mrb[58].mxu0  ;;  %v2050_v8 = vpop.f32.mrb[63].mxu1 }
 0x1e9   :  { %v2229_v24 = vmax.f32 %v2655_v1, 0.0  ;;  %v2663_v53 = vadd.f32 %v2662_v56, %v2180_v42  ;;  %v2182_v19 = vpop.f32.mrb[59].mxu0 }
 0x1ea   :  { %v2230_v20 = vmax.f32 %v2659_v14, 0.0  ;;  %v2667_v23 = vadd.f32 %v2666_v61, %v2182_v19 }
 0x1eb   :  { %2271 = vst [vmem:[%s4341_s3 + $0x120] sm:$0xff] %v2229_v24  ;;  %v2231_v47 = vmax.f32 %v2663_v53, 0.0 }
 0x1ec   :  { %2272 = vst [vmem:[%s4341_s3 + $0x128] sm:$0xff] %v2230_v20  ;;  %v2232_v18 = vmax.f32 %v2667_v23, 0.0 }
 0x1ed   :  { %2273 = vst [vmem:[%s4341_s3 + $0x130] sm:$0xff] %v2231_v47 }
 0x1ee   :  { %2274 = vst [vmem:[%s4341_s3 + $0x138] sm:$0xff] %v2232_v18  ;;  %v2186_v35 = vpop.f32.mrb[60].mxu0 }
 0x1ef   :  { %v2671_v15 = vadd.f32 %v2670_v38, %v2186_v35  ;;  %v2188_v29 = vpop.f32.mrb[61].mxu0 }
 0x1f0   :  { %v2675_v12 = vadd.f32 %v2674_v21, %v2188_v29  ;;  %v2190_v54 = vpop.f32.mrb[62].mxu0 }
 0x1f1   :  { %v2233_v43 = vmax.f32 %v2671_v15, 0.0  ;;  %v2191_v39 = vpop.f32.mrb[63].mxu0 }
 0x1f2   :  { %v2234_v0 = vmax.f32 %v2675_v12, 0.0 }
 0x1f3   :  { %2275 = vst [vmem:[%s4341_s3 + $0x140] sm:$0x3] %v2233_v43 }
 0x1f4   :  { %2276 = vst [vmem:[%s4341_s3 + $0x148] sm:$0x3] %v2234_v0 }

// kernel: vqvae_forward.22
= control target key start
LH: loop header
LB: loop body
LE: loop exit
PB: predicated region body
PF: predicated region fallthrough
CT: control target
= control target key end

     0   :  { %s2822_s12 = smov 0   ;;  %s3426_s0 = inlined_call_operand.vmem [shape: bf16[736,576], index: 0, kind: input, shape index: {}]   ;;  %s3427_s1 = inlined_call_operand.vmem [shape: bf16[576,128], index: 1, kind: input, shape index: {}]   ;;  %s3428_s2 = inlined_call_operand.vmem [shape: f32[1,128], index: 2, kind: input, shape index: {}]   ;;  %s3429_s3 = inlined_call_operand.vmem [shape: f32[736,128], index: 3, kind: output, shape index: {}]  }
   0x1 LB: > { %s2055_s13 = sadd.s32 4294967295, %s2797_s12   ;;  %p2059_p0 = scmp.ge.s32.totalorder %s2797_s12, 1  ;;  %s2797_s12 = sphi %s2822_s12, %s13_s12  }
   0x2   : > { %p139_p1 = scmp.lt.s32.totalorder %s2797_s12, 3 }
   0x4   : > { %p140_p2 = pnand %p2059_p0, %p139_p1 }
   0x5   : > { %v2594_v0 = vld [vmem:[%s3427_s1] sm:$0xff] (!%p140_p2)   ;;  %v2799_v1 = vmov (!%p140_p2), 0   ;;  %v2596_v3 = vld [vmem:[%s3427_s1 + $0x8] sm:$0xff] (!%p140_p2)   ;;  %v2598_v5 = vld [vmem:[%s3427_s1 + $0x10] sm:$0xff] (!%p140_p2)   ;;  %s164_s5 = smul.u32 (!%p140_p2), 46, %s2055_s13  ;;  %v2800_v39 = vmov (!%p140_p2), 0.0  }
   0x6   : > { %143 = sbr.rel (%p140_p2) target bundleno = 561 (0x231), region = 32  ;;  %1256 = vmatprep.subr.bf16.mxu1 (!%p140_p2), %v2799_v1  ;;  %1473 = vmatprep.subr.bf16.mxu0 (!%p140_p2), %v2799_v1  ;;  %v2838_v2 = vld [vmem:[%s3427_s1 + $0x80] sm:$0xff] (!%p140_p2)   ;;  %v2848_v4 = vld [vmem:[%s3427_s1 + $0x88] sm:$0xff] (!%p140_p2)   ;;  %v2859_v6 = vld [vmem:[%s3427_s1 + $0x90] sm:$0xff] (!%p140_p2)   ;;  %vm2801_vm0 = vmmov (!%p140_p2), 0   ;;  %vm1186_vm1 = vcmask (!%p140_p2), 523264  }
   0x7   : > { %1257 = vmatpush1.bf16.msra.mxu1 (!%p140_p2), %v2594_v0  ;;  %1474 = vmatpush1.bf16.msra.mxu0 (!%p140_p2), %v2838_v2  ;;  %v2600_v7 = vld [vmem:[%s3427_s1 + $0x18] sm:$0xff] (!%p140_p2)   ;;  %v2602_v9 = vld [vmem:[%s3427_s1 + $0x20] sm:$0xff] (!%p140_p2)   ;;  %v2604_v11 = vld [vmem:[%s3427_s1 + $0x28] sm:$0xff] (!%p140_p2)   ;;  %p165_p3 = scmp.lt.s32.totalorder (!%p140_p2), %s164_s5, 91 }
   0x8   : > { %1258 = vmatprep.subr.bf16.mxu1 (!%p140_p2), %v2799_v1  ;;  %1475 = vmatprep.subr.bf16.mxu0 (!%p140_p2), %v2799_v1  ;;  %v2870_v8 = vld [vmem:[%s3427_s1 + $0x98] sm:$0xff] (!%p140_p2)   ;;  %v2883_v10 = vld [vmem:[%s3427_s1 + $0xa0] sm:$0xff] (!%p140_p2)   ;;  %v2894_v12 = vld [vmem:[%s3427_s1 + $0xa8] sm:$0xff] (!%p140_p2)  }
   0x9   : > { %v2606_v13 = vld [vmem:[%s3427_s1 + $0x30] sm:$0xff] (!%p140_p2)   ;;  %v2608_v15 = vld [vmem:[%s3427_s1 + $0x38] sm:$0xff] (!%p140_p2)   ;;  %v2610_v17 = vld [vmem:[%s3427_s1 + $0x40] sm:$0xff] (!%p140_p2)  }
   0xa   : > { %v2907_v14 = vld [vmem:[%s3427_s1 + $0xb0] sm:$0xff] (!%p140_p2)   ;;  %v2919_v16 = vld [vmem:[%s3427_s1 + $0xb8] sm:$0xff] (!%p140_p2)   ;;  %v2935_v18 = vld [vmem:[%s3427_s1 + $0xc0] sm:$0xff] (!%p140_p2)  }
   0xb   : > { %1259 = vmatpush1.bf16.msra.mxu1 (!%p140_p2), %v2596_v3  ;;  %1476 = vmatpush1.bf16.msra.mxu0 (!%p140_p2), %v2848_v4  ;;  %v2612_v20 = vld [vmem:[%s3427_s1 + $0x48] sm:$0xff] (!%p140_p2)   ;;  %v2614_v23 = vld [vmem:[%s3427_s1 + $0x50] sm:$0xff] (!%p140_p2)   ;;  %v2616_v25 = vld [vmem:[%s3427_s1 + $0x58] sm:$0xff] (!%p140_p2)  }
   0xc   : > { %1260 = vmatprep.subr.bf16.mxu1 (!%p140_p2), %v2799_v1  ;;  %1477 = vmatprep.subr.bf16.mxu0 (!%p140_p2), %v2799_v1  ;;  %v2948_v22 = vld [vmem:[%s3427_s1 + $0xc8] sm:$0xff] (!%p140_p2)   ;;  %v2959_v24 = vld [vmem:[%s3427_s1 + $0xd0] sm:$0xff] (!%p140_p2)   ;;  %v2970_v26 = vld [vmem:[%s3427_s1 + $0xd8] sm:$0xff] (!%p140_p2)  }
   0xd   : > { %s3431_s5 = smov (!%p165_p3, %s164_s5), 91  ;;  %v2618_v27 = vld [vmem:[%s3427_s1 + $0x60] sm:$0xff]   ;;  %v2620_v29 = vld [vmem:[%s3427_s1 + $0x68] sm:$0xff]   ;;  %v2622_v31 = vld [vmem:[%s3427_s1 + $0x70] sm:$0xff]  }
   0xe   : > { %s2582_s19 = smul.u32 20, %s3431_s5  ;;  %v2981_v28 = vld [vmem:[%s3427_s1 + $0xe0] sm:$0xff]   ;;  %v2992_v30 = vld [vmem:[%s3427_s1 + $0xe8] sm:$0xff]   ;;  %v3003_v32 = vld [vmem:[%s3427_s1 + $0xf0] sm:$0xff]   ;;  %s2061_s17 = sshll.u32 %s3431_s5, 3 }
   0xf   : > { %1261 = vmatpush1.bf16.msra.mxu1 %v2598_v5  ;;  %1478 = vmatpush1.bf16.msra.mxu0 %v2859_v6  ;;  %v2624_v33 = vld [vmem:[%s3427_s1 + $0x78] sm:$0xff]   ;;  %v2632_v38 = vld [vmem:[%s3427_s1 + $0x100] sm:$0xff]   ;;  %v2651_v41 = vld [vmem:[%s3427_s1 + $0x108] sm:$0xff]   ;;  %s3309_s20 = scalar_lea.vmem %s3429_s3, %s2061_s17 }
  0x10   : > { %1262 = vmatprep.subr.bf16.mxu1 %v2799_v1  ;;  %1479 = vmatprep.subr.bf16.mxu0 %v2799_v1  ;;  %s2928_s26 = scalar_lea.vmem %s3426_s0, %s2582_s19  ;;  %v3014_v34 = vld [vmem:[%s3427_s1 + $0xf8] sm:$0xff]   ;;  %v2670_v46 = vld [vmem:[%s3427_s1 + $0x110] sm:$0xff]  }
  0x11   : > { %v2628_v19 = vld [vmem:[%s2928_s26 + $0x4] ss:$20 sps:$4 sm:$0xff]   ;;  %v2631_v21 = vld [vmem:[%s2928_s26 + $0xc] ss:$20 sps:$4 sm:$0xff]   ;;  %v2629_v36 = vld [vmem:[%s2928_s26 + $0x8] ss:$20 sps:$4 sm:$0xff]  }
  0x12   : > { %1288 = vmatprep.mubr.bf16.mxu1 %v2628_v19  ;;  %1505 = vmatprep.mubr.bf16.mxu0 %v2631_v21  ;;  %v2626_v35 = vld [vmem:[%s2928_s26] ss:$20 sps:$4 sm:$0xff]   ;;  %v2637_v42 = vld [vmem:[%s2928_s26 + $0x28] ss:$20 sps:$4 sm:$0xff]   ;;  %v2638_v43 = vld [vmem:[%s2928_s26 + $0x30] ss:$20 sps:$4 sm:$0xff]  }
  0x13   : > { %1263 = vmatpush1.bf16.msra.mxu1 %v2600_v7  ;;  %1480 = vmatpush1.bf16.msra.mxu0 %v2870_v8  ;;  %v2633_v37 = vld [vmem:[%s2928_s26 + $0x2c] ss:$20 sps:$4 sm:$0xff]   ;;  %v2635_v40 = vld [vmem:[%s2928_s26 + $0x34] ss:$20 sps:$4 sm:$0xff]   ;;  %v2641_v45 = vld [vmem:[%s2928_s26 + $0x5c] ss:$20 sps:$4 sm:$0xff]  }
  0x14   : > { %1264 = vmatprep.subr.bf16.mxu1 %v2799_v1  ;;  %1481 = vmatprep.subr.bf16.mxu0 %v2799_v1  ;;  %v2639_v44 = vld [vmem:[%s2928_s26 + $0x54] ss:$20 sps:$4 sm:$0xff]   ;;  %v2689_v47 = vld [vmem:[%s3427_s1 + $0x118] sm:$0xff]   ;;  %v2643_v48 = vld [vmem:[%s2928_s26 + $0x50] ss:$20 sps:$4 sm:$0xff]  }
  0x15   : > { %v2644_v49 = vld [vmem:[%s2928_s26 + $0x58] ss:$20 sps:$4 sm:$0xff]   ;;  %v2645_v50 = vld [vmem:[%s2928_s26 + $0x7c] ss:$20 sps:$4 sm:$0xff]   ;;  %v2650_v53 = vld [vmem:[%s2928_s26 + $0x80] ss:$20 sps:$4 sm:$0xff]  }
  0x16   : > { %v2647_v51 = vld [vmem:[%s2928_s26 + $0x84] ss:$20 sps:$4 sm:$0xff]   ;;  %v2654_v55 = vld [vmem:[%s2928_s26 + $0xac] ss:$20 sps:$4 sm:$0xff]   ;;  %v2657_v57 = vld [vmem:[%s2928_s26 + $0xa8] ss:$20 sps:$4 sm:$0xff]  }
  0x17   : > { %1265 = vmatpush1.bf16.msra.mxu1 %v2602_v9  ;;  %1482 = vmatpush1.bf16.msra.mxu0 %v2883_v10  ;;  %v2649_v52 = vld [vmem:[%s2928_s26 + $0x78] ss:$20 sps:$4 sm:$0xff]   ;;  %v2656_v56 = vld [vmem:[%s2928_s26 + $0xa0] ss:$20 sps:$4 sm:$0xff]   ;;  %v2662_v60 = vld [vmem:[%s2928_s26 + $0xc8] ss:$20 sps:$4 sm:$0xff]  }
  0x18   : > { %1266 = vmatprep.subr.bf16.mxu1 %v2799_v1  ;;  %1483 = vmatprep.subr.bf16.mxu0 %v2799_v1  ;;  %v2652_v54 = vld [vmem:[%s2928_s26 + $0xa4] ss:$20 sps:$4 sm:$0xff]   ;;  %v2658_v58 = vld [vmem:[%s2928_s26 + $0xcc] ss:$20 sps:$4 sm:$0xff]   ;;  %v2660_v59 = vld [vmem:[%s2928_s26 + $0xd4] ss:$20 sps:$4 sm:$0xff]  }
  0x19   : > { %v2663_v61 = vld [vmem:[%s2928_s26 + $0xd0] ss:$20 sps:$4 sm:$0xff]   ;;  %v2664_v62 = vld [vmem:[%s2928_s26 + $0xf4] ss:$20 sps:$4 sm:$0xff]   ;;  %v2675_v5 = vld [vmem:[%s2928_s26 + $0x118] ss:$20 sps:$4 sm:$0xff]  }
  0x1a   : > { %v2666_v63 = vld [vmem:[%s2928_s26 + $0xfc] ss:$20 sps:$4 sm:$0xff]   ;;  %v2677_v7 = vld [vmem:[%s2928_s26 + $0x144] ss:$20 sps:$4 sm:$0xff]   ;;  %v2681_v9 = vld [vmem:[%s2928_s26 + $0x140] ss:$20 sps:$4 sm:$0xff]  }
  0x1b   : > { %1267 = vmatpush1.bf16.msra.mxu1 %v2604_v11  ;;  %1484 = vmatpush1.bf16.msra.mxu0 %v2894_v12  ;;  %v2668_v0 = vld [vmem:[%s2928_s26 + $0xf0] ss:$20 sps:$4 sm:$0xff]   ;;  %v2683_v11 = vld [vmem:[%s2928_s26 + $0x16c] ss:$20 sps:$4 sm:$0xff]  }
  0x1c   : > { %1268 = vmatprep.subr.bf16.mxu1 %v2799_v1  ;;  %1485 = vmatprep.subr.bf16.mxu0 %v2799_v1  ;;  %v2671_v3 = vld [vmem:[%s2928_s26 + $0x11c] ss:$20 sps:$4 sm:$0xff]   ;;  %v2698_v19 = vld [vmem:[%s2928_s26 + $0x1c4] ss:$20 sps:$4 sm:$0xff]   ;;  %v2701_v21 = vld [vmem:[%s2928_s26 + $0x1c0] ss:$20 sps:$4 sm:$0xff]  }
  0x1f   : > { %1269 = vmatpush1.bf16.msra.mxu1 %v2606_v13  ;;  %1486 = vmatpush1.bf16.msra.mxu0 %v2907_v14  ;;  %v2687_v13 = vld [vmem:[%s2928_s26 + $0x168] ss:$20 sps:$4 sm:$0xff]  }
  0x20   : > { %1270 = vmatprep.subr.bf16.mxu1 %v2799_v1  ;;  %1487 = vmatprep.subr.bf16.mxu0 %v2799_v1 }
  0x23   : > { %1271 = vmatpush1.bf16.msra.mxu1 %v2608_v15  ;;  %1488 = vmatpush1.bf16.msra.mxu0 %v2919_v16  ;;  %v2690_v15 = vld [vmem:[%s2928_s26 + $0x194] ss:$20 sps:$4 sm:$0xff]  }
  0x24   : > { %1272 = vmatprep.subr.bf16.mxu1 %v2799_v1  ;;  %1489 = vmatprep.subr.bf16.mxu0 %v2799_v1 }
  0x27   : > { %1273 = vmatpush1.bf16.msra.mxu1 %v2610_v17  ;;  %1490 = vmatpush1.bf16.msra.mxu0 %v2935_v18  ;;  %v2695_v17 = vld [vmem:[%s2928_s26 + $0x198] ss:$20 sps:$4 sm:$0xff]  }
  0x28   : > { %1274 = vmatprep.subr.bf16.mxu1 %v2799_v1  ;;  %1491 = vmatprep.subr.bf16.mxu0 %v2799_v1 }
  0x2b   : > { %1275 = vmatpush1.bf16.msra.mxu1 %v2612_v20  ;;  %1492 = vmatpush1.bf16.msra.mxu0 %v2948_v22  ;;  %v2700_v20 = vld [vmem:[%s2928_s26 + $0x1b8] ss:$20 sps:$4 sm:$0xff]  }
  0x2c   : > { %1276 = vmatprep.subr.bf16.mxu1 %v2799_v1  ;;  %1493 = vmatprep.subr.bf16.mxu0 %v2799_v1 }
  0x2f   : > { %1277 = vmatpush1.bf16.msra.mxu1 %v2614_v23  ;;  %1494 = vmatpush1.bf16.msra.mxu0 %v2959_v24  ;;  %v2704_v23 = vld [vmem:[%s2928_s26 + $0x1e0] ss:$20 sps:$4 sm:$0xff]  }
  0x30   : > { %1278 = vmatprep.subr.bf16.mxu1 %v2799_v1  ;;  %1495 = vmatprep.subr.bf16.mxu0 %v2799_v1 }
  0x33   : > { %1279 = vmatpush1.bf16.msra.mxu1 %v2616_v25  ;;  %1496 = vmatpush1.bf16.msra.mxu0 %v2970_v26  ;;  %v2706_v25 = vld [vmem:[%s2928_s26 + $0x20c] ss:$20 sps:$4 sm:$0xff]  }
  0x34   : > { %1280 = vmatprep.subr.bf16.mxu1 %v2799_v1  ;;  %1497 = vmatprep.subr.bf16.mxu0 %v2799_v1 }
  0x37   : > { %1281 = vmatpush1.bf16.msra.mxu1 %v2618_v27  ;;  %1498 = vmatpush1.bf16.msra.mxu0 %v2981_v28  ;;  %v2709_v27 = vld [vmem:[%s2928_s26 + $0x38] ss:$20 sps:$4 sm:$0xff]  }
  0x38   : > { %1282 = vmatprep.subr.bf16.mxu1 %v2799_v1  ;;  %1499 = vmatprep.subr.bf16.mxu0 %v2799_v1 }
  0x3b   : > { %1283 = vmatpush1.bf16.msra.mxu1 %v2620_v29  ;;  %1500 = vmatpush1.bf16.msra.mxu0 %v2992_v30  ;;  %v2712_v29 = vld [vmem:[%s2928_s26 + $0x230] ss:$20 sps:$4 sm:$0xff]  }
  0x3c   : > { %1284 = vmatprep.subr.bf16.mxu1 %v2799_v1  ;;  %1501 = vmatprep.subr.bf16.mxu0 %v2799_v1 }
  0x3f   : > { %1285 = vmatpush1.bf16.msra.mxu1 %v2622_v31  ;;  %1502 = vmatpush1.bf16.msra.mxu0 %v3003_v32  ;;  %v2714_v31 = vld [vmem:[%s2928_s26 + $0x25c] ss:$20 sps:$4 sm:$0xff]  }
  0x40   : > { %1286 = vmatprep.subr.bf16.mxu1 %v2799_v1  ;;  %1503 = vmatprep.subr.bf16.mxu0 %v2799_v1 }
  0x43   : > { %1287 = vmatpush1.bf16.msra.mxu1 %v2624_v33  ;;  %1504 = vmatpush1.bf16.msra.mxu0 %v3014_v34  ;;  %v2717_v33 = vld [vmem:[%s2928_s26 + $0x88] ss:$20 sps:$4 sm:$0xff]  }
  0x44   : > { %2366 = vmatprep.subr.bf16.mxu1 %v2799_v1  ;;  %2266 = vmatprep.subr.bf16.mxu0 %v2800_v39 }
  0x46   : > { %1289 = vmatmul.mubr.bf16.vlgmr.msra.gmra.mrb[0].mxu1 %v2626_v35  ;;  %1506 = vmatmul.mubr.bf16.vlgmr.msra.gmra.mrb[0].mxu0 %v2629_v36  ;;  %v2720_v35 = vld [vmem:[%s2928_s26 + $0x280] ss:$20 sps:$4 sm:$0xff]   ;;  %v2721_v36 = vld [vmem:[%s2928_s26 + $0xb0] ss:$20 sps:$4 sm:$0xff]  }
  0x47   : > { %1296 = vmatprep.mubr.bf16.mxu1 %v2633_v37  ;;  %2267 = vmatpush3.bf16.msra.mxu0 %v2632_v38  ;;  %v2722_v37 = vld [vmem:[%s2928_s26 + $0x2ac] ss:$20 sps:$4 sm:$0xff]   ;;  %v2724_v38 = vld [vmem:[%s2928_s26 + $0x2a8] ss:$20 sps:$4 sm:$0xff]  }
  0x48   : > { %2382 = vmatpush1.bf16.msra.mxu1 %v2838_v2  ;;  %1513 = vmatprep.mubr.bf16.mxu0 %v2635_v40  ;;  %v2669_v2 = vld [vmem:[%s2928_s26 + $0xf8] ss:$20 sps:$4 sm:$0xff]  }
  0x49   : > { %2367 = vmatprep.subr.bf16.mxu1 %v2799_v1  ;;  %2268 = vmatprep.subr.bf16.mxu0 %v2800_v39  ;;  %v2725_v40 = vld [vmem:[%s2928_s26 + $0xd8] ss:$20 sps:$4 sm:$0xff]  }
  0x4b   : > { %2269 = vmatpush3.bf16.msra.mxu0 %v2651_v41  ;;  %v2726_v41 = vld [vmem:[%s2928_s26 + $0x2d4] ss:$20 sps:$4 sm:$0xff]  }
  0x4c   : > { %2383 = vmatpush1.bf16.msra.mxu1 %v2848_v4  ;;  %2270 = vmatprep.subr.bf16.mxu0 %v2800_v39  ;;  %v2673_v4 = vld [vmem:[%s2928_s26 + $0x124] ss:$20 sps:$4 sm:$0xff]  }
  0x4d   : > { %2368 = vmatprep.subr.bf16.mxu1 %v2799_v1 }
  0x4e   : > { %1297 = vmatmul.mubr.bf16.gmra.mrb[4].mxu1 %v2637_v42  ;;  %1514 = vmatmul.mubr.bf16.gmra.mrb[4].mxu0 %v2638_v43  ;;  %v2728_v42 = vld [vmem:[%s2928_s26 + $0x2d0] ss:$20 sps:$4 sm:$0xff]   ;;  %v2729_v43 = vld [vmem:[%s2928_s26 + $0x100] ss:$20 sps:$4 sm:$0xff]  }
  0x4f   : > { %1304 = vmatprep.mubr.bf16.mxu1 %v2639_v44  ;;  %1521 = vmatprep.mubr.bf16.mxu0 %v2641_v45  ;;  %v2730_v44 = vld [vmem:[%s2928_s26 + $0x2fc] ss:$20 sps:$4 sm:$0xff]   ;;  %v2732_v45 = vld [vmem:[%s2928_s26 + $0x2f8] ss:$20 sps:$4 sm:$0xff]  }
  0x50   : > { %2384 = vmatpush1.bf16.msra.mxu1 %v2859_v6  ;;  %2271 = vmatpush3.bf16.msra.mxu0 %v2670_v46  ;;  %v2676_v6 = vld [vmem:[%s2928_s26 + $0x120] ss:$20 sps:$4 sm:$0xff]   ;;  %v2733_v46 = vld [vmem:[%s2928_s26 + $0x128] ss:$20 sps:$4 sm:$0xff]  }
  0x51   : > { %2369 = vmatprep.subr.bf16.mxu1 %v2799_v1  ;;  %2272 = vmatprep.subr.bf16.mxu0 %v2800_v39 }
  0x54   : > { %2385 = vmatpush1.bf16.msra.mxu1 %v2870_v8  ;;  %2273 = vmatpush3.bf16.msra.mxu0 %v2689_v47  ;;  %v2679_v8 = vld [vmem:[%s2928_s26 + $0x14c] ss:$20 sps:$4 sm:$0xff]   ;;  %v2734_v47 = vld [vmem:[%s2928_s26 + $0x324] ss:$20 sps:$4 sm:$0xff]  }
  0x55   : > { %2370 = vmatprep.subr.bf16.mxu1 %v2799_v1 }
  0x56   : > { %1305 = vmatmul.mubr.bf16.gmra.mrb[8].mxu1 %v2643_v48  ;;  %1522 = vmatmul.mubr.bf16.gmra.mrb[8].mxu0 %v2644_v49  ;;  %v2736_v48 = vld [vmem:[%s2928_s26 + $0x320] ss:$20 sps:$4 sm:$0xff]   ;;  %v2737_v49 = vld [vmem:[%s2928_s26 + $0x150] ss:$20 sps:$4 sm:$0xff]  }
  0x57   : > { %1312 = vmatprep.mubr.bf16.mxu1 %v2645_v50  ;;  %1529 = vmatprep.mubr.bf16.mxu0 %v2647_v51  ;;  %v2738_v50 = vld [vmem:[%s2928_s26 + $0x34c] ss:$20 sps:$4 sm:$0xff]   ;;  %v2740_v51 = vld [vmem:[%s2928_s26 + $0x348] ss:$20 sps:$4 sm:$0xff]  }
  0x58   : > { %2386 = vmatpush1.bf16.msra.mxu1 %v2883_v10  ;;  %v2682_v10 = vld [vmem:[%s2928_s26 + $0x148] ss:$20 sps:$4 sm:$0xff]  }
  0x59   : > { %2371 = vmatprep.subr.bf16.mxu1 %v2799_v1 }
  0x5c   : > { %2387 = vmatpush1.bf16.msra.mxu1 %v2894_v12  ;;  %v2685_v12 = vld [vmem:[%s2928_s26 + $0x174] ss:$20 sps:$4 sm:$0xff]  }
  0x5d   : > { %2372 = vmatprep.subr.bf16.mxu1 %v2799_v1 }
  0x5e   : > { %1313 = vmatmul.mubr.bf16.gmra.mrb[12].mxu1 %v2649_v52  ;;  %1530 = vmatmul.mubr.bf16.gmra.mrb[12].mxu0 %v2650_v53  ;;  %v2741_v52 = vld [vmem:[%s2928_s26 + $0x178] ss:$20 sps:$4 sm:$0xff]   ;;  %v2742_v53 = vld [vmem:[%s2928_s26 + $0x374] ss:$20 sps:$4 sm:$0xff]  }
  0x5f   : > { %1320 = vmatprep.mubr.bf16.mxu1 %v2652_v54  ;;  %1537 = vmatprep.mubr.bf16.mxu0 %v2654_v55  ;;  %v2744_v54 = vld [vmem:[%s2928_s26 + $0x370] ss:$20 sps:$4 sm:$0xff]   ;;  %v2745_v55 = vld [vmem:[%s2928_s26 + $0x1a0] ss:$20 sps:$4 sm:$0xff]  }
  0x60   : > { %2388 = vmatpush1.bf16.msra.mxu1 %v2907_v14  ;;  %v2688_v14 = vld [vmem:[%s2928_s26 + $0x170] ss:$20 sps:$4 sm:$0xff]  }
  0x61   : > { %2373 = vmatprep.subr.bf16.mxu1 %v2799_v1 }
  0x64   : > { %2389 = vmatpush1.bf16.msra.mxu1 %v2919_v16  ;;  %v2694_v16 = vld [vmem:[%s2928_s26 + $0x190] ss:$20 sps:$4 sm:$0xff]  }
  0x65   : > { %2374 = vmatprep.subr.bf16.mxu1 %v2799_v1 }
  0x66   : > { %1321 = vmatmul.mubr.bf16.gmra.mrb[16].mxu1 %v2656_v56  ;;  %1538 = vmatmul.mubr.bf16.gmra.mrb[16].mxu0 %v2657_v57  ;;  %v2748_v56 = vld [vmem:[%s2928_s26 + $0x1ec] ss:$20 sps:$4 sm:$0xff]   ;;  %v2746_v57 = vld [vmem:[%s2928_s26 + $0x1e8] ss:$20 sps:$4 sm:$0xff]  }
  0x67   : > { %1328 = vmatprep.mubr.bf16.mxu1 %v2658_v58  ;;  %1545 = vmatprep.mubr.bf16.mxu0 %v2660_v59  ;;  %v2749_v58 = vld [vmem:[%s2928_s26 + $0x1c8] ss:$20 sps:$4 sm:$0xff]  }
  0x68   : > { %2390 = vmatpush1.bf16.msra.mxu1 %v2935_v18  ;;  %v2696_v18 = vld [vmem:[%s2928_s26 + $0x1bc] ss:$20 sps:$4 sm:$0xff]   ;;  %v2750_v59 = vld [vmem:[%s2928_s26 + $0x214] ss:$20 sps:$4 sm:$0xff]  }
  0x69   : > { %2375 = vmatprep.subr.bf16.mxu1 %v2799_v1 }
  0x6c   : > { %2391 = vmatpush1.bf16.msra.mxu1 %v2948_v22  ;;  %v2702_v22 = vld [vmem:[%s2928_s26 + $0x1e4] ss:$20 sps:$4 sm:$0xff]  }
  0x6d   : > { %2376 = vmatprep.subr.bf16.mxu1 %v2799_v1 }
  0x6e   : > { %1329 = vmatmul.mubr.bf16.gmra.mrb[20].mxu1 %v2662_v60  ;;  %1546 = vmatmul.mubr.bf16.gmra.mrb[20].mxu0 %v2663_v61  ;;  %v2752_v60 = vld [vmem:[%s2928_s26 + $0x210] ss:$20 sps:$4 sm:$0xff]  }
  0x6f   : > { %1336 = vmatprep.mubr.bf16.mxu1 %v2664_v62  ;;  %1553 = vmatprep.mubr.bf16.mxu0 %v2666_v63  ;;  %v2753_v61 = vld [vmem:[%s2928_s26 + $0x1f0] ss:$20 sps:$4 sm:$0xff]   ;;  %v2756_v63 = vld [vmem:[%s2928_s26 + $0x238] ss:$20 sps:$4 sm:$0xff]  }
  0x70   : > { %2392 = vmatpush1.bf16.msra.mxu1 %v2959_v24  ;;  %v2705_v24 = vld [vmem:[%s2928_s26 + $0x10] ss:$20 sps:$4 sm:$0xff]  }
  0x71   : > { %2377 = vmatprep.subr.bf16.mxu1 %v2799_v1  ;;  %v2754_v62 = vld [vmem:[%s2928_s26 + $0x23c] ss:$20 sps:$4 sm:$0xff]  }
  0x74   : > { %2393 = vmatpush1.bf16.msra.mxu1 %v2970_v26  ;;  %v2708_v26 = vld [vmem:[%s2928_s26 + $0x208] ss:$20 sps:$4 sm:$0xff]  }
  0x75   : > { %2378 = vmatprep.subr.bf16.mxu1 %v2799_v1 }
  0x76   : > { %1337 = vmatmul.mubr.bf16.gmra.mrb[24].mxu1 %v2668_v0  ;;  %1554 = vmatmul.mubr.bf16.gmra.mrb[24].mxu0 %v2669_v2  ;;  %v2757_v0 = vld [vmem:[%s2928_s26 + $0x218] ss:$20 sps:$4 sm:$0xff]  }
  0x77   : > { %1344 = vmatprep.mubr.bf16.mxu1 %v2671_v3  ;;  %1561 = vmatprep.mubr.bf16.mxu0 %v2673_v4  ;;  %v2758_v2 = vld [vmem:[%s2928_s26 + $0x264] ss:$20 sps:$4 sm:$0xff]   ;;  %v2760_v3 = vld [vmem:[%s2928_s26 + $0x260] ss:$20 sps:$4 sm:$0xff]  }
  0x78   : > { %2394 = vmatpush1.bf16.msra.mxu1 %v2981_v28  ;;  %v2710_v28 = vld [vmem:[%s2928_s26 + $0x234] ss:$20 sps:$4 sm:$0xff]  }
  0x79   : > { %2379 = vmatprep.subr.bf16.mxu1 %v2799_v1  ;;  %v2761_v4 = vld [vmem:[%s2928_s26 + $0x240] ss:$20 sps:$4 sm:$0xff]  }
  0x7c   : > { %2395 = vmatpush1.bf16.msra.mxu1 %v2992_v30  ;;  %v2713_v30 = vld [vmem:[%s2928_s26 + $0x60] ss:$20 sps:$4 sm:$0xff]  }
  0x7d   : > { %2380 = vmatprep.subr.bf16.mxu1 %v2799_v1 }
  0x7e   : > { %1345 = vmatmul.mubr.bf16.gmra.mrb[28].mxu1 %v2675_v5  ;;  %1562 = vmatmul.mubr.bf16.gmra.mrb[28].mxu0 %v2676_v6  ;;  %v2762_v5 = vld [vmem:[%s2928_s26 + $0x28c] ss:$20 sps:$4 sm:$0xff]  }
  0x7f   : > { %1352 = vmatprep.mubr.bf16.mxu1 %v2677_v7  ;;  %1569 = vmatprep.mubr.bf16.mxu0 %v2679_v8  ;;  %v2764_v8 = vld [vmem:[%s2928_s26 + $0x288] ss:$20 sps:$4 sm:$0xff]  }
  0x80   : > { %2396 = vmatpush1.bf16.msra.mxu1 %v3003_v32  ;;  %v2716_v32 = vld [vmem:[%s2928_s26 + $0x258] ss:$20 sps:$4 sm:$0xff]  }
  0x81   : > { %2381 = vmatprep.subr.bf16.mxu1 %v2799_v1  ;;  %v2692_v1 = vld [vmem:[%s2928_s26 + $0x19c] ss:$20 sps:$4 sm:$0xff]  }
  0x84   : > { %2397 = vmatpush1.bf16.msra.mxu1 %v3014_v34  ;;  %v2718_v34 = vld [vmem:[%s2928_s26 + $0x284] ss:$20 sps:$4 sm:$0xff]  }
  0x86   : > { %1353 = vmatmul.mubr.bf16.gmra.mrb[32].mxu1 %v2681_v9  ;;  %1570 = vmatmul.mubr.bf16.gmra.mrb[32].mxu0 %v2682_v10  ;;  %v2765_v9 = vld [vmem:[%s2928_s26 + $0x268] ss:$20 sps:$4 sm:$0xff]  }
  0x87   : > { %1360 = vmatprep.mubr.bf16.mxu1 %v2683_v11  ;;  %1577 = vmatprep.mubr.bf16.mxu0 %v2685_v12  ;;  %v2766_v11 = vld [vmem:[%s2928_s26 + $0x2b4] ss:$20 sps:$4 sm:$0xff]  }
  0x8e   : > { %1361 = vmatmul.mubr.bf16.gmra.mrb[36].mxu1 %v2687_v13  ;;  %1578 = vmatmul.mubr.bf16.gmra.mrb[36].mxu0 %v2688_v14 }
  0x8f   : > { %1368 = vmatprep.mubr.bf16.mxu1 %v2690_v15  ;;  %1585 = vmatprep.mubr.bf16.mxu0 %v2692_v1  ;;  %v2768_v15 = vld [vmem:[%s2928_s26 + $0x2b0] ss:$20 sps:$4 sm:$0xff]  }
  0x90   : > { %v2769_v1 = vld [vmem:[%s2928_s26 + $0x290] ss:$20 sps:$4 sm:$0xff]  }
  0x96   : > { %1369 = vmatmul.mubr.bf16.gmra.mrb[40].mxu1 %v2694_v16  ;;  %1586 = vmatmul.mubr.bf16.gmra.mrb[40].mxu0 %v2695_v17  ;;  %v2770_v17 = vld [vmem:[%s2928_s26 + $0x2dc] ss:$20 sps:$4 sm:$0xff]  }
  0x97   : > { %1376 = vmatprep.mubr.bf16.mxu1 %v2696_v18  ;;  %1593 = vmatprep.mubr.bf16.mxu0 %v2698_v19 }
  0x9e   : > { %1377 = vmatmul.mubr.bf16.gmra.mrb[44].mxu1 %v2700_v20  ;;  %1594 = vmatmul.mubr.bf16.gmra.mrb[44].mxu0 %v2701_v21  ;;  %v2772_v21 = vld [vmem:[%s2928_s26 + $0x2d8] ss:$20 sps:$4 sm:$0xff]  }
  0x9f   : > { %1384 = vmatprep.mubr.bf16.mxu1 %v2702_v22  ;;  %2274 = vmatprep.mubr.msk.bf16.mxu0 %vm2801_vm0, %v2800_v39  ;;  %v2773_v22 = vld [vmem:[%s2928_s26 + $0x2b8] ss:$20 sps:$4 sm:$0xff]  }
  0xa6   : > { %1385 = vmatmul.mubr.bf16.gmra.mrb[48].mxu1 %v2704_v23  ;;  %2275 = vmatmul.mubr.msk.bf16.vlgmr.msra.gmra.mrb[0].mxu0 %vm1186_vm1, %v2705_v24  ;;  %v2774_v24 = vld [vmem:[%s2928_s26 + $0x304] ss:$20 sps:$4 sm:$0xff]  }
  0xa7   : > { %1392 = vmatprep.mubr.bf16.mxu1 %v2706_v25  ;;  %2278 = vmatprep.mubr.msk.bf16.mxu0 %vm2801_vm0, %v2800_v39 }
  0xae   : > { %1393 = vmatmul.mubr.bf16.gmra.mrb[52].mxu1 %v2708_v26  ;;  %2279 = vmatmul.mubr.msk.bf16.gmra.mrb[4].mxu0 %vm1186_vm1, %v2709_v27 }
  0xaf   : > { %1400 = vmatprep.mubr.bf16.mxu1 %v2710_v28  ;;  %2282 = vmatprep.mubr.msk.bf16.mxu0 %vm2801_vm0, %v2800_v39  ;;  %v2776_v28 = vld [vmem:[%s2928_s26 + $0x300] ss:$20 sps:$4 sm:$0xff]  }
  0xb6   : > { %1401 = vmatmul.mubr.bf16.gmra.mrb[56].mxu1 %v2712_v29  ;;  %2283 = vmatmul.mubr.msk.bf16.gmra.mrb[8].mxu0 %vm1186_vm1, %v2713_v30  ;;  %v2777_v29 = vld [vmem:[%s2928_s26 + $0x2e0] ss:$20 sps:$4 sm:$0xff]  }
  0xb7   : > { %1408 = vmatprep.mubr.bf16.mxu1 %v2714_v31  ;;  %2286 = vmatprep.mubr.msk.bf16.mxu0 %vm2801_vm0, %v2800_v39  ;;  %v2778_v31 = vld [vmem:[%s2928_s26 + $0x32c] ss:$20 sps:$4 sm:$0xff]  }
  0xbe   : > { %1409 = vmatmul.mubr.bf16.gmra.mrb[60].mxu1 %v2716_v32  ;;  %2287 = vmatmul.mubr.msk.bf16.gmra.mrb[12].mxu0 %vm1186_vm1, %v2717_v33 }
  0xbf   : > { %1416 = vmatprep.mubr.bf16.mxu1 %v2718_v34  ;;  %2290 = vmatprep.mubr.msk.bf16.mxu0 %vm2801_vm0, %v2800_v39 }
  0xc6   : > { %1417 = vmatmul.mubr.bf16.gmra.mrb[64].mxu1 %v2720_v35  ;;  %2291 = vmatmul.mubr.msk.bf16.gmra.mrb[16].mxu0 %vm1186_vm1, %v2721_v36  ;;  %v2780_v35 = vld [vmem:[%s2928_s26 + $0x328] ss:$20 sps:$4 sm:$0xff]  }
  0xc7   : > { %1424 = vmatprep.mubr.bf16.mxu1 %v2722_v37  ;;  %2294 = vmatprep.mubr.msk.bf16.mxu0 %vm2801_vm0, %v2800_v39  ;;  %v2781_v36 = vld [vmem:[%s2928_s26 + $0x308] ss:$20 sps:$4 sm:$0xff]  }
  0xce   : > { %1425 = vmatmul.mubr.bf16.gmra.mrb[68].mxu1 %v2724_v38  ;;  %2295 = vmatmul.mubr.msk.bf16.gmra.mrb[20].mxu0 %vm1186_vm1, %v2725_v40  ;;  %v2782_v38 = vld [vmem:[%s2928_s26 + $0x354] ss:$20 sps:$4 sm:$0xff]  }
  0xcf   : > { %1432 = vmatprep.mubr.bf16.mxu1 %v2726_v41  ;;  %2298 = vmatprep.mubr.msk.bf16.mxu0 %vm2801_vm0, %v2800_v39 }
  0xd6   : > { %1433 = vmatmul.mubr.bf16.gmra.mrb[72].mxu1 %v2728_v42  ;;  %2299 = vmatmul.mubr.msk.bf16.gmra.mrb[24].mxu0 %vm1186_vm1, %v2729_v43  ;;  %v2784_v43 = vld [vmem:[%s2928_s26 + $0x350] ss:$20 sps:$4 sm:$0xff]  }
  0xd7   : > { %1440 = vmatprep.mubr.bf16.mxu1 %v2730_v44  ;;  %2302 = vmatprep.mubr.msk.bf16.mxu0 %vm2801_vm0, %v2800_v39  ;;  %v2785_v44 = vld [vmem:[%s2928_s26 + $0x330] ss:$20 sps:$4 sm:$0xff]  }
  0xde   : > { %1441 = vmatmul.mubr.bf16.gmra.mrb[76].mxu1 %v2732_v45  ;;  %2303 = vmatmul.mubr.msk.bf16.gmra.mrb[28].mxu0 %vm1186_vm1, %v2733_v46  ;;  %v2786_v46 = vld [vmem:[%s2928_s26 + $0x37c] ss:$20 sps:$4 sm:$0xff]  }
  0xdf   : > { %1448 = vmatprep.mubr.bf16.mxu1 %v2734_v47  ;;  %2306 = vmatprep.mubr.msk.bf16.mxu0 %vm2801_vm0, %v2800_v39 }
  0xe6   : > { %1449 = vmatmul.mubr.bf16.gmra.mrb[80].mxu1 %v2736_v48  ;;  %2307 = vmatmul.mubr.msk.bf16.gmra.mrb[32].mxu0 %vm1186_vm1, %v2737_v49 }
  0xe7   : > { %1456 = vmatprep.mubr.bf16.mxu1 %v2738_v50  ;;  %2310 = vmatprep.mubr.msk.bf16.mxu0 %vm2801_vm0, %v2800_v39  ;;  %v2788_v50 = vld [vmem:[%s2928_s26 + $0x378] ss:$20 sps:$4 sm:$0xff]  }
  0xee   : > { %1457 = vmatmul.mubr.bf16.gmra.mrb[84].mxu1 %v2740_v51  ;;  %2311 = vmatmul.mubr.msk.bf16.gmra.mrb[36].mxu0 %vm1186_vm1, %v2741_v52  ;;  %v2789_v51 = vld [vmem:[%s2928_s26 + $0x358] ss:$20 sps:$4 sm:$0xff]  }
  0xef   : > { %1464 = vmatprep.mubr.bf16.mxu1 %v2742_v53  ;;  %2314 = vmatprep.mubr.msk.bf16.mxu0 %vm2801_vm0, %v2800_v39 }
  0xf6   : > { %1465 = vmatmul.mubr.bf16.gmra.mrb[88].mxu1 %v2744_v54  ;;  %2315 = vmatmul.mubr.msk.bf16.gmra.mrb[40].mxu0 %vm1186_vm1, %v2745_v55 }
  0xf7   : > { %1601 = vmatprep.mubr.bf16.mxu1 %v2748_v56  ;;  %2318 = vmatprep.mubr.msk.bf16.mxu0 %vm2801_vm0, %v2800_v39  ;;  %v2790_v56 = vld [vmem:[%s2928_s26 + $0x380] ss:$20 sps:$4 sm:$0xff]  }
  0xfe   : > { %1602 = vmatmul.mubr.bf16.vlgmr.msra.gmra.mrb[48].mxu1 %v2746_v57  ;;  %2319 = vmatmul.mubr.msk.bf16.gmra.mrb[44].mxu0 %vm1186_vm1, %v2749_v58 }
  0xff   : > { %1609 = vmatprep.mubr.bf16.mxu1 %v2750_v59  ;;  %2322 = vmatprep.mubr.msk.bf16.mxu0 %vm2801_vm0, %v2800_v39 }
 0x106   : > { %1610 = vmatmul.mubr.bf16.gmra.mrb[52].mxu1 %v2752_v60  ;;  %2323 = vmatmul.mubr.msk.bf16.gmra.mrb[48].mxu0 %vm1186_vm1, %v2753_v61 }
 0x107   : > { %1617 = vmatprep.mubr.bf16.mxu1 %v2754_v62  ;;  %2326 = vmatprep.mubr.msk.bf16.mxu0 %vm2801_vm0, %v2800_v39 }
 0x10e   : > { %1618 = vmatmul.mubr.bf16.gmra.mrb[56].mxu1 %v2756_v63  ;;  %2327 = vmatmul.mubr.msk.bf16.gmra.mrb[52].mxu0 %vm1186_vm1, %v2757_v0 }
 0x10f   : > { %1625 = vmatprep.mubr.bf16.mxu1 %v2758_v2  ;;  %2330 = vmatprep.mubr.msk.bf16.mxu0 %vm2801_vm0, %v2800_v39 }
 0x116   : > { %1626 = vmatmul.mubr.bf16.gmra.mrb[60].mxu1 %v2760_v3  ;;  %2331 = vmatmul.mubr.msk.bf16.gmra.mrb[56].mxu0 %vm1186_vm1, %v2761_v4 }
 0x117   : > { %1633 = vmatprep.mubr.bf16.mxu1 %v2762_v5  ;;  %2334 = vmatprep.mubr.msk.bf16.mxu0 %vm2801_vm0, %v2800_v39 }
 0x119   : > { %v3205_v6 = vpop.f32.mrb[0].mxu1 }
 0x11a   : > { %v1292_v7 = vpop.f32.mrb[1].mxu1 }
 0x11b   : > { %v3209_v10 = vpop.f32.mrb[2].mxu1 }
 0x11c   : > { %v1295_v12 = vpop.f32.mrb[3].mxu1 }
 0x11e   : > { %1634 = vmatmul.mubr.bf16.gmra.mrb[64].mxu1 %v2764_v8  ;;  %2335 = vmatmul.mubr.msk.bf16.gmra.mrb[60].mxu0 %vm1186_vm1, %v2765_v9 }
 0x11f   : > { %1641 = vmatprep.mubr.bf16.mxu1 %v2766_v11  ;;  %2338 = vmatprep.mubr.msk.bf16.mxu0 %vm2801_vm0, %v2800_v39 }
 0x121   : > { %v3215_v13 = vpop.f32.mrb[4].mxu1 }
 0x122   : > { %v1300_v14 = vpop.f32.mrb[5].mxu1 }
 0x123   : > { %v3219_v16 = vpop.f32.mrb[6].mxu1  ;;  %v3299_v14 = vld [vmem:[%s3428_s2] ss:$0 sm:$0xff] }
 0x124   : > { %v1303_v18 = vpop.f32.mrb[7].mxu1 }
 0x126   : > { %1642 = vmatmul.mubr.bf16.gmra.mrb[68].mxu1 %v2768_v15  ;;  %2339 = vmatmul.mubr.msk.bf16.gmra.mrb[64].mxu0 %vm1186_vm1, %v2769_v1  ;;  %v1291_v15 = vadd.f32 %v3299_v14, %v3205_v6 }
 0x127   : > { %1649 = vmatprep.mubr.bf16.mxu1 %v2770_v17  ;;  %2342 = vmatprep.mubr.msk.bf16.mxu0 %vm2801_vm0, %v2800_v39  ;;  %v1294_v17 = vadd.f32 %v3299_v14, %v3209_v10  ;;  %v1299_v10 = vadd.f32 %v3299_v14, %v3215_v13 }
 0x129   : > { %v3225_v19 = vpop.f32.mrb[8].mxu1 }
 0x12a   : > { %v1308_v20 = vpop.f32.mrb[9].mxu1 }
 0x12b   : > { %v3229_v23 = vpop.f32.mrb[10].mxu1 }
 0x12c   : > { %v1311_v25 = vpop.f32.mrb[11].mxu1 }
 0x12e   : > { %1650 = vmatmul.mubr.bf16.gmra.mrb[72].mxu1 %v2772_v21  ;;  %2343 = vmatmul.mubr.msk.bf16.gmra.mrb[68].mxu0 %vm1186_vm1, %v2773_v22 }
 0x12f   : > { %1657 = vmatprep.mubr.bf16.mxu1 %v2774_v24  ;;  %2346 = vmatprep.mubr.msk.bf16.mxu0 %vm2801_vm0, %v2800_v39 }
 0x131   : > { %v3235_v26 = vpop.f32.mrb[12].mxu1 }
 0x132   : > { %v1316_v27 = vpop.f32.mrb[13].mxu1 }
 0x133   : > { %v3239_v30 = vpop.f32.mrb[14].mxu1 }
 0x134   : > { %v1319_v32 = vpop.f32.mrb[15].mxu1 }
 0x136   : > { %1658 = vmatmul.mubr.bf16.gmra.mrb[76].mxu1 %v2776_v28  ;;  %2347 = vmatmul.mubr.msk.bf16.gmra.mrb[72].mxu0 %vm1186_vm1, %v2777_v29  ;;  %v1302_v28 = vadd.f32 %v3299_v14, %v3219_v16 }
 0x137   : > { %1665 = vmatprep.mubr.bf16.mxu1 %v2778_v31  ;;  %2350 = vmatprep.mubr.msk.bf16.mxu0 %vm2801_vm0, %v2800_v39 }
 0x139   : > { %v3245_v33 = vpop.f32.mrb[16].mxu1 }
 0x13a   : > { %v1324_v34 = vpop.f32.mrb[17].mxu1 }
 0x13b   : > { %v3249_v37 = vpop.f32.mrb[18].mxu1 }
 0x13c   : > { %v1327_v40 = vpop.f32.mrb[19].mxu1 }
 0x13d   : > { %v1307_v40 = vadd.f32 %v3299_v14, %v3225_v19 }
 0x13e   : > { %1666 = vmatmul.mubr.bf16.gmra.mrb[80].mxu1 %v2780_v35  ;;  %2351 = vmatmul.mubr.msk.bf16.gmra.mrb[76].mxu0 %vm1186_vm1, %v2781_v36 }
 0x13f   : > { %1673 = vmatprep.mubr.bf16.mxu1 %v2782_v38  ;;  %2354 = vmatprep.mubr.msk.bf16.mxu0 %vm2801_vm0, %v2800_v39 }
 0x141   : > { %v3255_v41 = vpop.f32.mrb[20].mxu1 }
 0x142   : > { %v1332_v42 = vpop.f32.mrb[21].mxu1 }
 0x143   : > { %v3259_v45 = vpop.f32.mrb[22].mxu1  ;;  %v1310_v42 = vadd.f32 %v3299_v14, %v3229_v23 }
 0x144   : > { %v1335_v47 = vpop.f32.mrb[23].mxu1 }
 0x146   : > { %1674 = vmatmul.mubr.bf16.gmra.mrb[84].mxu1 %v2784_v43  ;;  %2355 = vmatmul.mubr.msk.bf16.gmra.mrb[80].mxu0 %vm1186_vm1, %v2785_v44 }
 0x147   : > { %1681 = vmatprep.mubr.bf16.mxu1 %v2786_v46  ;;  %2358 = vmatprep.mubr.msk.bf16.mxu0 %vm2801_vm0, %v2800_v39 }
 0x149   : > { %v3265_v48 = vpop.f32.mrb[24].mxu1 }
 0x14a   : > { %v1340_v49 = vpop.f32.mrb[25].mxu1 }
 0x14b   : > { %v3269_v52 = vpop.f32.mrb[26].mxu1 }
 0x14c   : > { %v1343_v53 = vpop.f32.mrb[27].mxu1 }
 0x14d   : > { %v1318_v53 = vadd.f32 %v3299_v14, %v3239_v30 }
 0x14e   : > { %1682 = vmatmul.mubr.bf16.gmra.mrb[88].mxu1 %v2788_v50  ;;  %2359 = vmatmul.mubr.msk.bf16.gmra.mrb[84].mxu0 %vm1186_vm1, %v2789_v51  ;;  %v1315_v51 = vadd.f32 %v3299_v14, %v3235_v26 }
 0x14f   : > { %2362 = vmatprep.mubr.msk.bf16.mxu0 %vm2801_vm0, %v2800_v39 }
 0x151   : > { %v3274_v54 = vpop.f32.mrb[28].mxu1 }
 0x152   : > { %v1348_v55 = vpop.f32.mrb[29].mxu1 }
 0x153   : > { %v3277_v57 = vpop.f32.mrb[30].mxu1 }
 0x154   : > { %v1351_v58 = vpop.f32.mrb[31].mxu1 }
 0x156   : > { %2363 = vmatmul.mubr.msk.bf16.gmra.mrb[88].mxu0 %vm1186_vm1, %v2790_v56 }
 0x159   : > { %v3280_v59 = vpop.f32.mrb[32].mxu1 }
 0x15a   : > { %v1356_v60 = vpop.f32.mrb[33].mxu1 }
 0x15b   : > { %v3282_v61 = vpop.f32.mrb[34].mxu1 }
 0x15c   : > { %v1359_v62 = vpop.f32.mrb[35].mxu1 }
 0x161   : > { %v3284_v63 = vpop.f32.mrb[36].mxu1 }
 0x162   : > { %v1364_v0 = vpop.f32.mrb[37].mxu1 }
 0x163   : > { %v3286_v39 = vpop.f32.mrb[38].mxu1 }
 0x164   : > { %v1367_v2 = vpop.f32.mrb[39].mxu1 }
 0x165   : > { %v1323_v2 = vadd.f32 %v3299_v14, %v3245_v33 }
 0x169   : > { %v3288_v3 = vpop.f32.mrb[40].mxu1 }
 0x16a   : > { %v1372_v4 = vpop.f32.mrb[41].mxu1 }
 0x16b   : > { %v3290_v5 = vpop.f32.mrb[42].mxu1  ;;  %v1326_v4 = vadd.f32 %v3299_v14, %v3249_v37 }
 0x16c   : > { %v1375_v7 = vpop.f32.mrb[43].mxu1 }
 0x171   : > { %v3292_v8 = vpop.f32.mrb[44].mxu1 }
 0x172   : > { %v1380_v9 = vpop.f32.mrb[45].mxu1 }
 0x173   : > { %v3294_v11 = vpop.f32.mrb[46].mxu1 }
 0x174   : > { %v1383_v12 = vpop.f32.mrb[47].mxu1 }
 0x179   : > { %v1724_v1 = vpop.f32.mrb[0].mxu0 }
 0x17a   : > { %v2399_v18 = vadd.f32 %v1724_v1, %v1291_v15  ;;  %v2276_v20 = vpop.f32.mrb[1].mxu0 }
 0x17b   : > { %v1727_v21 = vpop.f32.mrb[2].mxu0  ;;  %v1334_v20 = vadd.f32 %v3299_v14, %v3259_v45 }
 0x17c   : > { %v1907_v22 = vmax.f32 %v2399_v18, 0.0  ;;  %v2401_v24 = vadd.f32 %v1727_v21, %v1294_v17  ;;  %v2277_v25 = vpop.f32.mrb[3].mxu0  ;;  %v1331_v18 = vadd.f32 %v3299_v14, %v3255_v41 }
 0x17e   : > { %1953 = vst [vmem:[%s3309_s20] sm:$0xff] %v1907_v22  ;;  %v1908_v6 = vmax.f32 %v2401_v24, 0.0 }
 0x180   : > { %1954 = vst [vmem:[%s3309_s20 + $0x8] sm:$0xff] %v1908_v6 }
 0x181   : > { %v1732_v27 = vpop.f32.mrb[4].mxu0 }
 0x182   : > { %v2403_v29 = vadd.f32 %v1732_v27, %v1299_v10  ;;  %v2280_v31 = vpop.f32.mrb[5].mxu0  ;;  %v1339_v27 = vadd.f32 %v3299_v14, %v3265_v48 }
 0x183   : > { %v1735_v32 = vpop.f32.mrb[6].mxu0 }
 0x184   : > { %v1909_v34 = vmax.f32 %v2403_v29, 0.0  ;;  %v2405_v35 = vadd.f32 %v1735_v32, %v1302_v28  ;;  %v2281_v36 = vpop.f32.mrb[7].mxu0  ;;  %v1342_v28 = vadd.f32 %v3299_v14, %v3269_v52 }
 0x186   : > { %1955 = vst [vmem:[%s3309_s20 + $0x10] sm:$0xff] %v1909_v34  ;;  %v1910_v38 = vmax.f32 %v2405_v35, 0.0 }
 0x188   : > { %1956 = vst [vmem:[%s3309_s20 + $0x18] sm:$0xff] %v1910_v38  ;;  %v1347_v38 = vadd.f32 %v3299_v14, %v3274_v54 }
 0x189   : > { %v1740_v13 = vpop.f32.mrb[8].mxu0 }
 0x18a   : > { %v2407_v43 = vadd.f32 %v1740_v13, %v1307_v40  ;;  %v2284_v16 = vpop.f32.mrb[9].mxu0  ;;  %v1350_v40 = vadd.f32 %v3299_v14, %v3277_v57 }
 0x18b   : > { %v1743_v44 = vpop.f32.mrb[10].mxu0 }
 0x18c   : > { %v1911_v46 = vmax.f32 %v2407_v43, 0.0  ;;  %v2409_v47 = vadd.f32 %v1743_v44, %v1310_v42  ;;  %v2285_v49 = vpop.f32.mrb[11].mxu0 }
 0x18d   : > { %v1358_v49 = vadd.f32 %v3299_v14, %v3282_v61 }
 0x18e   : > { %1957 = vst [vmem:[%s3309_s20 + $0x20] sm:$0xff] %v1911_v46  ;;  %v1912_v50 = vmax.f32 %v2409_v47, 0.0  ;;  %v1355_v47 = vadd.f32 %v3299_v14, %v3280_v59 }
 0x190   : > { %1958 = vst [vmem:[%s3309_s20 + $0x28] sm:$0xff] %v1912_v50 }
 0x191   : > { %v1748_v19 = vpop.f32.mrb[12].mxu0 }
 0x192   : > { %v2411_v55 = vadd.f32 %v1748_v19, %v1315_v51  ;;  %v2288_v23 = vpop.f32.mrb[13].mxu0 }
 0x193   : > { %v1751_v56 = vpop.f32.mrb[14].mxu0 }
 0x194   : > { %v1913_v58 = vmax.f32 %v2411_v55, 0.0  ;;  %v2413_v60 = vadd.f32 %v1751_v56, %v1318_v53  ;;  %v2289_v62 = vpop.f32.mrb[15].mxu0  ;;  %v1363_v56 = vadd.f32 %v3299_v14, %v3284_v63 }
 0x196   : > { %1959 = vst [vmem:[%s3309_s20 + $0x30] sm:$0xff] %v1913_v58  ;;  %v1914_v0 = vmax.f32 %v2413_v60, 0.0  ;;  %v1366_v58 = vadd.f32 %v3299_v14, %v3286_v39 }
 0x198   : > { %1960 = vst [vmem:[%s3309_s20 + $0x38] sm:$0xff] %v1914_v0 }
 0x199   : > { %v1756_v26 = vpop.f32.mrb[16].mxu0 }
 0x19a   : > { %v2415_v7 = vadd.f32 %v1756_v26, %v1323_v2  ;;  %v2292_v30 = vpop.f32.mrb[17].mxu0 }
 0x19b   : > { %v1759_v9 = vpop.f32.mrb[18].mxu0  ;;  %v1374_v30 = vadd.f32 %v3299_v14, %v3290_v5  ;;  %v1382_v5 = vadd.f32 %v3299_v14, %v3294_v11 }
 0x19c   : > { %v1915_v12 = vmax.f32 %v2415_v7, 0.0  ;;  %v2417_v15 = vadd.f32 %v1759_v9, %v1326_v4  ;;  %v2293_v1 = vpop.f32.mrb[19].mxu0  ;;  %v1371_v7 = vadd.f32 %v3299_v14, %v3288_v3 }
 0x19e   : > { %1961 = vst [vmem:[%s3309_s20 + $0x40] sm:$0xff] %v1915_v12  ;;  %v1916_v17 = vmax.f32 %v2417_v15, 0.0 }
 0x1a0   : > { %1962 = vst [vmem:[%s3309_s20 + $0x48] sm:$0xff] %v1916_v17 }
 0x1a1   : > { %v1764_v33 = vpop.f32.mrb[20].mxu0 }
 0x1a2   : > { %v2419_v21 = vadd.f32 %v1764_v33, %v1331_v18  ;;  %v2296_v37 = vpop.f32.mrb[21].mxu0  ;;  %v1379_v33 = vadd.f32 %v3299_v14, %v3292_v8 }
 0x1a3   : > { %v1767_v22 = vpop.f32.mrb[22].mxu0 }
 0x1a4   : > { %v1917_v24 = vmax.f32 %v2419_v21, 0.0  ;;  %v2421_v25 = vadd.f32 %v1767_v22, %v1334_v20  ;;  %v2297_v6 = vpop.f32.mrb[23].mxu0 }
 0x1a6   : > { %1963 = vst [vmem:[%s3309_s20 + $0x50] sm:$0xff] %v1917_v24  ;;  %v1918_v10 = vmax.f32 %v2421_v25, 0.0 }
 0x1a8   : > { %1964 = vst [vmem:[%s3309_s20 + $0x58] sm:$0xff] %v1918_v10 }
 0x1a9   : > { %v1772_v41 = vpop.f32.mrb[24].mxu0 }
 0x1aa   : > { %v2423_v29 = vadd.f32 %v1772_v41, %v1339_v27  ;;  %v2300_v45 = vpop.f32.mrb[25].mxu0 }
 0x1ab   : > { %v1775_v31 = vpop.f32.mrb[26].mxu0 }
 0x1ac   : > { %v1919_v32 = vmax.f32 %v2423_v29, 0.0  ;;  %v2425_v34 = vadd.f32 %v1775_v31, %v1342_v28  ;;  %v2301_v35 = vpop.f32.mrb[27].mxu0 }
 0x1ae   : > { %1965 = vst [vmem:[%s3309_s20 + $0x60] sm:$0xff] %v1919_v32  ;;  %v1920_v36 = vmax.f32 %v2425_v34, 0.0 }
 0x1b0   : > { %1966 = vst [vmem:[%s3309_s20 + $0x68] sm:$0xff] %v1920_v36 }
 0x1b1   : > { %v1780_v48 = vpop.f32.mrb[28].mxu0 }
 0x1b2   : > { %v2427_v13 = vadd.f32 %v1780_v48, %v1347_v38  ;;  %v2304_v52 = vpop.f32.mrb[29].mxu0 }
 0x1b3   : > { %v1783_v42 = vpop.f32.mrb[30].mxu0 }
 0x1b4   : > { %v1921_v43 = vmax.f32 %v2427_v13, 0.0  ;;  %v2429_v16 = vadd.f32 %v1783_v42, %v1350_v40  ;;  %v2305_v44 = vpop.f32.mrb[31].mxu0 }
 0x1b6   : > { %1967 = vst [vmem:[%s3309_s20 + $0x70] sm:$0xff] %v1921_v43  ;;  %v1922_v46 = vmax.f32 %v2429_v16, 0.0 }
 0x1b8   : > { %1968 = vst [vmem:[%s3309_s20 + $0x78] sm:$0xff] %v1922_v46 }
 0x1b9   : > { %v1788_v54 = vpop.f32.mrb[32].mxu0 }
 0x1ba   : > { %v2431_v50 = vadd.f32 %v1788_v54, %v1355_v47  ;;  %v2308_v57 = vpop.f32.mrb[33].mxu0 }
 0x1bb   : > { %v1791_v51 = vpop.f32.mrb[34].mxu0 }
 0x1bc   : > { %v1923_v19 = vmax.f32 %v2431_v50, 0.0  ;;  %v2433_v53 = vadd.f32 %v1791_v51, %v1358_v49  ;;  %v2309_v55 = vpop.f32.mrb[35].mxu0 }
 0x1be   : > { %1969 = vst [vmem:[%s3309_s20 + $0x80] sm:$0xff] %v1923_v19  ;;  %v1924_v23 = vmax.f32 %v2433_v53, 0.0 }
 0x1c0   : > { %1970 = vst [vmem:[%s3309_s20 + $0x88] sm:$0xff] %v1924_v23 }
 0x1c1   : > { %v1796_v59 = vpop.f32.mrb[36].mxu0 }
 0x1c2   : > { %v2435_v60 = vadd.f32 %v1796_v59, %v1363_v56  ;;  %v2312_v61 = vpop.f32.mrb[37].mxu0 }
 0x1c3   : > { %v1799_v62 = vpop.f32.mrb[38].mxu0 }
 0x1c4   : > { %v1925_v0 = vmax.f32 %v2435_v60, 0.0  ;;  %v2437_v2 = vadd.f32 %v1799_v62, %v1366_v58  ;;  %v2313_v26 = vpop.f32.mrb[39].mxu0 }
 0x1c6   : > { %1971 = vst [vmem:[%s3309_s20 + $0x90] sm:$0xff] %v1925_v0  ;;  %v1926_v4 = vmax.f32 %v2437_v2, 0.0 }
 0x1c8   : > { %1972 = vst [vmem:[%s3309_s20 + $0x98] sm:$0xff] %v1926_v4 }
 0x1c9   : > { %v1804_v63 = vpop.f32.mrb[40].mxu0 }
 0x1ca   : > { %v2439_v9 = vadd.f32 %v1804_v63, %v1371_v7  ;;  %v2316_v39 = vpop.f32.mrb[41].mxu0 }
 0x1cb   : > { %v1807_v12 = vpop.f32.mrb[42].mxu0 }
 0x1cc   : > { %v1927_v15 = vmax.f32 %v2439_v9, 0.0  ;;  %v2441_v1 = vadd.f32 %v1807_v12, %v1374_v30  ;;  %v2317_v17 = vpop.f32.mrb[43].mxu0 }
 0x1ce   : > { %1973 = vst [vmem:[%s3309_s20 + $0xa0] sm:$0xff] %v1927_v15  ;;  %v1928_v18 = vmax.f32 %v2441_v1, 0.0 }
 0x1d0   : > { %1974 = vst [vmem:[%s3309_s20 + $0xa8] sm:$0xff] %v1928_v18 }
 0x1d1   : > { %v1603_v3 = vpop.f32.mrb[48].mxu1  ;;  %v1812_v20 = vpop.f32.mrb[44].mxu0 }
 0x1d2   : > { %v1605_v21 = vpop.f32.mrb[49].mxu1  ;;  %v2443_v37 = vadd.f32 %v1812_v20, %v1379_v33  ;;  %v2320_v22 = vpop.f32.mrb[45].mxu0  ;;  %v2446_v8 = vadd.f32 %v3299_v14, %v1603_v3 }
 0x1d3   : > { %v1606_v24 = vpop.f32.mrb[50].mxu1  ;;  %v1815_v25 = vpop.f32.mrb[46].mxu0 }
 0x1d4   : > { %v1608_v6 = vpop.f32.mrb[51].mxu1  ;;  %v1929_v10 = vmax.f32 %v2443_v37, 0.0  ;;  %v2445_v27 = vadd.f32 %v1815_v25, %v1382_v5  ;;  %v2321_v41 = vpop.f32.mrb[47].mxu0  ;;  %v2448_v11 = vadd.f32 %v3299_v14, %v1606_v24 }
 0x1d6   : > { %1975 = vst [vmem:[%s3309_s20 + $0xb0] sm:$0xff] %v1929_v10  ;;  %v1930_v28 = vmax.f32 %v2445_v27, 0.0 }
 0x1d8   : > { %1976 = vst [vmem:[%s3309_s20 + $0xb8] sm:$0xff] %v1930_v28 }
 0x1d9   : > { %v1611_v29 = vpop.f32.mrb[52].mxu1  ;;  %v1820_v45 = vpop.f32.mrb[48].mxu0 }
 0x1da   : > { %v1613_v31 = vpop.f32.mrb[53].mxu1  ;;  %v2447_v32 = vadd.f32 %v2446_v8, %v1820_v45  ;;  %v2324_v34 = vpop.f32.mrb[49].mxu0  ;;  %v2450_v42 = vadd.f32 %v3299_v14, %v1611_v29 }
 0x1db   : > { %v1614_v35 = vpop.f32.mrb[54].mxu1  ;;  %v1823_v36 = vpop.f32.mrb[50].mxu0 }
 0x1dc   : > { %v1616_v38 = vpop.f32.mrb[55].mxu1  ;;  %v1931_v48 = vmax.f32 %v2447_v32, 0.0  ;;  %v2449_v40 = vadd.f32 %v2448_v11, %v1823_v36  ;;  %v2325_v13 = vpop.f32.mrb[51].mxu0  ;;  %v2452_v46 = vadd.f32 %v3299_v14, %v1614_v35 }
 0x1de   : > { %1977 = vst [vmem:[%s3309_s20 + $0xc0] sm:$0xff] %v1931_v48  ;;  %v1932_v52 = vmax.f32 %v2449_v40, 0.0 }
 0x1e0   : > { %1978 = vst [vmem:[%s3309_s20 + $0xc8] sm:$0xff] %v1932_v52 }
 0x1e1   : > { %v1619_v43 = vpop.f32.mrb[56].mxu1  ;;  %v1828_v16 = vpop.f32.mrb[52].mxu0 }
 0x1e2   : > { %v1621_v44 = vpop.f32.mrb[57].mxu1  ;;  %v2451_v47 = vadd.f32 %v2450_v42, %v1828_v16  ;;  %v2328_v54 = vpop.f32.mrb[53].mxu0  ;;  %v2454_v23 = vadd.f32 %v3299_v14, %v1619_v43 }
 0x1e3   : > { %v1622_v49 = vpop.f32.mrb[58].mxu1  ;;  %v1831_v50 = vpop.f32.mrb[54].mxu0 }
 0x1e4   : > { %v1624_v57 = vpop.f32.mrb[59].mxu1  ;;  %v1933_v51 = vmax.f32 %v2451_v47, 0.0  ;;  %v2453_v19 = vadd.f32 %v2452_v46, %v1831_v50  ;;  %v2329_v53 = vpop.f32.mrb[55].mxu0  ;;  %v2456_v60 = vadd.f32 %v3299_v14, %v1622_v49 }
 0x1e6   : > { %1979 = vst [vmem:[%s3309_s20 + $0xd0] sm:$0xff] %v1933_v51  ;;  %v1934_v55 = vmax.f32 %v2453_v19, 0.0 }
 0x1e8   : > { %1980 = vst [vmem:[%s3309_s20 + $0xd8] sm:$0xff] %v1934_v55 }
 0x1e9   : > { %v1627_v56 = vpop.f32.mrb[60].mxu1  ;;  %v1836_v59 = vpop.f32.mrb[56].mxu0 }
 0x1ea   : > { %v1629_v58 = vpop.f32.mrb[61].mxu1  ;;  %v2455_v61 = vadd.f32 %v2454_v23, %v1836_v59  ;;  %v2332_v62 = vpop.f32.mrb[57].mxu0  ;;  %v2458_v9 = vadd.f32 %v3299_v14, %v1627_v56 }
 0x1eb   : > { %v1630_v0 = vpop.f32.mrb[62].mxu1  ;;  %v1839_v2 = vpop.f32.mrb[58].mxu0 }
 0x1ec   : > { %v1632_v26 = vpop.f32.mrb[63].mxu1  ;;  %v1935_v4 = vmax.f32 %v2455_v61, 0.0  ;;  %v2457_v7 = vadd.f32 %v2456_v60, %v1839_v2  ;;  %v2333_v63 = vpop.f32.mrb[59].mxu0  ;;  %v2460_v1 = vadd.f32 %v3299_v14, %v1630_v0 }
 0x1ee   : > { %1981 = vst [vmem:[%s3309_s20 + $0xe0] sm:$0xff] %v1935_v4  ;;  %v1936_v30 = vmax.f32 %v2457_v7, 0.0 }
 0x1f0   : > { %1982 = vst [vmem:[%s3309_s20 + $0xe8] sm:$0xff] %v1936_v30 }
 0x1f1   : > { %v1635_v39 = vpop.f32.mrb[64].mxu1  ;;  %v1844_v12 = vpop.f32.mrb[60].mxu0 }
 0x1f2   : > { %v1637_v15 = vpop.f32.mrb[65].mxu1  ;;  %v2459_v17 = vadd.f32 %v2458_v9, %v1844_v12  ;;  %v2336_v18 = vpop.f32.mrb[61].mxu0  ;;  %v2462_v24 = vadd.f32 %v3299_v14, %v1635_v39 }
 0x1f3   : > { %v1638_v33 = vpop.f32.mrb[66].mxu1  ;;  %v1847_v3 = vpop.f32.mrb[62].mxu0 }
 0x1f4   : > { %v1640_v20 = vpop.f32.mrb[67].mxu1  ;;  %v1937_v21 = vmax.f32 %v2459_v17, 0.0  ;;  %v2461_v5 = vadd.f32 %v2460_v1, %v1847_v3  ;;  %v2337_v37 = vpop.f32.mrb[63].mxu0  ;;  %v2464_v27 = vadd.f32 %v3299_v14, %v1638_v33 }
 0x1f6   : > { %1983 = vst [vmem:[%s3309_s20 + $0xf0] sm:$0xff] %v1937_v21  ;;  %v1938_v22 = vmax.f32 %v2461_v5, 0.0 }
 0x1f8   : > { %1984 = vst [vmem:[%s3309_s20 + $0xf8] sm:$0xff] %v1938_v22 }
 0x1f9   : > { %v1643_v25 = vpop.f32.mrb[68].mxu1  ;;  %v1852_v6 = vpop.f32.mrb[64].mxu0 }
 0x1fa   : > { %v1645_v10 = vpop.f32.mrb[69].mxu1  ;;  %v2463_v41 = vadd.f32 %v2462_v24, %v1852_v6  ;;  %v2340_v28 = vpop.f32.mrb[65].mxu0  ;;  %v2466_v35 = vadd.f32 %v3299_v14, %v1643_v25 }
 0x1fb   : > { %v1646_v8 = vpop.f32.mrb[70].mxu1  ;;  %v1855_v29 = vpop.f32.mrb[66].mxu0 }
 0x1fc   : > { %v1648_v45 = vpop.f32.mrb[71].mxu1  ;;  %v1939_v31 = vmax.f32 %v2463_v41, 0.0  ;;  %v2465_v11 = vadd.f32 %v2464_v27, %v1855_v29  ;;  %v2341_v32 = vpop.f32.mrb[67].mxu0  ;;  %v2468_v40 = vadd.f32 %v3299_v14, %v1646_v8 }
 0x1fe   : > { %1985 = vst [vmem:[%s3309_s20 + $0x100] sm:$0xff] %v1939_v31  ;;  %v1940_v34 = vmax.f32 %v2465_v11, 0.0 }
 0x200   : > { %1986 = vst [vmem:[%s3309_s20 + $0x108] sm:$0xff] %v1940_v34 }
 0x201   : > { %v1651_v36 = vpop.f32.mrb[72].mxu1  ;;  %v1860_v38 = vpop.f32.mrb[68].mxu0 }
 0x202   : > { %v1653_v48 = vpop.f32.mrb[73].mxu1  ;;  %v2467_v13 = vadd.f32 %v2466_v35, %v1860_v38  ;;  %v2344_v52 = vpop.f32.mrb[69].mxu0  ;;  %v2470_v49 = vadd.f32 %v3299_v14, %v1651_v36 }
 0x203   : > { %v1654_v42 = vpop.f32.mrb[74].mxu1  ;;  %v1863_v43 = vpop.f32.mrb[70].mxu0 }
 0x204   : > { %v1656_v16 = vpop.f32.mrb[75].mxu1  ;;  %v1941_v44 = vmax.f32 %v2467_v13, 0.0  ;;  %v2469_v46 = vadd.f32 %v2468_v40, %v1863_v43  ;;  %v2345_v47 = vpop.f32.mrb[71].mxu0  ;;  %v2472_v19 = vadd.f32 %v3299_v14, %v1654_v42 }
 0x206   : > { %1987 = vst [vmem:[%s3309_s20 + $0x110] sm:$0xff] %v1941_v44  ;;  %v1942_v54 = vmax.f32 %v2469_v46, 0.0 }
 0x208   : > { %1988 = vst [vmem:[%s3309_s20 + $0x118] sm:$0xff] %v1942_v54 }
 0x209   : > { %v1659_v50 = vpop.f32.mrb[76].mxu1  ;;  %v1868_v57 = vpop.f32.mrb[72].mxu0 }
 0x20a   : > { %v1661_v51 = vpop.f32.mrb[77].mxu1  ;;  %v2471_v53 = vadd.f32 %v2470_v49, %v1868_v57  ;;  %v2348_v55 = vpop.f32.mrb[73].mxu0  ;;  %v2474_v0 = vadd.f32 %v3299_v14, %v1659_v50 }
 0x20b   : > { %v1662_v23 = vpop.f32.mrb[78].mxu1  ;;  %v1871_v56 = vpop.f32.mrb[74].mxu0 }
 0x20c   : > { %v1664_v59 = vpop.f32.mrb[79].mxu1  ;;  %v1943_v58 = vmax.f32 %v2471_v53, 0.0  ;;  %v2473_v60 = vadd.f32 %v2472_v19, %v1871_v56  ;;  %v2349_v61 = vpop.f32.mrb[75].mxu0  ;;  %v2476_v7 = vadd.f32 %v3299_v14, %v1662_v23 }
 0x20e   : > { %1989 = vst [vmem:[%s3309_s20 + $0x120] sm:$0xff] %v1943_v58  ;;  %v1944_v62 = vmax.f32 %v2473_v60, 0.0 }
 0x210   : > { %1990 = vst [vmem:[%s3309_s20 + $0x128] sm:$0xff] %v1944_v62 }
 0x211   : > { %v1667_v2 = vpop.f32.mrb[80].mxu1  ;;  %v1876_v26 = vpop.f32.mrb[76].mxu0 }
 0x212   : > { %v1669_v4 = vpop.f32.mrb[81].mxu1  ;;  %v2475_v63 = vadd.f32 %v2474_v0, %v1876_v26  ;;  %v2352_v30 = vpop.f32.mrb[77].mxu0  ;;  %v2478_v33 = vadd.f32 %v3299_v14, %v1667_v2 }
 0x213   : > { %v1670_v9 = vpop.f32.mrb[82].mxu1  ;;  %v1879_v39 = vpop.f32.mrb[78].mxu0 }
 0x214   : > { %v1672_v12 = vpop.f32.mrb[83].mxu1  ;;  %v1945_v15 = vmax.f32 %v2475_v63, 0.0  ;;  %v2477_v1 = vadd.f32 %v2476_v7, %v1879_v39  ;;  %v2353_v17 = vpop.f32.mrb[79].mxu0  ;;  %v2480_v5 = vadd.f32 %v3299_v14, %v1670_v9 }
 0x216   : > { %1991 = vst [vmem:[%s3309_s20 + $0x130] sm:$0xff] %v1945_v15  ;;  %v1946_v18 = vmax.f32 %v2477_v1, 0.0 }
 0x218   : > { %1992 = vst [vmem:[%s3309_s20 + $0x138] sm:$0xff] %v1946_v18 }
 0x219   : > { %v1675_v3 = vpop.f32.mrb[84].mxu1  ;;  %v1884_v20 = vpop.f32.mrb[80].mxu0 }
 0x21a   : > { %v1677_v21 = vpop.f32.mrb[85].mxu1  ;;  %v2479_v37 = vadd.f32 %v2478_v33, %v1884_v20  ;;  %v2356_v22 = vpop.f32.mrb[81].mxu0  ;;  %v2482_v8 = vadd.f32 %v3299_v14, %v1675_v3 }
 0x21b   : > { %v1678_v24 = vpop.f32.mrb[86].mxu1  ;;  %v1887_v25 = vpop.f32.mrb[82].mxu0 }
 0x21c   : > { %v1680_v6 = vpop.f32.mrb[87].mxu1  ;;  %v1947_v10 = vmax.f32 %v2479_v37, 0.0  ;;  %v2481_v27 = vadd.f32 %v2480_v5, %v1887_v25  ;;  %v2357_v41 = vpop.f32.mrb[83].mxu0  ;;  %v2484_v11 = vadd.f32 %v3299_v14, %v1678_v24 }
 0x21e   : > { %1993 = vst [vmem:[%s3309_s20 + $0x140] sm:$0xff] %v1947_v10  ;;  %v1948_v28 = vmax.f32 %v2481_v27, 0.0 }
 0x220   : > { %1994 = vst [vmem:[%s3309_s20 + $0x148] sm:$0xff] %v1948_v28 }
 0x221   : > { %v1683_v29 = vpop.f32.mrb[88].mxu1  ;;  %v1892_v45 = vpop.f32.mrb[84].mxu0 }
 0x222   : > { %v1685_v31 = vpop.f32.mrb[89].mxu1  ;;  %v2483_v32 = vadd.f32 %v2482_v8, %v1892_v45  ;;  %v2360_v34 = vpop.f32.mrb[85].mxu0  ;;  %v2486_v42 = vadd.f32 %v3299_v14, %v1683_v29 }
 0x223   : > { %v1686_v35 = vpop.f32.mrb[90].mxu1  ;;  %v1895_v36 = vpop.f32.mrb[86].mxu0 }
 0x224   : > { %v1688_v38 = vpop.f32.mrb[91].mxu1  ;;  %v1949_v48 = vmax.f32 %v2483_v32, 0.0  ;;  %v2485_v40 = vadd.f32 %v2484_v11, %v1895_v36  ;;  %v2361_v13 = vpop.f32.mrb[87].mxu0  ;;  %v2488_v16 = vadd.f32 %v3299_v14, %v1686_v35 }
 0x226   : > { %1995 = vst [vmem:[%s3309_s20 + $0x150] sm:$0xff] %v1949_v48  ;;  %v1950_v52 = vmax.f32 %v2485_v40, 0.0 }
 0x228   : > { %1996 = vst [vmem:[%s3309_s20 + $0x158] sm:$0xff] %v1950_v52 }
 0x229   : > { %v1900_v43 = vpop.f32.mrb[88].mxu0 }
 0x22a   : > { %v2487_v44 = vadd.f32 %v2486_v42, %v1900_v43  ;;  %v2364_v46 = vpop.f32.mrb[89].mxu0 }
 0x22b   : > { %v1903_v47 = vpop.f32.mrb[90].mxu0 }
 0x22c   : > { %v1951_v54 = vmax.f32 %v2487_v44, 0.0  ;;  %v2489_v49 = vadd.f32 %v2488_v16, %v1903_v47  ;;  %v2365_v50 = vpop.f32.mrb[91].mxu0 }
 0x22e   : > { %1997 = vst [vmem:[%s3309_s20 + $0x160] sm:$0xff] %v1951_v54  ;;  %v1952_v57 = vmax.f32 %v2489_v49, 0.0 }
 0x230   : > { %1998 = vst [vmem:[%s3309_s20 + $0x168] sm:$0xff] %v1952_v57 }
 0x231 PF: > { %s13_s12 = sadd.s32 1, %s2797_s12  }
 0x232   : > { %p10_p4 = scmp.ge.s32.totalorder %s13_s12, 4  }
 0x234   :  { %12 = sbr.rel (!%p10_p4) target bundleno = 1 (0x1), region = 62 }

// kernel: squeeze.1
= control target key start
LH: loop header
LB: loop body
LE: loop exit
PB: predicated region body
PF: predicated region fallthrough
CT: control target
= control target key end

     0   :  { %s110_s0 = inlined_call_operand.vmem [shape: s32[8], index: 0, kind: input, shape index: {}]   ;;  %s111_s1 = inlined_call_operand.hbm [shape: s32[2,2,2], index: 1, kind: output, shape index: {}]  }
   0x1   :  { %v5_v0 = vld [vmem:[%s110_s0] sm:$0x1] }
   0x2   :  { %6 = vst [vmem:[#allocation3] sm:$0x1] %v5_v0 }
   0x3   :  { %2 = vsyncpa [#allocation1], 0  ;;  %vm8_vm0 = vcmask 15360   ;;  %s77_s0 = smov 126   ;;  %s78_s8 = smov 122  }
   0x4   :  { %s79_s9 = smov 124   ;;  %s80_s10 = smov [#allocation0]  }
   0x5   :  { %s43_s11 = sshll.u32 %s80_s10, 4  ;;  %s44_s11 = int_to_ptr.vmem [resolvable:$true] %s43_s11 }
   0x6   :  { %s53_s12 = scalar_lea.vmem %s44_s11, 64  ;;  %p58_p1 = scmp.lt.s32.totalorder %s44_s11, %s44_s11 }
   0x7   :  { %p54_p0 = scmp.ne.s32.totalorder %s44_s11, %s53_s12  ;;  %p59_p2 = scmp.lt.s32.totalorder %s53_s12, %s53_s12 }
   0x9   :  { %v10_v1 = vld [vmem:[#allocation3] sm:$0x1]   ;;  %p60_p3 = por %p59_p2, %p58_p1 }
   0xa   :  { %v22_v2 = vld [vmem:[#allocation3] sm:$0x1]   ;;  %11 = vrot.lane.b32.xlu0 %v10_v1, %s77_s0 }
   0xb   :  { %23 = vrot.lane.b32.xlu1 %v22_v2, %s78_s8  ;;  %v7_v3 = vld [vmem:[#allocation3] sm:$0x1]   ;;  %p61_p4 = pnand %p60_p3, %p54_p0 }
   0xc   :  { %v16_v4 = vld [vmem:[#allocation3] sm:$0x1]   ;;  %9 = vst.msk [vmem:[#allocation2] sm:$0x1] %vm8_vm0, %v7_v3  }
   0xe   :  { %17 = vrot.lane.b32.xlu0 %v16_v4, %s79_s9 }
  0x7c   :  { %v12_v5 = vpop.permute.xlu0 %11  }
  0x7d   :  { %v24_v6 = vpop.permute.xlu1 %23   ;;  %15 = vst.msk [vmem:[#allocation2 + $0x1] sm:$0x1] %vm8_vm0, %v12_v5  }
  0x7e   :  { %27 = vst.msk [vmem:[#allocation2 + $0x9] sm:$0x1] %vm8_vm0, %v24_v6  }
  0x80   :  { %v18_v7 = vpop.permute.xlu0 %17  }
  0x81   :  { %21 = vst.msk [vmem:[#allocation2 + $0x8] sm:$0x1] %vm8_vm0, %v18_v7  }
  0x84   :  { %v31_v8 = vld [vmem:[#allocation2] sm:$0x3] }
  0x85   :  { %33 = vst [vmem:[#allocation0] sm:$0x3] %v31_v8 }
  0x88   :  { %v35_v9 = vld [vmem:[#allocation2 + $0x8] sm:$0x3] }
  0x89   :  { %38 = vst [vmem:[#allocation0 + $0x2] sm:$0x3] %v35_v9 }
  0x8a   :  { %64 = shalt.err (!%p61_p4)
}
  0x8b   :  { %s65_s15 = scalar_lea.hbm %s111_s1, 64 }
  0x8c   :  { %p66_p5 = scmp.ne.s32.totalorder %s111_s1, %s65_s15  ;;  %p69_p6 = scmp.lt.u32.totalorder %s65_s15, %s111_s1 }
  0x8e   :  { %p71_p7 = pnand %p69_p6, %p66_p5 }
  0x90   :  { %74 = shalt.err (!%p71_p7)
}
  0x91   :  { %46 = dma.vmem_to_hbm [thread:$0]  %s44_s11, 64, %s111_s1, [#allocation1]  }
  0x92   :  { %75 = dma.done.wait [#allocation1], 64  }
  0x93   :  { %76 = vsyncadd [#allocation1], 4294967232 }
  0x94   :  { %48 = vsyncpa [#allocation1], 1 }

</bundles_post_ra>
